<compile_context>
chip_gen: v7x
topology: tpu7x:2x2x1
jax: 0.10.0
libtpu: 0.0.40
codegen_flags: <defaults>
</compile_context>

<pallas_src>
import jax
import jax.numpy as jnp
from jax.experimental import pallas as pl
from jax.experimental.pallas import tpu as pltpu

BN_EPS = 1e-5
SEQ_LEN = 1000      # PyTorch module hard-codes MaxPool2d((1000 + pooling, 1))
IN_WIDTH = 20       # first conv consumes the full width-20 axis
C_MID = 128
C_HEAD = 128 * 3


def _n_mid(layer_info):
    return sum(len(s) - 1 for s in layer_info)


def _n_tmp(layer_info):
    d = max(len(s) for s in layer_info)
    return 0 if d <= 1 else (1 if d == 2 else 2)


# ----------------------------------------------------------------------------
# Fused whole-network kernel (one grid step == one sample)
# ----------------------------------------------------------------------------
def _build_kernel(layer_info, valid_len):
    ns = len(layer_info)
    n_mid = _n_mid(layer_info)
    n_tmp = _n_tmp(layer_info)

    def kernel(*refs):
        x_ref = refs[0]                                  # (1000, k_max*20) f32
        w0_ref = refs[1]                                 # (k_max*20, ns*128) bf16
        w_mid_refs = refs[2:2 + n_mid]                   # (k*128, 128) bf16 each
        wh_ref = refs[2 + n_mid]                         # (ns*128, 384) bf16
        bn_ref = refs[3 + n_mid]                         # (n_vec, 2, padw) f32
        out_ref = refs[4 + n_mid]                        # (1, 384) f32
        cat_ref = refs[5 + n_mid]                        # (1000, ns*128) f32 scratch
        tmp_refs = refs[6 + n_mid:6 + n_mid + n_tmp]     # (1000, 128) f32 scratch

        def bn_scale_shift(idx, cols):
            return bn_ref[idx, 0:1, 0:cols], bn_ref[idx, 1:2, 0:cols]

        # ---- layer 0 of every subnet fused into one wide dot ---------------
        sc0, sh0 = bn_scale_shift(0, ns * C_MID)
        y0 = jnp.dot(x_ref[...].astype(jnp.bfloat16), w0_ref[...],
                     preferred_element_type=jnp.float32)        # (1000, ns*128)
        y0 = jnp.maximum(y0 * sc0 + sh0, 0.0)

        # ---- remaining conv layers; final activations land in cat_ref ------
        mid_i, bn_i = 0, 1
        for s, sub in enumerate(layer_info):
            c0, c1 = s * C_MID, (s + 1) * C_MID
            if len(sub) == 1:
                cat_ref[:, c0:c1] = y0[:, c0:c1]
                continue
            tmp_refs[0][...] = y0[:, c0:c1]
            cur = tmp_refs[0]
            v = SEQ_LEN - (sub[0] - 1)          # valid rows currently in `cur`
            for li, k in enumerate(sub[1:], start=1):
                n_out = v - (k - 1)
                assert n_out >= 1
                if k == 1:
                    lhs = cur[0:n_out, :]
                else:
                    # im2col over taps -> single wide-K MXU dot (K = k*128).
                    lhs = jnp.concatenate(
                        [cur[j:j + n_out, :] for j in range(k)], axis=1)
                lhs = lhs.astype(jnp.bfloat16)
                sc, sh = bn_scale_shift(bn_i, C_MID)
                y = jnp.dot(lhs, w_mid_refs[mid_i][...],
                            preferred_element_type=jnp.float32)  # (n_out, 128)
                y = jnp.maximum(y * sc + sh, 0.0)
                if li == len(sub) - 1:
                    assert n_out == valid_len
                    cat_ref[0:n_out, c0:c1] = y
                else:
                    nxt = tmp_refs[1] if cur is tmp_refs[0] else tmp_refs[0]
                    nxt[0:n_out, :] = y
                    cur = nxt
                v = n_out
                mid_i += 1
                bn_i += 1

        # ---- head: 1x1 conv over the "concat" + BN + ReLU + height max -----
        sc_h, sh_h = bn_scale_shift(bn_i, C_HEAD)
        lhs = cat_ref[0:valid_len, :].astype(jnp.bfloat16)       # (valid, ns*128)
        y = jnp.dot(lhs, wh_ref[...], preferred_element_type=jnp.float32)
        y = jnp.maximum(y * sc_h + sh_h, 0.0)
        out_ref[...] = jnp.max(y, axis=0, keepdims=True)         # (1, 384)

    return kernel


# ----------------------------------------------------------------------------
# Deterministic parameter init (Conv + BatchNorm folded to scale/shift)
# ----------------------------------------------------------------------------
def init_conv_bn(key, k, c_in, c_out):
    ks = jax.random.split(key, 6)
    w = jax.random.normal(ks[0], (k, c_in, c_out), jnp.float32) / jnp.sqrt(k * c_in)
    b = 0.05 * jax.random.normal(ks[1], (c_out,), jnp.float32)
    gamma = 1.0 + 0.1 * jax.random.normal(ks[2], (c_out,), jnp.float32)
    beta = 0.1 * jax.random.normal(ks[3], (c_out,), jnp.float32)
    mean = 0.1 * jax.random.normal(ks[4], (c_out,), jnp.float32)
    var = 0.9 + 0.1 * jnp.abs(jax.random.normal(ks[5], (c_out,), jnp.float32))
    scale = gamma / jnp.sqrt(var + BN_EPS)     # BN (inference) scale
    shift = beta + scale * (b - mean)          # BN shift with conv bias folded
    return w, scale, shift


class PallasCNN:
    def __init__(self, layer_info, key):
        self.layer_info = [list(s) for s in layer_info]
        pooling_sizes = [sum(-k + 1 for k in sub) for sub in self.layer_info]
        if len(set(pooling_sizes)) != 1:
            raise ValueError("Different kernel sizes between subnetworks")
        self.pooling_size = pooling_sizes[0]
        self.valid_len = SEQ_LEN + self.pooling_size
        assert self.valid_len >= 1
        self.num_sub = len(self.layer_info)

        # Raw f32 params (used by the pure-JAX reference as well).
        self.subnet_params = []
        for sub in self.layer_info:
            layers = []
            for i, kk in enumerate(sub):
                key, k2 = jax.random.split(key)
                c_in = IN_WIDTH if i == 0 else C_MID
                layers.append((kk, init_conv_bn(k2, kk, c_in, C_MID)))
            self.subnet_params.append(layers)
        key, k2 = jax.random.split(key)
        wh, hs, hb = init_conv_bn(k2, 1, C_MID * self.num_sub, C_HEAD)
        self.head = (wh[0], hs, hb)            # (ns*128, 384) 1x1-conv weight

        self._prepare_fused_params()

    def _prepare_fused_params(self):
        ns = self.num_sub
        self.k0_max = max(sub[0] for sub in self.layer_info)
        k1 = self.k0_max * IN_WIDTH

        # Fused first-layer weight: zero-pad each subnet to k0_max taps,
        # reshape to (k0_max*20, 128), concat along the output axis.
        w0_cols, sc0, sh0 = [], [], []
        for layers in self.subnet_params:
            k0, (w, sc, sh) = layers[0]
            wp = jnp.zeros((self.k0_max, IN_WIDTH, C_MID), jnp.float32).at[:k0].set(w)
            w0_cols.append(wp.reshape(k1, C_MID))
            sc0.append(sc)
            sh0.append(sh)
        self.w0 = jnp.concatenate(w0_cols, axis=1).astype(jnp.bfloat16)   # (k1, ns*128)

        # Middle-layer weights (im2col-reshaped) + BN vectors in traversal order.
        self.w_mid = []
        bn_vecs = [(jnp.concatenate(sc0), jnp.concatenate(sh0))]
        for layers in self.subnet_params:
            for kk, (w, sc, sh) in layers[1:]:
                self.w_mid.append(w.reshape(kk * C_MID, C_MID).astype(jnp.bfloat16))
                bn_vecs.append((sc, sh))
        wh, hs, hb = self.head
        self.w_head = wh.astype(jnp.bfloat16)                             # (ns*128, 384)
        bn_vecs.append((hs, hb))

        # Pack all scale/shift vectors into one (n_vec, 2, padw) array.
        self.padw = max(ns * C_MID, C_HEAD)
        rows = []
        for sc, sh in bn_vecs:
            sc_p = jnp.zeros((self.padw,), jnp.float32).at[:sc.shape[0]].set(sc)
            sh_p = jnp.zeros((self.padw,), jnp.float32).at[:sh.shape[0]].set(sh)
            rows.append(jnp.stack([sc_p, sh_p]))
        self.bn_packed = jnp.stack(rows)                                  # (n_vec, 2, padw)

    def __call__(self, x_nchw):
        # x_nchw: (N, 1, 1000, 20) float32.
        n, c, h, wdt = x_nchw.shape
        assert c == 1 and h == SEQ_LEN and wdt == IN_WIDTH
        x = x_nchw[:, 0, :, :]                                            # (N, 1000, 20)

        # Wrapper-side im2col for the first layer (taps stacked along width).
        k1 = self.k0_max * IN_WIDTH
        taps = [x] + [jnp.pad(x[:, j:, :], ((0, 0), (0, j), (0, 0)))
                      for j in range(1, self.k0_max)]
        x_im2col = jnp.concatenate(taps, axis=-1)                         # (N, 1000, k1)

        n_tmp = _n_tmp(self.layer_info)
        in_specs = [pl.BlockSpec((None, SEQ_LEN, k1), lambda i: (i, 0, 0)),
                    pl.BlockSpec(self.w0.shape, lambda i: (0, 0))]
        in_specs += [pl.BlockSpec(wm.shape, lambda i: (0, 0)) for wm in self.w_mid]
        in_specs += [pl.BlockSpec(self.w_head.shape, lambda i: (0, 0)),
                     pl.BlockSpec(self.bn_packed.shape, lambda i: (0, 0, 0))]

        kernel = _build_kernel(self.layer_info, self.valid_len)
        out = pl.pallas_call(
            kernel,
            out_shape=jax.ShapeDtypeStruct((n, 1, C_HEAD), jnp.float32),
            grid=(n,),
            in_specs=in_specs,
            out_specs=pl.BlockSpec((None, 1, C_HEAD), lambda i: (i, 0, 0)),
            scratch_shapes=(
                [pltpu.VMEM((SEQ_LEN, self.num_sub * C_MID), jnp.float32)]
                + [pltpu.VMEM((SEQ_LEN, C_MID), jnp.float32) for _ in range(n_tmp)]),
            compiler_params=pltpu.CompilerParams(
                dimension_semantics=("parallel",),          # v7x: 2 TCs
                vmem_limit_bytes=32 * 1024 * 1024),
        )(x_im2col, self.w0, *self.w_mid, self.w_head, self.bn_packed)
        return out.reshape(n, C_HEAD)[:, :, None, None]                   # (N, 384, 1, 1)


# ----------------------------------------------------------------------------
# Pure-JAX reference (mirrors the kernel's bf16-operand / f32-accumulate math)
# ----------------------------------------------------------------------------
def reference_forward(model, x_nchw):
    x = x_nchw[:, 0, :, :]

    def conv_bn_relu(h, w, scale, shift):
        k = w.shape[0]
        n_out = h.shape[1] - k + 1
        acc = None
        for j in range(k):
            d = jnp.einsum('nrc,cd->nrd',
                           h[:, j:j + n_out, :].astype(jnp.bfloat16),
                           w[j].astype(jnp.bfloat16),
                           preferred_element_type=jnp.float32)
            acc = d if acc is None else acc + d
        return jnp.maximum(acc * scale + shift, 0.0)

    finals = []
    for layers in model.subnet_params:
        h = x
        for _kk, (w, sc, sh) in layers:
            h = conv_bn_relu(h, w, sc, sh)
        finals.append(h)
    cat = jnp.concatenate(finals, axis=-1)                  # (N, valid, ns*128)
    wh, hs, hb = model.head
    y = jnp.einsum('nrc,cd->nrd', cat.astype(jnp.bfloat16),
                   wh.astype(jnp.bfloat16), preferred_element_type=jnp.float32)
    y = jnp.maximum(y * hs + hb, 0.0)
    y = jnp.max(y, axis=1)                                  # (N, 384)
    return y[:, :, None, None]                              # (N, 384, 1, 1)


if __name__ == "__main__":
    key = jax.random.PRNGKey(0)
    key, pkey, xkey = jax.random.split(key, 3)

    # Two subnetworks with matching total "pooling size" (-3 each).
    layer_info = [[4], [2, 3]]
    model = PallasCNN(layer_info, pkey)

    # batch=2, 1 channel, H=1000 (required by the fixed MaxPool kernel), W=20.
    x = jax.random.normal(xkey, (2, 1, SEQ_LEN, IN_WIDTH), jnp.float32)

    out = jax.block_until_ready(model(x))
    assert out.shape == (2, C_HEAD, 1, 1), out.shape

    ref = reference_forward(model, x)
    err = float(jnp.max(jnp.abs(out - ref)))
    assert jnp.allclose(out, ref, rtol=1e-2, atol=1e-2), err

    print("KERNEL_OK")
</pallas_src>

<mosaic_0001>
module attributes {stable_mosaic.version = 11 : i64} {
  func.func @kernel(%arg0: i32, %arg1: memref<1x1000x80xf32, #tpu.memory_space<vmem>>, %arg2: memref<80x256xbf16, #tpu.memory_space<vmem>>, %arg3: memref<384x128xbf16, #tpu.memory_space<vmem>>, %arg4: memref<256x384xbf16, #tpu.memory_space<vmem>>, %arg5: memref<3x2x384xf32, #tpu.memory_space<vmem>>, %arg6: memref<1x1x384xf32, #tpu.memory_space<vmem>>, %arg7: memref<1000x256xf32, #tpu.memory_space<vmem>>, %arg8: memref<1000x128xf32, #tpu.memory_space<vmem>>) attributes {dimension_semantics = [#tpu.dimension_semantics<parallel>], iteration_bounds = array<i64: 2>, scalar_prefetch = 0 : i64, scratch_operands = 2 : i64, tpu.core_type = #tpu.core_type<tc>, window_params = [{transform_indices = @transform_0, window_bounds = array<i64: 1, 1000, 80>}, {pipeline_mode = #tpu.pipeline_mode<synchronous>, transform_indices = @transform_1, window_bounds = array<i64: 80, 256>}, {pipeline_mode = #tpu.pipeline_mode<synchronous>, transform_indices = @transform_2, window_bounds = array<i64: 384, 128>}, {pipeline_mode = #tpu.pipeline_mode<synchronous>, transform_indices = @transform_3, window_bounds = array<i64: 256, 384>}, {pipeline_mode = #tpu.pipeline_mode<synchronous>, transform_indices = @transform_4, window_bounds = array<i64: 3, 2, 384>}, {transform_indices = @transform_5, window_bounds = array<i64: 1, 1, 384>}]} {
    %c0 = arith.constant 0 : index
    %c0_0 = arith.constant 0 : index
    %c0_1 = arith.constant 0 : index
    %0 = vector.load %arg5[%c0, %c0_0, %c0_1] : memref<3x2x384xf32, #tpu.memory_space<vmem>>, vector<1x1x256xf32>
    %1 = vector.shape_cast %0 : vector<1x1x256xf32> to vector<1x256xf32>
    %c0_2 = arith.constant 0 : index
    %c1 = arith.constant 1 : index
    %c0_3 = arith.constant 0 : index
    %2 = vector.load %arg5[%c0_2, %c1, %c0_3] : memref<3x2x384xf32, #tpu.memory_space<vmem>>, vector<1x1x256xf32>
    %3 = vector.shape_cast %2 : vector<1x1x256xf32> to vector<1x256xf32>
    %c0_4 = arith.constant 0 : index
    %c0_5 = arith.constant 0 : index
    %c0_6 = arith.constant 0 : index
    %4 = vector.load %arg1[%c0_4, %c0_5, %c0_6] : memref<1x1000x80xf32, #tpu.memory_space<vmem>>, vector<1x1000x80xf32>
    %5 = vector.shape_cast %4 : vector<1x1000x80xf32> to vector<1000x80xf32>
    %6 = arith.truncf %5 : vector<1000x80xf32> to vector<1000x80xbf16>
    %c0_7 = arith.constant 0 : index
    %c0_8 = arith.constant 0 : index
    %7 = vector.load %arg2[%c0_7, %c0_8] : memref<80x256xbf16, #tpu.memory_space<vmem>>, vector<80x256xbf16>
    %cst = arith.constant dense<0.000000e+00> : vector<1000x256xf32>
    %8 = tpu.matmul %6, %7, %cst {dimension_numbers = #tpu.dot_dimension_numbers<[1], [0], [0], [1], [0, 0, 1, 1], [], []>} : vector<1000x80xbf16>, vector<80x256xbf16>, vector<1000x256xf32> -> vector<1000x256xf32>
    %9 = vector.broadcast %1 : vector<1x256xf32> to vector<1000x256xf32>
    %10 = arith.mulf %8, %9 : vector<1000x256xf32>
    %11 = vector.broadcast %3 : vector<1x256xf32> to vector<1000x256xf32>
    %12 = arith.addf %10, %11 : vector<1000x256xf32>
    %cst_9 = arith.constant 0.000000e+00 : f32
    %13 = vector.broadcast %cst_9 : f32 to vector<1000x256xf32>
    %14 = arith.maximumf %12, %13 : vector<1000x256xf32>
    %15 = vector.extract_strided_slice %14 {offsets = [0, 0], sizes = [1000, 128], strides = [1, 1]} : vector<1000x256xf32> to vector<1000x128xf32>
    %c0_10 = arith.constant 0 : index
    %c0_11 = arith.constant 0 : index
    %16 = vector.load %arg7[%c0_10, %c0_11] : memref<1000x256xf32, #tpu.memory_space<vmem>>, vector<1000x128xf32>
    tpu.vector_store %arg7[%c0_10, %c0_11], %15 {strides = array<i32>} : memref<1000x256xf32, #tpu.memory_space<vmem>>, vector<1000x128xf32>,
    %17 = vector.extract_strided_slice %14 {offsets = [0, 128], sizes = [1000, 128], strides = [1, 1]} : vector<1000x256xf32> to vector<1000x128xf32>
    %c0_12 = arith.constant 0 : index
    %c0_13 = arith.constant 0 : index
    %18 = vector.load %arg8[%c0_12, %c0_13] : memref<1000x128xf32, #tpu.memory_space<vmem>>, vector<1000x128xf32>
    tpu.vector_store %arg8[%c0_12, %c0_13], %17 {strides = array<i32>} : memref<1000x128xf32, #tpu.memory_space<vmem>>, vector<1000x128xf32>,
    %c0_14 = arith.constant 0 : index
    %c0_15 = arith.constant 0 : index
    %19 = vector.load %arg8[%c0_14, %c0_15] : memref<1000x128xf32, #tpu.memory_space<vmem>>, vector<997x128xf32>
    %c1_16 = arith.constant 1 : index
    %c0_17 = arith.constant 0 : index
    %20 = vector.load %arg8[%c1_16, %c0_17] : memref<1000x128xf32, #tpu.memory_space<vmem>>, vector<997x128xf32>
    %c2 = arith.constant 2 : index
    %c0_18 = arith.constant 0 : index
    %21 = vector.load %arg8[%c2, %c0_18] : memref<1000x128xf32, #tpu.memory_space<vmem>>, vector<997x128xf32>
    %22 = tpu.concatenate %19, %20, %21 in 1 : vector<997x128xf32>, vector<997x128xf32>, vector<997x128xf32> -> vector<997x384xf32>
    %23 = arith.truncf %22 : vector<997x384xf32> to vector<997x384xbf16>
    %c1_19 = arith.constant 1 : index
    %c0_20 = arith.constant 0 : index
    %c0_21 = arith.constant 0 : index
    %24 = vector.load %arg5[%c1_19, %c0_20, %c0_21] : memref<3x2x384xf32, #tpu.memory_space<vmem>>, vector<1x1x128xf32>
    %25 = vector.shape_cast %24 : vector<1x1x128xf32> to vector<1x128xf32>
    %c1_22 = arith.constant 1 : index
    %c1_23 = arith.constant 1 : index
    %c0_24 = arith.constant 0 : index
    %26 = vector.load %arg5[%c1_22, %c1_23, %c0_24] : memref<3x2x384xf32, #tpu.memory_space<vmem>>, vector<1x1x128xf32>
    %27 = vector.shape_cast %26 : vector<1x1x128xf32> to vector<1x128xf32>
    %c0_25 = arith.constant 0 : index
    %c0_26 = arith.constant 0 : index
    %28 = vector.load %arg3[%c0_25, %c0_26] : memref<384x128xbf16, #tpu.memory_space<vmem>>, vector<384x128xbf16>
    %cst_27 = arith.constant dense<0.000000e+00> : vector<997x128xf32>
    %29 = tpu.matmul %23, %28, %cst_27 {dimension_numbers = #tpu.dot_dimension_numbers<[1], [0], [0], [1], [0, 0, 1, 1], [], []>} : vector<997x384xbf16>, vector<384x128xbf16>, vector<997x128xf32> -> vector<997x128xf32>
    %30 = vector.broadcast %25 : vector<1x128xf32> to vector<997x128xf32>
    %31 = arith.mulf %29, %30 : vector<997x128xf32>
    %32 = vector.broadcast %27 : vector<1x128xf32> to vector<997x128xf32>
    %33 = arith.addf %31, %32 : vector<997x128xf32>
    %cst_28 = arith.constant 0.000000e+00 : f32
    %34 = vector.broadcast %cst_28 : f32 to vector<997x128xf32>
    %35 = arith.maximumf %33, %34 : vector<997x128xf32>
    %c0_29 = arith.constant 0 : index
    %c128 = arith.constant 128 : index
    %36 = vector.load %arg7[%c0_29, %c128] : memref<1000x256xf32, #tpu.memory_space<vmem>>, vector<997x128xf32>
    tpu.vector_store %arg7[%c0_29, %c128], %35 {strides = array<i32>} : memref<1000x256xf32, #tpu.memory_space<vmem>>, vector<997x128xf32>,
    %c2_30 = arith.constant 2 : index
    %c0_31 = arith.constant 0 : index
    %c0_32 = arith.constant 0 : index
    %37 = vector.load %arg5[%c2_30, %c0_31, %c0_32] : memref<3x2x384xf32, #tpu.memory_space<vmem>>, vector<1x1x384xf32>
    %38 = vector.shape_cast %37 : vector<1x1x384xf32> to vector<1x384xf32>
    %c2_33 = arith.constant 2 : index
    %c1_34 = arith.constant 1 : index
    %c0_35 = arith.constant 0 : index
    %39 = vector.load %arg5[%c2_33, %c1_34, %c0_35] : memref<3x2x384xf32, #tpu.memory_space<vmem>>, vector<1x1x384xf32>
    %40 = vector.shape_cast %39 : vector<1x1x384xf32> to vector<1x384xf32>
    %c0_36 = arith.constant 0 : index
    %c0_37 = arith.constant 0 : index
    %41 = vector.load %arg7[%c0_36, %c0_37] : memref<1000x256xf32, #tpu.memory_space<vmem>>, vector<997x256xf32>
    %42 = arith.truncf %41 : vector<997x256xf32> to vector<997x256xbf16>
    %c0_38 = arith.constant 0 : index
    %c0_39 = arith.constant 0 : index
    %43 = vector.load %arg4[%c0_38, %c0_39] : memref<256x384xbf16, #tpu.memory_space<vmem>>, vector<256x384xbf16>
    %cst_40 = arith.constant dense<0.000000e+00> : vector<997x384xf32>
    %44 = tpu.matmul %42, %43, %cst_40 {dimension_numbers = #tpu.dot_dimension_numbers<[1], [0], [0], [1], [0, 0, 1, 1], [], []>} : vector<997x256xbf16>, vector<256x384xbf16>, vector<997x384xf32> -> vector<997x384xf32>
    %45 = vector.broadcast %38 : vector<1x384xf32> to vector<997x384xf32>
    %46 = arith.mulf %44, %45 : vector<997x384xf32>
    %47 = vector.broadcast %40 : vector<1x384xf32> to vector<997x384xf32>
    %48 = arith.addf %46, %47 : vector<997x384xf32>
    %cst_41 = arith.constant 0.000000e+00 : f32
    %49 = vector.broadcast %cst_41 : f32 to vector<997x384xf32>
    %50 = arith.maximumf %48, %49 : vector<997x384xf32>
    %cst_42 = arith.constant dense<0xFF800000> : vector<384xf32>
    %51 = vector.multi_reduction <maximumf>, %50, %cst_42 [0] : vector<997x384xf32> to vector<384xf32>
    %52 = vector.shape_cast %51 : vector<384xf32> to vector<1x384xf32>
    %c0_43 = arith.constant 0 : index
    %c0_44 = arith.constant 0 : index
    %c0_45 = arith.constant 0 : index
    %53 = vector.load %arg6[%c0_43, %c0_44, %c0_45] : memref<1x1x384xf32, #tpu.memory_space<vmem>>, vector<1x1x384xf32>
    %54 = vector.shape_cast %53 : vector<1x1x384xf32> to vector<1x384xf32>
    %55 = vector.shape_cast %52 : vector<1x384xf32> to vector<1x1x384xf32>
    tpu.vector_store %arg6[%c0_43, %c0_44, %c0_45], %55 {strides = array<i32>} : memref<1x1x384xf32, #tpu.memory_space<vmem>>, vector<1x1x384xf32>,
    return
  }
  func.func @transform_0(%arg0: i32) -> (i32, i32, i32) {
    %c0_i32 = arith.constant 0 : i32
    %c0_i32_0 = arith.constant 0 : i32
    %c0_i32_1 = arith.constant 0 : i32
    return %arg0, %c0_i32, %c0_i32_0 : i32, i32, i32
  }
  func.func @transform_1(%arg0: i32) -> (i32, i32) {
    %c0_i32 = arith.constant 0 : i32
    %c0_i32_0 = arith.constant 0 : i32
    %c0_i32_1 = arith.constant 0 : i32
    return %c0_i32, %c0_i32_0 : i32, i32
  }
  func.func @transform_2(%arg0: i32) -> (i32, i32) {
    %c0_i32 = arith.constant 0 : i32
    %c0_i32_0 = arith.constant 0 : i32
    %c0_i32_1 = arith.constant 0 : i32
    return %c0_i32, %c0_i32_0 : i32, i32
  }
  func.func @transform_3(%arg0: i32) -> (i32, i32) {
    %c0_i32 = arith.constant 0 : i32
    %c0_i32_0 = arith.constant 0 : i32
    %c0_i32_1 = arith.constant 0 : i32
    return %c0_i32, %c0_i32_0 : i32, i32
  }
  func.func @transform_4(%arg0: i32) -> (i32, i32, i32) {
    %c0_i32 = arith.constant 0 : i32
    %c0_i32_0 = arith.constant 0 : i32
    %c0_i32_1 = arith.constant 0 : i32
    %c0_i32_2 = arith.constant 0 : i32
    return %c0_i32, %c0_i32_0, %c0_i32_1 : i32, i32, i32
  }
  func.func @transform_5(%arg0: i32) -> (i32, i32, i32) {
    %c0_i32 = arith.constant 0 : i32
    %c0_i32_0 = arith.constant 0 : i32
    %c0_i32_1 = arith.constant 0 : i32
    return %arg0, %c0_i32, %c0_i32_0 : i32, i32, i32
  }
}

</mosaic_0001>

<bundles_post_ra>
// kernel: tpu_custom_call.1
= control target key start
LH: loop header
LB: loop body
LE: loop exit
PB: predicated region body
PF: predicated region fallthrough
CT: control target
= control target key end

     0   :  { %10 = vsyncpa [#allocation5], 0  ;;  %s12241_s0 = inlined_call_operand.vmem [shape: f32[2,1000,80], index: 0, kind: input, shape index: {}]   ;;  %s12242_s1 = inlined_call_operand.vmem [shape: bf16[80,256], index: 1, kind: input, shape index: {}]   ;;  %s12243_s2 = inlined_call_operand.vmem [shape: bf16[384,128], index: 2, kind: input, shape index: {}]   ;;  %s12244_s3 = inlined_call_operand.vmem [shape: bf16[256,384], index: 3, kind: input, shape index: {}]   ;;  %s12245_s4 = inlined_call_operand.vmem [shape: f32[3,2,384], index: 4, kind: input, shape index: {}]   ;;  %s12246_s5 = inlined_call_operand.hbm [shape: f32[2,1,384], index: 5, kind: output, shape index: {}]  }
   0x1   :  { %12 = vsyncpa [#allocation5 + $0x1], 0  ;;  %s9259_s18 = smov 0   ;;  %s9261_s19 = smov 0  }
   0x2   :  { %s9263_s20 = smov 0   ;;  %s9265_s21 = smov 0  }
   0x3 LB: > { %s9280_s22 = sadd.s32 4294967295, %s9222_s21   ;;  %s8242_s23 = sadd.s32 4294967294, %s9222_s21   ;;  %s9222_s21 = sphi %s9265_s21, %s12537_s21   ;;  %s9218_s20 = sphi %s9263_s20, %s12536_s20   ;;  %s9214_s19 = sphi %s9261_s19, %s12535_s19   ;;  %s9210_s18 = sphi %s9259_s18, %s12534_s18  }
   0x4   : > { %s9284_s24 = sadd.s32 1, %s9222_s21   ;;  %s135_s25 = sadd.s32 1, %s9218_s20 }
   0x5   : > { %s132_s26 = ssub.s32 %s9222_s21, %s9284_s24  ;;  %p145_p0 = scmp.ne.s32.totalorder %s9218_s20, %s9214_s19 }
   0x6   : > { %p133_p1 = scmp.eq.s32.totalorder %s132_s26, 0  ;;  %p146_p2 = scmp.eq.s32.totalorder %s9280_s22, 1 }
   0x7   : > { %p151_p3 = scmp.ne.s32.totalorder %s9214_s19, %s9210_s18  ;;  %p152_p4 = scmp.eq.s32.totalorder %s8242_s23, 1 }
   0x8   : > { %s9295_s27 = scalar_select %p133_p1, %s9218_s20, %s135_s25  }
   0x9   : > { %p9297_p5 = por %p146_p2, %p145_p0  ;;  %p9301_p6 = por %p152_p4, %p151_p3 }
   0xa   : > { %p8245_p7 = scmp.ge.s32.totalorder %s9222_s21, 1  ;;  %p190_p8 = scmp.lt.s32.totalorder %s9222_s21, 3 }
   0xc   : > { %p191_p9 = pnand %p8245_p7, %p190_p8 }
   0xe   : > { %194 = sbr.rel (%p191_p9) target bundleno = 2279 (0x8e7), region = 40 }
  0x15   : > { %v9049_v0 = vld [vmem:[%s12242_s1 + $0x4] ss:$8 sps:$4 sm:$0xff]   ;;  %p218_p10 = scmp.lt.s32.totalorder %s9280_s22, 1  ;;  %v9051_v1 = vld [vmem:[%s12242_s1] ss:$8 sps:$4 sm:$0xff]   ;;  %v12248_v2 = vmov 0  }
  0x16   : > { %697 = vmatprep.mubr.bf16.mxu0 %v12248_v2  ;;  %1017 = vmatprep.mubr.bf16.mxu1 %v12248_v2  ;;  %v9052_v3 = vld [vmem:[%s12242_s1 + $0x14] ss:$8 sps:$4 sm:$0xff]   ;;  %v9054_v4 = vld [vmem:[%s12242_s1 + $0x10] ss:$8 sps:$4 sm:$0xff]   ;;  %v9055_v5 = vld [vmem:[%s12242_s1 + $0x24] ss:$8 sps:$4 sm:$0xff]  }
  0x17   : > { %665 = vmatprep.subr.bf16.mxu0 %v9049_v0  ;;  %8741 = vmatprep.subr.bf16.mxu1 %v9049_v0  ;;  %s219_s13 = scalar_select %p218_p10, %s9280_s22, 1  ;;  %v9057_v6 = vld [vmem:[%s12242_s1 + $0x20] ss:$8 sps:$4 sm:$0xff]   ;;  %v9058_v7 = vld [vmem:[%s12242_s1 + $0x34] ss:$8 sps:$4 sm:$0xff]   ;;  %vm475_vm0 = vcmask 654336  }
  0x18   : > { %666 = vmatpush1.bf16.msra.mxu0 %v9051_v1  ;;  %8746 = vmatpush1.bf16.msra.mxu1 %v9051_v1  ;;  %v9060_v8 = vld [vmem:[%s12242_s1 + $0x30] ss:$8 sps:$4 sm:$0xff]   ;;  %v9061_v9 = vld [vmem:[%s12242_s1 + $0x44] ss:$8 sps:$4 sm:$0xff]   ;;  %v9063_v10 = vld [vmem:[%s12242_s1 + $0x40] ss:$8 sps:$4 sm:$0xff]  }
  0x19   : > { %667 = vmatprep.subr.bf16.mxu0 %v9052_v3  ;;  %8742 = vmatprep.subr.bf16.mxu1 %v9052_v3  ;;  %s9004_s23 = smul.u32 1000, %s219_s13  ;;  %v9064_v17 = vld [vmem:[%s12243_s2] sm:$0xff]   ;;  %v9065_v22 = vld [vmem:[%s12243_s2 + $0x8] sm:$0xff]   ;;  %v9066_v25 = vld [vmem:[%s12243_s2 + $0x10] sm:$0xff]   ;;  %vm9226_vm1 = vmmov 0   ;;  %vm7863_vm2 = vcmask 1044480  }
  0x1a   : > { %v9067_v30 = vld [vmem:[%s12243_s2 + $0x18] sm:$0xff]   ;;  %v9068_v33 = vld [vmem:[%s12243_s2 + $0x20] sm:$0xff]   ;;  %v9069_v38 = vld [vmem:[%s12243_s2 + $0x28] sm:$0xff]   ;;  %s215_s12 = sand.u32 1, %s9214_s19   ;;  %s9005_s14 = smul.u32 48, %s9280_s22 }
  0x1b   : > { %s9338_s9 = scalar_lea.vmem %s12241_s0, %s9004_s23  ;;  %v9070_v41 = vld [vmem:[%s12243_s2 + $0x30] sm:$0xff]   ;;  %v9071_v46 = vld [vmem:[%s12243_s2 + $0x38] sm:$0xff]   ;;  %v9072_v49 = vld [vmem:[%s12243_s2 + $0x40] sm:$0xff]   ;;  %s9003_s13 = smul.u32 3, %s215_s12 }
  0x1c   : > { %668 = vmatpush1.bf16.msra.mxu0 %v9054_v4  ;;  %8747 = vmatpush1.bf16.msra.mxu1 %v9054_v4  ;;  %v227_v11 = vld [vmem:[%s9338_s9] sm:$0xff]  ;;  %v228_v12 = vld [vmem:[%s9338_s9 + $0x8] sm:$0xff]  ;;  %v229_v18 = vld [vmem:[%s9338_s9 + $0x10] sm:$0xff]  ;;  %s12199_s25 = scalar_lea.hbm %s12246_s5, %s9005_s14  ;;  %s9228_s22 = smov [#allocation4]  }
  0x1d   : > { %669 = vmatprep.subr.bf16.mxu0 %v9055_v5  ;;  %8743 = vmatprep.subr.bf16.mxu1 %v9055_v5  ;;  %v291_v13 = vld [vmem:[%s9338_s9 + $0x200] sm:$0xff]  ;;  %v292_v14 = vld [vmem:[%s9338_s9 + $0x208] sm:$0xff]  ;;  %v352_v15 = vpack.c.bf16 %v228_v12, %v227_v11  ;;  %v230_v19 = vld [vmem:[%s9338_s9 + $0x18] sm:$0xff]  ;;  %s217_s15 = scalar_lea.vmem [#allocation4], %s9003_s13  ;;  %s9164_s30 = sshll.u32 %s9228_s22, 4  ;;  %s9165_s30 = int_to_ptr.vmem [resolvable:$false] %s9164_s30 }
  0x1e   : > { %v384_v16 = vpack.c.bf16 %v292_v14, %v291_v13  ;;  %v293_v20 = vld [vmem:[%s9338_s9 + $0x210] sm:$0xff]  ;;  %v294_v21 = vld [vmem:[%s9338_s9 + $0x218] sm:$0xff]  ;;  %v353_v23 = vpack.c.bf16 %v230_v19, %v229_v18  ;;  %v231_v26 = vld [vmem:[%s9338_s9 + $0x20] sm:$0xff]  ;;  %s8182_s16 = sshll.u32 %s217_s15, 4  ;;  %s9166_s6 = scalar_lea.vmem %s9165_s30, 96  ;;  %s12201_s16 = int_to_ptr.vmem [resolvable:$true] %s8182_s16 }
  0x1f   : > { %v385_v24 = vpack.c.bf16 %v294_v21, %v293_v20  ;;  %v232_v27 = vld [vmem:[%s9338_s9 + $0x28] sm:$0xff]  ;;  %v295_v28 = vld [vmem:[%s9338_s9 + $0x220] sm:$0xff]  ;;  %v233_v34 = vld [vmem:[%s9338_s9 + $0x30] sm:$0xff]  ;;  %s9160_s26 = scalar_lea.vmem %s12201_s16, 48  ;;  %p9167_p0 = scmp.lt.s32.totalorder %s12201_s16, %s9165_s30 }
  0x20   : > { %670 = vmatpush1.bf16.msra.mxu0 %v9057_v6  ;;  %8748 = vmatpush1.bf16.msra.mxu1 %v9057_v6  ;;  %v296_v29 = vld [vmem:[%s9338_s9 + $0x228] sm:$0xff]  ;;  %v354_v31 = vpack.c.bf16 %v232_v27, %v231_v26  ;;  %v234_v35 = vld [vmem:[%s9338_s9 + $0x38] sm:$0xff]  ;;  %v297_v36 = vld [vmem:[%s9338_s9 + $0x230] sm:$0xff]  ;;  %p9161_p11 = scmp.ne.s32.totalorder %s12201_s16, %s9160_s26  ;;  %p9168_p1 = scmp.lt.s32.totalorder %s9166_s6, %s9160_s26 }
  0x21   : > { %671 = vmatprep.subr.bf16.mxu0 %v9058_v7  ;;  %8744 = vmatprep.subr.bf16.mxu1 %v9058_v7  ;;  %v386_v32 = vpack.c.bf16 %v296_v29, %v295_v28  ;;  %v298_v37 = vld [vmem:[%s9338_s9 + $0x238] sm:$0xff]  ;;  %v355_v39 = vpack.c.bf16 %v234_v35, %v233_v34  ;;  %v235_v42 = vld [vmem:[%s9338_s9 + $0x40] sm:$0xff]  ;;  %v236_v43 = vld [vmem:[%s9338_s9 + $0x48] sm:$0xff] }
  0x22   : > { %v387_v40 = vpack.c.bf16 %v298_v37, %v297_v36  ;;  %v299_v44 = vld [vmem:[%s9338_s9 + $0x240] sm:$0xff]  ;;  %v300_v45 = vld [vmem:[%s9338_s9 + $0x248] sm:$0xff]  ;;  %v356_v47 = vpack.c.bf16 %v236_v43, %v235_v42  ;;  %v237_v50 = vld [vmem:[%s9338_s9 + $0x50] sm:$0xff]  ;;  %p9162_p12 = pnand %p9161_p11, %p9297_p5  ;;  %p9169_p2 = por %p9168_p1, %p9167_p0 }
  0x23   : > { %v388_v48 = vpack.c.bf16 %v300_v45, %v299_v44  ;;  %v238_v51 = vld [vmem:[%s9338_s9 + $0x58] sm:$0xff]  ;;  %v301_v52 = vld [vmem:[%s9338_s9 + $0x250] sm:$0xff]  ;;  %v9073_v54 = vld [vmem:[%s12243_s2 + $0x48] sm:$0xff]  }
  0x24   : > { %672 = vmatpush1.bf16.msra.mxu0 %v9060_v8  ;;  %8749 = vmatpush1.bf16.msra.mxu1 %v9060_v8  ;;  %v302_v53 = vld [vmem:[%s9338_s9 + $0x258] sm:$0xff]  ;;  %v357_v55 = vpack.c.bf16 %v238_v51, %v237_v50  ;;  %v9074_v57 = vld [vmem:[%s12243_s2 + $0x50] sm:$0xff]   ;;  %v239_v58 = vld [vmem:[%s9338_s9 + $0x60] sm:$0xff]  ;;  %p9163_p13 = pneg %p9162_p12 }
  0x25   : > { %673 = vmatprep.subr.bf16.mxu0 %v9061_v9  ;;  %8745 = vmatprep.subr.bf16.mxu1 %v9061_v9  ;;  %v389_v56 = vpack.c.bf16 %v302_v53, %v301_v52  ;;  %v240_v59 = vld [vmem:[%s9338_s9 + $0x68] sm:$0xff]  ;;  %v303_v60 = vld [vmem:[%s9338_s9 + $0x260] sm:$0xff]  ;;  %v9075_v62 = vld [vmem:[%s12243_s2 + $0x58] sm:$0xff]  }
  0x26   : > { %v304_v61 = vld [vmem:[%s9338_s9 + $0x268] sm:$0xff]  ;;  %v358_v63 = vpack.c.bf16 %v240_v59, %v239_v58  ;;  %v241_v1 = vld [vmem:[%s9338_s9 + $0x70] sm:$0xff]  ;;  %v242_v3 = vld [vmem:[%s9338_s9 + $0x78] sm:$0xff]  ;;  %p9170_p3 = pnand %p9169_p2, %p9163_p13 }
  0x27   : > { %v390_v0 = vpack.c.bf16 %v304_v61, %v303_v60  ;;  %v305_v4 = vld [vmem:[%s9338_s9 + $0x270] sm:$0xff]  ;;  %v306_v5 = vld [vmem:[%s9338_s9 + $0x278] sm:$0xff]  ;;  %v359_v6 = vpack.c.bf16 %v242_v3, %v241_v1  ;;  %v243_v8 = vld [vmem:[%s9338_s9 + $0x80] sm:$0xff]  ;;  %v12250_v3 = vmov 0.0  }
  0x28   : > { %674 = vmatpush1.bf16.msra.mxu0 %v9063_v10  ;;  %8750 = vmatpush1.bf16.msra.mxu1 %v9063_v10  ;;  %v391_v7 = vpack.c.bf16 %v306_v5, %v305_v4  ;;  %v244_v9 = vld [vmem:[%s9338_s9 + $0x88] sm:$0xff]  ;;  %v9076_v10 = vld [vmem:[%s12243_s2 + $0x60] sm:$0xff]   ;;  %v310_v18 = vld [vmem:[%s9338_s9 + $0x298] sm:$0xff] }
  0x29   : > { %3107 = vmatprep.subr.bf16.mxu1 %v12248_v2  ;;  %v307_v11 = vld [vmem:[%s9338_s9 + $0x280] sm:$0xff]  ;;  %v308_v12 = vld [vmem:[%s9338_s9 + $0x288] sm:$0xff]  ;;  %v360_v13 = vpack.c.bf16 %v244_v9, %v243_v8  ;;  %v249_v28 = vld [vmem:[%s9338_s9 + $0xb0] sm:$0xff] }
  0x2a   : > { %v392_v14 = vpack.c.bf16 %v308_v12, %v307_v11  ;;  %v247_v21 = vld [vmem:[%s9338_s9 + $0xa0] sm:$0xff]  ;;  %v250_v29 = vld [vmem:[%s9338_s9 + $0xb8] sm:$0xff]  ;;  %v252_v35 = vld [vmem:[%s9338_s9 + $0xc8] sm:$0xff] }
  0x2b   : > { %8258 = vmatmul.mubr.msk.bf16.vlgmr.msra.gmra.mrb[0].mxu0 %vm475_vm0, %v352_v15  ;;  %8290 = vmatmul.mubr.msk.bf16.vlgmr.msra.gmra.mrb[0].mxu1 %vm475_vm0, %v384_v16  ;;  %v245_v15 = vld [vmem:[%s9338_s9 + $0x90] sm:$0xff]  ;;  %v246_v16 = vld [vmem:[%s9338_s9 + $0x98] sm:$0xff]  ;;  %v251_v34 = vld [vmem:[%s9338_s9 + $0xc0] sm:$0xff] }
  0x2c   : > { %3108 = vmatpush1.bf16.msra.mxu1 %v9064_v17  ;;  %707 = vmatprep.mubr.bf16.mxu0 %v12248_v2  ;;  %v309_v17 = vld [vmem:[%s9338_s9 + $0x290] sm:$0xff]  ;;  %v361_v19 = vpack.c.bf16 %v246_v16, %v245_v15  ;;  %v315_v36 = vld [vmem:[%s9338_s9 + $0x2c0] sm:$0xff]  ;;  %v316_v37 = vld [vmem:[%s9338_s9 + $0x2c8] sm:$0xff] }
  0x2d   : > { %1027 = vmatprep.mubr.bf16.mxu1 %v12248_v2  ;;  %3109 = vmatprep.subr.bf16.mxu1 %v12248_v2  ;;  %v393_v20 = vpack.c.bf16 %v310_v18, %v309_v17  ;;  %v254_v42 = vld [vmem:[%s9338_s9 + $0xd8] sm:$0xff]  ;;  %v317_v43 = vld [vmem:[%s9338_s9 + $0x2d0] sm:$0xff]  ;;  %v320_v50 = vld [vmem:[%s9338_s9 + $0x2e8] sm:$0xff] }
  0x2e   : > { %v318_v44 = vld [vmem:[%s9338_s9 + $0x2d8] sm:$0xff]  ;;  %v259_v60 = vld [vmem:[%s9338_s9 + $0x100] sm:$0xff]  ;;  %v260_v61 = vld [vmem:[%s9338_s9 + $0x108] sm:$0xff] }
  0x2f   : > { %v9079_v53 = vld [vmem:[%s12243_s2 + $0x78] sm:$0xff]   ;;  %v261_v4 = vld [vmem:[%s9338_s9 + $0x110] sm:$0xff]  ;;  %v264_v11 = vld [vmem:[%s9338_s9 + $0x128] sm:$0xff] }
  0x30   : > { %3110 = vmatpush1.bf16.msra.mxu1 %v9065_v22  ;;  %v9077_v22 = vld [vmem:[%s12243_s2 + $0x68] sm:$0xff]   ;;  %v262_v5 = vld [vmem:[%s9338_s9 + $0x118] sm:$0xff]  ;;  %v327_v12 = vld [vmem:[%s9338_s9 + $0x320] sm:$0xff] }
  0x31   : > { %3111 = vmatprep.subr.bf16.mxu1 %v12248_v2  ;;  %v369_v8 = vpack.c.bf16 %v262_v5, %v261_v4  ;;  %v265_v16 = vld [vmem:[%s9338_s9 + $0x130] sm:$0xff]  ;;  %v266_v17 = vld [vmem:[%s9338_s9 + $0x138] sm:$0xff]  ;;  %v224_v5 = vld [vmem:[%s12245_s4] ss:$2 sm:$0x3] }
  0x32   : > { %v329_v18 = vld [vmem:[%s9338_s9 + $0x330] sm:$0xff] }
  0x33   : > { %8259 = vmatmul.mubr.msk.bf16.gmra.mrb[4].mxu0 %vm475_vm0, %v353_v23  ;;  %8291 = vmatmul.mubr.msk.bf16.gmra.mrb[4].mxu1 %vm475_vm0, %v385_v24  ;;  %v248_v23 = vld [vmem:[%s9338_s9 + $0xa8] sm:$0xff]  ;;  %v311_v24 = vld [vmem:[%s9338_s9 + $0x2a0] sm:$0xff] }
  0x34   : > { %717 = vmatprep.mubr.bf16.mxu0 %v12248_v2  ;;  %1037 = vmatprep.mubr.bf16.mxu1 %v12248_v2  ;;  %v362_v26 = vpack.c.bf16 %v248_v23, %v247_v21  ;;  %v268_v23 = vld [vmem:[%s9338_s9 + $0x148] sm:$0xff] }
  0x35   : > { %3112 = vmatpush1.bf16.msra.mxu1 %v9066_v25  ;;  %v312_v25 = vld [vmem:[%s9338_s9 + $0x2a8] sm:$0xff] }
  0x36   : > { %3113 = vmatprep.subr.bf16.mxu1 %v12248_v2  ;;  %v394_v27 = vpack.c.bf16 %v312_v25, %v311_v24  ;;  %v331_v24 = vld [vmem:[%s9338_s9 + $0x340] sm:$0xff]  ;;  %v332_v25 = vld [vmem:[%s9338_s9 + $0x348] sm:$0xff] }
  0x39   : > { %3114 = vmatpush1.bf16.msra.mxu1 %v9067_v30  ;;  %v313_v30 = vld [vmem:[%s9338_s9 + $0x2b0] sm:$0xff] }
  0x3a   : > { %3115 = vmatprep.subr.bf16.mxu1 %v12248_v2 }
  0x3b   : > { %8260 = vmatmul.mubr.msk.bf16.gmra.mrb[8].mxu0 %vm475_vm0, %v354_v31  ;;  %8292 = vmatmul.mubr.msk.bf16.gmra.mrb[8].mxu1 %vm475_vm0, %v386_v32  ;;  %v314_v31 = vld [vmem:[%s9338_s9 + $0x2b8] sm:$0xff]  ;;  %v363_v32 = vpack.c.bf16 %v250_v29, %v249_v28  ;;  %v269_v28 = vld [vmem:[%s9338_s9 + $0x150] sm:$0xff] }
  0x3c   : > { %727 = vmatprep.mubr.bf16.mxu0 %v12248_v2  ;;  %1047 = vmatprep.mubr.bf16.mxu1 %v12248_v2  ;;  %v270_v29 = vld [vmem:[%s9338_s9 + $0x158] sm:$0xff] }
  0x3d   : > { %3116 = vmatpush1.bf16.msra.mxu1 %v9068_v33  ;;  %v395_v33 = vpack.c.bf16 %v314_v31, %v313_v30  ;;  %v333_v30 = vld [vmem:[%s9338_s9 + $0x350] sm:$0xff]  ;;  %v334_v31 = vld [vmem:[%s9338_s9 + $0x358] sm:$0xff] }
  0x3e   : > { %3117 = vmatprep.subr.bf16.mxu1 %v12248_v2 }
  0x41   : > { %3118 = vmatpush1.bf16.msra.mxu1 %v9069_v38  ;;  %v364_v38 = vpack.c.bf16 %v252_v35, %v251_v34  ;;  %v271_v34 = vld [vmem:[%s9338_s9 + $0x160] sm:$0xff]  ;;  %v272_v35 = vld [vmem:[%s9338_s9 + $0x168] sm:$0xff] }
  0x42   : > { %3119 = vmatprep.subr.bf16.mxu1 %v12248_v2 }
  0x43   : > { %8261 = vmatmul.mubr.msk.bf16.gmra.mrb[12].mxu0 %vm475_vm0, %v355_v39  ;;  %8293 = vmatmul.mubr.msk.bf16.gmra.mrb[12].mxu1 %vm475_vm0, %v387_v40  ;;  %v396_v39 = vpack.c.bf16 %v316_v37, %v315_v36  ;;  %v9078_v40 = vld [vmem:[%s12243_s2 + $0x70] sm:$0xff]   ;;  %v335_v36 = vld [vmem:[%s9338_s9 + $0x360] sm:$0xff]  ;;  %v336_v37 = vld [vmem:[%s9338_s9 + $0x368] sm:$0xff] }
  0x44   : > { %737 = vmatprep.mubr.bf16.mxu0 %v12248_v2  ;;  %1057 = vmatprep.mubr.bf16.mxu1 %v12248_v2 }
  0x45   : > { %3120 = vmatpush1.bf16.msra.mxu1 %v9070_v41  ;;  %v253_v41 = vld [vmem:[%s9338_s9 + $0xd0] sm:$0xff] }
  0x46   : > { %3121 = vmatprep.subr.bf16.mxu1 %v12248_v2  ;;  %v365_v45 = vpack.c.bf16 %v254_v42, %v253_v41  ;;  %v274_v41 = vld [vmem:[%s9338_s9 + $0x178] sm:$0xff]  ;;  %v337_v42 = vld [vmem:[%s9338_s9 + $0x370] sm:$0xff] }
  0x49   : > { %3122 = vmatpush1.bf16.msra.mxu1 %v9071_v46  ;;  %v397_v46 = vpack.c.bf16 %v318_v44, %v317_v43  ;;  %v338_v43 = vld [vmem:[%s9338_s9 + $0x378] sm:$0xff] }
  0x4a   : > { %3123 = vmatprep.subr.bf16.mxu1 %v12248_v2 }
  0x4b   : > { %8262 = vmatmul.mubr.msk.bf16.gmra.mrb[16].mxu0 %vm475_vm0, %v356_v47  ;;  %8294 = vmatmul.mubr.msk.bf16.gmra.mrb[16].mxu1 %vm475_vm0, %v388_v48  ;;  %v255_v47 = vld [vmem:[%s9338_s9 + $0xe0] sm:$0xff]  ;;  %v256_v48 = vld [vmem:[%s9338_s9 + $0xe8] sm:$0xff] }
  0x4c   : > { %747 = vmatprep.mubr.bf16.mxu0 %v12248_v2  ;;  %1067 = vmatprep.mubr.bf16.mxu1 %v12248_v2  ;;  %v366_v51 = vpack.c.bf16 %v256_v48, %v255_v47  ;;  %v276_v47 = vld [vmem:[%s9338_s9 + $0x188] sm:$0xff]  ;;  %v339_v48 = vld [vmem:[%s9338_s9 + $0x380] sm:$0xff] }
  0x4d   : > { %3124 = vmatpush1.bf16.msra.mxu1 %v9072_v49  ;;  %v319_v49 = vld [vmem:[%s9338_s9 + $0x2e0] sm:$0xff] }
  0x4e   : > { %3125 = vmatprep.subr.bf16.mxu1 %v12248_v2  ;;  %v398_v52 = vpack.c.bf16 %v320_v50, %v319_v49  ;;  %v340_v49 = vld [vmem:[%s9338_s9 + $0x388] sm:$0xff] }
  0x51   : > { %3126 = vmatpush1.bf16.msra.mxu1 %v9073_v54  ;;  %v257_v54 = vld [vmem:[%s9338_s9 + $0xf0] sm:$0xff] }
  0x52   : > { %3127 = vmatprep.subr.bf16.mxu1 %v12248_v2 }
  0x53   : > { %8263 = vmatmul.mubr.msk.bf16.gmra.mrb[20].mxu0 %vm475_vm0, %v357_v55  ;;  %8295 = vmatmul.mubr.msk.bf16.gmra.mrb[20].mxu1 %vm475_vm0, %v389_v56  ;;  %v258_v55 = vld [vmem:[%s9338_s9 + $0xf8] sm:$0xff]  ;;  %v321_v56 = vld [vmem:[%s9338_s9 + $0x2f0] sm:$0xff] }
  0x54   : > { %757 = vmatprep.mubr.bf16.mxu0 %v12248_v2  ;;  %1077 = vmatprep.mubr.bf16.mxu1 %v12248_v2  ;;  %v367_v58 = vpack.c.bf16 %v258_v55, %v257_v54  ;;  %v341_v54 = vld [vmem:[%s9338_s9 + $0x390] sm:$0xff]  ;;  %v342_v55 = vld [vmem:[%s9338_s9 + $0x398] sm:$0xff] }
  0x55   : > { %3128 = vmatpush1.bf16.msra.mxu1 %v9074_v57  ;;  %v322_v57 = vld [vmem:[%s9338_s9 + $0x2f8] sm:$0xff] }
  0x56   : > { %3129 = vmatprep.subr.bf16.mxu1 %v12248_v2  ;;  %v399_v59 = vpack.c.bf16 %v322_v57, %v321_v56  ;;  %v409_v57 = vpack.c.bf16 %v342_v55, %v341_v54 }
  0x59   : > { %3130 = vmatpush1.bf16.msra.mxu1 %v9075_v62  ;;  %v323_v62 = vld [vmem:[%s9338_s9 + $0x300] sm:$0xff] }
  0x5a   : > { %3131 = vmatprep.subr.bf16.mxu1 %v12248_v2 }
  0x5b   : > { %8264 = vmatmul.mubr.msk.bf16.gmra.mrb[24].mxu0 %vm475_vm0, %v358_v63  ;;  %8296 = vmatmul.mubr.msk.bf16.gmra.mrb[24].mxu1 %vm475_vm0, %v390_v0  ;;  %v324_v63 = vld [vmem:[%s9338_s9 + $0x308] sm:$0xff]  ;;  %v368_v0 = vpack.c.bf16 %v260_v61, %v259_v60 }
  0x5c   : > { %767 = vmatprep.mubr.bf16.mxu0 %v12248_v2  ;;  %1087 = vmatprep.mubr.bf16.mxu1 %v12248_v2  ;;  %v400_v1 = vpack.c.bf16 %v324_v63, %v323_v62  ;;  %v280_v61 = vld [vmem:[%s9338_s9 + $0x1a8] sm:$0xff]  ;;  %v343_v62 = vld [vmem:[%s9338_s9 + $0x3a0] sm:$0xff] }
  0x5d   : > { %3132 = vmatpush1.bf16.msra.mxu1 %v9076_v10  ;;  %v263_v10 = vld [vmem:[%s9338_s9 + $0x120] sm:$0xff]  ;;  %v344_v63 = vld [vmem:[%s9338_s9 + $0x3a8] sm:$0xff] }
  0x5e   : > { %3133 = vmatprep.subr.bf16.mxu1 %v12248_v2 }
  0x61   : > { %3134 = vmatpush1.bf16.msra.mxu1 %v9077_v22  ;;  %v267_v22 = vld [vmem:[%s9338_s9 + $0x140] sm:$0xff] }
  0x62   : > { %3135 = vmatprep.subr.bf16.mxu1 %v12248_v2 }
  0x63   : > { %8265 = vmatmul.mubr.msk.bf16.gmra.mrb[28].mxu0 %vm475_vm0, %v359_v6  ;;  %8297 = vmatmul.mubr.msk.bf16.gmra.mrb[28].mxu1 %vm475_vm0, %v391_v7  ;;  %v325_v6 = vld [vmem:[%s9338_s9 + $0x310] sm:$0xff]  ;;  %v326_v7 = vld [vmem:[%s9338_s9 + $0x318] sm:$0xff] }
  0x64   : > { %777 = vmatprep.mubr.bf16.mxu0 %v12248_v2  ;;  %1097 = vmatprep.mubr.bf16.mxu1 %v12248_v2  ;;  %v401_v9 = vpack.c.bf16 %v326_v7, %v325_v6  ;;  %v8247_v7 = vld [vmem:[%s12245_s4 + $0x1] ss:$2 sm:$0x3] }
  0x65   : > { %3136 = vmatpush1.bf16.msra.mxu1 %v9078_v40  ;;  %v273_v40 = vld [vmem:[%s9338_s9 + $0x170] sm:$0xff] }
  0x66   : > { %3137 = vmatprep.subr.bf16.mxu1 %v12248_v2  ;;  %v375_v44 = vpack.c.bf16 %v274_v41, %v273_v40 }
  0x69   : > { %3138 = vmatpush1.bf16.msra.mxu1 %v9079_v53  ;;  %v278_v53 = vld [vmem:[%s9338_s9 + $0x198] sm:$0xff] }
  0x6a   : > { %8473 = vmatprep.subr.bf16.mxu1 %v12250_v3 }
  0x6b   : > { %8266 = vmatmul.mubr.msk.bf16.gmra.mrb[32].mxu0 %vm475_vm0, %v360_v13  ;;  %8298 = vmatmul.mubr.msk.bf16.gmra.mrb[32].mxu1 %vm475_vm0, %v392_v14  ;;  %v328_v13 = vld [vmem:[%s9338_s9 + $0x328] sm:$0xff]  ;;  %v370_v14 = vpack.c.bf16 %v264_v11, %v263_v10  ;;  %v282_v11 = vld [vmem:[%s9338_s9 + $0x1b8] sm:$0xff] }
  0x6c   : > { %787 = vmatprep.mubr.bf16.mxu0 %v12248_v2  ;;  %1107 = vmatprep.mubr.bf16.mxu1 %v12248_v2  ;;  %v402_v15 = vpack.c.bf16 %v328_v13, %v327_v12  ;;  %v345_v12 = vld [vmem:[%s9338_s9 + $0x3b0] sm:$0xff]  ;;  %v346_v13 = vld [vmem:[%s9338_s9 + $0x3b8] sm:$0xff] }
  0x73   : > { %8267 = vmatmul.mubr.msk.bf16.gmra.mrb[36].mxu0 %vm475_vm0, %v361_v19  ;;  %8299 = vmatmul.mubr.msk.bf16.gmra.mrb[36].mxu1 %vm475_vm0, %v393_v20  ;;  %v330_v19 = vld [vmem:[%s9338_s9 + $0x338] sm:$0xff]  ;;  %v371_v20 = vpack.c.bf16 %v266_v17, %v265_v16 }
  0x74   : > { %797 = vmatprep.mubr.bf16.mxu0 %v12248_v2  ;;  %1117 = vmatprep.mubr.bf16.mxu1 %v12248_v2  ;;  %v403_v21 = vpack.c.bf16 %v330_v19, %v329_v18 }
  0x7b   : > { %8268 = vmatmul.mubr.msk.bf16.gmra.mrb[40].mxu0 %vm475_vm0, %v362_v26  ;;  %8300 = vmatmul.mubr.msk.bf16.gmra.mrb[40].mxu1 %vm475_vm0, %v394_v27  ;;  %v372_v26 = vpack.c.bf16 %v268_v23, %v267_v22  ;;  %v404_v27 = vpack.c.bf16 %v332_v25, %v331_v24 }
  0x7c   : > { %807 = vmatprep.mubr.bf16.mxu0 %v12248_v2  ;;  %1127 = vmatprep.mubr.bf16.mxu1 %v12248_v2 }
  0x83   : > { %8269 = vmatmul.mubr.msk.bf16.gmra.mrb[44].mxu0 %vm475_vm0, %v363_v32  ;;  %8301 = vmatmul.mubr.msk.bf16.gmra.mrb[44].mxu1 %vm475_vm0, %v395_v33  ;;  %v373_v32 = vpack.c.bf16 %v270_v29, %v269_v28  ;;  %v405_v33 = vpack.c.bf16 %v334_v31, %v333_v30 }
  0x84   : > { %817 = vmatprep.mubr.bf16.mxu0 %v12248_v2  ;;  %1137 = vmatprep.mubr.bf16.mxu1 %v12248_v2 }
  0x8b   : > { %8270 = vmatmul.mubr.msk.bf16.gmra.mrb[48].mxu0 %vm475_vm0, %v364_v38  ;;  %8302 = vmatmul.mubr.msk.bf16.gmra.mrb[48].mxu1 %vm475_vm0, %v396_v39  ;;  %v374_v38 = vpack.c.bf16 %v272_v35, %v271_v34  ;;  %v406_v39 = vpack.c.bf16 %v336_v37, %v335_v36 }
  0x8c   : > { %827 = vmatprep.mubr.bf16.mxu0 %v12248_v2  ;;  %1147 = vmatprep.mubr.bf16.mxu1 %v12248_v2 }
  0x93   : > { %8271 = vmatmul.mubr.msk.bf16.gmra.mrb[52].mxu0 %vm475_vm0, %v365_v45  ;;  %8303 = vmatmul.mubr.msk.bf16.gmra.mrb[52].mxu1 %vm475_vm0, %v397_v46  ;;  %v407_v45 = vpack.c.bf16 %v338_v43, %v337_v42  ;;  %v275_v46 = vld [vmem:[%s9338_s9 + $0x180] sm:$0xff] }
  0x94   : > { %837 = vmatprep.mubr.bf16.mxu0 %v12248_v2  ;;  %1157 = vmatprep.mubr.bf16.mxu1 %v12248_v2  ;;  %v376_v50 = vpack.c.bf16 %v276_v47, %v275_v46  ;;  %v283_v42 = vld [vmem:[%s9338_s9 + $0x1c0] sm:$0xff]  ;;  %v284_v47 = vld [vmem:[%s9338_s9 + $0x1c8] sm:$0xff] }
  0x9b   : > { %8272 = vmatmul.mubr.msk.bf16.gmra.mrb[56].mxu0 %vm475_vm0, %v366_v51  ;;  %8304 = vmatmul.mubr.msk.bf16.gmra.mrb[56].mxu1 %vm475_vm0, %v398_v52  ;;  %v408_v51 = vpack.c.bf16 %v340_v49, %v339_v48  ;;  %v277_v52 = vld [vmem:[%s9338_s9 + $0x190] sm:$0xff]  ;;  %v347_v48 = vld [vmem:[%s9338_s9 + $0x3c0] sm:$0xff]  ;;  %v348_v49 = vld [vmem:[%s9338_s9 + $0x3c8] sm:$0xff] }
  0x9c   : > { %847 = vmatprep.mubr.bf16.mxu0 %v12248_v2  ;;  %1167 = vmatprep.mubr.bf16.mxu1 %v12248_v2  ;;  %v377_v56 = vpack.c.bf16 %v278_v53, %v277_v52 }
  0xa3   : > { %8273 = vmatmul.mubr.msk.bf16.gmra.mrb[60].mxu0 %vm475_vm0, %v367_v58  ;;  %8305 = vmatmul.mubr.msk.bf16.gmra.mrb[60].mxu1 %vm475_vm0, %v399_v59  ;;  %v12247_v58 = vlaneseq  ;;  %v279_v59 = vld [vmem:[%s9338_s9 + $0x1a0] sm:$0xff] }
  0xa4   : > { %857 = vmatprep.mubr.bf16.mxu0 %v12248_v2  ;;  %1177 = vmatprep.mubr.bf16.mxu1 %v12248_v2 }
  0xa5   : > { %v9619_v60 = vshrl.u32 %v12247_v58, 7 }
  0xa7   : > { %12347 = vst [vmem:[#allocation7_spill] sm:$0xff] %v9619_v60  ;;  %v9627_v4 = vsub.s32 0, %v9619_v60  ;;  %v9633_v6 = vsub.s32 1, %v9619_v60  ;;  %v12366_v60 = vmov 0  }
  0xa9   : > { %v9645_v10 = vrot.slane %v224_v5, %v9633_v6  ;;  %v9656_v16 = vrot.slane %v8247_v7, %v9633_v6 }
  0xab   : > { %8274 = vmatmul.mubr.msk.bf16.gmra.mrb[64].mxu0 %vm475_vm0, %v368_v0  ;;  %8306 = vmatmul.mubr.msk.bf16.gmra.mrb[64].mxu1 %vm475_vm0, %v400_v1  ;;  %v378_v0 = vpack.c.bf16 %v280_v61, %v279_v59  ;;  %v410_v1 = vpack.c.bf16 %v344_v63, %v343_v62  ;;  %v380_v62 = vpack.c.bf16 %v284_v47, %v283_v42 }
  0xac   : > { %867 = vmatprep.mubr.bf16.mxu0 %v12248_v2  ;;  %1187 = vmatprep.mubr.bf16.mxu1 %v12248_v2  ;;  %v412_v63 = vpack.c.bf16 %v348_v49, %v347_v48 }
  0xb3   : > { %8275 = vmatmul.mubr.msk.bf16.gmra.mrb[68].mxu0 %vm475_vm0, %v369_v8  ;;  %8307 = vmatmul.mubr.msk.bf16.gmra.mrb[68].mxu1 %vm475_vm0, %v401_v9  ;;  %v9641_v8 = vrot.slane %v224_v5, %v9627_v4  ;;  %v281_v9 = vld [vmem:[%s9338_s9 + $0x1b0] sm:$0xff] }
  0xb4   : > { %877 = vmatprep.mubr.bf16.mxu0 %v12248_v2  ;;  %1197 = vmatprep.mubr.bf16.mxu1 %v12248_v2 }
  0xbb   : > { %8276 = vmatmul.mubr.msk.bf16.gmra.mrb[72].mxu0 %vm475_vm0, %v370_v14  ;;  %8308 = vmatmul.mubr.msk.bf16.gmra.mrb[72].mxu1 %vm475_vm0, %v402_v15  ;;  %v9653_v14 = vrot.slane %v8247_v7, %v9627_v4 }
  0xbc   : > { %887 = vmatprep.mubr.bf16.mxu0 %v12248_v2  ;;  %1207 = vmatprep.mubr.bf16.mxu1 %v12248_v2 }
  0xc3   : > { %8277 = vmatmul.mubr.msk.bf16.gmra.mrb[76].mxu0 %vm475_vm0, %v371_v20  ;;  %8309 = vmatmul.mubr.msk.bf16.gmra.mrb[76].mxu1 %vm475_vm0, %v403_v21  ;;  %v379_v20 = vpack.c.bf16 %v282_v11, %v281_v9  ;;  %v411_v21 = vpack.c.bf16 %v346_v13, %v345_v12 }
  0xc4   : > { %897 = vmatprep.mubr.bf16.mxu0 %v12248_v2  ;;  %1217 = vmatprep.mubr.bf16.mxu1 %v12248_v2 }
  0xcb   : > { %8278 = vmatmul.mubr.msk.bf16.gmra.mrb[80].mxu0 %vm475_vm0, %v372_v26  ;;  %8310 = vmatmul.mubr.msk.bf16.gmra.mrb[80].mxu1 %vm475_vm0, %v404_v27 }
  0xcc   : > { %907 = vmatprep.mubr.bf16.mxu0 %v12248_v2  ;;  %1227 = vmatprep.mubr.bf16.mxu1 %v12248_v2 }
  0xd3   : > { %8279 = vmatmul.mubr.msk.bf16.gmra.mrb[84].mxu0 %vm475_vm0, %v373_v32  ;;  %8311 = vmatmul.mubr.msk.bf16.gmra.mrb[84].mxu1 %vm475_vm0, %v405_v33 }
  0xd4   : > { %917 = vmatprep.mubr.bf16.mxu0 %v12248_v2  ;;  %1237 = vmatprep.mubr.bf16.mxu1 %v12248_v2 }
  0xdb   : > { %8280 = vmatmul.mubr.msk.bf16.gmra.mrb[88].mxu0 %vm475_vm0, %v374_v38  ;;  %8312 = vmatmul.mubr.msk.bf16.gmra.mrb[88].mxu1 %vm475_vm0, %v406_v39 }
  0xdc   : > { %927 = vmatprep.mubr.bf16.mxu0 %v12248_v2  ;;  %1247 = vmatprep.mubr.bf16.mxu1 %v12248_v2 }
  0xe3   : > { %8281 = vmatmul.mubr.msk.bf16.gmra.mrb[92].mxu0 %vm475_vm0, %v375_v44  ;;  %8313 = vmatmul.mubr.msk.bf16.gmra.mrb[92].mxu1 %vm475_vm0, %v407_v45 }
  0xe4   : > { %937 = vmatprep.mubr.bf16.mxu0 %v12248_v2  ;;  %1257 = vmatprep.mubr.bf16.mxu1 %v12248_v2 }
  0xeb   : > { %8282 = vmatmul.mubr.msk.bf16.gmra.mrb[96].mxu0 %vm475_vm0, %v376_v50  ;;  %8314 = vmatmul.mubr.msk.bf16.gmra.mrb[96].mxu1 %vm475_vm0, %v408_v51 }
  0xec   : > { %947 = vmatprep.mubr.bf16.mxu0 %v12248_v2  ;;  %1267 = vmatprep.mubr.bf16.mxu1 %v12248_v2 }
  0xf3   : > { %8283 = vmatmul.mubr.msk.bf16.gmra.mrb[100].mxu0 %vm475_vm0, %v377_v56  ;;  %8315 = vmatmul.mubr.msk.bf16.gmra.mrb[100].mxu1 %vm475_vm0, %v409_v57 }
  0xf4   : > { %957 = vmatprep.mubr.bf16.mxu0 %v12248_v2  ;;  %1277 = vmatprep.mubr.bf16.mxu1 %v12248_v2 }
  0xfb   : > { %8284 = vmatmul.mubr.msk.bf16.gmra.mrb[104].mxu0 %vm475_vm0, %v378_v0  ;;  %8316 = vmatmul.mubr.msk.bf16.gmra.mrb[104].mxu1 %vm475_vm0, %v410_v1 }
  0xfc   : > { %967 = vmatprep.mubr.bf16.mxu0 %v12248_v2  ;;  %1287 = vmatprep.mubr.bf16.mxu1 %v12248_v2 }
  0xfe   : > { %v1019_v15 = vpop.f32.mrb[0].mxu1  ;;  %v699_v17 = vpop.f32.mrb[0].mxu0 }
  0xff   : > { %v1465_v18 = vmul.f32 %v9641_v8, %v1019_v15  ;;  %v1021_v19 = vpop.f32.mrb[1].mxu1  ;;  %v1337_v22 = vmul.f32 %v9641_v8, %v699_v17  ;;  %v701_v23 = vpop.f32.mrb[1].mxu0 }
 0x100   : > { %v1466_v24 = vmul.f32 %v9645_v10, %v1021_v19  ;;  %v1023_v25 = vpop.f32.mrb[2].mxu1  ;;  %v1338_v26 = vmul.f32 %v9645_v10, %v701_v23  ;;  %v703_v27 = vpop.f32.mrb[2].mxu0 }
 0x101   : > { %v1726_v28 = vadd.f32 %v9653_v14, %v1465_v18  ;;  %v1467_v29 = vmul.f32 %v9641_v8, %v1023_v25  ;;  %v1025_v30 = vpop.f32.mrb[3].mxu1  ;;  %v1598_v31 = vadd.f32 %v9653_v14, %v1337_v22  ;;  %v1339_v32 = vmul.f32 %v9641_v8, %v703_v27  ;;  %v705_v33 = vpop.f32.mrb[3].mxu0  ;;  %v285_v27 = vld [vmem:[%s9338_s9 + $0x1d0] sm:$0xff] }
 0x102   : > { %v1727_v34 = vadd.f32 %v9656_v16, %v1466_v24  ;;  %v1468_v35 = vmul.f32 %v9645_v10, %v1025_v30  ;;  %v1599_v36 = vadd.f32 %v9656_v16, %v1338_v26  ;;  %v1340_v37 = vmul.f32 %v9645_v10, %v705_v33  ;;  %v349_v33 = vld [vmem:[%s9338_s9 + $0x3d0] sm:$0xff] }
 0x103   : > { %v1976_v38 = vmax.f32 %v1726_v28, 0.0  ;;  %v1728_v39 = vadd.f32 %v9653_v14, %v1467_v29  ;;  %8285 = vmatmul.mubr.msk.bf16.gmra.mrb[108].mxu0 %vm475_vm0, %v379_v20  ;;  %8317 = vmatmul.mubr.msk.bf16.gmra.mrb[108].mxu1 %vm475_vm0, %v411_v21  ;;  %v1848_v40 = vmax.f32 %v1598_v31, 0.0  ;;  %v1600_v41 = vadd.f32 %v9653_v14, %v1339_v32  ;;  %v286_v32 = vld [vmem:[%s9338_s9 + $0x1d8] sm:$0xff] }
 0x104   : > { %v1977_v43 = vmax.f32 %v1727_v34, 0.0  ;;  %v1729_v44 = vadd.f32 %v9656_v16, %v1468_v35  ;;  %v1849_v45 = vmax.f32 %v1599_v36, 0.0  ;;  %v1601_v46 = vadd.f32 %v9656_v16, %v1340_v37  ;;  %977 = vmatprep.mubr.bf16.mxu0 %v12248_v2  ;;  %1297 = vmatprep.mubr.bf16.mxu1 %v12248_v2  ;;  %v350_v34 = vld [vmem:[%s9338_s9 + $0x3d8] sm:$0xff] }
 0x105   : > { %2162 = vst [vmem:[#allocation2 + $0x400] sm:$0xff] %v1976_v38  ;;  %v1978_v50 = vmax.f32 %v1728_v39, 0.0  ;;  %2098 = vst [vmem:[#allocation2] sm:$0xff] %v1848_v40  ;;  %v1850_v51 = vmax.f32 %v1600_v41, 0.0 }
 0x106   : > { %2287 = vst [vmem:[#allocation3 + $0x200] sm:$0xff] %v1977_v43  ;;  %v1979_v52 = vmax.f32 %v1729_v44, 0.0  ;;  %2223 = vst [vmem:[#allocation3] sm:$0xff] %v1849_v45  ;;  %v1029_v53 = vpop.f32.mrb[4].mxu1  ;;  %v1851_v54 = vmax.f32 %v1601_v46, 0.0  ;;  %v709_v55 = vpop.f32.mrb[4].mxu0  ;;  %v413_v46 = vpack.c.bf16 %v350_v34, %v349_v33 }
 0x107   : > { %2163 = vst [vmem:[#allocation2 + $0x410] sm:$0xff] %v1978_v50  ;;  %2099 = vst [vmem:[#allocation2 + $0x10] sm:$0xff] %v1850_v51  ;;  %v1469_v56 = vmul.f32 %v9641_v8, %v1029_v53  ;;  %v1031_v57 = vpop.f32.mrb[5].mxu1  ;;  %v1341_v59 = vmul.f32 %v9641_v8, %v709_v55  ;;  %v711_v61 = vpop.f32.mrb[5].mxu0 }
 0x108   : > { %2288 = vst [vmem:[#allocation3 + $0x208] sm:$0xff] %v1979_v52  ;;  %2224 = vst [vmem:[#allocation3 + $0x8] sm:$0xff] %v1851_v54  ;;  %v1470_v0 = vmul.f32 %v9645_v10, %v1031_v57  ;;  %v1033_v1 = vpop.f32.mrb[6].mxu1  ;;  %v1342_v5 = vmul.f32 %v9645_v10, %v711_v61  ;;  %v713_v7 = vpop.f32.mrb[6].mxu0  ;;  %v9686_v9 = vpack.c.bf16 %v1851_v54, %v1849_v45 }
 0x109   : > { %v1730_v11 = vadd.f32 %v9653_v14, %v1469_v56  ;;  %v1602_v12 = vadd.f32 %v9653_v14, %v1341_v59  ;;  %v1471_v13 = vmul.f32 %v9641_v8, %v1033_v1  ;;  %v1035_v15 = vpop.f32.mrb[7].mxu1  ;;  %v1343_v17 = vmul.f32 %v9641_v8, %v713_v7  ;;  %v715_v18 = vpop.f32.mrb[7].mxu0 }
 0x10a   : > { %v1731_v19 = vadd.f32 %v9656_v16, %v1470_v0  ;;  %v1603_v20 = vadd.f32 %v9656_v16, %v1342_v5  ;;  %v1472_v21 = vmul.f32 %v9645_v10, %v1035_v15  ;;  %v1344_v22 = vmul.f32 %v9645_v10, %v715_v18  ;;  %v288_v18 = vld [vmem:[%s9338_s9 + $0x1e8] sm:$0xff] }
 0x10b   : > { %v1980_v23 = vmax.f32 %v1730_v11, 0.0  ;;  %v1852_v24 = vmax.f32 %v1602_v12, 0.0  ;;  %v1732_v25 = vadd.f32 %v9653_v14, %v1471_v13  ;;  %8286 = vmatmul.mubr.msk.bf16.gmra.mrb[112].mxu0 %vm475_vm0, %v380_v62  ;;  %8318 = vmatmul.mubr.msk.bf16.gmra.mrb[112].mxu1 %vm475_vm0, %v412_v63  ;;  %v1604_v26 = vadd.f32 %v9653_v14, %v1343_v17  ;;  %v287_v17 = vld [vmem:[%s9338_s9 + $0x1e0] sm:$0xff] }
 0x10c   : > { %v1981_v28 = vmax.f32 %v1731_v19, 0.0  ;;  %v1853_v29 = vmax.f32 %v1603_v20, 0.0  ;;  %v1733_v30 = vadd.f32 %v9656_v16, %v1472_v21  ;;  %v1605_v31 = vadd.f32 %v9656_v16, %v1344_v22  ;;  %987 = vmatprep.mubr.bf16.mxu0 %v12248_v2  ;;  %1307 = vmatprep.mubr.bf16.mxu1 %v12248_v2  ;;  %v351_v19 = vld [vmem:[%s9338_s9 + $0x3e0] sm:$0xff] }
 0x10d   : > { %2164 = vst [vmem:[#allocation2 + $0x420] sm:$0xff] %v1980_v23  ;;  %2100 = vst [vmem:[#allocation2 + $0x20] sm:$0xff] %v1852_v24  ;;  %v1982_v35 = vmax.f32 %v1732_v25, 0.0  ;;  %v1854_v36 = vmax.f32 %v1604_v26, 0.0  ;;  %v381_v45 = vpack.c.bf16 %v286_v32, %v285_v27  ;;  %v382_v32 = vpack.c.bf16 %v288_v18, %v287_v17 }
 0x10e   : > { %2289 = vst [vmem:[#allocation3 + $0x210] sm:$0xff] %v1981_v28  ;;  %2225 = vst [vmem:[#allocation3 + $0x10] sm:$0xff] %v1853_v29  ;;  %v1983_v37 = vmax.f32 %v1733_v30, 0.0  ;;  %v1039_v38 = vpop.f32.mrb[8].mxu1  ;;  %v1855_v39 = vmax.f32 %v1605_v31, 0.0  ;;  %v719_v40 = vpop.f32.mrb[8].mxu0  ;;  %v414_v33 = vpack.c.bf16 %v351_v19, %v351_v19 }
 0x10f   : > { %2165 = vst [vmem:[#allocation2 + $0x430] sm:$0xff] %v1982_v35  ;;  %2101 = vst [vmem:[#allocation2 + $0x30] sm:$0xff] %v1854_v36  ;;  %v1473_v41 = vmul.f32 %v9641_v8, %v1039_v38  ;;  %v1041_v42 = vpop.f32.mrb[9].mxu1  ;;  %v1345_v43 = vmul.f32 %v9641_v8, %v719_v40  ;;  %v721_v44 = vpop.f32.mrb[9].mxu0  ;;  %v2473_v22 = vld [vmem:[#allocation3 + $0x1] sm:$0xff] }
 0x110   : > { %2290 = vst [vmem:[#allocation3 + $0x218] sm:$0xff] %v1983_v37  ;;  %2226 = vst [vmem:[#allocation3 + $0x18] sm:$0xff] %v1855_v39  ;;  %v1474_v47 = vmul.f32 %v9645_v10, %v1041_v42  ;;  %v1043_v48 = vpop.f32.mrb[10].mxu1  ;;  %v1346_v49 = vmul.f32 %v9645_v10, %v721_v44  ;;  %v723_v50 = vpop.f32.mrb[10].mxu0  ;;  %v9712_v51 = vpack.c.bf16 %v1855_v39, %v1853_v29 }
 0x111   : > { %v1734_v52 = vadd.f32 %v9653_v14, %v1473_v41  ;;  %v1606_v53 = vadd.f32 %v9653_v14, %v1345_v43  ;;  %v1475_v54 = vmul.f32 %v9641_v8, %v1043_v48  ;;  %v1045_v55 = vpop.f32.mrb[11].mxu1  ;;  %v1347_v56 = vmul.f32 %v9641_v8, %v723_v50  ;;  %v725_v57 = vpop.f32.mrb[11].mxu0 }
 0x112   : > { %v1735_v59 = vadd.f32 %v9656_v16, %v1474_v47  ;;  %v1607_v61 = vadd.f32 %v9656_v16, %v1346_v49  ;;  %v1476_v62 = vmul.f32 %v9645_v10, %v1045_v55  ;;  %v1348_v63 = vmul.f32 %v9645_v10, %v725_v57 }
 0x113   : > { %v1984_v0 = vmax.f32 %v1734_v52, 0.0  ;;  %v1856_v1 = vmax.f32 %v1606_v53, 0.0  ;;  %v1736_v5 = vadd.f32 %v9653_v14, %v1475_v54  ;;  %8287 = vmatmul.mubr.msk.bf16.gmra.mrb[116].mxu0 %vm475_vm0, %v381_v45  ;;  %8319 = vmatmul.mubr.msk.bf16.gmra.mrb[116].mxu1 %vm475_vm0, %v413_v46  ;;  %v1608_v7 = vadd.f32 %v9653_v14, %v1347_v56 }
 0x114   : > { %v1985_v11 = vmax.f32 %v1735_v59, 0.0  ;;  %v1857_v12 = vmax.f32 %v1607_v61, 0.0  ;;  %v1737_v13 = vadd.f32 %v9656_v16, %v1476_v62  ;;  %v1609_v15 = vadd.f32 %v9656_v16, %v1348_v63  ;;  %997 = vmatprep.mubr.bf16.mxu0 %v12248_v2  ;;  %1317 = vmatprep.mubr.bf16.mxu1 %v12248_v2  ;;  %v289_v61 = vld [vmem:[%s9338_s9 + $0x1f0] sm:$0xff]  ;;  %v290_v62 = vld [vmem:[%s9338_s9 + $0x1f8] sm:$0xff]  ;;  %s8168_s9 = scalar_lea.sflag [#allocation5], %s215_s12 }
 0x115   : > { %2166 = vst [vmem:[#allocation2 + $0x440] sm:$0xff] %v1984_v0  ;;  %2102 = vst [vmem:[#allocation2 + $0x40] sm:$0xff] %v1856_v1  ;;  %v1986_v20 = vmax.f32 %v1736_v5, 0.0  ;;  %v1858_v21 = vmax.f32 %v1608_v7, 0.0  ;;  %v2474_v23 = vld [vmem:[#allocation3 + $0x9] sm:$0xff] }
 0x116   : > { %2291 = vst [vmem:[#allocation3 + $0x220] sm:$0xff] %v1985_v11  ;;  %2227 = vst [vmem:[#allocation3 + $0x20] sm:$0xff] %v1857_v12  ;;  %v1987_v24 = vmax.f32 %v1737_v13, 0.0  ;;  %v1049_v25 = vpop.f32.mrb[12].mxu1  ;;  %v1859_v26 = vmax.f32 %v1609_v15, 0.0  ;;  %v729_v27 = vpop.f32.mrb[12].mxu0  ;;  %v2724_v37 = vpack.c.bf16 %v2474_v23, %v2473_v22 }
 0x117   : > { %2167 = vst [vmem:[#allocation2 + $0x450] sm:$0xff] %v1986_v20  ;;  %2103 = vst [vmem:[#allocation2 + $0x50] sm:$0xff] %v1858_v21  ;;  %v1477_v28 = vmul.f32 %v9641_v8, %v1049_v25  ;;  %v1051_v29 = vpop.f32.mrb[13].mxu1  ;;  %v1349_v30 = vmul.f32 %v9641_v8, %v729_v27  ;;  %v731_v31 = vpop.f32.mrb[13].mxu0  ;;  %v2475_v1 = vld [vmem:[#allocation3 + $0x11] sm:$0xff]  ;;  %v383_v20 = vpack.c.bf16 %v290_v62, %v289_v61 }
 0x118   : > { %2292 = vst [vmem:[#allocation3 + $0x228] sm:$0xff] %v1987_v24  ;;  %2228 = vst [vmem:[#allocation3 + $0x28] sm:$0xff] %v1859_v26  ;;  %v1478_v34 = vmul.f32 %v9645_v10, %v1051_v29  ;;  %v1053_v35 = vpop.f32.mrb[14].mxu1  ;;  %v1350_v36 = vmul.f32 %v9645_v10, %v731_v31  ;;  %v733_v38 = vpop.f32.mrb[14].mxu0  ;;  %v9737_v39 = vpack.c.bf16 %v1859_v26, %v1857_v12  ;;  %v9080_v25 = vld [vmem:[%s12243_s2 + $0x80] sm:$0xff]  }
 0x119   : > { %v1738_v40 = vadd.f32 %v9653_v14, %v1477_v28  ;;  %v1610_v41 = vadd.f32 %v9653_v14, %v1349_v30  ;;  %v1479_v42 = vmul.f32 %v9641_v8, %v1053_v35  ;;  %v1055_v43 = vpop.f32.mrb[15].mxu1  ;;  %v1351_v44 = vmul.f32 %v9641_v8, %v733_v38  ;;  %v735_v45 = vpop.f32.mrb[15].mxu0 }
 0x11a   : > { %v1739_v46 = vadd.f32 %v9656_v16, %v1478_v34  ;;  %v1611_v47 = vadd.f32 %v9656_v16, %v1350_v36  ;;  %v1480_v48 = vmul.f32 %v9645_v10, %v1055_v43  ;;  %v1352_v49 = vmul.f32 %v9645_v10, %v735_v45 }
 0x11b   : > { %v1988_v50 = vmax.f32 %v1738_v40, 0.0  ;;  %v1860_v52 = vmax.f32 %v1610_v41, 0.0  ;;  %v1740_v53 = vadd.f32 %v9653_v14, %v1479_v42  ;;  %8288 = vmatmul.mubr.msk.bf16.gmra.mrb[120].mxu0 %vm475_vm0, %v382_v32  ;;  %8320 = vmatmul.mubr.msk.bf16.gmra.mrb[120].mxu1 %vm475_vm0, %v414_v33  ;;  %v1612_v54 = vadd.f32 %v9653_v14, %v1351_v44 }
 0x11c   : > { %v1989_v55 = vmax.f32 %v1739_v46, 0.0  ;;  %v1861_v56 = vmax.f32 %v1611_v47, 0.0  ;;  %v1741_v57 = vadd.f32 %v9656_v16, %v1480_v48  ;;  %3139 = vmatprep.mubr.bf16.mxu1 %v2724_v37  ;;  %v1613_v59 = vadd.f32 %v9656_v16, %v1352_v49  ;;  %1007 = vmatprep.mubr.bf16.mxu0 %v12248_v2  ;;  %v9081_v47 = vld [vmem:[%s12243_s2 + $0x88] sm:$0xff]  }
 0x11d   : > { %2168 = vst [vmem:[#allocation2 + $0x460] sm:$0xff] %v1988_v50  ;;  %2104 = vst [vmem:[#allocation2 + $0x60] sm:$0xff] %v1860_v52  ;;  %v1990_v63 = vmax.f32 %v1740_v53, 0.0  ;;  %v1862_v0 = vmax.f32 %v1612_v54, 0.0  ;;  %v2476_v5 = vld [vmem:[#allocation3 + $0x19] sm:$0xff] }
 0x11e   : > { %2293 = vst [vmem:[#allocation3 + $0x230] sm:$0xff] %v1989_v55  ;;  %2229 = vst [vmem:[#allocation3 + $0x30] sm:$0xff] %v1861_v56  ;;  %v1991_v7 = vmax.f32 %v1741_v57, 0.0  ;;  %v1059_v11 = vpop.f32.mrb[16].mxu1  ;;  %v1863_v12 = vmax.f32 %v1613_v59, 0.0  ;;  %v739_v13 = vpop.f32.mrb[16].mxu0  ;;  %v2727_v24 = vpack.c.bf16 %v2476_v5, %v2475_v1 }
 0x11f   : > { %2169 = vst [vmem:[#allocation2 + $0x470] sm:$0xff] %v1990_v63  ;;  %2105 = vst [vmem:[#allocation2 + $0x70] sm:$0xff] %v1862_v0  ;;  %v1481_v15 = vmul.f32 %v9641_v8, %v1059_v11  ;;  %v1061_v17 = vpop.f32.mrb[17].mxu1  ;;  %v1353_v18 = vmul.f32 %v9641_v8, %v739_v13  ;;  %v741_v19 = vpop.f32.mrb[17].mxu0  ;;  %v2477_v50 = vld [vmem:[#allocation3 + $0x21] sm:$0xff] }
 0x120   : > { %2294 = vst [vmem:[#allocation3 + $0x238] sm:$0xff] %v1991_v7  ;;  %2230 = vst [vmem:[#allocation3 + $0x38] sm:$0xff] %v1863_v12  ;;  %v1482_v21 = vmul.f32 %v9645_v10, %v1061_v17  ;;  %v1063_v22 = vpop.f32.mrb[18].mxu1  ;;  %v1354_v23 = vmul.f32 %v9645_v10, %v741_v19  ;;  %v743_v26 = vpop.f32.mrb[18].mxu0  ;;  %v9763_v27 = vpack.c.bf16 %v1863_v12, %v1861_v56  ;;  %v9082_v11 = vld [vmem:[%s12243_s2 + $0x90] sm:$0xff]  }
 0x121   : > { %v1742_v28 = vadd.f32 %v9653_v14, %v1481_v15  ;;  %v1614_v29 = vadd.f32 %v9653_v14, %v1353_v18  ;;  %v1483_v30 = vmul.f32 %v9641_v8, %v1063_v22  ;;  %v1065_v31 = vpop.f32.mrb[19].mxu1  ;;  %v1355_v32 = vmul.f32 %v9641_v8, %v743_v26  ;;  %v745_v33 = vpop.f32.mrb[19].mxu0 }
 0x122   : > { %v1743_v34 = vadd.f32 %v9656_v16, %v1482_v21  ;;  %v1615_v35 = vadd.f32 %v9656_v16, %v1354_v23  ;;  %v1484_v36 = vmul.f32 %v9645_v10, %v1065_v31  ;;  %v1356_v37 = vmul.f32 %v9645_v10, %v745_v33 }
 0x123   : > { %v1992_v38 = vmax.f32 %v1742_v28, 0.0  ;;  %v1864_v40 = vmax.f32 %v1614_v29, 0.0  ;;  %v1744_v41 = vadd.f32 %v9653_v14, %v1483_v30  ;;  %8289 = vmatmul.mubr.msk.bf16.gmra.mrb[124].mxu0 %vm475_vm0, %v383_v20  ;;  %3140 = vmatmul.mubr.bf16.vlgmr.msra.gmra.mrb[124].mxu1 %v9686_v9  ;;  %v1616_v42 = vadd.f32 %v9653_v14, %v1355_v32 }
 0x124   : > { %v1993_v43 = vmax.f32 %v1743_v34, 0.0  ;;  %v1865_v44 = vmax.f32 %v1615_v35, 0.0  ;;  %v1745_v45 = vadd.f32 %v9656_v16, %v1484_v36  ;;  %3147 = vmatprep.mubr.bf16.mxu1 %v2727_v24  ;;  %8474 = vmatpush3.bf16.msra.mxu1 %v9080_v25  ;;  %v1617_v46 = vadd.f32 %v9656_v16, %v1356_v37 }
 0x125   : > { %2170 = vst [vmem:[#allocation2 + $0x480] sm:$0xff] %v1992_v38  ;;  %2106 = vst [vmem:[#allocation2 + $0x80] sm:$0xff] %v1864_v40  ;;  %v1994_v48 = vmax.f32 %v1744_v41, 0.0  ;;  %v1866_v49 = vmax.f32 %v1616_v42, 0.0  ;;  %v2478_v9 = vld [vmem:[#allocation3 + $0x29] sm:$0xff]  ;;  %8475 = vmatprep.subr.bf16.mxu1 %v12250_v3 }
 0x126   : > { %2295 = vst [vmem:[#allocation3 + $0x240] sm:$0xff] %v1993_v43  ;;  %2231 = vst [vmem:[#allocation3 + $0x40] sm:$0xff] %v1865_v44  ;;  %v1995_v52 = vmax.f32 %v1745_v45, 0.0  ;;  %v1069_v53 = vpop.f32.mrb[20].mxu1  ;;  %v1867_v54 = vmax.f32 %v1617_v46, 0.0  ;;  %v749_v55 = vpop.f32.mrb[20].mxu0  ;;  %v2730_v1 = vpack.c.bf16 %v2478_v9, %v2477_v50 }
 0x127   : > { %2171 = vst [vmem:[#allocation2 + $0x490] sm:$0xff] %v1994_v48  ;;  %2107 = vst [vmem:[#allocation2 + $0x90] sm:$0xff] %v1866_v49  ;;  %v1485_v56 = vmul.f32 %v9641_v8, %v1069_v53  ;;  %v1071_v57 = vpop.f32.mrb[21].mxu1  ;;  %v1357_v59 = vmul.f32 %v9641_v8, %v749_v55  ;;  %v751_v61 = vpop.f32.mrb[21].mxu0  ;;  %v2479_v35 = vld [vmem:[#allocation3 + $0x31] sm:$0xff] }
 0x128   : > { %2296 = vst [vmem:[#allocation3 + $0x248] sm:$0xff] %v1995_v52  ;;  %2232 = vst [vmem:[#allocation3 + $0x48] sm:$0xff] %v1867_v54  ;;  %v1486_v62 = vmul.f32 %v9645_v10, %v1071_v57  ;;  %v1073_v63 = vpop.f32.mrb[22].mxu1  ;;  %v1358_v0 = vmul.f32 %v9645_v10, %v751_v61  ;;  %v753_v5 = vpop.f32.mrb[22].mxu0  ;;  %v9787_v7 = vpack.c.bf16 %v1867_v54, %v1865_v44  ;;  %8476 = vmatpush3.bf16.msra.mxu1 %v9081_v47 }
 0x129   : > { %v1746_v12 = vadd.f32 %v9653_v14, %v1485_v56  ;;  %v1618_v13 = vadd.f32 %v9653_v14, %v1357_v59  ;;  %v1487_v15 = vmul.f32 %v9641_v8, %v1073_v63  ;;  %v1075_v17 = vpop.f32.mrb[23].mxu1  ;;  %v1359_v18 = vmul.f32 %v9641_v8, %v753_v5  ;;  %v755_v19 = vpop.f32.mrb[23].mxu0  ;;  %8477 = vmatprep.subr.bf16.mxu1 %v12250_v3 }
 0x12a   : > { %v1747_v20 = vadd.f32 %v9656_v16, %v1486_v62  ;;  %v1619_v21 = vadd.f32 %v9656_v16, %v1358_v0  ;;  %v1488_v22 = vmul.f32 %v9645_v10, %v1075_v17  ;;  %v1360_v23 = vmul.f32 %v9645_v10, %v755_v19 }
 0x12b   : > { %v1996_v24 = vmax.f32 %v1746_v12, 0.0  ;;  %v1868_v25 = vmax.f32 %v1618_v13, 0.0  ;;  %v1748_v26 = vadd.f32 %v9653_v14, %v1487_v15  ;;  %3148 = vmatmul.mubr.bf16.gmra.mrb[128].mxu1 %v9712_v51  ;;  %v1620_v28 = vadd.f32 %v9653_v14, %v1359_v18 }
 0x12c   : > { %v1997_v29 = vmax.f32 %v1747_v20, 0.0  ;;  %v1869_v30 = vmax.f32 %v1619_v21, 0.0  ;;  %v1749_v31 = vadd.f32 %v9656_v16, %v1488_v22  ;;  %3155 = vmatprep.mubr.bf16.mxu1 %v2730_v1  ;;  %v1621_v32 = vadd.f32 %v9656_v16, %v1360_v23  ;;  %8478 = vmatpush3.bf16.msra.mxu1 %v9082_v11 }
 0x12d   : > { %2172 = vst [vmem:[#allocation2 + $0x4a0] sm:$0xff] %v1996_v24  ;;  %2108 = vst [vmem:[#allocation2 + $0xa0] sm:$0xff] %v1868_v25  ;;  %v1998_v33 = vmax.f32 %v1748_v26, 0.0  ;;  %v1870_v34 = vmax.f32 %v1620_v28, 0.0  ;;  %v2480_v36 = vld [vmem:[#allocation3 + $0x39] sm:$0xff]  ;;  %8479 = vmatprep.subr.bf16.mxu1 %v12250_v3 }
 0x12e   : > { %2297 = vst [vmem:[#allocation3 + $0x250] sm:$0xff] %v1997_v29  ;;  %2233 = vst [vmem:[#allocation3 + $0x50] sm:$0xff] %v1869_v30  ;;  %v1999_v51 = vmax.f32 %v1749_v31, 0.0  ;;  %v1079_v37 = vpop.f32.mrb[24].mxu1  ;;  %v1871_v38 = vmax.f32 %v1621_v32, 0.0  ;;  %v759_v40 = vpop.f32.mrb[24].mxu0  ;;  %v2733_v48 = vpack.c.bf16 %v2480_v36, %v2479_v35 }
 0x12f   : > { %2173 = vst [vmem:[#allocation2 + $0x4b0] sm:$0xff] %v1998_v33  ;;  %2109 = vst [vmem:[#allocation2 + $0xb0] sm:$0xff] %v1870_v34  ;;  %v1489_v41 = vmul.f32 %v9641_v8, %v1079_v37  ;;  %v1081_v42 = vpop.f32.mrb[25].mxu1  ;;  %v1361_v43 = vmul.f32 %v9641_v8, %v759_v40  ;;  %v761_v44 = vpop.f32.mrb[25].mxu0  ;;  %v2481_v19 = vld [vmem:[#allocation3 + $0x41] sm:$0xff] }
 0x130   : > { %2298 = vst [vmem:[#allocation3 + $0x258] sm:$0xff] %v1999_v51  ;;  %2234 = vst [vmem:[#allocation3 + $0x58] sm:$0xff] %v1871_v38  ;;  %v1490_v45 = vmul.f32 %v9645_v10, %v1081_v42  ;;  %v1083_v46 = vpop.f32.mrb[26].mxu1  ;;  %v1362_v47 = vmul.f32 %v9645_v10, %v761_v44  ;;  %v763_v49 = vpop.f32.mrb[26].mxu0  ;;  %v9811_v50 = vpack.c.bf16 %v1871_v38, %v1869_v30 }
 0x131   : > { %v1750_v9 = vadd.f32 %v9653_v14, %v1489_v41  ;;  %v1622_v52 = vadd.f32 %v9653_v14, %v1361_v43  ;;  %v1491_v53 = vmul.f32 %v9641_v8, %v1083_v46  ;;  %v1085_v54 = vpop.f32.mrb[27].mxu1  ;;  %v1363_v55 = vmul.f32 %v9641_v8, %v763_v49  ;;  %v765_v56 = vpop.f32.mrb[27].mxu0 }
 0x132   : > { %v1751_v57 = vadd.f32 %v9656_v16, %v1490_v45  ;;  %v1623_v59 = vadd.f32 %v9656_v16, %v1362_v47  ;;  %v1492_v61 = vmul.f32 %v9645_v10, %v1085_v54  ;;  %v1364_v62 = vmul.f32 %v9645_v10, %v765_v56 }
 0x133   : > { %v2000_v63 = vmax.f32 %v1750_v9, 0.0  ;;  %v1872_v0 = vmax.f32 %v1622_v52, 0.0  ;;  %v1752_v1 = vadd.f32 %v9653_v14, %v1491_v53  ;;  %3156 = vmatmul.mubr.bf16.gmra.mrb[132].mxu1 %v9737_v39  ;;  %v1624_v5 = vadd.f32 %v9653_v14, %v1363_v55 }
 0x134   : > { %v2001_v11 = vmax.f32 %v1751_v57, 0.0  ;;  %v1873_v12 = vmax.f32 %v1623_v59, 0.0  ;;  %v1753_v13 = vadd.f32 %v9656_v16, %v1492_v61  ;;  %3163 = vmatprep.mubr.bf16.mxu1 %v2733_v48  ;;  %v1625_v15 = vadd.f32 %v9656_v16, %v1364_v62 }
 0x135   : > { %2174 = vst [vmem:[#allocation2 + $0x4c0] sm:$0xff] %v2000_v63  ;;  %2110 = vst [vmem:[#allocation2 + $0xc0] sm:$0xff] %v1872_v0  ;;  %v2002_v17 = vmax.f32 %v1752_v1, 0.0  ;;  %v1874_v18 = vmax.f32 %v1624_v5, 0.0  ;;  %v2482_v20 = vld [vmem:[#allocation3 + $0x49] sm:$0xff] }
 0x136   : > { %2299 = vst [vmem:[#allocation3 + $0x260] sm:$0xff] %v2001_v11  ;;  %2235 = vst [vmem:[#allocation3 + $0x60] sm:$0xff] %v1873_v12  ;;  %v2003_v21 = vmax.f32 %v1753_v13, 0.0  ;;  %v1089_v22 = vpop.f32.mrb[28].mxu1  ;;  %v1875_v39 = vmax.f32 %v1625_v15, 0.0  ;;  %v769_v23 = vpop.f32.mrb[28].mxu0  ;;  %v2736_v32 = vpack.c.bf16 %v2482_v20, %v2481_v19 }
 0x137   : > { %2175 = vst [vmem:[#allocation2 + $0x4d0] sm:$0xff] %v2002_v17  ;;  %2111 = vst [vmem:[#allocation2 + $0xd0] sm:$0xff] %v1874_v18  ;;  %v1493_v24 = vmul.f32 %v9641_v8, %v1089_v22  ;;  %v1091_v25 = vpop.f32.mrb[29].mxu1  ;;  %v1365_v26 = vmul.f32 %v9641_v8, %v769_v23  ;;  %v771_v28 = vpop.f32.mrb[29].mxu0  ;;  %v2483_v56 = vld [vmem:[#allocation3 + $0x51] sm:$0xff] }
 0x138   : > { %2300 = vst [vmem:[#allocation3 + $0x268] sm:$0xff] %v2003_v21  ;;  %2236 = vst [vmem:[#allocation3 + $0x68] sm:$0xff] %v1875_v39  ;;  %v1494_v29 = vmul.f32 %v9645_v10, %v1091_v25  ;;  %v1093_v30 = vpop.f32.mrb[30].mxu1  ;;  %v1366_v31 = vmul.f32 %v9645_v10, %v771_v28  ;;  %v773_v33 = vpop.f32.mrb[30].mxu0  ;;  %v9830_v34 = vpack.c.bf16 %v1875_v39, %v1873_v12 }
 0x139   : > { %v1754_v35 = vadd.f32 %v9653_v14, %v1493_v24  ;;  %v1626_v36 = vadd.f32 %v9653_v14, %v1365_v26  ;;  %v1495_v51 = vmul.f32 %v9641_v8, %v1093_v30  ;;  %v1095_v37 = vpop.f32.mrb[31].mxu1  ;;  %v1367_v38 = vmul.f32 %v9641_v8, %v773_v33  ;;  %v775_v40 = vpop.f32.mrb[31].mxu0 }
 0x13a   : > { %v1755_v41 = vadd.f32 %v9656_v16, %v1494_v29  ;;  %v1627_v42 = vadd.f32 %v9656_v16, %v1366_v31  ;;  %v1496_v43 = vmul.f32 %v9645_v10, %v1095_v37  ;;  %v1368_v44 = vmul.f32 %v9645_v10, %v775_v40 }
 0x13b   : > { %v2004_v45 = vmax.f32 %v1754_v35, 0.0  ;;  %v1876_v46 = vmax.f32 %v1626_v36, 0.0  ;;  %v1756_v47 = vadd.f32 %v9653_v14, %v1495_v51  ;;  %3164 = vmatmul.mubr.bf16.gmra.mrb[136].mxu1 %v9763_v27  ;;  %v1628_v48 = vadd.f32 %v9653_v14, %v1367_v38 }
 0x13c   : > { %v2005_v49 = vmax.f32 %v1755_v41, 0.0  ;;  %v1877_v9 = vmax.f32 %v1627_v42, 0.0  ;;  %v1757_v52 = vadd.f32 %v9656_v16, %v1496_v43  ;;  %3171 = vmatprep.mubr.bf16.mxu1 %v2736_v32  ;;  %v1629_v53 = vadd.f32 %v9656_v16, %v1368_v44 }
 0x13d   : > { %2176 = vst [vmem:[#allocation2 + $0x4e0] sm:$0xff] %v2004_v45  ;;  %2112 = vst [vmem:[#allocation2 + $0xe0] sm:$0xff] %v1876_v46  ;;  %v2006_v54 = vmax.f32 %v1756_v47, 0.0  ;;  %v1878_v55 = vmax.f32 %v1628_v48, 0.0  ;;  %v2484_v57 = vld [vmem:[#allocation3 + $0x59] sm:$0xff] }
 0x13e   : > { %2301 = vst [vmem:[#allocation3 + $0x270] sm:$0xff] %v2005_v49  ;;  %2237 = vst [vmem:[#allocation3 + $0x70] sm:$0xff] %v1877_v9  ;;  %v2007_v59 = vmax.f32 %v1757_v52, 0.0  ;;  %v1099_v61 = vpop.f32.mrb[32].mxu1  ;;  %v1879_v27 = vmax.f32 %v1629_v53, 0.0  ;;  %v779_v62 = vpop.f32.mrb[32].mxu0  ;;  %v2739_v15 = vpack.c.bf16 %v2484_v57, %v2483_v56 }
 0x13f   : > { %2177 = vst [vmem:[#allocation2 + $0x4f0] sm:$0xff] %v2006_v54  ;;  %2113 = vst [vmem:[#allocation2 + $0xf0] sm:$0xff] %v1878_v55  ;;  %v1497_v63 = vmul.f32 %v9641_v8, %v1099_v61  ;;  %v1101_v0 = vpop.f32.mrb[33].mxu1  ;;  %v1369_v1 = vmul.f32 %v9641_v8, %v779_v62  ;;  %v781_v5 = vpop.f32.mrb[33].mxu0  ;;  %v2485_v40 = vld [vmem:[#allocation3 + $0x61] sm:$0xff] }
 0x140   : > { %2302 = vst [vmem:[#allocation3 + $0x278] sm:$0xff] %v2007_v59  ;;  %2238 = vst [vmem:[#allocation3 + $0x78] sm:$0xff] %v1879_v27  ;;  %v1498_v11 = vmul.f32 %v9645_v10, %v1101_v0  ;;  %v1103_v12 = vpop.f32.mrb[34].mxu1  ;;  %v1370_v13 = vmul.f32 %v9645_v10, %v781_v5  ;;  %v783_v17 = vpop.f32.mrb[34].mxu0  ;;  %v9849_v18 = vpack.c.bf16 %v1879_v27, %v1877_v9 }
 0x141   : > { %v1758_v19 = vadd.f32 %v9653_v14, %v1497_v63  ;;  %v1630_v20 = vadd.f32 %v9653_v14, %v1369_v1  ;;  %v1499_v21 = vmul.f32 %v9641_v8, %v1103_v12  ;;  %v1105_v22 = vpop.f32.mrb[35].mxu1  ;;  %v1371_v39 = vmul.f32 %v9641_v8, %v783_v17  ;;  %v785_v23 = vpop.f32.mrb[35].mxu0 }
 0x142   : > { %v1759_v24 = vadd.f32 %v9656_v16, %v1498_v11  ;;  %v1631_v25 = vadd.f32 %v9656_v16, %v1370_v13  ;;  %v1500_v26 = vmul.f32 %v9645_v10, %v1105_v22  ;;  %v1372_v28 = vmul.f32 %v9645_v10, %v785_v23 }
 0x143   : > { %v2008_v29 = vmax.f32 %v1758_v19, 0.0  ;;  %v1880_v30 = vmax.f32 %v1630_v20, 0.0  ;;  %v1760_v31 = vadd.f32 %v9653_v14, %v1499_v21  ;;  %3172 = vmatmul.mubr.bf16.gmra.mrb[140].mxu1 %v9787_v7  ;;  %v1632_v32 = vadd.f32 %v9653_v14, %v1371_v39 }
 0x144   : > { %v2009_v33 = vmax.f32 %v1759_v24, 0.0  ;;  %v1881_v35 = vmax.f32 %v1631_v25, 0.0  ;;  %v1761_v36 = vadd.f32 %v9656_v16, %v1500_v26  ;;  %3179 = vmatprep.mubr.bf16.mxu1 %v2739_v15  ;;  %v1633_v51 = vadd.f32 %v9656_v16, %v1372_v28 }
 0x145   : > { %2178 = vst [vmem:[#allocation2 + $0x500] sm:$0xff] %v2008_v29  ;;  %2114 = vst [vmem:[#allocation2 + $0x100] sm:$0xff] %v1880_v30  ;;  %v2010_v37 = vmax.f32 %v1760_v31, 0.0  ;;  %v1882_v38 = vmax.f32 %v1632_v32, 0.0  ;;  %v2486_v41 = vld [vmem:[#allocation3 + $0x69] sm:$0xff] }
 0x146   : > { %2303 = vst [vmem:[#allocation3 + $0x280] sm:$0xff] %v2009_v33  ;;  %2239 = vst [vmem:[#allocation3 + $0x80] sm:$0xff] %v1881_v35  ;;  %v2011_v42 = vmax.f32 %v1761_v36, 0.0  ;;  %v1109_v43 = vpop.f32.mrb[36].mxu1  ;;  %v1883_v7 = vmax.f32 %v1633_v51, 0.0  ;;  %v789_v44 = vpop.f32.mrb[36].mxu0  ;;  %v2742_v53 = vpack.c.bf16 %v2486_v41, %v2485_v40 }
 0x147   : > { %2179 = vst [vmem:[#allocation2 + $0x510] sm:$0xff] %v2010_v37  ;;  %2115 = vst [vmem:[#allocation2 + $0x110] sm:$0xff] %v1882_v38  ;;  %v1501_v45 = vmul.f32 %v9641_v8, %v1109_v43  ;;  %v1111_v46 = vpop.f32.mrb[37].mxu1  ;;  %v1373_v47 = vmul.f32 %v9641_v8, %v789_v44  ;;  %v791_v48 = vpop.f32.mrb[37].mxu0  ;;  %v2487_v23 = vld [vmem:[#allocation3 + $0x71] sm:$0xff] }
 0x148   : > { %2304 = vst [vmem:[#allocation3 + $0x288] sm:$0xff] %v2011_v42  ;;  %2240 = vst [vmem:[#allocation3 + $0x88] sm:$0xff] %v1883_v7  ;;  %v1502_v49 = vmul.f32 %v9645_v10, %v1111_v46  ;;  %v1113_v9 = vpop.f32.mrb[38].mxu1  ;;  %v1374_v52 = vmul.f32 %v9645_v10, %v791_v48  ;;  %v793_v54 = vpop.f32.mrb[38].mxu0  ;;  %v9868_v55 = vpack.c.bf16 %v1883_v7, %v1881_v35 }
 0x149   : > { %v1762_v56 = vadd.f32 %v9653_v14, %v1501_v45  ;;  %v1634_v57 = vadd.f32 %v9653_v14, %v1373_v47  ;;  %v1503_v59 = vmul.f32 %v9641_v8, %v1113_v9  ;;  %v1115_v61 = vpop.f32.mrb[39].mxu1  ;;  %v1375_v27 = vmul.f32 %v9641_v8, %v793_v54  ;;  %v795_v62 = vpop.f32.mrb[39].mxu0 }
 0x14a   : > { %v1763_v63 = vadd.f32 %v9656_v16, %v1502_v49  ;;  %v1635_v0 = vadd.f32 %v9656_v16, %v1374_v52  ;;  %v1504_v1 = vmul.f32 %v9645_v10, %v1115_v61  ;;  %v1376_v5 = vmul.f32 %v9645_v10, %v795_v62 }
 0x14b   : > { %v2012_v11 = vmax.f32 %v1762_v56, 0.0  ;;  %v1884_v12 = vmax.f32 %v1634_v57, 0.0  ;;  %v1764_v13 = vadd.f32 %v9653_v14, %v1503_v59  ;;  %3180 = vmatmul.mubr.bf16.gmra.mrb[144].mxu1 %v9811_v50  ;;  %v1636_v15 = vadd.f32 %v9653_v14, %v1375_v27 }
 0x14c   : > { %v2013_v17 = vmax.f32 %v1763_v63, 0.0  ;;  %v1885_v19 = vmax.f32 %v1635_v0, 0.0  ;;  %v1765_v20 = vadd.f32 %v9656_v16, %v1504_v1  ;;  %3187 = vmatprep.mubr.bf16.mxu1 %v2742_v53  ;;  %v1637_v21 = vadd.f32 %v9656_v16, %v1376_v5 }
 0x14d   : > { %2180 = vst [vmem:[#allocation2 + $0x520] sm:$0xff] %v2012_v11  ;;  %2116 = vst [vmem:[#allocation2 + $0x120] sm:$0xff] %v1884_v12  ;;  %v2014_v22 = vmax.f32 %v1764_v13, 0.0  ;;  %v1886_v39 = vmax.f32 %v1636_v15, 0.0  ;;  %v2488_v24 = vld [vmem:[#allocation3 + $0x79] sm:$0xff] }
 0x14e   : > { %2305 = vst [vmem:[#allocation3 + $0x290] sm:$0xff] %v2013_v17  ;;  %2241 = vst [vmem:[#allocation3 + $0x90] sm:$0xff] %v1885_v19  ;;  %v2015_v25 = vmax.f32 %v1765_v20, 0.0  ;;  %v1119_v26 = vpop.f32.mrb[40].mxu1  ;;  %v1887_v50 = vmax.f32 %v1637_v21, 0.0  ;;  %v799_v28 = vpop.f32.mrb[40].mxu0  ;;  %v2745_v51 = vpack.c.bf16 %v2488_v24, %v2487_v23 }
 0x14f   : > { %2181 = vst [vmem:[#allocation2 + $0x530] sm:$0xff] %v2014_v22  ;;  %2117 = vst [vmem:[#allocation2 + $0x130] sm:$0xff] %v1886_v39  ;;  %v1505_v29 = vmul.f32 %v9641_v8, %v1119_v26  ;;  %v1121_v30 = vpop.f32.mrb[41].mxu1  ;;  %v1377_v31 = vmul.f32 %v9641_v8, %v799_v28  ;;  %v801_v32 = vpop.f32.mrb[41].mxu0  ;;  %v2489_v62 = vld [vmem:[#allocation3 + $0x81] sm:$0xff] }
 0x150   : > { %2306 = vst [vmem:[#allocation3 + $0x298] sm:$0xff] %v2015_v25  ;;  %2242 = vst [vmem:[#allocation3 + $0x98] sm:$0xff] %v1887_v50  ;;  %v1506_v33 = vmul.f32 %v9645_v10, %v1121_v30  ;;  %v1123_v35 = vpop.f32.mrb[42].mxu1  ;;  %v1378_v36 = vmul.f32 %v9645_v10, %v801_v32  ;;  %v803_v37 = vpop.f32.mrb[42].mxu0  ;;  %v9887_v38 = vpack.c.bf16 %v1887_v50, %v1885_v19 }
 0x151   : > { %v1766_v40 = vadd.f32 %v9653_v14, %v1505_v29  ;;  %v1638_v41 = vadd.f32 %v9653_v14, %v1377_v31  ;;  %v1507_v42 = vmul.f32 %v9641_v8, %v1123_v35  ;;  %v1125_v43 = vpop.f32.mrb[43].mxu1  ;;  %v1379_v7 = vmul.f32 %v9641_v8, %v803_v37  ;;  %v805_v44 = vpop.f32.mrb[43].mxu0 }
 0x152   : > { %v1767_v45 = vadd.f32 %v9656_v16, %v1506_v33  ;;  %v1639_v46 = vadd.f32 %v9656_v16, %v1378_v36  ;;  %v1508_v47 = vmul.f32 %v9645_v10, %v1125_v43  ;;  %v1380_v48 = vmul.f32 %v9645_v10, %v805_v44 }
 0x153   : > { %v2016_v49 = vmax.f32 %v1766_v40, 0.0  ;;  %v1888_v9 = vmax.f32 %v1638_v41, 0.0  ;;  %v1768_v52 = vadd.f32 %v9653_v14, %v1507_v42  ;;  %3188 = vmatmul.mubr.bf16.gmra.mrb[148].mxu1 %v9830_v34  ;;  %v1640_v53 = vadd.f32 %v9653_v14, %v1379_v7 }
 0x154   : > { %v2017_v54 = vmax.f32 %v1767_v45, 0.0  ;;  %v1889_v56 = vmax.f32 %v1639_v46, 0.0  ;;  %v1769_v57 = vadd.f32 %v9656_v16, %v1508_v47  ;;  %3195 = vmatprep.mubr.bf16.mxu1 %v2745_v51  ;;  %v1641_v59 = vadd.f32 %v9656_v16, %v1380_v48 }
 0x155   : > { %2182 = vst [vmem:[#allocation2 + $0x540] sm:$0xff] %v2016_v49  ;;  %2118 = vst [vmem:[#allocation2 + $0x140] sm:$0xff] %v1888_v9  ;;  %v2018_v61 = vmax.f32 %v1768_v52, 0.0  ;;  %v1890_v27 = vmax.f32 %v1640_v53, 0.0  ;;  %v2490_v63 = vld [vmem:[#allocation3 + $0x89] sm:$0xff] }
 0x156   : > { %2307 = vst [vmem:[#allocation3 + $0x2a0] sm:$0xff] %v2017_v54  ;;  %2243 = vst [vmem:[#allocation3 + $0xa0] sm:$0xff] %v1889_v56  ;;  %v2019_v0 = vmax.f32 %v1769_v57, 0.0  ;;  %v1129_v1 = vpop.f32.mrb[44].mxu1  ;;  %v1891_v34 = vmax.f32 %v1641_v59, 0.0  ;;  %v809_v5 = vpop.f32.mrb[44].mxu0  ;;  %v2748_v21 = vpack.c.bf16 %v2490_v63, %v2489_v62 }
 0x157   : > { %2183 = vst [vmem:[#allocation2 + $0x550] sm:$0xff] %v2018_v61  ;;  %2119 = vst [vmem:[#allocation2 + $0x150] sm:$0xff] %v1890_v27  ;;  %v1509_v11 = vmul.f32 %v9641_v8, %v1129_v1  ;;  %v1131_v12 = vpop.f32.mrb[45].mxu1  ;;  %v1381_v13 = vmul.f32 %v9641_v8, %v809_v5  ;;  %v811_v15 = vpop.f32.mrb[45].mxu0  ;;  %v2491_v44 = vld [vmem:[#allocation3 + $0x91] sm:$0xff] }
 0x158   : > { %2308 = vst [vmem:[#allocation3 + $0x2a8] sm:$0xff] %v2019_v0  ;;  %2244 = vst [vmem:[#allocation3 + $0xa8] sm:$0xff] %v1891_v34  ;;  %v1510_v17 = vmul.f32 %v9645_v10, %v1131_v12  ;;  %v1133_v19 = vpop.f32.mrb[46].mxu1  ;;  %v1382_v20 = vmul.f32 %v9645_v10, %v811_v15  ;;  %v813_v22 = vpop.f32.mrb[46].mxu0  ;;  %v9906_v39 = vpack.c.bf16 %v1891_v34, %v1889_v56 }
 0x159   : > { %v1770_v23 = vadd.f32 %v9653_v14, %v1509_v11  ;;  %v1642_v24 = vadd.f32 %v9653_v14, %v1381_v13  ;;  %v1511_v25 = vmul.f32 %v9641_v8, %v1133_v19  ;;  %v1135_v26 = vpop.f32.mrb[47].mxu1  ;;  %v1383_v50 = vmul.f32 %v9641_v8, %v813_v22  ;;  %v815_v28 = vpop.f32.mrb[47].mxu0 }
 0x15a   : > { %v1771_v29 = vadd.f32 %v9656_v16, %v1510_v17  ;;  %v1643_v30 = vadd.f32 %v9656_v16, %v1382_v20  ;;  %v1512_v31 = vmul.f32 %v9645_v10, %v1135_v26  ;;  %v1384_v32 = vmul.f32 %v9645_v10, %v815_v28 }
 0x15b   : > { %v2020_v33 = vmax.f32 %v1770_v23, 0.0  ;;  %v1892_v35 = vmax.f32 %v1642_v24, 0.0  ;;  %v1772_v36 = vadd.f32 %v9653_v14, %v1511_v25  ;;  %3196 = vmatmul.mubr.bf16.gmra.mrb[152].mxu1 %v9849_v18  ;;  %v1644_v51 = vadd.f32 %v9653_v14, %v1383_v50 }
 0x15c   : > { %v2021_v37 = vmax.f32 %v1771_v29, 0.0  ;;  %v1893_v40 = vmax.f32 %v1643_v30, 0.0  ;;  %v1773_v41 = vadd.f32 %v9656_v16, %v1512_v31  ;;  %3203 = vmatprep.mubr.bf16.mxu1 %v2748_v21  ;;  %v1645_v42 = vadd.f32 %v9656_v16, %v1384_v32 }
 0x15d   : > { %2184 = vst [vmem:[#allocation2 + $0x560] sm:$0xff] %v2020_v33  ;;  %2120 = vst [vmem:[#allocation2 + $0x160] sm:$0xff] %v1892_v35  ;;  %v2022_v43 = vmax.f32 %v1772_v36, 0.0  ;;  %v1894_v7 = vmax.f32 %v1644_v51, 0.0  ;;  %v2492_v45 = vld [vmem:[#allocation3 + $0x99] sm:$0xff] }
 0x15e   : > { %2309 = vst [vmem:[#allocation3 + $0x2b0] sm:$0xff] %v2021_v37  ;;  %2245 = vst [vmem:[#allocation3 + $0xb0] sm:$0xff] %v1893_v40  ;;  %v2023_v46 = vmax.f32 %v1773_v41, 0.0  ;;  %v1139_v47 = vpop.f32.mrb[48].mxu1  ;;  %v1895_v18 = vmax.f32 %v1645_v42, 0.0  ;;  %v819_v48 = vpop.f32.mrb[48].mxu0  ;;  %v2751_v59 = vpack.c.bf16 %v2492_v45, %v2491_v44 }
 0x15f   : > { %2185 = vst [vmem:[#allocation2 + $0x570] sm:$0xff] %v2022_v43  ;;  %2121 = vst [vmem:[#allocation2 + $0x170] sm:$0xff] %v1894_v7  ;;  %v1513_v49 = vmul.f32 %v9641_v8, %v1139_v47  ;;  %v1141_v9 = vpop.f32.mrb[49].mxu1  ;;  %v1385_v52 = vmul.f32 %v9641_v8, %v819_v48  ;;  %v821_v53 = vpop.f32.mrb[49].mxu0  ;;  %v2493_v28 = vld [vmem:[#allocation3 + $0xa1] sm:$0xff] }
 0x160   : > { %2310 = vst [vmem:[#allocation3 + $0x2b8] sm:$0xff] %v2023_v46  ;;  %2246 = vst [vmem:[#allocation3 + $0xb8] sm:$0xff] %v1895_v18  ;;  %v1514_v54 = vmul.f32 %v9645_v10, %v1141_v9  ;;  %v1143_v56 = vpop.f32.mrb[50].mxu1  ;;  %v1386_v57 = vmul.f32 %v9645_v10, %v821_v53  ;;  %v823_v61 = vpop.f32.mrb[50].mxu0  ;;  %v9925_v27 = vpack.c.bf16 %v1895_v18, %v1893_v40  ;;  %v9083_v44 = vld [vmem:[%s12243_s2 + $0x98] sm:$0xff]  }
 0x161   : > { %v1774_v62 = vadd.f32 %v9653_v14, %v1513_v49  ;;  %v1646_v63 = vadd.f32 %v9653_v14, %v1385_v52  ;;  %v1515_v0 = vmul.f32 %v9641_v8, %v1143_v56  ;;  %v1145_v1 = vpop.f32.mrb[51].mxu1  ;;  %v1387_v34 = vmul.f32 %v9641_v8, %v823_v61  ;;  %v825_v5 = vpop.f32.mrb[51].mxu0  ;;  %8480 = vmatpush3.bf16.msra.mxu1 %v9083_v44 }
 0x162   : > { %v1775_v11 = vadd.f32 %v9656_v16, %v1514_v54  ;;  %v1647_v12 = vadd.f32 %v9656_v16, %v1386_v57  ;;  %v1516_v13 = vmul.f32 %v9645_v10, %v1145_v1  ;;  %v1388_v15 = vmul.f32 %v9645_v10, %v825_v5  ;;  %8481 = vmatprep.subr.bf16.mxu1 %v12250_v3 }
 0x163   : > { %v2024_v17 = vmax.f32 %v1774_v62, 0.0  ;;  %v1896_v19 = vmax.f32 %v1646_v63, 0.0  ;;  %v1776_v20 = vadd.f32 %v9653_v14, %v1515_v0  ;;  %3204 = vmatmul.mubr.bf16.gmra.mrb[156].mxu1 %v9868_v55  ;;  %v1648_v21 = vadd.f32 %v9653_v14, %v1387_v34 }
 0x164   : > { %v2025_v22 = vmax.f32 %v1775_v11, 0.0  ;;  %v1897_v23 = vmax.f32 %v1647_v12, 0.0  ;;  %v1777_v24 = vadd.f32 %v9656_v16, %v1516_v13  ;;  %3211 = vmatprep.mubr.bf16.mxu1 %v2751_v59  ;;  %v1649_v25 = vadd.f32 %v9656_v16, %v1388_v15 }
 0x165   : > { %2186 = vst [vmem:[#allocation2 + $0x580] sm:$0xff] %v2024_v17  ;;  %2122 = vst [vmem:[#allocation2 + $0x180] sm:$0xff] %v1896_v19  ;;  %v2026_v26 = vmax.f32 %v1776_v20, 0.0  ;;  %v1898_v50 = vmax.f32 %v1648_v21, 0.0  ;;  %v2494_v29 = vld [vmem:[#allocation3 + $0xa9] sm:$0xff] }
 0x166   : > { %2311 = vst [vmem:[#allocation3 + $0x2c0] sm:$0xff] %v2025_v22  ;;  %2247 = vst [vmem:[#allocation3 + $0xc0] sm:$0xff] %v1897_v23  ;;  %v2027_v30 = vmax.f32 %v1777_v24, 0.0  ;;  %v1149_v31 = vpop.f32.mrb[52].mxu1  ;;  %v1899_v55 = vmax.f32 %v1649_v25, 0.0  ;;  %v829_v32 = vpop.f32.mrb[52].mxu0  ;;  %v2754_v42 = vpack.c.bf16 %v2494_v29, %v2493_v28 }
 0x167   : > { %2187 = vst [vmem:[#allocation2 + $0x590] sm:$0xff] %v2026_v26  ;;  %2123 = vst [vmem:[#allocation2 + $0x190] sm:$0xff] %v1898_v50  ;;  %v1517_v33 = vmul.f32 %v9641_v8, %v1149_v31  ;;  %v1151_v35 = vpop.f32.mrb[53].mxu1  ;;  %v1389_v36 = vmul.f32 %v9641_v8, %v829_v32  ;;  %v831_v51 = vpop.f32.mrb[53].mxu0  ;;  %v2495_v11 = vld [vmem:[#allocation3 + $0xb1] sm:$0xff] }
 0x168   : > { %2312 = vst [vmem:[#allocation3 + $0x2c8] sm:$0xff] %v2027_v30  ;;  %2248 = vst [vmem:[#allocation3 + $0xc8] sm:$0xff] %v1899_v55  ;;  %v1518_v37 = vmul.f32 %v9645_v10, %v1151_v35  ;;  %v1153_v40 = vpop.f32.mrb[54].mxu1  ;;  %v1390_v41 = vmul.f32 %v9645_v10, %v831_v51  ;;  %v833_v43 = vpop.f32.mrb[54].mxu0  ;;  %v9944_v7 = vpack.c.bf16 %v1899_v55, %v1897_v23 }
 0x169   : > { %v1778_v45 = vadd.f32 %v9653_v14, %v1517_v33  ;;  %v1650_v46 = vadd.f32 %v9653_v14, %v1389_v36  ;;  %v1519_v47 = vmul.f32 %v9641_v8, %v1153_v40  ;;  %v1155_v18 = vpop.f32.mrb[55].mxu1  ;;  %v1391_v48 = vmul.f32 %v9641_v8, %v833_v43  ;;  %v835_v49 = vpop.f32.mrb[55].mxu0 }
 0x16a   : > { %v1779_v9 = vadd.f32 %v9656_v16, %v1518_v37  ;;  %v1651_v52 = vadd.f32 %v9656_v16, %v1390_v41  ;;  %v1520_v53 = vmul.f32 %v9645_v10, %v1155_v18  ;;  %v1392_v54 = vmul.f32 %v9645_v10, %v835_v49 }
 0x16b   : > { %v2028_v56 = vmax.f32 %v1778_v45, 0.0  ;;  %v1900_v57 = vmax.f32 %v1650_v46, 0.0  ;;  %v1780_v59 = vadd.f32 %v9653_v14, %v1519_v47  ;;  %3212 = vmatmul.mubr.bf16.gmra.mrb[160].mxu1 %v9887_v38  ;;  %v1652_v61 = vadd.f32 %v9653_v14, %v1391_v48 }
 0x16c   : > { %v2029_v62 = vmax.f32 %v1779_v9, 0.0  ;;  %v1901_v63 = vmax.f32 %v1651_v52, 0.0  ;;  %v1781_v0 = vadd.f32 %v9656_v16, %v1520_v53  ;;  %3219 = vmatprep.mubr.bf16.mxu1 %v2754_v42  ;;  %v1653_v1 = vadd.f32 %v9656_v16, %v1392_v54 }
 0x16d   : > { %2188 = vst [vmem:[#allocation2 + $0x5a0] sm:$0xff] %v2028_v56  ;;  %2124 = vst [vmem:[#allocation2 + $0x1a0] sm:$0xff] %v1900_v57  ;;  %v2030_v34 = vmax.f32 %v1780_v59, 0.0  ;;  %v1902_v5 = vmax.f32 %v1652_v61, 0.0  ;;  %v2496_v12 = vld [vmem:[#allocation3 + $0xb9] sm:$0xff] }
 0x16e   : > { %2313 = vst [vmem:[#allocation3 + $0x2d0] sm:$0xff] %v2029_v62  ;;  %2249 = vst [vmem:[#allocation3 + $0xd0] sm:$0xff] %v1901_v63  ;;  %v2031_v38 = vmax.f32 %v1781_v0, 0.0  ;;  %v1159_v13 = vpop.f32.mrb[56].mxu1  ;;  %v1903_v15 = vmax.f32 %v1653_v1, 0.0  ;;  %v839_v17 = vpop.f32.mrb[56].mxu0  ;;  %v2757_v26 = vpack.c.bf16 %v2496_v12, %v2495_v11 }
 0x16f   : > { %2189 = vst [vmem:[#allocation2 + $0x5b0] sm:$0xff] %v2030_v34  ;;  %2125 = vst [vmem:[#allocation2 + $0x1b0] sm:$0xff] %v1902_v5  ;;  %v1521_v19 = vmul.f32 %v9641_v8, %v1159_v13  ;;  %v1161_v20 = vpop.f32.mrb[57].mxu1  ;;  %v1393_v21 = vmul.f32 %v9641_v8, %v839_v17  ;;  %v841_v22 = vpop.f32.mrb[57].mxu0  ;;  %v2497_v49 = vld [vmem:[#allocation3 + $0xc1] sm:$0xff] }
 0x170   : > { %2314 = vst [vmem:[#allocation3 + $0x2d8] sm:$0xff] %v2031_v38  ;;  %2250 = vst [vmem:[#allocation3 + $0xd8] sm:$0xff] %v1903_v15  ;;  %v1522_v23 = vmul.f32 %v9645_v10, %v1161_v20  ;;  %v1163_v24 = vpop.f32.mrb[58].mxu1  ;;  %v1394_v25 = vmul.f32 %v9645_v10, %v841_v22  ;;  %v843_v50 = vpop.f32.mrb[58].mxu0  ;;  %v9967_v28 = vpack.c.bf16 %v1903_v15, %v1901_v63 }
 0x171   : > { %v1782_v29 = vadd.f32 %v9653_v14, %v1521_v19  ;;  %v1654_v30 = vadd.f32 %v9653_v14, %v1393_v21  ;;  %v1523_v31 = vmul.f32 %v9641_v8, %v1163_v24  ;;  %v1165_v55 = vpop.f32.mrb[59].mxu1  ;;  %v1395_v32 = vmul.f32 %v9641_v8, %v843_v50  ;;  %v845_v33 = vpop.f32.mrb[59].mxu0 }
 0x172   : > { %v1783_v35 = vadd.f32 %v9656_v16, %v1522_v23  ;;  %v1655_v36 = vadd.f32 %v9656_v16, %v1394_v25  ;;  %v1524_v51 = vmul.f32 %v9645_v10, %v1165_v55  ;;  %v1396_v37 = vmul.f32 %v9645_v10, %v845_v33 }
 0x173   : > { %v2032_v40 = vmax.f32 %v1782_v29, 0.0  ;;  %v1904_v41 = vmax.f32 %v1654_v30, 0.0  ;;  %v1784_v42 = vadd.f32 %v9653_v14, %v1523_v31  ;;  %3220 = vmatmul.mubr.bf16.gmra.mrb[164].mxu1 %v9906_v39  ;;  %v1656_v43 = vadd.f32 %v9653_v14, %v1395_v32 }
 0x174   : > { %v2033_v44 = vmax.f32 %v1783_v35, 0.0  ;;  %v1905_v45 = vmax.f32 %v1655_v36, 0.0  ;;  %v1785_v46 = vadd.f32 %v9656_v16, %v1524_v51  ;;  %3227 = vmatprep.mubr.bf16.mxu1 %v2757_v26  ;;  %v1657_v47 = vadd.f32 %v9656_v16, %v1396_v37 }
 0x175   : > { %2190 = vst [vmem:[#allocation2 + $0x5c0] sm:$0xff] %v2032_v40  ;;  %2126 = vst [vmem:[#allocation2 + $0x1c0] sm:$0xff] %v1904_v41  ;;  %v2034_v18 = vmax.f32 %v1784_v42, 0.0  ;;  %v1906_v48 = vmax.f32 %v1656_v43, 0.0  ;;  %v2498_v9 = vld [vmem:[#allocation3 + $0xc9] sm:$0xff] }
 0x176   : > { %2315 = vst [vmem:[#allocation3 + $0x2e0] sm:$0xff] %v2033_v44  ;;  %2251 = vst [vmem:[#allocation3 + $0xe0] sm:$0xff] %v1905_v45  ;;  %v2035_v52 = vmax.f32 %v1785_v46, 0.0  ;;  %v1169_v53 = vpop.f32.mrb[60].mxu1  ;;  %v1907_v39 = vmax.f32 %v1657_v47, 0.0  ;;  %v849_v54 = vpop.f32.mrb[60].mxu0  ;;  %v2760_v1 = vpack.c.bf16 %v2498_v9, %v2497_v49 }
 0x177   : > { %2191 = vst [vmem:[#allocation2 + $0x5d0] sm:$0xff] %v2034_v18  ;;  %2127 = vst [vmem:[#allocation2 + $0x1d0] sm:$0xff] %v1906_v48  ;;  %v1525_v56 = vmul.f32 %v9641_v8, %v1169_v53  ;;  %v1171_v57 = vpop.f32.mrb[61].mxu1  ;;  %v1397_v59 = vmul.f32 %v9641_v8, %v849_v54  ;;  %v851_v61 = vpop.f32.mrb[61].mxu0  ;;  %v2499_v33 = vld [vmem:[#allocation3 + $0xd1] sm:$0xff] }
 0x178   : > { %2316 = vst [vmem:[#allocation3 + $0x2e8] sm:$0xff] %v2035_v52  ;;  %2252 = vst [vmem:[#allocation3 + $0xe8] sm:$0xff] %v1907_v39  ;;  %v1526_v62 = vmul.f32 %v9645_v10, %v1171_v57  ;;  %v1173_v63 = vpop.f32.mrb[62].mxu1  ;;  %v1398_v0 = vmul.f32 %v9645_v10, %v851_v61  ;;  %v853_v34 = vpop.f32.mrb[62].mxu0  ;;  %v9986_v5 = vpack.c.bf16 %v1907_v39, %v1905_v45 }
 0x179   : > { %v1786_v11 = vadd.f32 %v9653_v14, %v1525_v56  ;;  %v1658_v12 = vadd.f32 %v9653_v14, %v1397_v59  ;;  %v1527_v38 = vmul.f32 %v9641_v8, %v1173_v63  ;;  %v1175_v13 = vpop.f32.mrb[63].mxu1  ;;  %v1399_v15 = vmul.f32 %v9641_v8, %v853_v34  ;;  %v855_v17 = vpop.f32.mrb[63].mxu0 }
 0x17a   : > { %v1787_v19 = vadd.f32 %v9656_v16, %v1526_v62  ;;  %v1659_v20 = vadd.f32 %v9656_v16, %v1398_v0  ;;  %v1528_v21 = vmul.f32 %v9645_v10, %v1175_v13  ;;  %v1400_v22 = vmul.f32 %v9645_v10, %v855_v17 }
 0x17b   : > { %v2036_v23 = vmax.f32 %v1786_v11, 0.0  ;;  %v1908_v24 = vmax.f32 %v1658_v12, 0.0  ;;  %v1788_v25 = vadd.f32 %v9653_v14, %v1527_v38  ;;  %3228 = vmatmul.mubr.bf16.gmra.mrb[168].mxu1 %v9925_v27  ;;  %v1660_v26 = vadd.f32 %v9653_v14, %v1399_v15 }
 0x17c   : > { %v2037_v50 = vmax.f32 %v1787_v19, 0.0  ;;  %v1909_v29 = vmax.f32 %v1659_v20, 0.0  ;;  %v1789_v30 = vadd.f32 %v9656_v16, %v1528_v21  ;;  %3235 = vmatprep.mubr.bf16.mxu1 %v2760_v1  ;;  %v1661_v31 = vadd.f32 %v9656_v16, %v1400_v22 }
 0x17d   : > { %2192 = vst [vmem:[#allocation2 + $0x5e0] sm:$0xff] %v2036_v23  ;;  %2128 = vst [vmem:[#allocation2 + $0x1e0] sm:$0xff] %v1908_v24  ;;  %v2038_v55 = vmax.f32 %v1788_v25, 0.0  ;;  %v1910_v32 = vmax.f32 %v1660_v26, 0.0  ;;  %v2500_v35 = vld [vmem:[#allocation3 + $0xd9] sm:$0xff] }
 0x17e   : > { %2317 = vst [vmem:[#allocation3 + $0x2f0] sm:$0xff] %v2037_v50  ;;  %2253 = vst [vmem:[#allocation3 + $0xf0] sm:$0xff] %v1909_v29  ;;  %v2039_v36 = vmax.f32 %v1789_v30, 0.0  ;;  %v1179_v51 = vpop.f32.mrb[64].mxu1  ;;  %v1911_v27 = vmax.f32 %v1661_v31, 0.0  ;;  %v859_v37 = vpop.f32.mrb[64].mxu0  ;;  %v2763_v47 = vpack.c.bf16 %v2500_v35, %v2499_v33 }
 0x17f   : > { %2193 = vst [vmem:[#allocation2 + $0x5f0] sm:$0xff] %v2038_v55  ;;  %2129 = vst [vmem:[#allocation2 + $0x1f0] sm:$0xff] %v1910_v32  ;;  %v1529_v40 = vmul.f32 %v9641_v8, %v1179_v51  ;;  %v1181_v41 = vpop.f32.mrb[65].mxu1  ;;  %v1401_v42 = vmul.f32 %v9641_v8, %v859_v37  ;;  %v861_v43 = vpop.f32.mrb[65].mxu0  ;;  %v2501_v17 = vld [vmem:[#allocation3 + $0xe1] sm:$0xff] }
 0x180   : > { %2318 = vst [vmem:[#allocation3 + $0x2f8] sm:$0xff] %v2039_v36  ;;  %2254 = vst [vmem:[#allocation3 + $0xf8] sm:$0xff] %v1911_v27  ;;  %v1530_v44 = vmul.f32 %v9645_v10, %v1181_v41  ;;  %v1183_v45 = vpop.f32.mrb[66].mxu1  ;;  %v1402_v46 = vmul.f32 %v9645_v10, %v861_v43  ;;  %v863_v18 = vpop.f32.mrb[66].mxu0  ;;  %v10005_v48 = vpack.c.bf16 %v1911_v27, %v1909_v29 }
 0x181   : > { %v1790_v49 = vadd.f32 %v9653_v14, %v1529_v40  ;;  %v1662_v9 = vadd.f32 %v9653_v14, %v1401_v42  ;;  %v1531_v52 = vmul.f32 %v9641_v8, %v1183_v45  ;;  %v1185_v53 = vpop.f32.mrb[67].mxu1  ;;  %v1403_v39 = vmul.f32 %v9641_v8, %v863_v18  ;;  %v865_v54 = vpop.f32.mrb[67].mxu0 }
 0x182   : > { %v1791_v56 = vadd.f32 %v9656_v16, %v1530_v44  ;;  %v1663_v57 = vadd.f32 %v9656_v16, %v1402_v46  ;;  %v1532_v59 = vmul.f32 %v9645_v10, %v1185_v53  ;;  %v1404_v61 = vmul.f32 %v9645_v10, %v865_v54 }
 0x183   : > { %v2040_v62 = vmax.f32 %v1790_v49, 0.0  ;;  %v1912_v63 = vmax.f32 %v1662_v9, 0.0  ;;  %v1792_v0 = vadd.f32 %v9653_v14, %v1531_v52  ;;  %3236 = vmatmul.mubr.bf16.gmra.mrb[172].mxu1 %v9944_v7  ;;  %v1664_v1 = vadd.f32 %v9653_v14, %v1403_v39 }
 0x184   : > { %v2041_v34 = vmax.f32 %v1791_v56, 0.0  ;;  %v1913_v11 = vmax.f32 %v1663_v57, 0.0  ;;  %v1793_v12 = vadd.f32 %v9656_v16, %v1532_v59  ;;  %3243 = vmatprep.mubr.bf16.mxu1 %v2763_v47  ;;  %v1665_v38 = vadd.f32 %v9656_v16, %v1404_v61 }
 0x185   : > { %2194 = vst [vmem:[#allocation2 + $0x600] sm:$0xff] %v2040_v62  ;;  %2130 = vst [vmem:[#allocation2 + $0x200] sm:$0xff] %v1912_v63  ;;  %v2042_v13 = vmax.f32 %v1792_v0, 0.0  ;;  %v1914_v15 = vmax.f32 %v1664_v1, 0.0  ;;  %v2502_v19 = vld [vmem:[#allocation3 + $0xe9] sm:$0xff] }
 0x186   : > { %2319 = vst [vmem:[#allocation3 + $0x300] sm:$0xff] %v2041_v34  ;;  %2255 = vst [vmem:[#allocation3 + $0x100] sm:$0xff] %v1913_v11  ;;  %v2043_v20 = vmax.f32 %v1793_v12, 0.0  ;;  %v1189_v21 = vpop.f32.mrb[68].mxu1  ;;  %v1915_v7 = vmax.f32 %v1665_v38, 0.0  ;;  %v869_v22 = vpop.f32.mrb[68].mxu0  ;;  %v2766_v31 = vpack.c.bf16 %v2502_v19, %v2501_v17 }
 0x187   : > { %2195 = vst [vmem:[#allocation2 + $0x610] sm:$0xff] %v2042_v13  ;;  %2131 = vst [vmem:[#allocation2 + $0x210] sm:$0xff] %v1914_v15  ;;  %v1533_v23 = vmul.f32 %v9641_v8, %v1189_v21  ;;  %v1191_v24 = vpop.f32.mrb[69].mxu1  ;;  %v1405_v25 = vmul.f32 %v9641_v8, %v869_v22  ;;  %v871_v26 = vpop.f32.mrb[69].mxu0  ;;  %v2503_v54 = vld [vmem:[#allocation3 + $0xf1] sm:$0xff] }
 0x188   : > { %2320 = vst [vmem:[#allocation3 + $0x308] sm:$0xff] %v2043_v20  ;;  %2256 = vst [vmem:[#allocation3 + $0x108] sm:$0xff] %v1915_v7  ;;  %v1534_v50 = vmul.f32 %v9645_v10, %v1191_v24  ;;  %v1193_v29 = vpop.f32.mrb[70].mxu1  ;;  %v1406_v30 = vmul.f32 %v9645_v10, %v871_v26  ;;  %v873_v55 = vpop.f32.mrb[70].mxu0  ;;  %v10024_v32 = vpack.c.bf16 %v1915_v7, %v1913_v11 }
 0x189   : > { %v1794_v33 = vadd.f32 %v9653_v14, %v1533_v23  ;;  %v1666_v35 = vadd.f32 %v9653_v14, %v1405_v25  ;;  %v1535_v36 = vmul.f32 %v9641_v8, %v1193_v29  ;;  %v1195_v51 = vpop.f32.mrb[71].mxu1  ;;  %v1407_v27 = vmul.f32 %v9641_v8, %v873_v55  ;;  %v875_v37 = vpop.f32.mrb[71].mxu0 }
 0x18a   : > { %v1795_v40 = vadd.f32 %v9656_v16, %v1534_v50  ;;  %v1667_v41 = vadd.f32 %v9656_v16, %v1406_v30  ;;  %v1536_v42 = vmul.f32 %v9645_v10, %v1195_v51  ;;  %v1408_v43 = vmul.f32 %v9645_v10, %v875_v37 }
 0x18b   : > { %v2044_v44 = vmax.f32 %v1794_v33, 0.0  ;;  %v1916_v45 = vmax.f32 %v1666_v35, 0.0  ;;  %v1796_v46 = vadd.f32 %v9653_v14, %v1535_v36  ;;  %3244 = vmatmul.mubr.bf16.gmra.mrb[176].mxu1 %v9967_v28  ;;  %v1668_v47 = vadd.f32 %v9653_v14, %v1407_v27 }
 0x18c   : > { %v2045_v18 = vmax.f32 %v1795_v40, 0.0  ;;  %v1917_v49 = vmax.f32 %v1667_v41, 0.0  ;;  %v1797_v9 = vadd.f32 %v9656_v16, %v1536_v42  ;;  %3251 = vmatprep.mubr.bf16.mxu1 %v2766_v31  ;;  %v1669_v52 = vadd.f32 %v9656_v16, %v1408_v43 }
 0x18d   : > { %2196 = vst [vmem:[#allocation2 + $0x620] sm:$0xff] %v2044_v44  ;;  %2132 = vst [vmem:[#allocation2 + $0x220] sm:$0xff] %v1916_v45  ;;  %v2046_v53 = vmax.f32 %v1796_v46, 0.0  ;;  %v1918_v39 = vmax.f32 %v1668_v47, 0.0  ;;  %v2504_v56 = vld [vmem:[#allocation3 + $0xf9] sm:$0xff] }
 0x18e   : > { %2321 = vst [vmem:[#allocation3 + $0x310] sm:$0xff] %v2045_v18  ;;  %2257 = vst [vmem:[#allocation3 + $0x110] sm:$0xff] %v1917_v49  ;;  %v2047_v57 = vmax.f32 %v1797_v9, 0.0  ;;  %v1199_v59 = vpop.f32.mrb[72].mxu1  ;;  %v1919_v28 = vmax.f32 %v1669_v52, 0.0  ;;  %v879_v61 = vpop.f32.mrb[72].mxu0  ;;  %v2769_v38 = vpack.c.bf16 %v2504_v56, %v2503_v54 }
 0x18f   : > { %2197 = vst [vmem:[#allocation2 + $0x630] sm:$0xff] %v2046_v53  ;;  %2133 = vst [vmem:[#allocation2 + $0x230] sm:$0xff] %v1918_v39  ;;  %v1537_v62 = vmul.f32 %v9641_v8, %v1199_v59  ;;  %v1201_v63 = vpop.f32.mrb[73].mxu1  ;;  %v1409_v0 = vmul.f32 %v9641_v8, %v879_v61  ;;  %v881_v1 = vpop.f32.mrb[73].mxu0  ;;  %v2505_v37 = vld [vmem:[#allocation3 + $0x101] sm:$0xff] }
 0x190   : > { %2322 = vst [vmem:[#allocation3 + $0x318] sm:$0xff] %v2047_v57  ;;  %2258 = vst [vmem:[#allocation3 + $0x118] sm:$0xff] %v1919_v28  ;;  %v1538_v34 = vmul.f32 %v9645_v10, %v1201_v63  ;;  %v1203_v11 = vpop.f32.mrb[74].mxu1  ;;  %v1410_v12 = vmul.f32 %v9645_v10, %v881_v1  ;;  %v883_v13 = vpop.f32.mrb[74].mxu0  ;;  %v10043_v15 = vpack.c.bf16 %v1919_v28, %v1917_v49 }
 0x191   : > { %v1798_v17 = vadd.f32 %v9653_v14, %v1537_v62  ;;  %v1670_v19 = vadd.f32 %v9653_v14, %v1409_v0  ;;  %v1539_v20 = vmul.f32 %v9641_v8, %v1203_v11  ;;  %v1205_v21 = vpop.f32.mrb[75].mxu1  ;;  %v1411_v7 = vmul.f32 %v9641_v8, %v883_v13  ;;  %v885_v22 = vpop.f32.mrb[75].mxu0 }
 0x192   : > { %v1799_v23 = vadd.f32 %v9656_v16, %v1538_v34  ;;  %v1671_v24 = vadd.f32 %v9656_v16, %v1410_v12  ;;  %v1540_v25 = vmul.f32 %v9645_v10, %v1205_v21  ;;  %v1412_v26 = vmul.f32 %v9645_v10, %v885_v22  ;;  %v9084_v21 = vld [vmem:[%s12243_s2 + $0xa0] sm:$0xff]  }
 0x193   : > { %v2048_v50 = vmax.f32 %v1798_v17, 0.0  ;;  %v1920_v29 = vmax.f32 %v1670_v19, 0.0  ;;  %v1800_v30 = vadd.f32 %v9653_v14, %v1539_v20  ;;  %3252 = vmatmul.mubr.bf16.gmra.mrb[180].mxu1 %v9986_v5  ;;  %v1672_v31 = vadd.f32 %v9653_v14, %v1411_v7 }
 0x194   : > { %v2049_v55 = vmax.f32 %v1799_v23, 0.0  ;;  %v1921_v33 = vmax.f32 %v1671_v24, 0.0  ;;  %v1801_v35 = vadd.f32 %v9656_v16, %v1540_v25  ;;  %3259 = vmatprep.mubr.bf16.mxu1 %v2769_v38  ;;  %v1673_v36 = vadd.f32 %v9656_v16, %v1412_v26  ;;  %8482 = vmatpush3.bf16.msra.mxu1 %v9084_v21 }
 0x195   : > { %2198 = vst [vmem:[#allocation2 + $0x640] sm:$0xff] %v2048_v50  ;;  %2134 = vst [vmem:[#allocation2 + $0x240] sm:$0xff] %v1920_v29  ;;  %v2050_v51 = vmax.f32 %v1800_v30, 0.0  ;;  %v1922_v27 = vmax.f32 %v1672_v31, 0.0  ;;  %v2506_v40 = vld [vmem:[#allocation3 + $0x109] sm:$0xff]  ;;  %8483 = vmatprep.subr.bf16.mxu1 %v12250_v3 }
 0x196   : > { %2323 = vst [vmem:[#allocation3 + $0x320] sm:$0xff] %v2049_v55  ;;  %2259 = vst [vmem:[#allocation3 + $0x120] sm:$0xff] %v1921_v33  ;;  %v2051_v41 = vmax.f32 %v1801_v35, 0.0  ;;  %v1209_v42 = vpop.f32.mrb[76].mxu1  ;;  %v1923_v5 = vmax.f32 %v1673_v36, 0.0  ;;  %v889_v43 = vpop.f32.mrb[76].mxu0  ;;  %v2772_v52 = vpack.c.bf16 %v2506_v40, %v2505_v37 }
 0x197   : > { %2199 = vst [vmem:[#allocation2 + $0x650] sm:$0xff] %v2050_v51  ;;  %2135 = vst [vmem:[#allocation2 + $0x250] sm:$0xff] %v1922_v27  ;;  %v1541_v44 = vmul.f32 %v9641_v8, %v1209_v42  ;;  %v1211_v45 = vpop.f32.mrb[77].mxu1  ;;  %v1413_v46 = vmul.f32 %v9641_v8, %v889_v43  ;;  %v891_v47 = vpop.f32.mrb[77].mxu0  ;;  %v2507_v23 = vld [vmem:[#allocation3 + $0x111] sm:$0xff] }
 0x198   : > { %2324 = vst [vmem:[#allocation3 + $0x328] sm:$0xff] %v2051_v41  ;;  %2260 = vst [vmem:[#allocation3 + $0x128] sm:$0xff] %v1923_v5  ;;  %v1542_v18 = vmul.f32 %v9645_v10, %v1211_v45  ;;  %v1213_v49 = vpop.f32.mrb[78].mxu1  ;;  %v1414_v9 = vmul.f32 %v9645_v10, %v891_v47  ;;  %v893_v53 = vpop.f32.mrb[78].mxu0  ;;  %v10062_v39 = vpack.c.bf16 %v1923_v5, %v1921_v33  ;;  %v2696_v58 = vld [vmem:[#allocation3 + $0x312] sm:$0xff] }
 0x199   : > { %v1802_v54 = vadd.f32 %v9653_v14, %v1541_v44  ;;  %v1674_v56 = vadd.f32 %v9653_v14, %v1413_v46  ;;  %v1543_v57 = vmul.f32 %v9641_v8, %v1213_v49  ;;  %v1215_v59 = vpop.f32.mrb[79].mxu1  ;;  %v1415_v28 = vmul.f32 %v9641_v8, %v893_v53  ;;  %v895_v61 = vpop.f32.mrb[79].mxu0 }
 0x19a   : > { %v1803_v62 = vadd.f32 %v9656_v16, %v1542_v18  ;;  %v1675_v63 = vadd.f32 %v9656_v16, %v1414_v9  ;;  %v1544_v0 = vmul.f32 %v9645_v10, %v1215_v59  ;;  %v1416_v1 = vmul.f32 %v9645_v10, %v895_v61 }
 0x19b   : > { %v2052_v34 = vmax.f32 %v1802_v54, 0.0  ;;  %v1924_v11 = vmax.f32 %v1674_v56, 0.0  ;;  %v1804_v12 = vadd.f32 %v9653_v14, %v1543_v57  ;;  %3260 = vmatmul.mubr.bf16.gmra.mrb[184].mxu1 %v10005_v48  ;;  %v1676_v38 = vadd.f32 %v9653_v14, %v1415_v28 }
 0x19c   : > { %v2053_v13 = vmax.f32 %v1803_v62, 0.0  ;;  %v1925_v17 = vmax.f32 %v1675_v63, 0.0  ;;  %v1805_v19 = vadd.f32 %v9656_v16, %v1544_v0  ;;  %3267 = vmatprep.mubr.bf16.mxu1 %v2772_v52  ;;  %v1677_v20 = vadd.f32 %v9656_v16, %v1416_v1 }
 0x19d   : > { %2200 = vst [vmem:[#allocation2 + $0x660] sm:$0xff] %v2052_v34  ;;  %2136 = vst [vmem:[#allocation2 + $0x260] sm:$0xff] %v1924_v11  ;;  %v2054_v7 = vmax.f32 %v1804_v12, 0.0  ;;  %v1926_v22 = vmax.f32 %v1676_v38, 0.0  ;;  %v2508_v24 = vld [vmem:[#allocation3 + $0x119] sm:$0xff] }
 0x19e   : > { %2325 = vst [vmem:[#allocation3 + $0x330] sm:$0xff] %v2053_v13  ;;  %2261 = vst [vmem:[#allocation3 + $0x130] sm:$0xff] %v1925_v17  ;;  %v2055_v48 = vmax.f32 %v1805_v19, 0.0  ;;  %v1219_v25 = vpop.f32.mrb[80].mxu1  ;;  %v1927_v26 = vmax.f32 %v1677_v20, 0.0  ;;  %v899_v50 = vpop.f32.mrb[80].mxu0  ;;  %v2775_v51 = vpack.c.bf16 %v2508_v24, %v2507_v23 }
 0x19f   : > { %2201 = vst [vmem:[#allocation2 + $0x670] sm:$0xff] %v2054_v7  ;;  %2137 = vst [vmem:[#allocation2 + $0x270] sm:$0xff] %v1926_v22  ;;  %v1545_v29 = vmul.f32 %v9641_v8, %v1219_v25  ;;  %v1221_v30 = vpop.f32.mrb[81].mxu1  ;;  %v1417_v31 = vmul.f32 %v9641_v8, %v899_v50  ;;  %v901_v55 = vpop.f32.mrb[81].mxu0  ;;  %v2509_v62 = vld [vmem:[#allocation3 + $0x121] sm:$0xff] }
 0x1a0   : > { %2326 = vst [vmem:[#allocation3 + $0x338] sm:$0xff] %v2055_v48  ;;  %2262 = vst [vmem:[#allocation3 + $0x138] sm:$0xff] %v1927_v26  ;;  %v1546_v33 = vmul.f32 %v9645_v10, %v1221_v30  ;;  %v1223_v35 = vpop.f32.mrb[82].mxu1  ;;  %v1418_v36 = vmul.f32 %v9645_v10, %v901_v55  ;;  %v903_v27 = vpop.f32.mrb[82].mxu0  ;;  %v10085_v37 = vpack.c.bf16 %v1927_v26, %v1925_v17 }
 0x1a1   : > { %v1806_v40 = vadd.f32 %v9653_v14, %v1545_v29  ;;  %v1678_v41 = vadd.f32 %v9653_v14, %v1417_v31  ;;  %v1547_v42 = vmul.f32 %v9641_v8, %v1223_v35  ;;  %v1225_v5 = vpop.f32.mrb[83].mxu1  ;;  %v1419_v43 = vmul.f32 %v9641_v8, %v903_v27  ;;  %v905_v44 = vpop.f32.mrb[83].mxu0 }
 0x1a2   : > { %v1807_v45 = vadd.f32 %v9656_v16, %v1546_v33  ;;  %v1679_v46 = vadd.f32 %v9656_v16, %v1418_v36  ;;  %v1548_v47 = vmul.f32 %v9645_v10, %v1225_v5  ;;  %v1420_v18 = vmul.f32 %v9645_v10, %v905_v44 }
 0x1a3   : > { %v2056_v49 = vmax.f32 %v1806_v40, 0.0  ;;  %v1928_v9 = vmax.f32 %v1678_v41, 0.0  ;;  %v1808_v52 = vadd.f32 %v9653_v14, %v1547_v42  ;;  %3268 = vmatmul.mubr.bf16.gmra.mrb[188].mxu1 %v10024_v32  ;;  %v1680_v53 = vadd.f32 %v9653_v14, %v1419_v43 }
 0x1a4   : > { %v2057_v54 = vmax.f32 %v1807_v45, 0.0  ;;  %v1929_v56 = vmax.f32 %v1679_v46, 0.0  ;;  %v1809_v57 = vadd.f32 %v9656_v16, %v1548_v47  ;;  %3275 = vmatprep.mubr.bf16.mxu1 %v2775_v51  ;;  %v1681_v59 = vadd.f32 %v9656_v16, %v1420_v18 }
 0x1a5   : > { %2202 = vst [vmem:[#allocation2 + $0x680] sm:$0xff] %v2056_v49  ;;  %2138 = vst [vmem:[#allocation2 + $0x280] sm:$0xff] %v1928_v9  ;;  %v2058_v28 = vmax.f32 %v1808_v52, 0.0  ;;  %v1930_v61 = vmax.f32 %v1680_v53, 0.0  ;;  %v2510_v63 = vld [vmem:[#allocation3 + $0x129] sm:$0xff] }
 0x1a6   : > { %2327 = vst [vmem:[#allocation3 + $0x340] sm:$0xff] %v2057_v54  ;;  %2263 = vst [vmem:[#allocation3 + $0x140] sm:$0xff] %v1929_v56  ;;  %v2059_v0 = vmax.f32 %v1809_v57, 0.0  ;;  %v1229_v1 = vpop.f32.mrb[84].mxu1  ;;  %v1931_v32 = vmax.f32 %v1681_v59, 0.0  ;;  %v909_v34 = vpop.f32.mrb[84].mxu0  ;;  %v2778_v21 = vpack.c.bf16 %v2510_v63, %v2509_v62 }
 0x1a7   : > { %2203 = vst [vmem:[#allocation2 + $0x690] sm:$0xff] %v2058_v28  ;;  %2139 = vst [vmem:[#allocation2 + $0x290] sm:$0xff] %v1930_v61  ;;  %v1549_v11 = vmul.f32 %v9641_v8, %v1229_v1  ;;  %v1231_v12 = vpop.f32.mrb[85].mxu1  ;;  %v1421_v38 = vmul.f32 %v9641_v8, %v909_v34  ;;  %v911_v13 = vpop.f32.mrb[85].mxu0  ;;  %v2511_v44 = vld [vmem:[#allocation3 + $0x131] sm:$0xff] }
 0x1a8   : > { %2328 = vst [vmem:[#allocation3 + $0x348] sm:$0xff] %v2059_v0  ;;  %2264 = vst [vmem:[#allocation3 + $0x148] sm:$0xff] %v1931_v32  ;;  %v1550_v17 = vmul.f32 %v9645_v10, %v1231_v12  ;;  %v1233_v19 = vpop.f32.mrb[86].mxu1  ;;  %v1422_v20 = vmul.f32 %v9645_v10, %v911_v13  ;;  %v913_v7 = vpop.f32.mrb[86].mxu0  ;;  %v10104_v22 = vpack.c.bf16 %v1931_v32, %v1929_v56 }
 0x1a9   : > { %v1810_v23 = vadd.f32 %v9653_v14, %v1549_v11  ;;  %v1682_v24 = vadd.f32 %v9653_v14, %v1421_v38  ;;  %v1551_v48 = vmul.f32 %v9641_v8, %v1233_v19  ;;  %v1235_v25 = vpop.f32.mrb[87].mxu1  ;;  %v1423_v26 = vmul.f32 %v9641_v8, %v913_v7  ;;  %v915_v50 = vpop.f32.mrb[87].mxu0 }
 0x1aa   : > { %v1811_v29 = vadd.f32 %v9656_v16, %v1550_v17  ;;  %v1683_v30 = vadd.f32 %v9656_v16, %v1422_v20  ;;  %v1552_v31 = vmul.f32 %v9645_v10, %v1235_v25  ;;  %v1424_v55 = vmul.f32 %v9645_v10, %v915_v50 }
 0x1ab   : > { %v2060_v33 = vmax.f32 %v1810_v23, 0.0  ;;  %v1932_v35 = vmax.f32 %v1682_v24, 0.0  ;;  %v1812_v36 = vadd.f32 %v9653_v14, %v1551_v48  ;;  %3276 = vmatmul.mubr.bf16.gmra.mrb[192].mxu1 %v10043_v15  ;;  %v1684_v51 = vadd.f32 %v9653_v14, %v1423_v26 }
 0x1ac   : > { %v2061_v27 = vmax.f32 %v1811_v29, 0.0  ;;  %v1933_v40 = vmax.f32 %v1683_v30, 0.0  ;;  %v1813_v41 = vadd.f32 %v9656_v16, %v1552_v31  ;;  %3283 = vmatprep.mubr.bf16.mxu1 %v2778_v21  ;;  %v1685_v42 = vadd.f32 %v9656_v16, %v1424_v55 }
 0x1ad   : > { %2204 = vst [vmem:[#allocation2 + $0x6a0] sm:$0xff] %v2060_v33  ;;  %2140 = vst [vmem:[#allocation2 + $0x2a0] sm:$0xff] %v1932_v35  ;;  %v2062_v5 = vmax.f32 %v1812_v36, 0.0  ;;  %v1934_v43 = vmax.f32 %v1684_v51, 0.0  ;;  %v2512_v45 = vld [vmem:[#allocation3 + $0x139] sm:$0xff] }
 0x1ae   : > { %2329 = vst [vmem:[#allocation3 + $0x350] sm:$0xff] %v2061_v27  ;;  %2265 = vst [vmem:[#allocation3 + $0x150] sm:$0xff] %v1933_v40  ;;  %v2063_v46 = vmax.f32 %v1813_v41, 0.0  ;;  %v1239_v47 = vpop.f32.mrb[88].mxu1  ;;  %v1935_v15 = vmax.f32 %v1685_v42, 0.0  ;;  %v919_v18 = vpop.f32.mrb[88].mxu0  ;;  %v2781_v59 = vpack.c.bf16 %v2512_v45, %v2511_v44 }
 0x1af   : > { %2205 = vst [vmem:[#allocation2 + $0x6b0] sm:$0xff] %v2062_v5  ;;  %2141 = vst [vmem:[#allocation2 + $0x2b0] sm:$0xff] %v1934_v43  ;;  %v1553_v49 = vmul.f32 %v9641_v8, %v1239_v47  ;;  %v1241_v9 = vpop.f32.mrb[89].mxu1  ;;  %v1425_v52 = vmul.f32 %v9641_v8, %v919_v18  ;;  %v921_v53 = vpop.f32.mrb[89].mxu0  ;;  %v2513_v50 = vld [vmem:[#allocation3 + $0x141] sm:$0xff] }
 0x1b0   : > { %2330 = vst [vmem:[#allocation3 + $0x358] sm:$0xff] %v2063_v46  ;;  %2266 = vst [vmem:[#allocation3 + $0x158] sm:$0xff] %v1935_v15  ;;  %v1554_v54 = vmul.f32 %v9645_v10, %v1241_v9  ;;  %v1243_v56 = vpop.f32.mrb[90].mxu1  ;;  %v1426_v57 = vmul.f32 %v9645_v10, %v921_v53  ;;  %v923_v28 = vpop.f32.mrb[90].mxu0  ;;  %v10123_v61 = vpack.c.bf16 %v1935_v15, %v1933_v40 }
 0x1b1   : > { %v1814_v62 = vadd.f32 %v9653_v14, %v1553_v49  ;;  %v1686_v63 = vadd.f32 %v9653_v14, %v1425_v52  ;;  %v1555_v0 = vmul.f32 %v9641_v8, %v1243_v56  ;;  %v1245_v1 = vpop.f32.mrb[91].mxu1  ;;  %v1427_v32 = vmul.f32 %v9641_v8, %v923_v28  ;;  %v925_v34 = vpop.f32.mrb[91].mxu0 }
 0x1b2   : > { %v1815_v11 = vadd.f32 %v9656_v16, %v1554_v54  ;;  %v1687_v12 = vadd.f32 %v9656_v16, %v1426_v57  ;;  %v1556_v38 = vmul.f32 %v9645_v10, %v1245_v1  ;;  %v1428_v13 = vmul.f32 %v9645_v10, %v925_v34 }
 0x1b3   : > { %v2064_v17 = vmax.f32 %v1814_v62, 0.0  ;;  %v1936_v19 = vmax.f32 %v1686_v63, 0.0  ;;  %v1816_v20 = vadd.f32 %v9653_v14, %v1555_v0  ;;  %3284 = vmatmul.mubr.bf16.gmra.mrb[196].mxu1 %v10062_v39  ;;  %v1688_v21 = vadd.f32 %v9653_v14, %v1427_v32 }
 0x1b4   : > { %v2065_v7 = vmax.f32 %v1815_v11, 0.0  ;;  %v1937_v23 = vmax.f32 %v1687_v12, 0.0  ;;  %v1817_v24 = vadd.f32 %v9656_v16, %v1556_v38  ;;  %3291 = vmatprep.mubr.bf16.mxu1 %v2781_v59  ;;  %v1689_v48 = vadd.f32 %v9656_v16, %v1428_v13 }
 0x1b5   : > { %2206 = vst [vmem:[#allocation2 + $0x6c0] sm:$0xff] %v2064_v17  ;;  %2142 = vst [vmem:[#allocation2 + $0x2c0] sm:$0xff] %v1936_v19  ;;  %v2066_v25 = vmax.f32 %v1816_v20, 0.0  ;;  %v1938_v26 = vmax.f32 %v1688_v21, 0.0  ;;  %v2514_v29 = vld [vmem:[#allocation3 + $0x149] sm:$0xff] }
 0x1b6   : > { %2331 = vst [vmem:[#allocation3 + $0x360] sm:$0xff] %v2065_v7  ;;  %2267 = vst [vmem:[#allocation3 + $0x160] sm:$0xff] %v1937_v23  ;;  %v2067_v30 = vmax.f32 %v1817_v24, 0.0  ;;  %v1249_v31 = vpop.f32.mrb[92].mxu1  ;;  %v1939_v39 = vmax.f32 %v1689_v48, 0.0  ;;  %v929_v55 = vpop.f32.mrb[92].mxu0  ;;  %v2784_v42 = vpack.c.bf16 %v2514_v29, %v2513_v50 }
 0x1b7   : > { %2207 = vst [vmem:[#allocation2 + $0x6d0] sm:$0xff] %v2066_v25  ;;  %2143 = vst [vmem:[#allocation2 + $0x2d0] sm:$0xff] %v1938_v26  ;;  %v1557_v33 = vmul.f32 %v9641_v8, %v1249_v31  ;;  %v1251_v35 = vpop.f32.mrb[93].mxu1  ;;  %v1429_v36 = vmul.f32 %v9641_v8, %v929_v55  ;;  %v931_v51 = vpop.f32.mrb[93].mxu0  ;;  %v2515_v34 = vld [vmem:[#allocation3 + $0x151] sm:$0xff] }
 0x1b8   : > { %2332 = vst [vmem:[#allocation3 + $0x368] sm:$0xff] %v2067_v30  ;;  %2268 = vst [vmem:[#allocation3 + $0x168] sm:$0xff] %v1939_v39  ;;  %v1558_v27 = vmul.f32 %v9645_v10, %v1251_v35  ;;  %v1253_v40 = vpop.f32.mrb[94].mxu1  ;;  %v1430_v41 = vmul.f32 %v9645_v10, %v931_v51  ;;  %v933_v5 = vpop.f32.mrb[94].mxu0  ;;  %v10142_v43 = vpack.c.bf16 %v1939_v39, %v1937_v23 }
 0x1b9   : > { %v1818_v44 = vadd.f32 %v9653_v14, %v1557_v33  ;;  %v1690_v45 = vadd.f32 %v9653_v14, %v1429_v36  ;;  %v1559_v46 = vmul.f32 %v9641_v8, %v1253_v40  ;;  %v1255_v47 = vpop.f32.mrb[95].mxu1  ;;  %v1431_v15 = vmul.f32 %v9641_v8, %v933_v5  ;;  %v935_v18 = vpop.f32.mrb[95].mxu0 }
 0x1ba   : > { %v1819_v49 = vadd.f32 %v9656_v16, %v1558_v27  ;;  %v1691_v9 = vadd.f32 %v9656_v16, %v1430_v41  ;;  %v1560_v52 = vmul.f32 %v9645_v10, %v1255_v47  ;;  %v1432_v53 = vmul.f32 %v9645_v10, %v935_v18 }
 0x1bb   : > { %v2068_v54 = vmax.f32 %v1818_v44, 0.0  ;;  %v1940_v56 = vmax.f32 %v1690_v45, 0.0  ;;  %v1820_v57 = vadd.f32 %v9653_v14, %v1559_v46  ;;  %3292 = vmatmul.mubr.bf16.gmra.mrb[200].mxu1 %v10085_v37  ;;  %v1692_v59 = vadd.f32 %v9653_v14, %v1431_v15 }
 0x1bc   : > { %v2069_v28 = vmax.f32 %v1819_v49, 0.0  ;;  %v1941_v62 = vmax.f32 %v1691_v9, 0.0  ;;  %v1821_v63 = vadd.f32 %v9656_v16, %v1560_v52  ;;  %3299 = vmatprep.mubr.bf16.mxu1 %v2784_v42  ;;  %v1693_v0 = vadd.f32 %v9656_v16, %v1432_v53 }
 0x1bd   : > { %2208 = vst [vmem:[#allocation2 + $0x6e0] sm:$0xff] %v2068_v54  ;;  %2144 = vst [vmem:[#allocation2 + $0x2e0] sm:$0xff] %v1940_v56  ;;  %v2070_v1 = vmax.f32 %v1820_v57, 0.0  ;;  %v1942_v32 = vmax.f32 %v1692_v59, 0.0  ;;  %v2516_v11 = vld [vmem:[#allocation3 + $0x159] sm:$0xff] }
 0x1be   : > { %2333 = vst [vmem:[#allocation3 + $0x370] sm:$0xff] %v2069_v28  ;;  %2269 = vst [vmem:[#allocation3 + $0x170] sm:$0xff] %v1941_v62  ;;  %v2071_v12 = vmax.f32 %v1821_v63, 0.0  ;;  %v1259_v38 = vpop.f32.mrb[96].mxu1  ;;  %v1943_v37 = vmax.f32 %v1693_v0, 0.0  ;;  %v939_v13 = vpop.f32.mrb[96].mxu0  ;;  %v2787_v48 = vpack.c.bf16 %v2516_v11, %v2515_v34 }
 0x1bf   : > { %2209 = vst [vmem:[#allocation2 + $0x6f0] sm:$0xff] %v2070_v1  ;;  %2145 = vst [vmem:[#allocation2 + $0x2f0] sm:$0xff] %v1942_v32  ;;  %v1561_v17 = vmul.f32 %v9641_v8, %v1259_v38  ;;  %v1261_v19 = vpop.f32.mrb[97].mxu1  ;;  %v1433_v20 = vmul.f32 %v9641_v8, %v939_v13  ;;  %v941_v21 = vpop.f32.mrb[97].mxu0  ;;  %v2517_v18 = vld [vmem:[#allocation3 + $0x161] sm:$0xff] }
 0x1c0   : > { %2334 = vst [vmem:[#allocation3 + $0x378] sm:$0xff] %v2071_v12  ;;  %2270 = vst [vmem:[#allocation3 + $0x178] sm:$0xff] %v1943_v37  ;;  %v1562_v7 = vmul.f32 %v9645_v10, %v1261_v19  ;;  %v1263_v23 = vpop.f32.mrb[98].mxu1  ;;  %v1434_v24 = vmul.f32 %v9645_v10, %v941_v21  ;;  %v943_v25 = vpop.f32.mrb[98].mxu0  ;;  %v10161_v26 = vpack.c.bf16 %v1943_v37, %v1941_v62 }
 0x1c1   : > { %v1822_v50 = vadd.f32 %v9653_v14, %v1561_v17  ;;  %v1694_v29 = vadd.f32 %v9653_v14, %v1433_v20  ;;  %v1563_v30 = vmul.f32 %v9641_v8, %v1263_v23  ;;  %v1265_v31 = vpop.f32.mrb[99].mxu1  ;;  %v1435_v39 = vmul.f32 %v9641_v8, %v943_v25  ;;  %v945_v55 = vpop.f32.mrb[99].mxu0 }
 0x1c2   : > { %v1823_v33 = vadd.f32 %v9656_v16, %v1562_v7  ;;  %v1695_v35 = vadd.f32 %v9656_v16, %v1434_v24  ;;  %v1564_v36 = vmul.f32 %v9645_v10, %v1265_v31  ;;  %v1436_v51 = vmul.f32 %v9645_v10, %v945_v55 }
 0x1c3   : > { %v2072_v27 = vmax.f32 %v1822_v50, 0.0  ;;  %v1944_v40 = vmax.f32 %v1694_v29, 0.0  ;;  %v1824_v41 = vadd.f32 %v9653_v14, %v1563_v30  ;;  %3300 = vmatmul.mubr.bf16.gmra.mrb[204].mxu1 %v10104_v22  ;;  %v1696_v42 = vadd.f32 %v9653_v14, %v1435_v39 }
 0x1c4   : > { %v2073_v5 = vmax.f32 %v1823_v33, 0.0  ;;  %v1945_v44 = vmax.f32 %v1695_v35, 0.0  ;;  %v1825_v45 = vadd.f32 %v9656_v16, %v1564_v36  ;;  %3307 = vmatprep.mubr.bf16.mxu1 %v2787_v48  ;;  %v1697_v46 = vadd.f32 %v9656_v16, %v1436_v51 }
 0x1c5   : > { %2210 = vst [vmem:[#allocation2 + $0x700] sm:$0xff] %v2072_v27  ;;  %2146 = vst [vmem:[#allocation2 + $0x300] sm:$0xff] %v1944_v40  ;;  %v2074_v47 = vmax.f32 %v1824_v41, 0.0  ;;  %v1946_v15 = vmax.f32 %v1696_v42, 0.0  ;;  %v2518_v49 = vld [vmem:[#allocation3 + $0x169] sm:$0xff] }
 0x1c6   : > { %2335 = vst [vmem:[#allocation3 + $0x380] sm:$0xff] %v2073_v5  ;;  %2271 = vst [vmem:[#allocation3 + $0x180] sm:$0xff] %v1945_v44  ;;  %v2075_v9 = vmax.f32 %v1825_v45, 0.0  ;;  %v1269_v52 = vpop.f32.mrb[100].mxu1  ;;  %v1947_v22 = vmax.f32 %v1697_v46, 0.0  ;;  %v949_v53 = vpop.f32.mrb[100].mxu0  ;;  %v2790_v0 = vpack.c.bf16 %v2518_v49, %v2517_v18 }
 0x1c7   : > { %2211 = vst [vmem:[#allocation2 + $0x710] sm:$0xff] %v2074_v47  ;;  %2147 = vst [vmem:[#allocation2 + $0x310] sm:$0xff] %v1946_v15  ;;  %v1565_v54 = vmul.f32 %v9641_v8, %v1269_v52  ;;  %v1271_v56 = vpop.f32.mrb[101].mxu1  ;;  %v1437_v57 = vmul.f32 %v9641_v8, %v949_v53  ;;  %v951_v59 = vpop.f32.mrb[101].mxu0  ;;  %v2519_v55 = vld [vmem:[#allocation3 + $0x171] sm:$0xff] }
 0x1c8   : > { %2336 = vst [vmem:[#allocation3 + $0x388] sm:$0xff] %v2075_v9  ;;  %2272 = vst [vmem:[#allocation3 + $0x188] sm:$0xff] %v1947_v22  ;;  %v1566_v28 = vmul.f32 %v9645_v10, %v1271_v56  ;;  %v1273_v62 = vpop.f32.mrb[102].mxu1  ;;  %v1438_v63 = vmul.f32 %v9645_v10, %v951_v59  ;;  %v953_v1 = vpop.f32.mrb[102].mxu0  ;;  %v10180_v32 = vpack.c.bf16 %v1947_v22, %v1945_v44 }
 0x1c9   : > { %v1826_v34 = vadd.f32 %v9653_v14, %v1565_v54  ;;  %v1698_v11 = vadd.f32 %v9653_v14, %v1437_v57  ;;  %v1567_v12 = vmul.f32 %v9641_v8, %v1273_v62  ;;  %v1275_v38 = vpop.f32.mrb[103].mxu1  ;;  %v1439_v37 = vmul.f32 %v9641_v8, %v953_v1  ;;  %v955_v13 = vpop.f32.mrb[103].mxu0 }
 0x1ca   : > { %v1827_v17 = vadd.f32 %v9656_v16, %v1566_v28  ;;  %v1699_v19 = vadd.f32 %v9656_v16, %v1438_v63  ;;  %v1568_v20 = vmul.f32 %v9645_v10, %v1275_v38  ;;  %v1440_v21 = vmul.f32 %v9645_v10, %v955_v13 }
 0x1cb   : > { %v2076_v7 = vmax.f32 %v1826_v34, 0.0  ;;  %v1948_v23 = vmax.f32 %v1698_v11, 0.0  ;;  %v1828_v24 = vadd.f32 %v9653_v14, %v1567_v12  ;;  %3308 = vmatmul.mubr.bf16.gmra.mrb[208].mxu1 %v10123_v61  ;;  %v1700_v48 = vadd.f32 %v9653_v14, %v1439_v37 }
 0x1cc   : > { %v2077_v25 = vmax.f32 %v1827_v17, 0.0  ;;  %v1949_v50 = vmax.f32 %v1699_v19, 0.0  ;;  %v1829_v29 = vadd.f32 %v9656_v16, %v1568_v20  ;;  %3315 = vmatprep.mubr.bf16.mxu1 %v2790_v0  ;;  %v1701_v30 = vadd.f32 %v9656_v16, %v1440_v21 }
 0x1cd   : > { %2212 = vst [vmem:[#allocation2 + $0x720] sm:$0xff] %v2076_v7  ;;  %2148 = vst [vmem:[#allocation2 + $0x320] sm:$0xff] %v1948_v23  ;;  %v2078_v31 = vmax.f32 %v1828_v24, 0.0  ;;  %v1950_v39 = vmax.f32 %v1700_v48, 0.0  ;;  %v2520_v33 = vld [vmem:[#allocation3 + $0x179] sm:$0xff] }
 0x1ce   : > { %2337 = vst [vmem:[#allocation3 + $0x390] sm:$0xff] %v2077_v25  ;;  %2273 = vst [vmem:[#allocation3 + $0x190] sm:$0xff] %v1949_v50  ;;  %v2079_v35 = vmax.f32 %v1829_v29, 0.0  ;;  %v1279_v36 = vpop.f32.mrb[104].mxu1  ;;  %v1951_v61 = vmax.f32 %v1701_v30, 0.0  ;;  %v959_v51 = vpop.f32.mrb[104].mxu0  ;;  %v2793_v46 = vpack.c.bf16 %v2520_v33, %v2519_v55 }
 0x1cf   : > { %2213 = vst [vmem:[#allocation2 + $0x730] sm:$0xff] %v2078_v31  ;;  %2149 = vst [vmem:[#allocation2 + $0x330] sm:$0xff] %v1950_v39  ;;  %v1569_v27 = vmul.f32 %v9641_v8, %v1279_v36  ;;  %v1281_v40 = vpop.f32.mrb[105].mxu1  ;;  %v1441_v41 = vmul.f32 %v9641_v8, %v959_v51  ;;  %v961_v42 = vpop.f32.mrb[105].mxu0  ;;  %v2521_v13 = vld [vmem:[#allocation3 + $0x181] sm:$0xff] }
 0x1d0   : > { %2338 = vst [vmem:[#allocation3 + $0x398] sm:$0xff] %v2079_v35  ;;  %2274 = vst [vmem:[#allocation3 + $0x198] sm:$0xff] %v1951_v61  ;;  %v1570_v5 = vmul.f32 %v9645_v10, %v1281_v40  ;;  %v1283_v44 = vpop.f32.mrb[106].mxu1  ;;  %v1442_v45 = vmul.f32 %v9645_v10, %v961_v42  ;;  %v963_v47 = vpop.f32.mrb[106].mxu0  ;;  %v10199_v15 = vpack.c.bf16 %v1951_v61, %v1949_v50 }
 0x1d1   : > { %v1830_v18 = vadd.f32 %v9653_v14, %v1569_v27  ;;  %v1702_v49 = vadd.f32 %v9653_v14, %v1441_v41  ;;  %v1571_v9 = vmul.f32 %v9641_v8, %v1283_v44  ;;  %v1285_v52 = vpop.f32.mrb[107].mxu1  ;;  %v1443_v22 = vmul.f32 %v9641_v8, %v963_v47  ;;  %v965_v53 = vpop.f32.mrb[107].mxu0 }
 0x1d2   : > { %v1831_v54 = vadd.f32 %v9656_v16, %v1570_v5  ;;  %v1703_v56 = vadd.f32 %v9656_v16, %v1442_v45  ;;  %v1572_v57 = vmul.f32 %v9645_v10, %v1285_v52  ;;  %v1444_v59 = vmul.f32 %v9645_v10, %v965_v53 }
 0x1d3   : > { %v2080_v28 = vmax.f32 %v1830_v18, 0.0  ;;  %v1952_v62 = vmax.f32 %v1702_v49, 0.0  ;;  %v1832_v63 = vadd.f32 %v9653_v14, %v1571_v9  ;;  %3316 = vmatmul.mubr.bf16.gmra.mrb[212].mxu1 %v10142_v43  ;;  %v1704_v0 = vadd.f32 %v9653_v14, %v1443_v22  ;;  %v9085_v22 = vld [vmem:[%s12243_s2 + $0xa8] sm:$0xff]  }
 0x1d4   : > { %v2081_v1 = vmax.f32 %v1831_v54, 0.0  ;;  %v1953_v34 = vmax.f32 %v1703_v56, 0.0  ;;  %v10213_v11 = vadd.f32 %v9656_v16, %v1572_v57  ;;  %3323 = vmatprep.mubr.bf16.mxu1 %v2793_v46  ;;  %v1705_v12 = vadd.f32 %v9656_v16, %v1444_v59  ;;  %8484 = vmatpush3.bf16.msra.mxu1 %v9085_v22 }
 0x1d5   : > { %2214 = vst [vmem:[#allocation2 + $0x740] sm:$0xff] %v2080_v28  ;;  %2150 = vst [vmem:[#allocation2 + $0x340] sm:$0xff] %v1952_v62  ;;  %v2082_v38 = vmax.f32 %v1832_v63, 0.0  ;;  %v1954_v37 = vmax.f32 %v1704_v0, 0.0  ;;  %v2522_v17 = vld [vmem:[#allocation3 + $0x189] sm:$0xff]  ;;  %8485 = vmatprep.subr.bf16.mxu1 %v12250_v3 }
 0x1d6   : > { %2339 = vst [vmem:[#allocation3 + $0x3a0] sm:$0xff] %v2081_v1  ;;  %2275 = vst [vmem:[#allocation3 + $0x1a0] sm:$0xff] %v1953_v34  ;;  %v2083_v43 = vmax.f32 %v10213_v11, 0.0  ;;  %v1289_v19 = vpop.f32.mrb[108].mxu1  ;;  %v1955_v20 = vmax.f32 %v1705_v12, 0.0  ;;  %v969_v21 = vpop.f32.mrb[108].mxu0  ;;  %v2796_v30 = vpack.c.bf16 %v2522_v17, %v2521_v13 }
 0x1d7   : > { %2215 = vst [vmem:[#allocation2 + $0x750] sm:$0xff] %v2082_v38  ;;  %2151 = vst [vmem:[#allocation2 + $0x350] sm:$0xff] %v1954_v37  ;;  %v1573_v7 = vmul.f32 %v9641_v8, %v1289_v19  ;;  %v1291_v23 = vpop.f32.mrb[109].mxu1  ;;  %v1445_v24 = vmul.f32 %v9641_v8, %v969_v21  ;;  %v971_v48 = vpop.f32.mrb[109].mxu0  ;;  %v2523_v52 = vld [vmem:[#allocation3 + $0x191] sm:$0xff] }
 0x1d8   : > { %2340 = vst [vmem:[#allocation3 + $0x3a8] sm:$0xff] %v2083_v43  ;;  %2276 = vst [vmem:[#allocation3 + $0x1a8] sm:$0xff] %v1955_v20  ;;  %v1574_v25 = vmul.f32 %v9645_v10, %v1291_v23  ;;  %v1293_v50 = vpop.f32.mrb[110].mxu1  ;;  %v1446_v29 = vmul.f32 %v9645_v10, %v971_v48  ;;  %v973_v31 = vpop.f32.mrb[110].mxu0  ;;  %v10223_v39 = vpack.c.bf16 %v1955_v20, %v1953_v34 }
 0x1d9   : > { %v1834_v55 = vadd.f32 %v9653_v14, %v1573_v7  ;;  %v1706_v33 = vadd.f32 %v9653_v14, %v1445_v24  ;;  %v1575_v35 = vmul.f32 %v9641_v8, %v1293_v50  ;;  %v1295_v36 = vpop.f32.mrb[111].mxu1  ;;  %v1447_v61 = vmul.f32 %v9641_v8, %v973_v31  ;;  %v975_v51 = vpop.f32.mrb[111].mxu0 }
 0x1da   : > { %v1835_v27 = vadd.f32 %v9656_v16, %v1574_v25  ;;  %v1707_v40 = vadd.f32 %v9656_v16, %v1446_v29  ;;  %v1576_v41 = vmul.f32 %v9645_v10, %v1295_v36  ;;  %v1448_v42 = vmul.f32 %v9645_v10, %v975_v51 }
 0x1db   : > { %v2084_v5 = vmax.f32 %v1834_v55, 0.0  ;;  %v1956_v44 = vmax.f32 %v1706_v33, 0.0  ;;  %v1836_v45 = vadd.f32 %v9653_v14, %v1575_v35  ;;  %3324 = vmatmul.mubr.bf16.gmra.mrb[216].mxu1 %v10161_v26  ;;  %v1708_v46 = vadd.f32 %v9653_v14, %v1447_v61 }
 0x1dc   : > { %v2085_v47 = vmax.f32 %v1835_v27, 0.0  ;;  %v1957_v18 = vmax.f32 %v1707_v40, 0.0  ;;  %v1837_v49 = vadd.f32 %v9656_v16, %v1576_v41  ;;  %3331 = vmatprep.mubr.bf16.mxu1 %v2796_v30  ;;  %v1709_v9 = vadd.f32 %v9656_v16, %v1448_v42 }
 0x1dd   : > { %2216 = vst [vmem:[#allocation2 + $0x760] sm:$0xff] %v2084_v5  ;;  %2152 = vst [vmem:[#allocation2 + $0x360] sm:$0xff] %v1956_v44  ;;  %v2086_v53 = vmax.f32 %v1836_v45, 0.0  ;;  %v1958_v54 = vmax.f32 %v1708_v46, 0.0  ;;  %v2524_v56 = vld [vmem:[#allocation3 + $0x199] sm:$0xff] }
 0x1de   : > { %2341 = vst [vmem:[#allocation3 + $0x3b0] sm:$0xff] %v2085_v47  ;;  %2277 = vst [vmem:[#allocation3 + $0x1b0] sm:$0xff] %v1957_v18  ;;  %v2087_v26 = vmax.f32 %v1837_v49, 0.0  ;;  %v1299_v57 = vpop.f32.mrb[112].mxu1  ;;  %v1959_v59 = vmax.f32 %v1709_v9, 0.0  ;;  %v979_v28 = vpop.f32.mrb[112].mxu0  ;;  %v2799_v34 = vpack.c.bf16 %v2524_v56, %v2523_v52 }
 0x1df   : > { %2217 = vst [vmem:[#allocation2 + $0x770] sm:$0xff] %v2086_v53  ;;  %2153 = vst [vmem:[#allocation2 + $0x370] sm:$0xff] %v1958_v54  ;;  %v1577_v62 = vmul.f32 %v9641_v8, %v1299_v57  ;;  %v1301_v63 = vpop.f32.mrb[113].mxu1  ;;  %v1449_v0 = vmul.f32 %v9641_v8, %v979_v28  ;;  %v981_v1 = vpop.f32.mrb[113].mxu0  ;;  %v2525_v40 = vld [vmem:[#allocation3 + $0x1a1] sm:$0xff] }
 0x1e0   : > { %2342 = vst [vmem:[#allocation3 + $0x3b8] sm:$0xff] %v2087_v26  ;;  %2278 = vst [vmem:[#allocation3 + $0x1b8] sm:$0xff] %v1959_v59  ;;  %v1578_v12 = vmul.f32 %v9645_v10, %v1301_v63  ;;  %v1303_v38 = vpop.f32.mrb[114].mxu1  ;;  %v1450_v37 = vmul.f32 %v9645_v10, %v981_v1  ;;  %v983_v13 = vpop.f32.mrb[114].mxu0  ;;  %v10246_v17 = vpack.c.bf16 %v1959_v59, %v1957_v18 }
 0x1e1   : > { %v10248_v19 = vpack.c.bf16 %v2087_v26, %v2085_v47  ;;  %v1838_v20 = vadd.f32 %v9653_v14, %v1577_v62  ;;  %v1710_v21 = vadd.f32 %v9653_v14, %v1449_v0  ;;  %v1579_v7 = vmul.f32 %v9641_v8, %v1303_v38  ;;  %v1305_v23 = vpop.f32.mrb[115].mxu1  ;;  %v985_v48 = vpop.f32.mrb[115].mxu0 }
 0x1e2   : > { %v1451_v24 = vmul.f32 %v9641_v8, %v983_v13  ;;  %v1839_v25 = vadd.f32 %v9656_v16, %v1578_v12  ;;  %v1711_v50 = vadd.f32 %v9656_v16, %v1450_v37  ;;  %v1580_v29 = vmul.f32 %v9645_v10, %v1305_v23 }
 0x1e3   : > { %v1452_v30 = vmul.f32 %v9645_v10, %v985_v48  ;;  %v2088_v31 = vmax.f32 %v1838_v20, 0.0  ;;  %v1960_v55 = vmax.f32 %v1710_v21, 0.0  ;;  %v1840_v33 = vadd.f32 %v9653_v14, %v1579_v7  ;;  %3332 = vmatmul.mubr.bf16.gmra.mrb[220].mxu1 %v10180_v32 }
 0x1e4   : > { %v1712_v35 = vadd.f32 %v9653_v14, %v1451_v24  ;;  %v2089_v36 = vmax.f32 %v1839_v25, 0.0  ;;  %v1961_v61 = vmax.f32 %v1711_v50, 0.0  ;;  %v1841_v51 = vadd.f32 %v9656_v16, %v1580_v29  ;;  %3339 = vmatprep.mubr.bf16.mxu1 %v2799_v34 }
 0x1e5   : > { %v1713_v27 = vadd.f32 %v9656_v16, %v1452_v30  ;;  %2218 = vst [vmem:[#allocation2 + $0x780] sm:$0xff] %v2088_v31  ;;  %2154 = vst [vmem:[#allocation2 + $0x380] sm:$0xff] %v1960_v55  ;;  %v2090_v41 = vmax.f32 %v1840_v33, 0.0  ;;  %v2526_v5 = vld [vmem:[#allocation3 + $0x1a9] sm:$0xff] }
 0x1e6   : > { %v1962_v42 = vmax.f32 %v1712_v35, 0.0  ;;  %2343 = vst [vmem:[#allocation3 + $0x3c0] sm:$0xff] %v2089_v36  ;;  %2279 = vst [vmem:[#allocation3 + $0x1c0] sm:$0xff] %v1961_v61  ;;  %v2091_v44 = vmax.f32 %v1841_v51, 0.0  ;;  %v1309_v45 = vpop.f32.mrb[116].mxu1  ;;  %v989_v46 = vpop.f32.mrb[116].mxu0  ;;  %v2802_v52 = vpack.c.bf16 %v2526_v5, %v2525_v40 }
 0x1e7   : > { %v1963_v32 = vmax.f32 %v1713_v27, 0.0  ;;  %2219 = vst [vmem:[#allocation2 + $0x790] sm:$0xff] %v2090_v41  ;;  %v1581_v47 = vmul.f32 %v9641_v8, %v1309_v45  ;;  %v1311_v18 = vpop.f32.mrb[117].mxu1  ;;  %v1453_v49 = vmul.f32 %v9641_v8, %v989_v46  ;;  %v991_v9 = vpop.f32.mrb[117].mxu0  ;;  %v2527_v51 = vld [vmem:[#allocation3 + $0x1b1] sm:$0xff] }
 0x1e8   : > { %2155 = vst [vmem:[#allocation2 + $0x390] sm:$0xff] %v1962_v42  ;;  %2344 = vst [vmem:[#allocation3 + $0x3c8] sm:$0xff] %v2091_v44  ;;  %v1582_v22 = vmul.f32 %v9645_v10, %v1311_v18  ;;  %v1313_v53 = vpop.f32.mrb[118].mxu1  ;;  %v1454_v54 = vmul.f32 %v9645_v10, %v991_v9  ;;  %v993_v56 = vpop.f32.mrb[118].mxu0  ;;  %v10269_v57 = vpack.c.bf16 %v2091_v44, %v2089_v36 }
 0x1e9   : > { %2280 = vst [vmem:[#allocation3 + $0x1c8] sm:$0xff] %v1963_v32  ;;  %v10267_v26 = vpack.c.bf16 %v1963_v32, %v1961_v61  ;;  %v1842_v59 = vadd.f32 %v9653_v14, %v1581_v47  ;;  %v1714_v28 = vadd.f32 %v9653_v14, %v1453_v49  ;;  %v1583_v62 = vmul.f32 %v9641_v8, %v1313_v53  ;;  %v1315_v63 = vpop.f32.mrb[119].mxu1  ;;  %v995_v1 = vpop.f32.mrb[119].mxu0 }
 0x1ea   : > { %v1455_v0 = vmul.f32 %v9641_v8, %v993_v56  ;;  %v1843_v34 = vadd.f32 %v9656_v16, %v1582_v22  ;;  %v1715_v12 = vadd.f32 %v9656_v16, %v1454_v54  ;;  %v1584_v38 = vmul.f32 %v9645_v10, %v1315_v63 }
 0x1eb   : > { %v1456_v37 = vmul.f32 %v9645_v10, %v995_v1  ;;  %v2092_v13 = vmax.f32 %v1842_v59, 0.0  ;;  %v1964_v20 = vmax.f32 %v1714_v28, 0.0  ;;  %v1844_v21 = vadd.f32 %v9653_v14, %v1583_v62  ;;  %3340 = vmatmul.mubr.bf16.gmra.mrb[224].mxu1 %v10199_v15 }
 0x1ec   : > { %v1716_v7 = vadd.f32 %v9653_v14, %v1455_v0  ;;  %v2093_v23 = vmax.f32 %v1843_v34, 0.0  ;;  %v1965_v24 = vmax.f32 %v1715_v12, 0.0  ;;  %v1845_v48 = vadd.f32 %v9656_v16, %v1584_v38  ;;  %3347 = vmatprep.mubr.bf16.mxu1 %v2802_v52 }
 0x1ed   : > { %v1717_v25 = vadd.f32 %v9656_v16, %v1456_v37  ;;  %2220 = vst [vmem:[#allocation2 + $0x7a0] sm:$0xff] %v2092_v13  ;;  %2156 = vst [vmem:[#allocation2 + $0x3a0] sm:$0xff] %v1964_v20  ;;  %v2094_v50 = vmax.f32 %v1844_v21, 0.0  ;;  %v2528_v27 = vld [vmem:[#allocation3 + $0x1b9] sm:$0xff] }
 0x1ee   : > { %v1966_v29 = vmax.f32 %v1716_v7, 0.0  ;;  %2345 = vst [vmem:[#allocation3 + $0x3d0] sm:$0xff] %v2093_v23  ;;  %2281 = vst [vmem:[#allocation3 + $0x1d0] sm:$0xff] %v1965_v24  ;;  %v2095_v30 = vmax.f32 %v1845_v48, 0.0  ;;  %v1319_v31 = vpop.f32.mrb[120].mxu1  ;;  %v999_v33 = vpop.f32.mrb[120].mxu0  ;;  %v2805_v22 = vpack.c.bf16 %v2528_v27, %v2527_v51 }
 0x1ef   : > { %v1967_v55 = vmax.f32 %v1717_v25, 0.0  ;;  %2221 = vst [vmem:[#allocation2 + $0x7b0] sm:$0xff] %v2094_v50  ;;  %v1585_v15 = vmul.f32 %v9641_v8, %v1319_v31  ;;  %v1321_v35 = vpop.f32.mrb[121].mxu1  ;;  %v1457_v36 = vmul.f32 %v9641_v8, %v999_v33  ;;  %v1001_v61 = vpop.f32.mrb[121].mxu0 }
 0x1f0   : > { %2157 = vst [vmem:[#allocation2 + $0x3b0] sm:$0xff] %v1966_v29  ;;  %2346 = vst [vmem:[#allocation3 + $0x3d8] sm:$0xff] %v2095_v30  ;;  %v1586_v40 = vmul.f32 %v9645_v10, %v1321_v35  ;;  %v1323_v41 = vpop.f32.mrb[122].mxu1  ;;  %v1458_v42 = vmul.f32 %v9645_v10, %v1001_v61  ;;  %v1003_v5 = vpop.f32.mrb[122].mxu0  ;;  %v10288_v45 = vpack.c.bf16 %v2095_v30, %v2093_v23  ;;  %v2529_v37 = vld [vmem:[#allocation3 + $0x1c1] sm:$0xff] }
 0x1f1   : > { %2282 = vst [vmem:[#allocation3 + $0x1d8] sm:$0xff] %v1967_v55  ;;  %v2810_v44 = vpack.c.bf16 %v1967_v55, %v1965_v24  ;;  %v1846_v32 = vadd.f32 %v9653_v14, %v1585_v15  ;;  %v1718_v46 = vadd.f32 %v9653_v14, %v1457_v36  ;;  %v1324_v47 = vpop.f32.mrb[123].mxu1  ;;  %v1459_v18 = vmul.f32 %v9641_v8, %v1003_v5  ;;  %v1005_v49 = vpop.f32.mrb[123].mxu0  ;;  %v2537_v41 = vld [vmem:[#allocation3 + $0x201] sm:$0xff] }
 0x1f2   : > { %v1847_v9 = vadd.f32 %v9656_v16, %v1586_v40  ;;  %v1719_v52 = vadd.f32 %v9656_v16, %v1458_v42  ;;  %v1460_v53 = vmul.f32 %v9645_v10, %v1005_v49  ;;  %v2538_v40 = vld [vmem:[#allocation3 + $0x209] sm:$0xff]  ;;  %v2539_v47 = vld [vmem:[#allocation3 + $0x211] sm:$0xff] }
 0x1f3   : > { %v2096_v54 = vmax.f32 %v1846_v32, 0.0  ;;  %v1968_v56 = vmax.f32 %v1718_v46, 0.0  ;;  %3348 = vmatmul.mubr.bf16.gmra.mrb[228].mxu1 %v10223_v39  ;;  %v1720_v59 = vadd.f32 %v9653_v14, %v1459_v18  ;;  %v2820_v42 = vpack.c.bf16 %v2538_v40, %v2537_v41  ;;  %v2413_v5 = vld [vmem:[#allocation3 + $0x208] sm:$0xff]  ;;  %v2540_v32 = vld [vmem:[#allocation3 + $0x219] sm:$0xff] }
 0x1f4   : > { %v2097_v28 = vmax.f32 %v1847_v9, 0.0  ;;  %v1969_v62 = vmax.f32 %v1719_v52, 0.0  ;;  %3355 = vmatprep.mubr.bf16.mxu1 %v2805_v22  ;;  %v1721_v63 = vadd.f32 %v9656_v16, %v1460_v53  ;;  %v2823_v18 = vpack.c.bf16 %v2540_v32, %v2539_v47  ;;  %v2415_v49 = vld [vmem:[#allocation3 + $0x218] sm:$0xff]  ;;  %v2542_v9 = vld [vmem:[#allocation3 + $0x229] sm:$0xff]  ;;  %v2541_v53 = vld [vmem:[#allocation3 + $0x221] sm:$0xff] }
 0x1f5   : > { %2222 = vst [vmem:[#allocation2 + $0x7c0] sm:$0xff] %v2096_v54  ;;  %2158 = vst [vmem:[#allocation2 + $0x3c0] sm:$0xff] %v1968_v56  ;;  %v1970_v0 = vmax.f32 %v1720_v59, 0.0  ;;  %v2530_v39 = vld [vmem:[#allocation3 + $0x1c9] sm:$0xff]  ;;  %v2826_v54 = vpack.c.bf16 %v2542_v9, %v2541_v53  ;;  %v2544_v59 = vld [vmem:[#allocation3 + $0x239] sm:$0xff] }
 0x1f6   : > { %2347 = vst [vmem:[#allocation3 + $0x3e0] sm:$0xff] %v2097_v28  ;;  %2283 = vst [vmem:[#allocation3 + $0x1e0] sm:$0xff] %v1969_v62  ;;  %v1971_v1 = vmax.f32 %v1721_v63, 0.0  ;;  %v1009_v34 = vpop.f32.mrb[124].mxu0  ;;  %v2808_v50 = vpack.c.bf16 %v2530_v39, %v2529_v37  ;;  %v2414_v52 = vld [vmem:[#allocation3 + $0x210] sm:$0xff]  ;;  %v2417_v56 = vld [vmem:[#allocation3 + $0x228] sm:$0xff] }
 0x1f7   : > { %2159 = vst [vmem:[#allocation2 + $0x3d0] sm:$0xff] %v1970_v0  ;;  %v1461_v12 = vmul.f32 %v9641_v8, %v1009_v34  ;;  %v1011_v38 = vpop.f32.mrb[125].mxu0  ;;  %v2822_v22 = vpack.c.bf16 %v2415_v49, %v2414_v52  ;;  %v2416_v28 = vld [vmem:[#allocation3 + $0x220] sm:$0xff]  ;;  %v2543_v63 = vld [vmem:[#allocation3 + $0x231] sm:$0xff]  ;;  %v2546_v34 = vld [vmem:[#allocation3 + $0x249] sm:$0xff] }
 0x1f8   : > { %2284 = vst [vmem:[#allocation3 + $0x1e8] sm:$0xff] %v1971_v1  ;;  %v1462_v13 = vmul.f32 %v9645_v10, %v1011_v38  ;;  %v1013_v20 = vpop.f32.mrb[126].mxu0  ;;  %v2813_v21 = vpack.c.bf16 %v1971_v1, %v1969_v62  ;;  %v2825_v62 = vpack.c.bf16 %v2417_v56, %v2416_v28  ;;  %v2829_v0 = vpack.c.bf16 %v2544_v59, %v2543_v63  ;;  %v2419_v1 = vld [vmem:[#allocation3 + $0x238] sm:$0xff]  ;;  %v2545_v37 = vld [vmem:[#allocation3 + $0x241] sm:$0xff]  ;;  %v2430_v47 = vld [vmem:[#allocation3 + $0x290] sm:$0xff] }
 0x1f9   : > { %v1722_v7 = vadd.f32 %v9653_v14, %v1461_v12  ;;  %v1463_v23 = vmul.f32 %v9641_v8, %v1013_v20  ;;  %v1015_v24 = vpop.f32.mrb[127].mxu0  ;;  %v2531_v8 = vld [vmem:[#allocation3 + $0x1d1] sm:$0xff]  ;;  %v2832_v39 = vpack.c.bf16 %v2546_v34, %v2545_v37  ;;  %v2548_v20 = vld [vmem:[#allocation3 + $0x259] sm:$0xff]  ;;  %v2429_v40 = vld [vmem:[#allocation3 + $0x288] sm:$0xff] }
 0x1fa   : > { %v1723_v48 = vadd.f32 %v9656_v16, %v1462_v13  ;;  %v1464_v25 = vmul.f32 %v9645_v10, %v1015_v24  ;;  %v2418_v12 = vld [vmem:[#allocation3 + $0x230] sm:$0xff]  ;;  %v2421_v13 = vld [vmem:[#allocation3 + $0x248] sm:$0xff]  ;;  %v2556_v41 = vld [vmem:[#allocation3 + $0x299] sm:$0xff] }
 0x1fb   : > { %v1972_v29 = vmax.f32 %v1722_v7, 0.0  ;;  %v1724_v30 = vadd.f32 %v9653_v14, %v1463_v23  ;;  %3356 = vmatmul.mubr.bf16.gmra.mrb[232].mxu1 %v10246_v17  ;;  %v2828_v38 = vpack.c.bf16 %v2419_v1, %v2418_v12  ;;  %v2547_v23 = vld [vmem:[#allocation3 + $0x251] sm:$0xff]  ;;  %v2557_v49 = vld [vmem:[#allocation3 + $0x2a1] sm:$0xff] }
 0x1fc   : > { %v1973_v31 = vmax.f32 %v1723_v48, 0.0  ;;  %v1725_v55 = vadd.f32 %v9656_v16, %v1464_v25  ;;  %3363 = vmatprep.mubr.bf16.mxu1 %v2808_v50  ;;  %v2835_v24 = vpack.c.bf16 %v2548_v20, %v2547_v23  ;;  %v2423_v48 = vld [vmem:[#allocation3 + $0x258] sm:$0xff]  ;;  %v2550_v25 = vld [vmem:[#allocation3 + $0x269] sm:$0xff]  ;;  %v2432_v53 = vld [vmem:[#allocation3 + $0x2a0] sm:$0xff] }
 0x1fd   : > { %2160 = vst [vmem:[#allocation2 + $0x3e0] sm:$0xff] %v1972_v29  ;;  %v1974_v33 = vmax.f32 %v1724_v30, 0.0  ;;  %v2532_v35 = vld [vmem:[#allocation3 + $0x1d9] sm:$0xff]  ;;  %v2422_v50 = vld [vmem:[#allocation3 + $0x250] sm:$0xff]  ;;  %v2549_v30 = vld [vmem:[#allocation3 + $0x261] sm:$0xff] }
 0x1fe   : > { %2285 = vst [vmem:[#allocation3 + $0x1f0] sm:$0xff] %v1973_v31  ;;  %v1975_v15 = vmax.f32 %v1725_v55, 0.0  ;;  %v2811_v10 = vpack.c.bf16 %v2532_v35, %v2531_v8  ;;  %v2834_v29 = vpack.c.bf16 %v2423_v48, %v2422_v50  ;;  %v2425_v55 = vld [vmem:[#allocation3 + $0x268] sm:$0xff]  ;;  %v2551_v35 = vld [vmem:[#allocation3 + $0x271] sm:$0xff]  ;;  %v2596_v11 = vld [vmem:[#allocation3 + $0x3d9] sm:$0xff] }
 0x1ff   : > { %2161 = vst [vmem:[#allocation2 + $0x3f0] sm:$0xff] %v1974_v33  ;;  %v2533_v14 = vld [vmem:[#allocation3 + $0x1e1] sm:$0xff]  ;;  %v2552_v33 = vld [vmem:[#allocation3 + $0x279] sm:$0xff]  ;;  %v2559_v56 = vld [vmem:[#allocation3 + $0x2b1] sm:$0xff] }
 0x200   : > { %2286 = vst [vmem:[#allocation3 + $0x1f8] sm:$0xff] %v1975_v15  ;;  %v2816_v36 = vpack.c.bf16 %v1975_v15, %v1973_v31  ;;  %v2838_v31 = vpack.c.bf16 %v2550_v25, %v2549_v30  ;;  %v2424_v15 = vld [vmem:[#allocation3 + $0x260] sm:$0xff]  ;;  %v2433_v52 = vld [vmem:[#allocation3 + $0x2a8] sm:$0xff]  ;;  %v2435_v28 = vld [vmem:[#allocation3 + $0x2b8] sm:$0xff] }
 0x201   : > { %v2837_v8 = vpack.c.bf16 %v2425_v55, %v2424_v15  ;;  %v2434_v63 = vld [vmem:[#allocation3 + $0x2b0] sm:$0xff]  ;;  %v2561_v1 = vld [vmem:[#allocation3 + $0x2c1] sm:$0xff]  ;;  %v2439_v23 = vld [vmem:[#allocation3 + $0x2d8] sm:$0xff] }
 0x202   : > { %v9088_v12 = vld [vmem:[%s12244_s3] ss:$12 sps:$4 sm:$0xff]   ;;  %v2437_v37 = vld [vmem:[#allocation3 + $0x2c8] sm:$0xff]  ;;  %v2440_v15 = vld [vmem:[#allocation3 + $0x2e0] sm:$0xff] }
 0x203   : > { %3364 = vmatmul.mubr.bf16.gmra.mrb[236].mxu1 %v10267_v26  ;;  %v9086_v26 = vld [vmem:[%s12243_s2 + $0xb0] sm:$0xff]   ;;  %v2438_v48 = vld [vmem:[#allocation3 + $0x2d0] sm:$0xff]  ;;  %v2441_v55 = vld [vmem:[#allocation3 + $0x2e8] sm:$0xff] }
 0x204   : > { %3371 = vmatprep.mubr.bf16.mxu1 %v2811_v10  ;;  %8486 = vmatpush3.bf16.msra.mxu1 %v9086_v26  ;;  %v2427_v10 = vld [vmem:[#allocation3 + $0x278] sm:$0xff]  ;;  %v2858_v25 = vpack.c.bf16 %v2439_v23, %v2438_v48  ;;  %v2565_v50 = vld [vmem:[#allocation3 + $0x2e1] sm:$0xff] }
 0x205   : > { %v2534_v61 = vld [vmem:[#allocation3 + $0x1e9] sm:$0xff]  ;;  %8487 = vmatprep.subr.bf16.mxu1 %v12250_v3 }
 0x206   : > { %v2814_v17 = vpack.c.bf16 %v2534_v61, %v2533_v14  ;;  %v2554_v14 = vld [vmem:[#allocation3 + $0x289] sm:$0xff] }
 0x207   : > { %v2535_v16 = vld [vmem:[#allocation3 + $0x1f1] sm:$0xff]  ;;  %v2536_v51 = vld [vmem:[#allocation3 + $0x1f9] sm:$0xff] }
 0x208   : > { %v2817_v27 = vpack.c.bf16 %v2536_v51, %v2535_v16  ;;  %v2426_v61 = vld [vmem:[#allocation3 + $0x270] sm:$0xff]  ;;  %v2553_v16 = vld [vmem:[#allocation3 + $0x281] sm:$0xff] }
 0x209   : > { %v2844_v51 = vpack.c.bf16 %v2554_v14, %v2553_v16  ;;  %v9091_v30 = vld [vmem:[%s12244_s3 + $0x18] ss:$12 sps:$4 sm:$0xff]  }
 0x20a   : > { %v2570_v14 = vld [vmem:[#allocation3 + $0x309] sm:$0xff]  ;;  %v2569_v16 = vld [vmem:[#allocation3 + $0x301] sm:$0xff] }
 0x20b   : > { %3372 = vmatmul.mubr.bf16.gmra.mrb[240].mxu1 %v2810_v44  ;;  %v2412_v44 = vld [vmem:[#allocation3 + $0x200] sm:$0xff] }
 0x20c   : > { %3379 = vmatprep.mubr.bf16.mxu1 %v2814_v17  ;;  %v2819_v46 = vpack.c.bf16 %v2413_v5, %v2412_v44  ;;  %v2840_v17 = vpack.c.bf16 %v2427_v10, %v2426_v61  ;;  %v2555_v5 = vld [vmem:[#allocation3 + $0x291] sm:$0xff] }
 0x20d   : > { %v2847_v32 = vpack.c.bf16 %v2556_v41, %v2555_v5  ;;  %v2431_v44 = vld [vmem:[#allocation3 + $0x298] sm:$0xff]  ;;  %v2442_v61 = vld [vmem:[#allocation3 + $0x2f0] sm:$0xff]  ;;  %v2445_v41 = vld [vmem:[#allocation3 + $0x308] sm:$0xff] }
 0x20e   : > { %v2443_v10 = vld [vmem:[#allocation3 + $0x2f8] sm:$0xff] }
 0x213   : > { %3380 = vmatmul.mubr.bf16.gmra.mrb[244].mxu1 %v2813_v21  ;;  %v2420_v21 = vld [vmem:[#allocation3 + $0x240] sm:$0xff] }
 0x214   : > { %3387 = vmatprep.mubr.bf16.mxu1 %v2817_v27  ;;  %v2831_v7 = vpack.c.bf16 %v2421_v13, %v2420_v21  ;;  %v9087_v27 = vld [vmem:[%s12243_s2 + $0xb8] sm:$0xff]   ;;  %v2436_v13 = vld [vmem:[#allocation3 + $0x2c0] sm:$0xff]  ;;  %v2563_v21 = vld [vmem:[#allocation3 + $0x2d1] sm:$0xff] }
 0x215   : > { %8488 = vmatpush3.bf16.msra.mxu1 %v9087_v27  ;;  %v2855_v20 = vpack.c.bf16 %v2437_v37, %v2436_v13  ;;  %v9094_v27 = vld [vmem:[%s12244_s3 + $0x30] ss:$12 sps:$4 sm:$0xff]  }
 0x216   : > { %v9102_v13 = vld [vmem:[%s12244_s3 + $0x64] ss:$12 sps:$4 sm:$0xff]  }
 0x21b   : > { %3388 = vmatmul.mubr.bf16.gmra.mrb[248].mxu1 %v2816_v36  ;;  %v2841_v36 = vpack.c.bf16 %v2552_v33, %v2551_v35  ;;  %v2568_v33 = vld [vmem:[#allocation3 + $0x2f9] sm:$0xff]  ;;  %v2567_v35 = vld [vmem:[#allocation3 + $0x2f1] sm:$0xff] }
 0x21c   : > { %3395 = vmatprep.mubr.bf16.mxu1 %v2820_v42  ;;  %v2428_v42 = vld [vmem:[#allocation3 + $0x280] sm:$0xff] }
 0x21d   : > { %v2843_v26 = vpack.c.bf16 %v2429_v40, %v2428_v42  ;;  %v9096_v40 = vld [vmem:[%s12244_s3 + $0x34] ss:$12 sps:$4 sm:$0xff]   ;;  %v2572_v42 = vld [vmem:[#allocation3 + $0x319] sm:$0xff] }
 0x223   : > { %3396 = vmatmul.mubr.bf16.gmra.mrb[252].mxu1 %v2819_v46  ;;  %v2558_v46 = vld [vmem:[#allocation3 + $0x2a9] sm:$0xff] }
 0x224   : > { %3403 = vmatprep.mubr.bf16.mxu1 %v2823_v18  ;;  %v2846_v18 = vpack.c.bf16 %v2431_v44, %v2430_v47  ;;  %v2850_v9 = vpack.c.bf16 %v2558_v46, %v2557_v49  ;;  %v2447_v46 = vld [vmem:[#allocation3 + $0x318] sm:$0xff]  ;;  %v2574_v47 = vld [vmem:[#allocation3 + $0x329] sm:$0xff] }
 0x22b   : > { %3404 = vmatmul.mubr.bf16.gmra.mrb[0].mxu1 %v2822_v22  ;;  %v2560_v22 = vld [vmem:[#allocation3 + $0x2b9] sm:$0xff] }
 0x22c   : > { %3411 = vmatprep.mubr.bf16.mxu1 %v2826_v54  ;;  %v2849_v54 = vpack.c.bf16 %v2433_v52, %v2432_v53  ;;  %v2853_v59 = vpack.c.bf16 %v2560_v22, %v2559_v56  ;;  %v9097_v22 = vld [vmem:[%s12244_s3 + $0x48] ss:$12 sps:$4 sm:$0xff]   ;;  %v9099_v53 = vld [vmem:[%s12244_s3 + $0x4c] ss:$12 sps:$4 sm:$0xff]  }
 0x22d   : > { %v2576_v56 = vld [vmem:[#allocation3 + $0x339] sm:$0xff] }
 0x233   : > { %3412 = vmatmul.mubr.bf16.gmra.mrb[4].mxu1 %v2825_v62  ;;  %v2562_v62 = vld [vmem:[#allocation3 + $0x2c9] sm:$0xff] }
 0x234   : > { %3419 = vmatprep.mubr.bf16.mxu1 %v2829_v0  ;;  %v2852_v0 = vpack.c.bf16 %v2435_v28, %v2434_v63  ;;  %v2856_v34 = vpack.c.bf16 %v2562_v62, %v2561_v1  ;;  %v2575_v62 = vld [vmem:[#allocation3 + $0x331] sm:$0xff]  ;;  %v2578_v1 = vld [vmem:[#allocation3 + $0x349] sm:$0xff] }
 0x235   : > { %v2877_v63 = vpack.c.bf16 %v2576_v56, %v2575_v62  ;;  %v9109_v56 = vld [vmem:[%s12244_s3 + $0xa8] ss:$12 sps:$4 sm:$0xff]  }
 0x236   : > { %v2592_v62 = vld [vmem:[#allocation3 + $0x3b9] sm:$0xff] }
 0x23b   : > { %3420 = vmatmul.mubr.bf16.gmra.mrb[8].mxu1 %v2828_v38  ;;  %v9090_v38 = vld [vmem:[%s12244_s3 + $0x4] ss:$12 sps:$4 sm:$0xff]  }
 0x23c   : > { %3427 = vmatprep.mubr.bf16.mxu1 %v2832_v39  ;;  %5387 = vmatprep.subr.bf16.mxu0 %v9090_v38  ;;  %v2564_v39 = vld [vmem:[#allocation3 + $0x2d9] sm:$0xff]  ;;  %v2577_v38 = vld [vmem:[#allocation3 + $0x341] sm:$0xff] }
 0x23d   : > { %5388 = vmatpush1.bf16.msra.mxu0 %v9088_v12  ;;  %v2880_v37 = vpack.c.bf16 %v2578_v1, %v2577_v38 }
 0x243   : > { %3428 = vmatmul.mubr.bf16.gmra.mrb[12].mxu1 %v2831_v7  ;;  %v2859_v7 = vpack.c.bf16 %v2564_v39, %v2563_v21  ;;  %v9100_v39 = vld [vmem:[%s12244_s3 + $0x60] ss:$12 sps:$4 sm:$0xff]  }
 0x244   : > { %3435 = vmatprep.mubr.bf16.mxu1 %v2835_v24  ;;  %v2566_v24 = vld [vmem:[#allocation3 + $0x2e9] sm:$0xff]  ;;  %v2580_v21 = vld [vmem:[#allocation3 + $0x359] sm:$0xff] }
 0x24b   : > { %3436 = vmatmul.mubr.bf16.gmra.mrb[16].mxu1 %v2834_v29  ;;  %v2862_v29 = vpack.c.bf16 %v2566_v24, %v2565_v50  ;;  %v2579_v24 = vld [vmem:[#allocation3 + $0x351] sm:$0xff]  ;;  %v2582_v50 = vld [vmem:[#allocation3 + $0x369] sm:$0xff] }
 0x24c   : > { %3443 = vmatprep.mubr.bf16.mxu1 %v2838_v31  ;;  %v9093_v31 = vld [vmem:[%s12244_s3 + $0x1c] ss:$12 sps:$4 sm:$0xff]   ;;  %v2883_v48 = vpack.c.bf16 %v2580_v21, %v2579_v24 }
 0x24d   : > { %5389 = vmatprep.subr.bf16.mxu0 %v9093_v31  ;;  %v2581_v31 = vld [vmem:[#allocation3 + $0x361] sm:$0xff] }
 0x24e   : > { %5390 = vmatpush1.bf16.msra.mxu0 %v9091_v30 }
 0x24f   : > { %5391 = vmatprep.subr.bf16.mxu0 %v9096_v40  ;;  %v2585_v40 = vld [vmem:[#allocation3 + $0x381] sm:$0xff] }
 0x252   : > { %5392 = vmatpush1.bf16.msra.mxu0 %v9094_v27 }
 0x253   : > { %3444 = vmatmul.mubr.bf16.gmra.mrb[20].mxu1 %v2837_v8  ;;  %v2861_v8 = vpack.c.bf16 %v2441_v55, %v2440_v15  ;;  %5393 = vmatprep.subr.bf16.mxu0 %v9099_v53  ;;  %v2886_v55 = vpack.c.bf16 %v2582_v50, %v2581_v31  ;;  %v9105_v15 = vld [vmem:[%s12244_s3 + $0x7c] ss:$12 sps:$4 sm:$0xff]   ;;  %v2589_v53 = vld [vmem:[#allocation3 + $0x3a1] sm:$0xff] }
 0x254   : > { %3451 = vmatprep.mubr.bf16.mxu1 %v2841_v36  ;;  %v2865_v36 = vpack.c.bf16 %v2568_v33, %v2567_v35  ;;  %v9103_v33 = vld [vmem:[%s12244_s3 + $0x78] ss:$12 sps:$4 sm:$0xff]   ;;  %v2584_v35 = vld [vmem:[#allocation3 + $0x379] sm:$0xff]  ;;  %v9120_v50 = vld [vmem:[%s12244_s3 + $0xf4] ss:$12 sps:$4 sm:$0xff]  }
 0x256   : > { %5394 = vmatpush1.bf16.msra.mxu0 %v9097_v22 }
 0x257   : > { %5395 = vmatprep.subr.bf16.mxu0 %v9102_v13 }
 0x25a   : > { %5396 = vmatpush1.bf16.msra.mxu0 %v9100_v39  ;;  %v9114_v39 = vld [vmem:[%s12244_s3 + $0xc4] ss:$12 sps:$4 sm:$0xff]  }
 0x25b   : > { %3452 = vmatmul.mubr.bf16.gmra.mrb[24].mxu1 %v2840_v17  ;;  %v2864_v17 = vpack.c.bf16 %v2443_v10, %v2442_v61  ;;  %5397 = vmatprep.subr.bf16.mxu0 %v9105_v15 }
 0x25c   : > { %3459 = vmatprep.mubr.bf16.mxu1 %v2844_v51  ;;  %v2868_v51 = vpack.c.bf16 %v2570_v14, %v2569_v16  ;;  %v2583_v14 = vld [vmem:[#allocation3 + $0x371] sm:$0xff]  ;;  %v2586_v16 = vld [vmem:[#allocation3 + $0x389] sm:$0xff] }
 0x25d   : > { %v2889_v61 = vpack.c.bf16 %v2584_v35, %v2583_v14  ;;  %v9123_v35 = vld [vmem:[%s12244_s3 + $0x10c] ss:$12 sps:$4 sm:$0xff]  }
 0x25e   : > { %5398 = vmatpush1.bf16.msra.mxu0 %v9103_v33  ;;  %v2603_v33 = vld [vmem:[#allocation3 + $0x2a] sm:$0xff] }
 0x263   : > { %3460 = vmatmul.mubr.bf16.gmra.mrb[28].mxu1 %v2843_v26  ;;  %v2444_v26 = vld [vmem:[#allocation3 + $0x300] sm:$0xff] }
 0x264   : > { %3467 = vmatprep.mubr.bf16.mxu1 %v2847_v32  ;;  %v2867_v5 = vpack.c.bf16 %v2445_v41, %v2444_v26  ;;  %v2571_v32 = vld [vmem:[#allocation3 + $0x311] sm:$0xff]  ;;  %v2892_v41 = vpack.c.bf16 %v2586_v16, %v2585_v40 }
 0x265   : > { %v2871_v44 = vpack.c.bf16 %v2572_v42, %v2571_v32  ;;  %v9106_v42 = vld [vmem:[%s12244_s3 + $0x90] ss:$12 sps:$4 sm:$0xff]   ;;  %v9108_v26 = vld [vmem:[%s12244_s3 + $0x94] ss:$12 sps:$4 sm:$0xff]  }
 0x266   : > { %5399 = vmatprep.subr.bf16.mxu0 %v9108_v26  ;;  %v2588_v32 = vld [vmem:[#allocation3 + $0x399] sm:$0xff]  ;;  %v2610_v26 = vld [vmem:[#allocation3 + $0x62] sm:$0xff] }
 0x267   : > { %5400 = vmatpush1.bf16.msra.mxu0 %v9106_v42  ;;  %v2608_v40 = vld [vmem:[#allocation3 + $0x52] sm:$0xff] }
 0x26b   : > { %3468 = vmatmul.mubr.bf16.gmra.mrb[32].mxu1 %v2846_v18  ;;  %v2446_v18 = vld [vmem:[#allocation3 + $0x310] sm:$0xff] }
 0x26c   : > { %3475 = vmatprep.mubr.bf16.mxu1 %v2850_v9  ;;  %v2870_v49 = vpack.c.bf16 %v2447_v46, %v2446_v18  ;;  %v2573_v9 = vld [vmem:[#allocation3 + $0x321] sm:$0xff] }
 0x26d   : > { %v2874_v52 = vpack.c.bf16 %v2574_v47, %v2573_v9  ;;  %v2587_v47 = vld [vmem:[#allocation3 + $0x391] sm:$0xff]  ;;  %v2590_v9 = vld [vmem:[#allocation3 + $0x3a9] sm:$0xff] }
 0x26e   : > { %v2895_v18 = vpack.c.bf16 %v2588_v32, %v2587_v47  ;;  %v2612_v47 = vld [vmem:[#allocation3 + $0x72] sm:$0xff] }
 0x273   : > { %3476 = vmatmul.mubr.bf16.gmra.mrb[36].mxu1 %v2849_v54  ;;  %v2449_v54 = vld [vmem:[#allocation3 + $0x328] sm:$0xff] }
 0x274   : > { %3483 = vmatprep.mubr.bf16.mxu1 %v2853_v59  ;;  %v2448_v59 = vld [vmem:[#allocation3 + $0x320] sm:$0xff] }
 0x275   : > { %v2873_v28 = vpack.c.bf16 %v2449_v54, %v2448_v59  ;;  %v2898_v54 = vpack.c.bf16 %v2590_v9, %v2589_v53  ;;  %v9111_v59 = vld [vmem:[%s12244_s3 + $0xac] ss:$12 sps:$4 sm:$0xff]   ;;  %v9130_v53 = vld [vmem:[%s12244_s3 + $0x150] ss:$12 sps:$4 sm:$0xff]  }
 0x276   : > { %5401 = vmatprep.subr.bf16.mxu0 %v9111_v59  ;;  %v2614_v9 = vld [vmem:[#allocation3 + $0x82] sm:$0xff]  ;;  %v2617_v59 = vld [vmem:[#allocation3 + $0x9a] sm:$0xff] }
 0x277   : > { %5402 = vmatpush1.bf16.msra.mxu0 %v9109_v56  ;;  %v2616_v56 = vld [vmem:[#allocation3 + $0x92] sm:$0xff] }
 0x278   : > { %5403 = vmatprep.subr.bf16.mxu0 %v9114_v39  ;;  %v2623_v39 = vld [vmem:[#allocation3 + $0xca] sm:$0xff] }
 0x27b   : > { %3484 = vmatmul.mubr.bf16.gmra.mrb[40].mxu1 %v2852_v0  ;;  %v2451_v0 = vld [vmem:[#allocation3 + $0x338] sm:$0xff] }
 0x27c   : > { %3491 = vmatprep.mubr.bf16.mxu1 %v2856_v34  ;;  %v2450_v34 = vld [vmem:[#allocation3 + $0x330] sm:$0xff] }
 0x27d   : > { %v2876_v12 = vpack.c.bf16 %v2451_v0, %v2450_v34  ;;  %v2591_v0 = vld [vmem:[#allocation3 + $0x3b1] sm:$0xff]  ;;  %v2594_v34 = vld [vmem:[#allocation3 + $0x3c9] sm:$0xff] }
 0x27e   : > { %v2901_v1 = vpack.c.bf16 %v2592_v62, %v2591_v0  ;;  %v2618_v62 = vld [vmem:[#allocation3 + $0xa2] sm:$0xff] }
 0x283   : > { %3492 = vmatmul.mubr.bf16.gmra.mrb[44].mxu1 %v2855_v20  ;;  %v2453_v20 = vld [vmem:[#allocation3 + $0x348] sm:$0xff] }
 0x284   : > { %3499 = vmatprep.mubr.bf16.mxu1 %v2859_v7  ;;  %v2452_v7 = vld [vmem:[#allocation3 + $0x340] sm:$0xff] }
 0x285   : > { %v2879_v23 = vpack.c.bf16 %v2453_v20, %v2452_v7  ;;  %v2597_v20 = vld [vmem:[#allocation3 + $0x3e1] sm:$0x1f]  ;;  %v9117_v7 = vld [vmem:[%s12244_s3 + $0xdc] ss:$12 sps:$4 sm:$0xff]  }
 0x286   : > { %v2910_v21 = vpack.c.bf16 %v2597_v20, %v2597_v20  ;;  %v2625_v20 = vld [vmem:[#allocation3 + $0xda] sm:$0xff] }
 0x28b   : > { %3500 = vmatmul.mubr.bf16.gmra.mrb[48].mxu1 %v2858_v25  ;;  %v2455_v25 = vld [vmem:[#allocation3 + $0x358] sm:$0xff] }
 0x28c   : > { %3507 = vmatprep.mubr.bf16.mxu1 %v2862_v29  ;;  %v2454_v29 = vld [vmem:[#allocation3 + $0x350] sm:$0xff] }
 0x28d   : > { %v2882_v30 = vpack.c.bf16 %v2455_v25, %v2454_v29  ;;  %v9118_v25 = vld [vmem:[%s12244_s3 + $0xf0] ss:$12 sps:$4 sm:$0xff]   ;;  %v2600_v29 = vld [vmem:[#allocation3 + $0x12] sm:$0xff] }
 0x293   : > { %3508 = vmatmul.mubr.bf16.gmra.mrb[52].mxu1 %v2861_v8  ;;  %v2457_v8 = vld [vmem:[#allocation3 + $0x368] sm:$0xff] }
 0x294   : > { %3515 = vmatprep.mubr.bf16.mxu1 %v2865_v36  ;;  %v2456_v36 = vld [vmem:[#allocation3 + $0x360] sm:$0xff] }
 0x295   : > { %v2885_v10 = vpack.c.bf16 %v2457_v8, %v2456_v36  ;;  %v9121_v8 = vld [vmem:[%s12244_s3 + $0x108] ss:$12 sps:$4 sm:$0xff]  }
 0x296   : > { %v2604_v36 = vld [vmem:[#allocation3 + $0x32] sm:$0xff] }
 0x29b   : > { %3516 = vmatmul.mubr.bf16.gmra.mrb[56].mxu1 %v2864_v17  ;;  %v2459_v17 = vld [vmem:[#allocation3 + $0x378] sm:$0xff] }
 0x29c   : > { %3523 = vmatprep.mubr.bf16.mxu1 %v2868_v51  ;;  %v2458_v51 = vld [vmem:[#allocation3 + $0x370] sm:$0xff] }
 0x29d   : > { %v2888_v27 = vpack.c.bf16 %v2459_v17, %v2458_v51  ;;  %v2607_v17 = vld [vmem:[#allocation3 + $0x4a] sm:$0xff] }
 0x29e   : > { %v9124_v51 = vld [vmem:[%s12244_s3 + $0x120] ss:$12 sps:$4 sm:$0xff]  }
 0x2a3   : > { %3524 = vmatmul.mubr.bf16.gmra.mrb[60].mxu1 %v2867_v5  ;;  %v2461_v5 = vld [vmem:[#allocation3 + $0x388] sm:$0xff] }
 0x2a4   : > { %3531 = vmatprep.mubr.bf16.mxu1 %v2871_v44  ;;  %v2460_v44 = vld [vmem:[#allocation3 + $0x380] sm:$0xff] }
 0x2a5   : > { %v2891_v46 = vpack.c.bf16 %v2461_v5, %v2460_v44  ;;  %v2611_v5 = vld [vmem:[#allocation3 + $0x6a] sm:$0xff] }
 0x2a6   : > { %v2743_v32 = vpack.c.bf16 %v2611_v5, %v2610_v26  ;;  %v9127_v44 = vld [vmem:[%s12244_s3 + $0x138] ss:$12 sps:$4 sm:$0xff]   ;;  %v2645_v26 = vld [vmem:[#allocation3 + $0x17a] sm:$0xff] }
 0x2ab   : > { %3532 = vmatmul.mubr.bf16.gmra.mrb[64].mxu1 %v2870_v49  ;;  %v2463_v49 = vld [vmem:[#allocation3 + $0x398] sm:$0xff] }
 0x2ac   : > { %3539 = vmatprep.mubr.bf16.mxu1 %v2874_v52  ;;  %v2462_v52 = vld [vmem:[#allocation3 + $0x390] sm:$0xff] }
 0x2ad   : > { %v2894_v22 = vpack.c.bf16 %v2463_v49, %v2462_v52  ;;  %v2615_v52 = vld [vmem:[#allocation3 + $0x8a] sm:$0xff] }
 0x2b3   : > { %3540 = vmatmul.mubr.bf16.gmra.mrb[68].mxu1 %v2873_v28  ;;  %v2464_v28 = vld [vmem:[#allocation3 + $0x3a0] sm:$0xff] }
 0x2b4   : > { %3547 = vmatprep.mubr.bf16.mxu1 %v2877_v63  ;;  %v2897_v63 = vpack.c.bf16 %v2083_v43, %v2464_v28  ;;  %v2595_v43 = vld [vmem:[#allocation3 + $0x3d1] sm:$0xff]  ;;  %v2752_v28 = vpack.c.bf16 %v2617_v59, %v2616_v56 }
 0x2b5   : > { %v2907_v13 = vpack.c.bf16 %v2596_v11, %v2595_v43  ;;  %v9133_v11 = vld [vmem:[%s12244_s3 + $0x168] ss:$12 sps:$4 sm:$0xff]  }
 0x2b6   : > { %v2652_v59 = vld [vmem:[#allocation3 + $0x1b2] sm:$0xff] }
 0x2bb   : > { %3548 = vmatmul.mubr.bf16.gmra.mrb[72].mxu1 %v2876_v12  ;;  %v2593_v12 = vld [vmem:[#allocation3 + $0x3c1] sm:$0xff] }
 0x2bc   : > { %3555 = vmatprep.mubr.bf16.mxu1 %v2880_v37  ;;  %v2904_v38 = vpack.c.bf16 %v2594_v34, %v2593_v12  ;;  %v9112_v37 = vld [vmem:[%s12244_s3 + $0xc0] ss:$12 sps:$4 sm:$0xff]  }
 0x2bd   : > { %5404 = vmatpush1.bf16.msra.mxu0 %v9112_v37  ;;  %v2621_v34 = vld [vmem:[#allocation3 + $0xba] sm:$0xff]  ;;  %v2622_v37 = vld [vmem:[#allocation3 + $0xc2] sm:$0xff] }
 0x2be   : > { %5405 = vmatprep.subr.bf16.mxu0 %v9117_v7  ;;  %v2761_v43 = vpack.c.bf16 %v2623_v39, %v2622_v37  ;;  %v2627_v7 = vld [vmem:[#allocation3 + $0xea] sm:$0xff] }
 0x2c3   : > { %3556 = vmatmul.mubr.bf16.gmra.mrb[76].mxu1 %v2879_v23  ;;  %v2472_v23 = vld [vmem:[#allocation3 + $0x3e0] sm:$0x1f] }
 0x2c4   : > { %3563 = vmatprep.mubr.bf16.mxu1 %v2883_v48  ;;  %v2909_v24 = vpack.c.bf16 %v2472_v23, %v2472_v23 }
 0x2cb   : > { %3564 = vmatmul.mubr.bf16.gmra.mrb[80].mxu1 %v2882_v30  ;;  %v2601_v30 = vld [vmem:[#allocation3 + $0x1a] sm:$0xff] }
 0x2cc   : > { %3571 = vmatprep.mubr.bf16.mxu1 %v2886_v55  ;;  %v2728_v31 = vpack.c.bf16 %v2601_v30, %v2600_v29  ;;  %v2602_v55 = vld [vmem:[#allocation3 + $0x22] sm:$0xff]  ;;  %v2632_v29 = vld [vmem:[#allocation3 + $0x112] sm:$0xff]  ;;  %v2633_v30 = vld [vmem:[#allocation3 + $0x11a] sm:$0xff] }
 0x2cd   : > { %v2731_v15 = vpack.c.bf16 %v2603_v33, %v2602_v55  ;;  %v2634_v55 = vld [vmem:[#allocation3 + $0x122] sm:$0xff]  ;;  %v2635_v33 = vld [vmem:[#allocation3 + $0x12a] sm:$0xff] }
 0x2d3   : > { %3572 = vmatmul.mubr.bf16.gmra.mrb[84].mxu1 %v2885_v10  ;;  %v2605_v10 = vld [vmem:[#allocation3 + $0x3a] sm:$0xff] }
 0x2d4   : > { %3579 = vmatprep.mubr.bf16.mxu1 %v2889_v61  ;;  %v2734_v14 = vpack.c.bf16 %v2605_v10, %v2604_v36  ;;  %v2606_v61 = vld [vmem:[#allocation3 + $0x42] sm:$0xff] }
 0x2d5   : > { %v2737_v16 = vpack.c.bf16 %v2607_v17, %v2606_v61  ;;  %v2638_v10 = vld [vmem:[#allocation3 + $0x142] sm:$0xff]  ;;  %v2640_v17 = vld [vmem:[#allocation3 + $0x152] sm:$0xff] }
 0x2db   : > { %3580 = vmatmul.mubr.bf16.gmra.mrb[88].mxu1 %v2888_v27  ;;  %v9126_v27 = vld [vmem:[%s12244_s3 + $0x124] ss:$12 sps:$4 sm:$0xff]  }
 0x2dc   : > { %3587 = vmatprep.mubr.bf16.mxu1 %v2892_v41  ;;  %v2609_v41 = vld [vmem:[#allocation3 + $0x5a] sm:$0xff] }
 0x2dd   : > { %v2740_v42 = vpack.c.bf16 %v2609_v41, %v2608_v40  ;;  %v2643_v40 = vld [vmem:[#allocation3 + $0x16a] sm:$0xff] }
 0x2e3   : > { %3588 = vmatmul.mubr.bf16.gmra.mrb[92].mxu1 %v2891_v46  ;;  %v9129_v46 = vld [vmem:[%s12244_s3 + $0x13c] ss:$12 sps:$4 sm:$0xff]  }
 0x2e4   : > { %3595 = vmatprep.mubr.bf16.mxu1 %v2895_v18  ;;  %v2613_v18 = vld [vmem:[#allocation3 + $0x7a] sm:$0xff] }
 0x2e5   : > { %v2746_v49 = vpack.c.bf16 %v2613_v18, %v2612_v47  ;;  %v2648_v47 = vld [vmem:[#allocation3 + $0x192] sm:$0xff]  ;;  %v2649_v18 = vld [vmem:[#allocation3 + $0x19a] sm:$0xff] }
 0x2eb   : > { %3596 = vmatmul.mubr.bf16.gmra.mrb[96].mxu1 %v2894_v22  ;;  %v2749_v22 = vpack.c.bf16 %v2615_v52, %v2614_v9  ;;  %v2650_v9 = vld [vmem:[#allocation3 + $0x1a2] sm:$0xff]  ;;  %v2651_v52 = vld [vmem:[#allocation3 + $0x1aa] sm:$0xff] }
 0x2ec   : > { %3603 = vmatprep.mubr.bf16.mxu1 %v2898_v54  ;;  %v9132_v54 = vld [vmem:[%s12244_s3 + $0x154] ss:$12 sps:$4 sm:$0xff]  }
 0x2f3   : > { %3604 = vmatmul.mubr.bf16.gmra.mrb[100].mxu1 %v2897_v63  ;;  %v2619_v63 = vld [vmem:[#allocation3 + $0xaa] sm:$0xff] }
 0x2f4   : > { %3611 = vmatprep.mubr.bf16.mxu1 %v2901_v1  ;;  %v2755_v0 = vpack.c.bf16 %v2619_v63, %v2618_v62  ;;  %v2620_v1 = vld [vmem:[#allocation3 + $0xb2] sm:$0xff] }
 0x2f5   : > { %v2758_v12 = vpack.c.bf16 %v2621_v34, %v2620_v1 }
 0x2fb   : > { %3612 = vmatmul.mubr.bf16.gmra.mrb[104].mxu1 %v10248_v19  ;;  %v9115_v19 = vld [vmem:[%s12244_s3 + $0xd8] ss:$12 sps:$4 sm:$0xff]  }
 0x2fc   : > { %3619 = vmatprep.mubr.bf16.mxu1 %v2904_v38  ;;  %5406 = vmatpush1.bf16.msra.mxu0 %v9115_v19  ;;  %v9135_v38 = vld [vmem:[%s12244_s3 + $0x16c] ss:$12 sps:$4 sm:$0xff]  }
 0x2fd   : > { %5407 = vmatprep.subr.bf16.mxu0 %v9120_v50  ;;  %v2626_v19 = vld [vmem:[#allocation3 + $0xe2] sm:$0xff] }
 0x2fe   : > { %v2767_v23 = vpack.c.bf16 %v2627_v7, %v2626_v19  ;;  %v2655_v19 = vld [vmem:[#allocation3 + $0x1ca] sm:$0xff] }
 0x300   : > { %5408 = vmatpush1.bf16.msra.mxu0 %v9118_v25  ;;  %v2631_v25 = vld [vmem:[#allocation3 + $0x10a] sm:$0xff] }
 0x301   : > { %5409 = vmatprep.subr.bf16.mxu0 %v9123_v35  ;;  %v2637_v35 = vld [vmem:[#allocation3 + $0x13a] sm:$0xff] }
 0x303   : > { %3620 = vmatmul.mubr.bf16.gmra.mrb[108].mxu1 %v10269_v57  ;;  %v2598_v57 = vld [vmem:[#allocation3 + $0x2] sm:$0xff] }
 0x304   : > { %3627 = vmatprep.mubr.bf16.mxu1 %v2907_v13  ;;  %5410 = vmatpush1.bf16.msra.mxu0 %v9121_v8  ;;  %v2624_v13 = vld [vmem:[#allocation3 + $0xd2] sm:$0xff] }
 0x305   : > { %5411 = vmatprep.subr.bf16.mxu0 %v9126_v27  ;;  %v2636_v8 = vld [vmem:[#allocation3 + $0x132] sm:$0xff]  ;;  %v2642_v27 = vld [vmem:[#allocation3 + $0x162] sm:$0xff] }
 0x306   : > { %v2782_v36 = vpack.c.bf16 %v2637_v35, %v2636_v8  ;;  %v2791_v41 = vpack.c.bf16 %v2643_v40, %v2642_v27  ;;  %v4695_v8 = vld [vmem:[#allocation2 + $0x20] sm:$0xff]  ;;  %v4697_v35 = vld [vmem:[#allocation2 + $0x30] sm:$0xff] }
 0x307   : > { %v10515_v40 = vpack.c.bf16 %v4697_v35, %v4695_v8  ;;  %v4707_v8 = vld [vmem:[#allocation2 + $0x80] sm:$0xff]  ;;  %v4709_v35 = vld [vmem:[#allocation2 + $0x90] sm:$0xff] }
 0x308   : > { %5412 = vmatpush1.bf16.msra.mxu0 %v9124_v51 }
 0x309   : > { %5413 = vmatprep.subr.bf16.mxu0 %v9129_v46 }
 0x30b   : > { %3628 = vmatmul.mubr.bf16.gmra.mrb[112].mxu1 %v10288_v45  ;;  %v2599_v45 = vld [vmem:[#allocation3 + $0xa] sm:$0xff] }
 0x30c   : > { %3635 = vmatprep.mubr.bf16.mxu1 %v2910_v21  ;;  %v2725_v48 = vpack.c.bf16 %v2599_v45, %v2598_v57  ;;  %5414 = vmatpush1.bf16.msra.mxu0 %v9127_v44  ;;  %v2764_v21 = vpack.c.bf16 %v2625_v20, %v2624_v13  ;;  %v2629_v57 = vld [vmem:[#allocation3 + $0xfa] sm:$0xff]  ;;  %v2647_v44 = vld [vmem:[#allocation3 + $0x18a] sm:$0xff] }
 0x30d   : > { %5415 = vmatprep.subr.bf16.mxu0 %v9132_v54  ;;  %v10482_v54 = vld [vmem:[%s12245_s4 + $0x7] ss:$0 sm:$0xff]  ;;  %v4693_v13 = vld [vmem:[#allocation2 + $0x10] sm:$0xff] }
 0x310   : > { %5416 = vmatpush1.bf16.msra.mxu0 %v9130_v53  ;;  %v10475_v53 = vld [vmem:[%s12245_s4 + $0x6] ss:$0 sm:$0xff] }
 0x311   : > { %5417 = vmatprep.subr.bf16.mxu0 %v9135_v38 }
 0x313   : > { %3636 = vmatmul.mubr.bf16.gmra.mrb[116].mxu1 %v2909_v24  ;;  %v2628_v24 = vld [vmem:[#allocation3 + $0xf2] sm:$0xff] }
 0x314   : > { %8489 = vmatprep.mubr.msk.bf16.mxu1 %vm9226_vm1, %v12250_v3  ;;  %5418 = vmatpush1.bf16.msra.mxu0 %v9133_v11  ;;  %v2770_v45 = vpack.c.bf16 %v2629_v57, %v2628_v24  ;;  %v9136_v57 = vld [vmem:[%s12244_s3 + $0x8] ss:$12 sps:$4 sm:$0xff]  }
 0x315   : > { %6048 = vmatprep.subr.bf16.mxu0 %v12248_v2 }
 0x31b   : > { %8490 = vmatmul.mubr.bf16.vlgmr.msra.gmra.mrb[124].mxu1 %v2725_v48  ;;  %v2630_v48 = vld [vmem:[#allocation3 + $0x102] sm:$0xff] }
 0x31c   : > { %8493 = vmatprep.mubr.msk.bf16.mxu1 %vm9226_vm1, %v12250_v3  ;;  %v2773_v50 = vpack.c.bf16 %v2631_v25, %v2630_v48 }
 0x323   : > { %8494 = vmatmul.mubr.bf16.gmra.mrb[128].mxu1 %v2728_v31  ;;  %v2776_v31 = vpack.c.bf16 %v2633_v30, %v2632_v29 }
 0x324   : > { %8497 = vmatprep.mubr.msk.bf16.mxu1 %vm9226_vm1, %v12250_v3 }
 0x32b   : > { %8498 = vmatmul.mubr.bf16.gmra.mrb[132].mxu1 %v2731_v15  ;;  %v2779_v15 = vpack.c.bf16 %v2635_v33, %v2634_v55  ;;  %v9137_v33 = vld [vmem:[%s12244_s3 + $0x20] ss:$12 sps:$4 sm:$0xff]  }
 0x32c   : > { %8501 = vmatprep.mubr.msk.bf16.mxu1 %vm9226_vm1, %v12250_v3 }
 0x333   : > { %8502 = vmatmul.mubr.bf16.gmra.mrb[136].mxu1 %v2734_v14  ;;  %v2639_v14 = vld [vmem:[#allocation3 + $0x14a] sm:$0xff] }
 0x334   : > { %8505 = vmatprep.mubr.msk.bf16.mxu1 %vm9226_vm1, %v12250_v3  ;;  %v2785_v61 = vpack.c.bf16 %v2639_v14, %v2638_v10  ;;  %v2656_v10 = vld [vmem:[#allocation3 + $0x1d2] sm:$0xff]  ;;  %v2657_v14 = vld [vmem:[#allocation3 + $0x1da] sm:$0xff] }
 0x33b   : > { %8506 = vmatmul.mubr.bf16.gmra.mrb[140].mxu1 %v2737_v16  ;;  %v2641_v16 = vld [vmem:[#allocation3 + $0x15a] sm:$0xff] }
 0x33c   : > { %8509 = vmatprep.mubr.msk.bf16.mxu1 %vm9226_vm1, %v12250_v3  ;;  %v2788_v51 = vpack.c.bf16 %v2641_v16, %v2640_v17 }
 0x343   : > { %8510 = vmatmul.mubr.bf16.gmra.mrb[144].mxu1 %v2740_v42  ;;  %v2644_v42 = vld [vmem:[#allocation3 + $0x172] sm:$0xff] }
 0x344   : > { %8513 = vmatprep.mubr.msk.bf16.mxu1 %vm9226_vm1, %v12250_v3  ;;  %v2794_v5 = vpack.c.bf16 %v2645_v26, %v2644_v42 }
 0x34b   : > { %8514 = vmatmul.mubr.bf16.gmra.mrb[148].mxu1 %v2743_v32  ;;  %v2646_v32 = vld [vmem:[#allocation3 + $0x182] sm:$0xff] }
 0x34c   : > { %8517 = vmatprep.mubr.msk.bf16.mxu1 %vm9226_vm1, %v12250_v3  ;;  %v2797_v46 = vpack.c.bf16 %v2647_v44, %v2646_v32 }
 0x353   : > { %8518 = vmatmul.mubr.bf16.gmra.mrb[152].mxu1 %v2746_v49  ;;  %v2800_v49 = vpack.c.bf16 %v2649_v18, %v2648_v47  ;;  %v4699_v18 = vld [vmem:[#allocation2 + $0x40] sm:$0xff] }
 0x354   : > { %8521 = vmatprep.mubr.msk.bf16.mxu1 %vm9226_vm1, %v12250_v3 }
 0x35b   : > { %8522 = vmatmul.mubr.bf16.gmra.mrb[156].mxu1 %v2749_v22  ;;  %v2803_v22 = vpack.c.bf16 %v2651_v52, %v2650_v9  ;;  %v2658_v52 = vld [vmem:[#allocation3 + $0x1e2] sm:$0xff] }
 0x35c   : > { %8525 = vmatprep.mubr.msk.bf16.mxu1 %vm9226_vm1, %v12250_v3 }
 0x363   : > { %8526 = vmatmul.mubr.bf16.gmra.mrb[160].mxu1 %v2752_v28  ;;  %v2653_v28 = vld [vmem:[#allocation3 + $0x1ba] sm:$0xff] }
 0x364   : > { %8529 = vmatprep.mubr.msk.bf16.mxu1 %vm9226_vm1, %v12250_v3  ;;  %v2806_v38 = vpack.c.bf16 %v2653_v28, %v2652_v59 }
 0x36b   : > { %8530 = vmatmul.mubr.bf16.gmra.mrb[164].mxu1 %v2755_v0 }
 0x36c   : > { %8533 = vmatprep.mubr.msk.bf16.mxu1 %vm9226_vm1, %v12250_v3 }
 0x373   : > { %8534 = vmatmul.mubr.bf16.gmra.mrb[168].mxu1 %v2758_v12 }
 0x374   : > { %8537 = vmatprep.mubr.msk.bf16.mxu1 %vm9226_vm1, %v12250_v3 }
 0x37b   : > { %8538 = vmatmul.mubr.bf16.gmra.mrb[172].mxu1 %v2761_v43  ;;  %v4691_v43 = vld [vmem:[#allocation2] sm:$0xff] }
 0x37c   : > { %8541 = vmatprep.mubr.msk.bf16.mxu1 %vm9226_vm1, %v12250_v3  ;;  %v10496_v48 = vpack.c.bf16 %v4693_v13, %v4691_v43  ;;  %v4703_v43 = vld [vmem:[#allocation2 + $0x60] sm:$0xff]  ;;  %v4705_v13 = vld [vmem:[#allocation2 + $0x70] sm:$0xff] }
 0x383   : > { %8542 = vmatmul.mubr.bf16.gmra.mrb[176].mxu1 %v2764_v21  ;;  %v2654_v21 = vld [vmem:[#allocation3 + $0x1c2] sm:$0xff] }
 0x384   : > { %8545 = vmatprep.mubr.msk.bf16.mxu1 %vm9226_vm1, %v12250_v3  ;;  %v2809_v30 = vpack.c.bf16 %v2655_v19, %v2654_v21  ;;  %v2660_v21 = vld [vmem:[#allocation3 + $0x1f2] sm:$0xff]  ;;  %v2661_v19 = vld [vmem:[#allocation3 + $0x1fa] sm:$0xff] }
 0x38b   : > { %8546 = vmatmul.mubr.bf16.gmra.mrb[180].mxu1 %v2767_v23 }
 0x38c   : > { %8549 = vmatprep.mubr.msk.bf16.mxu1 %vm9226_vm1, %v12250_v3 }
 0x393   : > { %8550 = vmatmul.mubr.bf16.gmra.mrb[184].mxu1 %v2770_v45 }
 0x394   : > { %8553 = vmatprep.mubr.msk.bf16.mxu1 %vm9226_vm1, %v12250_v3 }
 0x39b   : > { %8554 = vmatmul.mubr.bf16.gmra.mrb[188].mxu1 %v2773_v50 }
 0x39c   : > { %8557 = vmatprep.mubr.msk.bf16.mxu1 %vm9226_vm1, %v12250_v3 }
 0x3a3   : > { %8558 = vmatmul.mubr.bf16.gmra.mrb[192].mxu1 %v2776_v31 }
 0x3a4   : > { %8561 = vmatprep.mubr.msk.bf16.mxu1 %vm9226_vm1, %v12250_v3 }
 0x3ab   : > { %8562 = vmatmul.mubr.bf16.gmra.mrb[196].mxu1 %v2779_v15 }
 0x3ac   : > { %8565 = vmatprep.mubr.msk.bf16.mxu1 %vm9226_vm1, %v12250_v3 }
 0x3b3   : > { %8566 = vmatmul.mubr.bf16.gmra.mrb[200].mxu1 %v2782_v36 }
 0x3b4   : > { %8569 = vmatprep.mubr.msk.bf16.mxu1 %vm9226_vm1, %v12250_v3 }
 0x3bb   : > { %8570 = vmatmul.mubr.bf16.gmra.mrb[204].mxu1 %v2785_v61 }
 0x3bc   : > { %8573 = vmatprep.mubr.msk.bf16.mxu1 %vm9226_vm1, %v12250_v3 }
 0x3c3   : > { %8574 = vmatmul.mubr.bf16.gmra.mrb[208].mxu1 %v2788_v51  ;;  %v9138_v51 = vld [vmem:[%s12244_s3 + $0x38] ss:$12 sps:$4 sm:$0xff]  }
 0x3c4   : > { %8577 = vmatprep.mubr.msk.bf16.mxu1 %vm9226_vm1, %v12250_v3 }
 0x3cb   : > { %8578 = vmatmul.mubr.bf16.gmra.mrb[212].mxu1 %v2791_v41 }
 0x3cc   : > { %8581 = vmatprep.mubr.msk.bf16.mxu1 %vm9226_vm1, %v12250_v3 }
 0x3d3   : > { %8582 = vmatmul.mubr.bf16.gmra.mrb[216].mxu1 %v2794_v5  ;;  %v2812_v5 = vpack.c.bf16 %v2657_v14, %v2656_v10  ;;  %v2663_v10 = vld [vmem:[#allocation3 + $0x20a] sm:$0xff] }
 0x3d4   : > { %8585 = vmatprep.mubr.msk.bf16.mxu1 %vm9226_vm1, %v12250_v3 }
 0x3db   : > { %8586 = vmatmul.mubr.bf16.gmra.mrb[220].mxu1 %v2797_v46  ;;  %v9139_v46 = vld [vmem:[%s12244_s3 + $0x50] ss:$12 sps:$4 sm:$0xff]  }
 0x3dc   : > { %8589 = vmatprep.mubr.msk.bf16.mxu1 %vm9226_vm1, %v12250_v3 }
 0x3e3   : > { %8590 = vmatmul.mubr.bf16.gmra.mrb[224].mxu1 %v2800_v49  ;;  %v4701_v49 = vld [vmem:[#allocation2 + $0x50] sm:$0xff] }
 0x3e4   : > { %8593 = vmatprep.mubr.msk.bf16.mxu1 %vm9226_vm1, %v12250_v3 }
 0x3eb   : > { %8594 = vmatmul.mubr.bf16.gmra.mrb[228].mxu1 %v2803_v22  ;;  %v2659_v22 = vld [vmem:[#allocation3 + $0x1ea] sm:$0xff] }
 0x3ec   : > { %8597 = vmatprep.mubr.msk.bf16.mxu1 %vm9226_vm1, %v12250_v3 }
 0x3ee   : > { %v3677_v56 = vpop.f32.mrb[124].mxu1 }
 0x3ef   : > { %v4183_v62 = vmul.f32 %v10475_v53, %v3677_v56  ;;  %v8491_v63 = vpop.f32.mrb[125].mxu1 }
 0x3f0   : > { %v3680_v0 = vpop.f32.mrb[126].mxu1 }
 0x3f1   : > { %v4312_v1 = vadd.f32 %v10482_v54, %v4183_v62  ;;  %v4184_v34 = vmul.f32 %v10475_v53, %v3680_v0  ;;  %v8492_v12 = vpop.f32.mrb[127].mxu1  ;;  %v9140_v62 = vld [vmem:[%s12244_s3 + $0x68] ss:$12 sps:$4 sm:$0xff]   ;;  %v10535_v0 = vpack.c.bf16 %v4701_v49, %v4699_v18  ;;  %v4711_v18 = vld [vmem:[#allocation2 + $0xa0] sm:$0xff] }
 0x3f2   : > { %v4713_v49 = vld [vmem:[#allocation2 + $0xb0] sm:$0xff] }
 0x3f3   : > { %v4437_v37 = vmax.f32 %v4312_v1, 0.0  ;;  %v4313_v39 = vadd.f32 %v10482_v54, %v4184_v34  ;;  %8598 = vmatmul.mubr.bf16.gmra.mrb[232].mxu1 %v2806_v38  ;;  %v2815_v38 = vpack.c.bf16 %v2659_v22, %v2658_v52  ;;  %v2665_v52 = vld [vmem:[#allocation3 + $0x21a] sm:$0xff] }
 0x3f4   : > { %8601 = vmatprep.mubr.msk.bf16.mxu1 %vm9226_vm1, %v12250_v3 }
 0x3f5   : > { %v4438_v11 = vmax.f32 %v4313_v39, 0.0 }
 0x3f6   : > { %v3685_v20 = vpop.f32.mrb[128].mxu1 }
 0x3f7   : > { %v4185_v7 = vmul.f32 %v10475_v53, %v3685_v20  ;;  %v8495_v23 = vpop.f32.mrb[129].mxu1  ;;  %v10491_v24 = vpack.c.bf16 %v4438_v11, %v4437_v37 }
 0x3f8   : > { %v3688_v45 = vpop.f32.mrb[130].mxu1 }
 0x3f9   : > { %v4314_v25 = vadd.f32 %v10482_v54, %v4185_v7  ;;  %v4186_v50 = vmul.f32 %v10475_v53, %v3688_v45  ;;  %v8496_v29 = vpop.f32.mrb[131].mxu1  ;;  %5419 = vmatprep.mubr.bf16.mxu0 %v10491_v24 }
 0x3fa   : > { %5420 = vmatmul.mubr.bf16.vlgmr.msra.gmra.mrb[128].mxu0 %v10496_v48 }
 0x3fb   : > { %v4439_v31 = vmax.f32 %v4314_v25, 0.0  ;;  %v4315_v55 = vadd.f32 %v10482_v54, %v4186_v50  ;;  %8602 = vmatmul.mubr.bf16.gmra.mrb[236].mxu1 %v2809_v30  ;;  %6049 = vmatpush1.bf16.msra.mxu0 %v9136_v57  ;;  %v10549_v25 = vpack.c.bf16 %v4705_v13, %v4703_v43  ;;  %v4715_v13 = vld [vmem:[#allocation2 + $0xc0] sm:$0xff] }
 0x3fc   : > { %8605 = vmatprep.mubr.msk.bf16.mxu1 %vm9226_vm1, %v12250_v3  ;;  %6050 = vmatprep.subr.bf16.mxu0 %v12248_v2 }
 0x3fd   : > { %v4440_v15 = vmax.f32 %v4315_v55, 0.0 }
 0x3fe   : > { %v3693_v36 = vpop.f32.mrb[132].mxu1 }
 0x3ff   : > { %v4187_v61 = vmul.f32 %v10475_v53, %v3693_v36  ;;  %v8499_v17 = vpop.f32.mrb[133].mxu1  ;;  %v10510_v16 = vpack.c.bf16 %v4440_v15, %v4439_v31  ;;  %6051 = vmatpush1.bf16.msra.mxu0 %v9137_v33  ;;  %v2818_v31 = vpack.c.bf16 %v2661_v19, %v2660_v21  ;;  %v2667_v19 = vld [vmem:[#allocation3 + $0x22a] sm:$0xff] }
 0x400   : > { %v3696_v27 = vpop.f32.mrb[134].mxu1  ;;  %6052 = vmatprep.subr.bf16.mxu0 %v12248_v2 }
 0x401   : > { %v4316_v41 = vadd.f32 %v10482_v54, %v4187_v61  ;;  %v4188_v42 = vmul.f32 %v10475_v53, %v3696_v27  ;;  %v8500_v26 = vpop.f32.mrb[135].mxu1  ;;  %5429 = vmatprep.mubr.bf16.mxu0 %v10510_v16  ;;  %v2662_v27 = vld [vmem:[#allocation3 + $0x202] sm:$0xff] }
 0x402   : > { %5430 = vmatmul.mubr.bf16.gmra.mrb[132].mxu0 %v10515_v40 }
 0x403   : > { %v4441_v32 = vmax.f32 %v4316_v41, 0.0  ;;  %v4317_v44 = vadd.f32 %v10482_v54, %v4188_v42  ;;  %8606 = vmatmul.mubr.bf16.gmra.mrb[240].mxu1 %v2812_v5  ;;  %6053 = vmatpush1.bf16.msra.mxu0 %v9138_v51  ;;  %v10561_v41 = vpack.c.bf16 %v4709_v35, %v4707_v8 }
 0x404   : > { %8609 = vmatprep.mubr.msk.bf16.mxu1 %vm9226_vm1, %v12250_v3  ;;  %6054 = vmatprep.subr.bf16.mxu0 %v12248_v2 }
 0x405   : > { %v4442_v47 = vmax.f32 %v4317_v44, 0.0 }
 0x406   : > { %v3701_v9 = vpop.f32.mrb[136].mxu1 }
 0x407   : > { %v4189_v56 = vmul.f32 %v10475_v53, %v3701_v9  ;;  %v8503_v59 = vpop.f32.mrb[137].mxu1  ;;  %v10530_v28 = vpack.c.bf16 %v4442_v47, %v4441_v32  ;;  %6055 = vmatpush1.bf16.msra.mxu0 %v9139_v46  ;;  %v2821_v32 = vpack.c.bf16 %v2663_v10, %v2662_v27  ;;  %v2669_v27 = vld [vmem:[#allocation3 + $0x23a] sm:$0xff] }
 0x408   : > { %v3704_v63 = vpop.f32.mrb[138].mxu1  ;;  %6056 = vmatprep.subr.bf16.mxu0 %v12248_v2 }
 0x409   : > { %v4318_v1 = vadd.f32 %v10482_v54, %v4189_v56  ;;  %v4190_v34 = vmul.f32 %v10475_v53, %v3704_v63  ;;  %v8504_v12 = vpop.f32.mrb[139].mxu1  ;;  %5439 = vmatprep.mubr.bf16.mxu0 %v10530_v28  ;;  %v2664_v63 = vld [vmem:[#allocation3 + $0x212] sm:$0xff] }
 0x40a   : > { %5440 = vmatmul.mubr.bf16.gmra.mrb[136].mxu0 %v10535_v0 }
 0x40b   : > { %v4443_v37 = vmax.f32 %v4318_v1, 0.0  ;;  %v4319_v39 = vadd.f32 %v10482_v54, %v4190_v34  ;;  %8610 = vmatmul.mubr.bf16.gmra.mrb[244].mxu1 %v2815_v38  ;;  %6057 = vmatpush1.bf16.msra.mxu0 %v9140_v62  ;;  %v10573_v1 = vpack.c.bf16 %v4713_v49, %v4711_v18 }
 0x40c   : > { %8613 = vmatprep.mubr.msk.bf16.mxu1 %vm9226_vm1, %v12250_v3  ;;  %6058 = vmatprep.subr.bf16.mxu0 %v12248_v2 }
 0x40d   : > { %v4444_v11 = vmax.f32 %v4319_v39, 0.0 }
 0x40e   : > { %v3709_v20 = vpop.f32.mrb[140].mxu1 }
 0x40f   : > { %v4191_v7 = vmul.f32 %v10475_v53, %v3709_v20  ;;  %v8507_v23 = vpop.f32.mrb[141].mxu1  ;;  %v10547_v57 = vpack.c.bf16 %v4444_v11, %v4443_v37  ;;  %v2824_v37 = vpack.c.bf16 %v2665_v52, %v2664_v63  ;;  %v4717_v20 = vld [vmem:[#allocation2 + $0xd0] sm:$0xff] }
 0x410   : > { %v3712_v45 = vpop.f32.mrb[142].mxu1  ;;  %v4725_v63 = vld [vmem:[#allocation2 + $0x110] sm:$0xff] }
 0x411   : > { %v4320_v50 = vadd.f32 %v10482_v54, %v4191_v7  ;;  %v4192_v29 = vmul.f32 %v10475_v53, %v3712_v45  ;;  %v8508_v30 = vpop.f32.mrb[143].mxu1  ;;  %5449 = vmatprep.mubr.bf16.mxu0 %v10547_v57 }
 0x412   : > { %5450 = vmatmul.mubr.bf16.gmra.mrb[140].mxu0 %v10549_v25  ;;  %v2666_v30 = vld [vmem:[#allocation3 + $0x222] sm:$0xff] }
 0x413   : > { %v4445_v55 = vmax.f32 %v4320_v50, 0.0  ;;  %v4321_v33 = vadd.f32 %v10482_v54, %v4192_v29  ;;  %8614 = vmatmul.mubr.bf16.gmra.mrb[248].mxu1 %v2818_v31  ;;  %v9141_v50 = vld [vmem:[%s12244_s3 + $0x80] ss:$12 sps:$4 sm:$0xff]   ;;  %v10588_v31 = vpack.c.bf16 %v4717_v20, %v4715_v13  ;;  %v2827_v8 = vpack.c.bf16 %v2667_v19, %v2666_v30 }
 0x414   : > { %8617 = vmatprep.mubr.msk.bf16.mxu1 %vm9226_vm1, %v12250_v3  ;;  %6059 = vmatpush1.bf16.msra.mxu0 %v9141_v50  ;;  %v4727_v30 = vld [vmem:[#allocation2 + $0x120] sm:$0xff] }
 0x415   : > { %v4446_v15 = vmax.f32 %v4321_v33, 0.0  ;;  %6060 = vmatprep.subr.bf16.mxu0 %v12248_v2 }
 0x416   : > { %v3717_v36 = vpop.f32.mrb[144].mxu1 }
 0x417   : > { %v4193_v14 = vmul.f32 %v10475_v53, %v3717_v36  ;;  %v8511_v61 = vpop.f32.mrb[145].mxu1  ;;  %v10559_v17 = vpack.c.bf16 %v4446_v15, %v4445_v55 }
 0x418   : > { %v3720_v51 = vpop.f32.mrb[146].mxu1  ;;  %v4721_v61 = vld [vmem:[#allocation2 + $0xf0] sm:$0xff] }
 0x419   : > { %v4322_v42 = vadd.f32 %v10482_v54, %v4193_v14  ;;  %v4194_v26 = vmul.f32 %v10475_v53, %v3720_v51  ;;  %v8512_v5 = vpop.f32.mrb[147].mxu1  ;;  %5459 = vmatprep.mubr.bf16.mxu0 %v10559_v17  ;;  %v4719_v14 = vld [vmem:[#allocation2 + $0xe0] sm:$0xff] }
 0x41a   : > { %5460 = vmatmul.mubr.bf16.gmra.mrb[144].mxu0 %v10561_v41 }
 0x41b   : > { %v4447_v44 = vmax.f32 %v4322_v42, 0.0  ;;  %v4323_v46 = vadd.f32 %v10482_v54, %v4194_v26  ;;  %8618 = vmatmul.mubr.bf16.gmra.mrb[252].mxu1 %v2821_v32 }
 0x41c   : > { %8621 = vmatprep.mubr.msk.bf16.mxu1 %vm9226_vm1, %v12250_v3 }
 0x41d   : > { %v4448_v47 = vmax.f32 %v4323_v46, 0.0  ;;  %v10601_v46 = vpack.c.bf16 %v4721_v61, %v4719_v14  ;;  %v2672_v14 = vld [vmem:[#allocation3 + $0x252] sm:$0xff] }
 0x41e   : > { %v3725_v9 = vpop.f32.mrb[148].mxu1 }
 0x41f   : > { %v4195_v22 = vmul.f32 %v10475_v53, %v3725_v9  ;;  %v8515_v56 = vpop.f32.mrb[149].mxu1  ;;  %v10571_v59 = vpack.c.bf16 %v4448_v47, %v4447_v44  ;;  %v2668_v44 = vld [vmem:[#allocation3 + $0x232] sm:$0xff] }
 0x420   : > { %v3728_v62 = vpop.f32.mrb[150].mxu1  ;;  %v2830_v9 = vpack.c.bf16 %v2669_v27, %v2668_v44 }
 0x421   : > { %v4324_v34 = vadd.f32 %v10482_v54, %v4195_v22  ;;  %v4196_v12 = vmul.f32 %v10475_v53, %v3728_v62  ;;  %v8516_v38 = vpop.f32.mrb[151].mxu1  ;;  %5469 = vmatprep.mubr.bf16.mxu0 %v10571_v59  ;;  %v4723_v62 = vld [vmem:[#allocation2 + $0x100] sm:$0xff] }
 0x422   : > { %5470 = vmatmul.mubr.bf16.gmra.mrb[148].mxu0 %v10573_v1  ;;  %v10613_v13 = vpack.c.bf16 %v4725_v63, %v4723_v62  ;;  %v9142_v63 = vld [vmem:[%s12244_s3 + $0x98] ss:$12 sps:$4 sm:$0xff]  }
 0x423   : > { %v4449_v39 = vmax.f32 %v4324_v34, 0.0  ;;  %v4325_v11 = vadd.f32 %v10482_v54, %v4196_v12  ;;  %8622 = vmatmul.mubr.bf16.gmra.mrb[0].mxu1 %v2824_v37  ;;  %v2671_v12 = vld [vmem:[#allocation3 + $0x24a] sm:$0xff]  ;;  %6061 = vmatpush1.bf16.msra.mxu0 %v9142_v63 }
 0x424   : > { %8625 = vmatprep.mubr.msk.bf16.mxu1 %vm9226_vm1, %v12250_v3  ;;  %6062 = vmatprep.subr.bf16.mxu0 %v12248_v2 }
 0x425   : > { %v4450_v43 = vmax.f32 %v4325_v11, 0.0 }
 0x426   : > { %v3733_v21 = vpop.f32.mrb[152].mxu1 }
 0x427   : > { %v4197_v7 = vmul.f32 %v10475_v53, %v3733_v21  ;;  %v8519_v23 = vpop.f32.mrb[153].mxu1  ;;  %v10583_v45 = vpack.c.bf16 %v4450_v43, %v4449_v39  ;;  %v2670_v43 = vld [vmem:[#allocation3 + $0x242] sm:$0xff] }
 0x428   : > { %v3736_v29 = vpop.f32.mrb[154].mxu1 }
 0x429   : > { %v4326_v55 = vadd.f32 %v10482_v54, %v4197_v7  ;;  %v4198_v33 = vmul.f32 %v10475_v53, %v3736_v29  ;;  %v8520_v15 = vpop.f32.mrb[155].mxu1  ;;  %5479 = vmatprep.mubr.bf16.mxu0 %v10583_v45  ;;  %v2833_v7 = vpack.c.bf16 %v2671_v12, %v2670_v43  ;;  %v2674_v12 = vld [vmem:[#allocation3 + $0x262] sm:$0xff] }
 0x42a   : > { %5480 = vmatmul.mubr.bf16.gmra.mrb[152].mxu0 %v10588_v31  ;;  %v2673_v15 = vld [vmem:[#allocation3 + $0x25a] sm:$0xff] }
 0x42b   : > { %v4451_v35 = vmax.f32 %v4326_v55, 0.0  ;;  %v4327_v36 = vadd.f32 %v10482_v54, %v4198_v33  ;;  %8626 = vmatmul.mubr.bf16.gmra.mrb[4].mxu1 %v2827_v8  ;;  %v4729_v55 = vld [vmem:[#allocation2 + $0x130] sm:$0xff] }
 0x42c   : > { %8629 = vmatprep.mubr.msk.bf16.mxu1 %vm9226_vm1, %v12250_v3  ;;  %v10625_v61 = vpack.c.bf16 %v4729_v55, %v4727_v30  ;;  %v2677_v30 = vld [vmem:[#allocation3 + $0x27a] sm:$0xff] }
 0x42d   : > { %v4452_v10 = vmax.f32 %v4327_v36, 0.0 }
 0x42e   : > { %v3741_v51 = vpop.f32.mrb[156].mxu1 }
 0x42f   : > { %v4199_v42 = vmul.f32 %v10475_v53, %v3741_v51  ;;  %v8523_v26 = vpop.f32.mrb[157].mxu1  ;;  %v10599_v5 = vpack.c.bf16 %v4452_v10, %v4451_v35 }
 0x430   : > { %v3744_v32 = vpop.f32.mrb[158].mxu1  ;;  %v2836_v26 = vpack.c.bf16 %v2673_v15, %v2672_v14 }
 0x431   : > { %v4328_v47 = vadd.f32 %v10482_v54, %v4199_v42  ;;  %v4200_v18 = vmul.f32 %v10475_v53, %v3744_v32  ;;  %v8524_v49 = vpop.f32.mrb[159].mxu1  ;;  %5489 = vmatprep.mubr.bf16.mxu0 %v10599_v5 }
 0x432   : > { %5490 = vmatmul.mubr.bf16.gmra.mrb[156].mxu0 %v10601_v46  ;;  %v4733_v49 = vld [vmem:[#allocation2 + $0x150] sm:$0xff] }
 0x433   : > { %v4453_v52 = vmax.f32 %v4328_v47, 0.0  ;;  %v4329_v22 = vadd.f32 %v10482_v54, %v4200_v18  ;;  %8630 = vmatmul.mubr.bf16.gmra.mrb[8].mxu1 %v2830_v9  ;;  %v4731_v18 = vld [vmem:[#allocation2 + $0x140] sm:$0xff] }
 0x434   : > { %8633 = vmatprep.mubr.msk.bf16.mxu1 %vm9226_vm1, %v12250_v3 }
 0x435   : > { %v4454_v56 = vmax.f32 %v4329_v22, 0.0 }
 0x436   : > { %v3749_v34 = vpop.f32.mrb[160].mxu1 }
 0x437   : > { %v4201_v38 = vmul.f32 %v10475_v53, %v3749_v34  ;;  %v8527_v37 = vpop.f32.mrb[161].mxu1  ;;  %v10611_v39 = vpack.c.bf16 %v4454_v56, %v4453_v52  ;;  %v2675_v52 = vld [vmem:[#allocation3 + $0x26a] sm:$0xff] }
 0x438   : > { %v3752_v11 = vpop.f32.mrb[162].mxu1 }
 0x439   : > { %v4330_v20 = vadd.f32 %v10482_v54, %v4201_v38  ;;  %v4202_v21 = vmul.f32 %v10475_v53, %v3752_v11  ;;  %v8528_v19 = vpop.f32.mrb[163].mxu1  ;;  %5499 = vmatprep.mubr.bf16.mxu0 %v10611_v39  ;;  %v10640_v38 = vpack.c.bf16 %v4733_v49, %v4731_v18  ;;  %v4741_v18 = vld [vmem:[#allocation2 + $0x190] sm:$0xff] }
 0x43a   : > { %5500 = vmatmul.mubr.bf16.gmra.mrb[160].mxu0 %v10613_v13 }
 0x43b   : > { %v4455_v23 = vmax.f32 %v4330_v20, 0.0  ;;  %v4331_v50 = vadd.f32 %v10482_v54, %v4202_v21  ;;  %8634 = vmatmul.mubr.bf16.gmra.mrb[12].mxu1 %v2833_v7  ;;  %v2839_v20 = vpack.c.bf16 %v2675_v52, %v2674_v12 }
 0x43c   : > { %8637 = vmatprep.mubr.msk.bf16.mxu1 %vm9226_vm1, %v12250_v3 }
 0x43d   : > { %v4456_v29 = vmax.f32 %v4331_v50, 0.0  ;;  %v4737_v50 = vld [vmem:[#allocation2 + $0x170] sm:$0xff] }
 0x43e   : > { %v3757_v33 = vpop.f32.mrb[164].mxu1 }
 0x43f   : > { %v4203_v8 = vmul.f32 %v10475_v53, %v3757_v33  ;;  %v8531_v35 = vpop.f32.mrb[165].mxu1  ;;  %v10623_v36 = vpack.c.bf16 %v4456_v29, %v4455_v23  ;;  %v4735_v23 = vld [vmem:[#allocation2 + $0x160] sm:$0xff] }
 0x440   : > { %v3760_v10 = vpop.f32.mrb[166].mxu1  ;;  %v2676_v35 = vld [vmem:[#allocation3 + $0x272] sm:$0xff] }
 0x441   : > { %v4332_v51 = vadd.f32 %v10482_v54, %v4203_v8  ;;  %v4204_v27 = vmul.f32 %v10475_v53, %v3760_v10  ;;  %v8532_v42 = vpop.f32.mrb[167].mxu1  ;;  %5509 = vmatprep.mubr.bf16.mxu0 %v10623_v36  ;;  %v10653_v10 = vpack.c.bf16 %v4737_v50, %v4735_v23  ;;  %v4743_v23 = vld [vmem:[#allocation2 + $0x1a0] sm:$0xff]  ;;  %v4745_v50 = vld [vmem:[#allocation2 + $0x1b0] sm:$0xff] }
 0x442   : > { %5510 = vmatmul.mubr.bf16.gmra.mrb[164].mxu0 %v10625_v61  ;;  %v2842_v42 = vpack.c.bf16 %v2677_v30, %v2676_v35  ;;  %v2681_v30 = vld [vmem:[#allocation3 + $0x29a] sm:$0xff] }
 0x443   : > { %v4457_v32 = vmax.f32 %v4332_v51, 0.0  ;;  %v4333_v44 = vadd.f32 %v10482_v54, %v4204_v27  ;;  %8638 = vmatmul.mubr.bf16.gmra.mrb[16].mxu1 %v2836_v26 }
 0x444   : > { %8641 = vmatprep.mubr.msk.bf16.mxu1 %vm9226_vm1, %v12250_v3 }
 0x445   : > { %v4458_v47 = vmax.f32 %v4333_v44, 0.0 }
 0x446   : > { %v3765_v9 = vpop.f32.mrb[168].mxu1 }
 0x447   : > { %v4205_v22 = vmul.f32 %v10475_v53, %v3765_v9  ;;  %v8535_v56 = vpop.f32.mrb[169].mxu1  ;;  %v10635_v62 = vpack.c.bf16 %v4458_v47, %v4457_v32  ;;  %v4739_v47 = vld [vmem:[#allocation2 + $0x180] sm:$0xff] }
 0x448   : > { %v3768_v34 = vpop.f32.mrb[170].mxu1  ;;  %v2679_v9 = vld [vmem:[#allocation3 + $0x28a] sm:$0xff]  ;;  %v10665_v12 = vpack.c.bf16 %v4741_v18, %v4739_v47 }
 0x449   : > { %v4334_v37 = vadd.f32 %v10482_v54, %v4205_v22  ;;  %v4206_v11 = vmul.f32 %v10475_v53, %v3768_v34  ;;  %v8536_v43 = vpop.f32.mrb[171].mxu1  ;;  %5519 = vmatprep.mubr.bf16.mxu0 %v10635_v62  ;;  %v2678_v34 = vld [vmem:[#allocation3 + $0x282] sm:$0xff] }
 0x44a   : > { %5520 = vmatmul.mubr.bf16.gmra.mrb[168].mxu0 %v10640_v38 }
 0x44b   : > { %v4459_v21 = vmax.f32 %v4334_v37, 0.0  ;;  %v4335_v19 = vadd.f32 %v10482_v54, %v4206_v11  ;;  %8642 = vmatmul.mubr.bf16.gmra.mrb[20].mxu1 %v2839_v20  ;;  %v2845_v20 = vpack.c.bf16 %v2679_v9, %v2678_v34  ;;  %v4749_v9 = vld [vmem:[#allocation2 + $0x1d0] sm:$0xff] }
 0x44c   : > { %8645 = vmatprep.mubr.msk.bf16.mxu1 %vm9226_vm1, %v12250_v3 }
 0x44d   : > { %v4460_v7 = vmax.f32 %v4335_v19, 0.0 }
 0x44e   : > { %v3773_v29 = vpop.f32.mrb[172].mxu1 }
 0x44f   : > { %v4207_v55 = vmul.f32 %v10475_v53, %v3773_v29  ;;  %v8539_v33 = vpop.f32.mrb[173].mxu1  ;;  %v10651_v15 = vpack.c.bf16 %v4460_v7, %v4459_v21 }
 0x450   : > { %v3776_v8 = vpop.f32.mrb[174].mxu1 }
 0x451   : > { %v4336_v14 = vadd.f32 %v10482_v54, %v4207_v55  ;;  %v4208_v51 = vmul.f32 %v10475_v53, %v3776_v8  ;;  %v8540_v27 = vpop.f32.mrb[175].mxu1  ;;  %5529 = vmatprep.mubr.bf16.mxu0 %v10651_v15 }
 0x452   : > { %5530 = vmatmul.mubr.bf16.gmra.mrb[172].mxu0 %v10653_v10 }
 0x453   : > { %v4461_v26 = vmax.f32 %v4336_v14, 0.0  ;;  %v4337_v32 = vadd.f32 %v10482_v54, %v4208_v51  ;;  %8646 = vmatmul.mubr.bf16.gmra.mrb[24].mxu1 %v2842_v42  ;;  %v2680_v14 = vld [vmem:[#allocation3 + $0x292] sm:$0xff]  ;;  %v10677_v51 = vpack.c.bf16 %v4745_v50, %v4743_v23 }
 0x454   : > { %8649 = vmatprep.mubr.msk.bf16.mxu1 %vm9226_vm1, %v12250_v3 }
 0x455   : > { %v4462_v44 = vmax.f32 %v4337_v32, 0.0  ;;  %v2848_v32 = vpack.c.bf16 %v2681_v30, %v2680_v14 }
 0x456   : > { %v3781_v49 = vpop.f32.mrb[176].mxu1 }
 0x457   : > { %v4209_v52 = vmul.f32 %v10475_v53, %v3781_v49  ;;  %v8543_v22 = vpop.f32.mrb[177].mxu1  ;;  %v10663_v56 = vpack.c.bf16 %v4462_v44, %v4461_v26  ;;  %v4747_v49 = vld [vmem:[#allocation2 + $0x1c0] sm:$0xff] }
 0x458   : > { %v3784_v63 = vpop.f32.mrb[178].mxu1  ;;  %v2683_v22 = vld [vmem:[#allocation3 + $0x2aa] sm:$0xff] }
 0x459   : > { %v4338_v37 = vadd.f32 %v10482_v54, %v4209_v52  ;;  %v4210_v11 = vmul.f32 %v10475_v53, %v3784_v63  ;;  %v8544_v43 = vpop.f32.mrb[179].mxu1  ;;  %5539 = vmatprep.mubr.bf16.mxu0 %v10663_v56 }
 0x45a   : > { %5540 = vmatmul.mubr.bf16.gmra.mrb[176].mxu0 %v10665_v12 }
 0x45b   : > { %v4463_v21 = vmax.f32 %v4338_v37, 0.0  ;;  %v4339_v19 = vadd.f32 %v10482_v54, %v4210_v11  ;;  %8650 = vmatmul.mubr.bf16.gmra.mrb[28].mxu1 %v2845_v20  ;;  %v9143_v11 = vld [vmem:[%s12244_s3 + $0xb0] ss:$12 sps:$4 sm:$0xff]  }
 0x45c   : > { %8653 = vmatprep.mubr.msk.bf16.mxu1 %vm9226_vm1, %v12250_v3  ;;  %v2682_v20 = vld [vmem:[#allocation3 + $0x2a2] sm:$0xff]  ;;  %6063 = vmatpush1.bf16.msra.mxu0 %v9143_v11 }
 0x45d   : > { %v4464_v7 = vmax.f32 %v4339_v19, 0.0  ;;  %v2851_v50 = vpack.c.bf16 %v2683_v22, %v2682_v20  ;;  %6064 = vmatprep.subr.bf16.mxu0 %v12248_v2  ;;  %v4757_v20 = vld [vmem:[#allocation2 + $0x210] sm:$0xff] }
 0x45e   : > { %v3789_v29 = vpop.f32.mrb[180].mxu1 }
 0x45f   : > { %v4211_v55 = vmul.f32 %v10475_v53, %v3789_v29  ;;  %v8547_v33 = vpop.f32.mrb[181].mxu1  ;;  %v10675_v8 = vpack.c.bf16 %v4464_v7, %v4463_v21  ;;  %v10692_v21 = vpack.c.bf16 %v4749_v9, %v4747_v49 }
 0x460   : > { %v3792_v35 = vpop.f32.mrb[182].mxu1  ;;  %v4751_v33 = vld [vmem:[#allocation2 + $0x1e0] sm:$0xff] }
 0x461   : > { %v4340_v27 = vadd.f32 %v10482_v54, %v4211_v55  ;;  %v4212_v42 = vmul.f32 %v10475_v53, %v3792_v35  ;;  %v8548_v26 = vpop.f32.mrb[183].mxu1  ;;  %5549 = vmatprep.mubr.bf16.mxu0 %v10675_v8  ;;  %12348 = vst [vmem:[#allocation8_spill] sm:$0xff] %v10692_v21  ;;  %v4753_v35 = vld [vmem:[#allocation2 + $0x1f0] sm:$0xff] }
 0x462   : > { %5550 = vmatmul.mubr.bf16.gmra.mrb[180].mxu0 %v10677_v51 }
 0x463   : > { %v4465_v44 = vmax.f32 %v4340_v27, 0.0  ;;  %v4341_v47 = vadd.f32 %v10482_v54, %v4212_v42  ;;  %8654 = vmatmul.mubr.bf16.gmra.mrb[32].mxu1 %v2848_v32  ;;  %v2685_v27 = vld [vmem:[#allocation3 + $0x2ba] sm:$0xff] }
 0x464   : > { %8657 = vmatprep.mubr.msk.bf16.mxu1 %vm9226_vm1, %v12250_v3 }
 0x465   : > { %v4466_v18 = vmax.f32 %v4341_v47, 0.0  ;;  %v2684_v47 = vld [vmem:[#allocation3 + $0x2b2] sm:$0xff] }
 0x466   : > { %v3797_v52 = vpop.f32.mrb[184].mxu1  ;;  %v2854_v22 = vpack.c.bf16 %v2685_v27, %v2684_v47 }
 0x467   : > { %v4213_v63 = vmul.f32 %v10475_v53, %v3797_v52  ;;  %v8551_v34 = vpop.f32.mrb[185].mxu1  ;;  %v10687_v37 = vpack.c.bf16 %v4466_v18, %v4465_v44  ;;  %v10705_v18 = vpack.c.bf16 %v4753_v35, %v4751_v33 }
 0x468   : > { %v3800_v43 = vpop.f32.mrb[186].mxu1 }
 0x469   : > { %v4342_v19 = vadd.f32 %v10482_v54, %v4213_v63  ;;  %v4214_v7 = vmul.f32 %v10475_v53, %v3800_v43  ;;  %v8552_v23 = vpop.f32.mrb[187].mxu1  ;;  %5559 = vmatprep.mubr.bf16.mxu0 %v10687_v37  ;;  %12350 = vst [vmem:[#allocation10_spill] sm:$0xff] %v10705_v18  ;;  %v4755_v43 = vld [vmem:[#allocation2 + $0x200] sm:$0xff] }
 0x46a   : > { %5560 = vmatmul.mubr.bf16.gmra.mrb[184].mxu0 %v10692_v21  ;;  %v10717_v33 = vpack.c.bf16 %v4757_v20, %v4755_v43  ;;  %v2688_v20 = vld [vmem:[#allocation3 + $0x2d2] sm:$0xff] }
 0x46b   : > { %v4467_v29 = vmax.f32 %v4342_v19, 0.0  ;;  %v4343_v30 = vadd.f32 %v10482_v54, %v4214_v7  ;;  %8658 = vmatmul.mubr.bf16.gmra.mrb[36].mxu1 %v2851_v50  ;;  %v2687_v7 = vld [vmem:[#allocation3 + $0x2ca] sm:$0xff] }
 0x46c   : > { %8661 = vmatprep.mubr.msk.bf16.mxu1 %vm9226_vm1, %v12250_v3  ;;  %12352 = vst [vmem:[#allocation12_spill] sm:$0xff] %v10717_v33 }
 0x46d   : > { %v4468_v55 = vmax.f32 %v4343_v30, 0.0 }
 0x46e   : > { %v3805_v14 = vpop.f32.mrb[188].mxu1 }
 0x46f   : > { %v4215_v42 = vmul.f32 %v10475_v53, %v3805_v14  ;;  %v8555_v26 = vpop.f32.mrb[189].mxu1  ;;  %v10703_v32 = vpack.c.bf16 %v4468_v55, %v4467_v29  ;;  %v2686_v55 = vld [vmem:[#allocation3 + $0x2c2] sm:$0xff] }
 0x470   : > { %v3808_v44 = vpop.f32.mrb[190].mxu1 }
 0x471   : > { %12349 = vst [vmem:[#allocation9_spill] sm:$0xff] %v10703_v32  ;;  %v4344_v49 = vadd.f32 %v10482_v54, %v4215_v42  ;;  %v4216_v9 = vmul.f32 %v10475_v53, %v3808_v44  ;;  %v8556_v52 = vpop.f32.mrb[191].mxu1  ;;  %5569 = vmatprep.mubr.bf16.mxu0 %v10703_v32  ;;  %v2857_v42 = vpack.c.bf16 %v2687_v7, %v2686_v55 }
 0x472   : > { %5570 = vmatmul.mubr.bf16.gmra.mrb[188].mxu0 %v10705_v18 }
 0x473   : > { %v4469_v63 = vmax.f32 %v4344_v49, 0.0  ;;  %v4345_v34 = vadd.f32 %v10482_v54, %v4216_v9  ;;  %8662 = vmatmul.mubr.bf16.gmra.mrb[40].mxu1 %v2854_v22  ;;  %v4759_v49 = vld [vmem:[#allocation2 + $0x220] sm:$0xff]  ;;  %v4761_v9 = vld [vmem:[#allocation2 + $0x230] sm:$0xff] }
 0x474   : > { %8665 = vmatprep.mubr.msk.bf16.mxu1 %vm9226_vm1, %v12250_v3  ;;  %v2689_v22 = vld [vmem:[#allocation3 + $0x2da] sm:$0xff] }
 0x475   : > { %v4470_v11 = vmax.f32 %v4345_v34, 0.0 }
 0x476   : > { %v3813_v19 = vpop.f32.mrb[192].mxu1 }
 0x477   : > { %v4217_v23 = vmul.f32 %v10475_v53, %v3813_v19  ;;  %v8559_v50 = vpop.f32.mrb[193].mxu1  ;;  %v10715_v29 = vpack.c.bf16 %v4470_v11, %v4469_v63  ;;  %v10729_v19 = vpack.c.bf16 %v4761_v9, %v4759_v49 }
 0x478   : > { %v3816_v30 = vpop.f32.mrb[194].mxu1 }
 0x479   : > { %12351 = vst [vmem:[#allocation11_spill] sm:$0xff] %v10715_v29  ;;  %v4346_v35 = vadd.f32 %v10482_v54, %v4217_v23  ;;  %v4218_v14 = vmul.f32 %v10475_v53, %v3816_v30  ;;  %v8560_v27 = vpop.f32.mrb[195].mxu1  ;;  %5579 = vmatprep.mubr.bf16.mxu0 %v10715_v29  ;;  %12354 = vst [vmem:[#allocation14_spill] sm:$0xff] %v10729_v19  ;;  %v2860_v30 = vpack.c.bf16 %v2689_v22, %v2688_v20 }
 0x47a   : > { %5580 = vmatmul.mubr.bf16.gmra.mrb[192].mxu0 %v10717_v33  ;;  %v4763_v27 = vld [vmem:[#allocation2 + $0x240] sm:$0xff] }
 0x47b   : > { %v4471_v26 = vmax.f32 %v4346_v35, 0.0  ;;  %v4347_v44 = vadd.f32 %v10482_v54, %v4218_v14  ;;  %8666 = vmatmul.mubr.bf16.gmra.mrb[44].mxu1 %v2857_v42  ;;  %v4765_v42 = vld [vmem:[#allocation2 + $0x250] sm:$0xff] }
 0x47c   : > { %8669 = vmatprep.mubr.msk.bf16.mxu1 %vm9226_vm1, %v12250_v3 }
 0x47d   : > { %v4472_v47 = vmax.f32 %v4347_v44, 0.0 }
 0x47e   : > { %v3821_v52 = vpop.f32.mrb[196].mxu1 }
 0x47f   : > { %v4219_v63 = vmul.f32 %v10475_v53, %v3821_v52  ;;  %v8563_v34 = vpop.f32.mrb[197].mxu1  ;;  %v10727_v11 = vpack.c.bf16 %v4472_v47, %v4471_v26  ;;  %v9144_v26 = vld [vmem:[%s12244_s3 + $0xc8] ss:$12 sps:$4 sm:$0xff]   ;;  %v2691_v47 = vld [vmem:[#allocation3 + $0x2ea] sm:$0xff] }
 0x480   : > { %v3824_v43 = vpop.f32.mrb[198].mxu1  ;;  %6065 = vmatpush1.bf16.msra.mxu0 %v9144_v26  ;;  %v10744_v34 = vpack.c.bf16 %v4765_v42, %v4763_v27  ;;  %v2693_v42 = vld [vmem:[#allocation3 + $0x2fa] sm:$0xff] }
 0x481   : > { %12353 = vst [vmem:[#allocation13_spill] sm:$0xff] %v10727_v11  ;;  %v4348_v7 = vadd.f32 %v10482_v54, %v4219_v63  ;;  %v4220_v23 = vmul.f32 %v10475_v53, %v3824_v43  ;;  %v8564_v50 = vpop.f32.mrb[199].mxu1  ;;  %5589 = vmatprep.mubr.bf16.mxu0 %v10727_v11  ;;  %v2690_v63 = vld [vmem:[#allocation3 + $0x2e2] sm:$0xff]  ;;  %6066 = vmatprep.subr.bf16.mxu0 %v12248_v2 }
 0x482   : > { %5590 = vmatmul.mubr.bf16.gmra.mrb[196].mxu0 %v10729_v19  ;;  %12356 = vst [vmem:[#allocation16_spill] sm:$0xff] %v10744_v34 }
 0x483   : > { %v4473_v55 = vmax.f32 %v4348_v7, 0.0  ;;  %v4349_v35 = vadd.f32 %v10482_v54, %v4220_v23  ;;  %8670 = vmatmul.mubr.bf16.gmra.mrb[48].mxu1 %v2860_v30  ;;  %v2863_v23 = vpack.c.bf16 %v2691_v47, %v2690_v63 }
 0x484   : > { %8673 = vmatprep.mubr.msk.bf16.mxu1 %vm9226_vm1, %v12250_v3 }
 0x485   : > { %v4474_v14 = vmax.f32 %v4349_v35, 0.0  ;;  %v4767_v35 = vld [vmem:[#allocation2 + $0x260] sm:$0xff] }
 0x486   : > { %v3829_v44 = vpop.f32.mrb[200].mxu1 }
 0x487   : > { %v4221_v49 = vmul.f32 %v10475_v53, %v3829_v44  ;;  %v8567_v9 = vpop.f32.mrb[201].mxu1  ;;  %v10742_v52 = vpack.c.bf16 %v4474_v14, %v4473_v55  ;;  %v4769_v14 = vld [vmem:[#allocation2 + $0x270] sm:$0xff] }
 0x488   : > { %v3832_v22 = vpop.f32.mrb[202].mxu1  ;;  %v2692_v9 = vld [vmem:[#allocation3 + $0x2f2] sm:$0xff] }
 0x489   : > { %12355 = vst [vmem:[#allocation15_spill] sm:$0xff] %v10742_v52  ;;  %v4350_v43 = vadd.f32 %v10482_v54, %v4221_v49  ;;  %v4222_v20 = vmul.f32 %v10475_v53, %v3832_v22  ;;  %v8568_v7 = vpop.f32.mrb[203].mxu1  ;;  %5599 = vmatprep.mubr.bf16.mxu0 %v10742_v52  ;;  %v10757_v22 = vpack.c.bf16 %v4769_v14, %v4767_v35  ;;  %v4773_v35 = vld [vmem:[#allocation2 + $0x290] sm:$0xff] }
 0x48a   : > { %5600 = vmatmul.mubr.bf16.gmra.mrb[200].mxu0 %v10744_v34  ;;  %v2866_v7 = vpack.c.bf16 %v2693_v42, %v2692_v9  ;;  %v2694_v9 = vld [vmem:[#allocation3 + $0x302] sm:$0xff] }
 0x48b   : > { %v4475_v50 = vmax.f32 %v4350_v43, 0.0  ;;  %v4351_v30 = vadd.f32 %v10482_v54, %v4222_v20  ;;  %8674 = vmatmul.mubr.bf16.gmra.mrb[52].mxu1 %v2863_v23  ;;  %12358 = vst [vmem:[#allocation18_spill] sm:$0xff] %v10757_v22 }
 0x48c   : > { %8677 = vmatprep.mubr.msk.bf16.mxu1 %vm9226_vm1, %v12250_v3 }
 0x48d   : > { %v4476_v55 = vmax.f32 %v4351_v30, 0.0 }
 0x48e   : > { %v3837_v27 = vpop.f32.mrb[204].mxu1 }
 0x48f   : > { %v4223_v26 = vmul.f32 %v10475_v53, %v3837_v27  ;;  %v8571_v44 = vpop.f32.mrb[205].mxu1  ;;  %v10755_v47 = vpack.c.bf16 %v4476_v55, %v4475_v50  ;;  %v4771_v55 = vld [vmem:[#allocation2 + $0x280] sm:$0xff] }
 0x490   : > { %v3840_v49 = vpop.f32.mrb[206].mxu1  ;;  %v2695_v27 = vld [vmem:[#allocation3 + $0x30a] sm:$0xff] }
 0x491   : > { %12357 = vst [vmem:[#allocation17_spill] sm:$0xff] %v10755_v47  ;;  %v4352_v63 = vadd.f32 %v10482_v54, %v4223_v26  ;;  %v4224_v43 = vmul.f32 %v10475_v53, %v3840_v49  ;;  %v8572_v20 = vpop.f32.mrb[207].mxu1  ;;  %5609 = vmatprep.mubr.bf16.mxu0 %v10755_v47 }
 0x492   : > { %5610 = vmatmul.mubr.bf16.gmra.mrb[204].mxu0 %v10757_v22  ;;  %v10769_v20 = vpack.c.bf16 %v4773_v35, %v4771_v55  ;;  %v4775_v35 = vld [vmem:[#allocation2 + $0x2a0] sm:$0xff] }
 0x493   : > { %v4477_v23 = vmax.f32 %v4352_v63, 0.0  ;;  %v4353_v30 = vadd.f32 %v10482_v54, %v4224_v43  ;;  %8678 = vmatmul.mubr.bf16.gmra.mrb[56].mxu1 %v2866_v7  ;;  %v10774_v54 = vld [vmem:[%s12245_s4 + $0x7] ss:$0 sm:$0xff]  ;;  %v10780_v43 = vld [vmem:[%s12245_s4 + $0x6] ss:$0 sm:$0xff] }
 0x494   : > { %8681 = vmatprep.mubr.msk.bf16.mxu1 %vm9226_vm1, %v12250_v3  ;;  %12360 = vst [vmem:[#allocation20_spill] sm:$0xff] %v10769_v20 }
 0x495   : > { %v4478_v50 = vmax.f32 %v4353_v30, 0.0 }
 0x496   : > { %v3845_v14 = vpop.f32.mrb[208].mxu1 }
 0x497   : > { %v4225_v26 = vmul.f32 %v10475_v53, %v3845_v14  ;;  %v8575_v44 = vpop.f32.mrb[209].mxu1  ;;  %v10767_v42 = vpack.c.bf16 %v4478_v50, %v4477_v23  ;;  %v2869_v23 = vpack.c.bf16 %v2695_v27, %v2694_v9  ;;  %v4777_v14 = vld [vmem:[#allocation2 + $0x2b0] sm:$0xff] }
 0x498   : > { %v3848_v49 = vpop.f32.mrb[210].mxu1  ;;  %v2697_v44 = vld [vmem:[#allocation3 + $0x31a] sm:$0xff]  ;;  %v10791_v2 = vpack.c.bf16 %v4777_v14, %v4775_v35  ;;  %v4779_v35 = vld [vmem:[#allocation2 + $0x2c0] sm:$0xff] }
 0x499   : > { %12359 = vst [vmem:[#allocation19_spill] sm:$0xff] %v10767_v42  ;;  %v4354_v63 = vadd.f32 %v10774_v54, %v4225_v26  ;;  %v4226_v53 = vmul.f32 %v10780_v43, %v3848_v49  ;;  %v8576_v7 = vpop.f32.mrb[211].mxu1  ;;  %5619 = vmatprep.mubr.bf16.mxu0 %v10767_v42  ;;  %v4781_v14 = vld [vmem:[#allocation2 + $0x2d0] sm:$0xff]  ;;  %v2708_v42 = vld [vmem:[#allocation3 + $0x372] sm:$0xff] }
 0x49a   : > { %5620 = vmatmul.mubr.bf16.gmra.mrb[208].mxu0 %v10769_v20  ;;  %12362 = vst [vmem:[#allocation22_spill] sm:$0xff] %v10791_v2 }
 0x49b   : > { %v4479_v30 = vmax.f32 %v4354_v63, 0.0  ;;  %v4355_v50 = vadd.f32 %v10774_v54, %v4226_v53  ;;  %8682 = vmatmul.mubr.bf16.gmra.mrb[60].mxu1 %v2869_v23 }
 0x49c   : > { %8685 = vmatprep.mubr.msk.bf16.mxu1 %vm9226_vm1, %v12250_v3  ;;  %v2872_v3 = vpack.c.bf16 %v2697_v44, %v2696_v58  ;;  %v2699_v58 = vld [vmem:[#allocation3 + $0x32a] sm:$0xff] }
 0x49d   : > { %v4480_v55 = vmax.f32 %v4355_v50, 0.0 }
 0x49e   : > { %v3853_v26 = vpop.f32.mrb[212].mxu1 }
 0x49f   : > { %v4227_v49 = vmul.f32 %v10780_v43, %v3853_v26  ;;  %v8579_v7 = vpop.f32.mrb[213].mxu1  ;;  %v10789_v27 = vpack.c.bf16 %v4480_v55, %v4479_v30  ;;  %v12363_v30 = vmov 0.0  }
 0x4a0   : > { %v3856_v9 = vpop.f32.mrb[214].mxu1 }
 0x4a1   : > { %12361 = vst [vmem:[#allocation21_spill] sm:$0xff] %v10789_v27  ;;  %v4356_v63 = vadd.f32 %v10774_v54, %v4227_v49  ;;  %v4228_v53 = vmul.f32 %v10780_v43, %v3856_v9  ;;  %v8580_v23 = vpop.f32.mrb[215].mxu1  ;;  %5629 = vmatprep.mubr.bf16.mxu0 %v10789_v27  ;;  %v9145_v49 = vld [vmem:[%s12244_s3 + $0xe0] ss:$12 sps:$4 sm:$0xff]  }
 0x4a2   : > { %5630 = vmatmul.mubr.bf16.gmra.mrb[212].mxu0 %v10791_v2 }
 0x4a3   : > { %v4481_v50 = vmax.f32 %v4356_v63, 0.0  ;;  %v4357_v26 = vadd.f32 %v10774_v54, %v4228_v53  ;;  %8686 = vmatmul.mubr.bf16.gmra.mrb[64].mxu1 %v2872_v3  ;;  %6067 = vmatpush1.bf16.msra.mxu0 %v9145_v49  ;;  %v2698_v3 = vld [vmem:[#allocation3 + $0x322] sm:$0xff]  ;;  %v10806_v53 = vpack.c.bf16 %v4781_v14, %v4779_v35  ;;  %v4783_v35 = vld [vmem:[#allocation2 + $0x2e0] sm:$0xff] }
 0x4a4   : > { %8689 = vmatprep.mubr.msk.bf16.mxu1 %vm9226_vm1, %v12363_v30  ;;  %6068 = vmatprep.subr.bf16.mxu0 %v12366_v60  ;;  %v2875_v20 = vpack.c.bf16 %v2699_v58, %v2698_v3  ;;  %v4785_v14 = vld [vmem:[#allocation2 + $0x2f0] sm:$0xff]  ;;  %v2700_v3 = vld [vmem:[#allocation3 + $0x332] sm:$0xff] }
 0x4a5   : > { %v4482_v55 = vmax.f32 %v4357_v26, 0.0  ;;  %12365 = vst [vmem:[#allocation24_spill] sm:$0xff] %v10806_v53 }
 0x4a6   : > { %v3861_v7 = vpop.f32.mrb[216].mxu1 }
 0x4a7   : > { %v4229_v44 = vmul.f32 %v10780_v43, %v3861_v7  ;;  %v8583_v9 = vpop.f32.mrb[217].mxu1  ;;  %v10804_v23 = vpack.c.bf16 %v4482_v55, %v4481_v50 }
 0x4a8   : > { %v3864_v63 = vpop.f32.mrb[218].mxu1 }
 0x4a9   : > { %12364 = vst [vmem:[#allocation23_spill] sm:$0xff] %v10804_v23  ;;  %v4358_v26 = vadd.f32 %v10774_v54, %v4229_v44  ;;  %v4230_v2 = vmul.f32 %v10780_v43, %v3864_v63  ;;  %v8584_v27 = vpop.f32.mrb[219].mxu1  ;;  %5639 = vmatprep.mubr.bf16.mxu0 %v10804_v23  ;;  %v2701_v44 = vld [vmem:[#allocation3 + $0x33a] sm:$0xff] }
 0x4aa   : > { %5640 = vmatmul.mubr.bf16.gmra.mrb[216].mxu0 %v10806_v53  ;;  %v10819_v53 = vpack.c.bf16 %v4785_v14, %v4783_v35  ;;  %v2878_v23 = vpack.c.bf16 %v2701_v44, %v2700_v3  ;;  %v4789_v35 = vld [vmem:[#allocation2 + $0x310] sm:$0xff] }
 0x4ab   : > { %v4483_v7 = vmax.f32 %v4358_v26, 0.0  ;;  %v4359_v50 = vadd.f32 %v10774_v54, %v4230_v2  ;;  %8690 = vmatmul.mubr.bf16.gmra.mrb[68].mxu1 %v2875_v20 }
 0x4ac   : > { %8693 = vmatprep.mubr.msk.bf16.mxu1 %vm9226_vm1, %v12363_v30  ;;  %12368 = vst [vmem:[#allocation26_spill] sm:$0xff] %v10819_v53 }
 0x4ad   : > { %v4484_v55 = vmax.f32 %v4359_v50, 0.0 }
 0x4ae   : > { %v3869_v49 = vpop.f32.mrb[220].mxu1 }
 0x4af   : > { %v4231_v9 = vmul.f32 %v10780_v43, %v3869_v49  ;;  %v8587_v27 = vpop.f32.mrb[221].mxu1  ;;  %v10817_v58 = vpack.c.bf16 %v4484_v55, %v4483_v7  ;;  %v4787_v55 = vld [vmem:[#allocation2 + $0x300] sm:$0xff] }
 0x4b0   : > { %v3872_v63 = vpop.f32.mrb[222].mxu1 }
 0x4b1   : > { %12367 = vst [vmem:[#allocation25_spill] sm:$0xff] %v10817_v58  ;;  %v4360_v2 = vadd.f32 %v10774_v54, %v4231_v9  ;;  %v4232_v20 = vmul.f32 %v10780_v43, %v3872_v63  ;;  %v8588_v26 = vpop.f32.mrb[223].mxu1  ;;  %5649 = vmatprep.mubr.bf16.mxu0 %v10817_v58  ;;  %v2703_v9 = vld [vmem:[#allocation3 + $0x34a] sm:$0xff] }
 0x4b2   : > { %5650 = vmatmul.mubr.bf16.gmra.mrb[220].mxu0 %v10819_v53  ;;  %v2702_v26 = vld [vmem:[#allocation3 + $0x342] sm:$0xff]  ;;  %v10831_v53 = vpack.c.bf16 %v4789_v35, %v4787_v55 }
 0x4b3   : > { %v4485_v50 = vmax.f32 %v4360_v2, 0.0  ;;  %v4361_v49 = vadd.f32 %v10774_v54, %v4232_v20  ;;  %8694 = vmatmul.mubr.bf16.gmra.mrb[72].mxu1 %v2878_v23  ;;  %v2881_v58 = vpack.c.bf16 %v2703_v9, %v2702_v26  ;;  %v4793_v55 = vld [vmem:[#allocation2 + $0x330] sm:$0xff] }
 0x4b4   : > { %8697 = vmatprep.mubr.msk.bf16.mxu1 %vm9226_vm1, %v12363_v30  ;;  %12370 = vst [vmem:[#allocation28_spill] sm:$0xff] %v10831_v53 }
 0x4b5   : > { %v4486_v7 = vmax.f32 %v4361_v49, 0.0 }
 0x4b6   : > { %v3877_v14 = vpop.f32.mrb[224].mxu1 }
 0x4b7   : > { %v4233_v27 = vmul.f32 %v10780_v43, %v3877_v14  ;;  %v8591_v63 = vpop.f32.mrb[225].mxu1  ;;  %v10829_v44 = vpack.c.bf16 %v4486_v7, %v4485_v50  ;;  %v4791_v7 = vld [vmem:[#allocation2 + $0x320] sm:$0xff] }
 0x4b8   : > { %v3880_v3 = vpop.f32.mrb[226].mxu1 }
 0x4b9   : > { %12369 = vst [vmem:[#allocation27_spill] sm:$0xff] %v10829_v44  ;;  %v4362_v2 = vadd.f32 %v10774_v54, %v4233_v27  ;;  %v4234_v23 = vmul.f32 %v10780_v43, %v3880_v3  ;;  %v8592_v20 = vpop.f32.mrb[227].mxu1  ;;  %5659 = vmatprep.mubr.bf16.mxu0 %v10829_v44  ;;  %v2705_v27 = vld [vmem:[#allocation3 + $0x35a] sm:$0xff] }
 0x4ba   : > { %5660 = vmatmul.mubr.bf16.gmra.mrb[224].mxu0 %v10831_v53  ;;  %v2704_v20 = vld [vmem:[#allocation3 + $0x352] sm:$0xff]  ;;  %v10843_v53 = vpack.c.bf16 %v4793_v55, %v4791_v7  ;;  %v4797_v7 = vld [vmem:[#allocation2 + $0x350] sm:$0xff] }
 0x4bb   : > { %v4487_v49 = vmax.f32 %v4362_v2, 0.0  ;;  %v4363_v14 = vadd.f32 %v10774_v54, %v4234_v23  ;;  %8698 = vmatmul.mubr.bf16.gmra.mrb[76].mxu1 %v2881_v58  ;;  %v2884_v44 = vpack.c.bf16 %v2705_v27, %v2704_v20  ;;  %v9146_v55 = vld [vmem:[%s12244_s3 + $0xf8] ss:$12 sps:$4 sm:$0xff]  }
 0x4bc   : > { %8701 = vmatprep.mubr.msk.bf16.mxu1 %vm9226_vm1, %v12363_v30  ;;  %12372 = vst [vmem:[#allocation30_spill] sm:$0xff] %v10843_v53  ;;  %v2707_v27 = vld [vmem:[#allocation3 + $0x36a] sm:$0xff]  ;;  %6069 = vmatpush1.bf16.msra.mxu0 %v9146_v55 }
 0x4bd   : > { %v4488_v50 = vmax.f32 %v4363_v14, 0.0  ;;  %6070 = vmatprep.subr.bf16.mxu0 %v12366_v60  ;;  %v4799_v55 = vld [vmem:[#allocation2 + $0x360] sm:$0xff] }
 0x4be   : > { %v3885_v35 = vpop.f32.mrb[228].mxu1 }
 0x4bf   : > { %v4235_v63 = vmul.f32 %v10780_v43, %v3885_v35  ;;  %v8595_v3 = vpop.f32.mrb[229].mxu1  ;;  %v10841_v9 = vpack.c.bf16 %v4488_v50, %v4487_v49  ;;  %v4795_v50 = vld [vmem:[#allocation2 + $0x340] sm:$0xff] }
 0x4c0   : > { %v3888_v26 = vpop.f32.mrb[230].mxu1 }
 0x4c1   : > { %12371 = vst [vmem:[#allocation29_spill] sm:$0xff] %v10841_v9  ;;  %v4364_v2 = vadd.f32 %v10774_v54, %v4235_v63  ;;  %v4236_v58 = vmul.f32 %v10780_v43, %v3888_v26  ;;  %v8596_v23 = vpop.f32.mrb[231].mxu1  ;;  %5669 = vmatprep.mubr.bf16.mxu0 %v10841_v9 }
 0x4c2   : > { %5670 = vmatmul.mubr.bf16.gmra.mrb[228].mxu0 %v10843_v53 }
 0x4c3   : > { %v4489_v14 = vmax.f32 %v4364_v2, 0.0  ;;  %v4365_v35 = vadd.f32 %v10774_v54, %v4236_v58  ;;  %8702 = vmatmul.mubr.bf16.gmra.mrb[80].mxu1 %v2884_v44  ;;  %v2706_v44 = vld [vmem:[#allocation3 + $0x362] sm:$0xff]  ;;  %v10858_v58 = vpack.c.bf16 %v4797_v7, %v4795_v50 }
 0x4c4   : > { %8705 = vmatprep.mubr.msk.bf16.mxu1 %vm9226_vm1, %v12363_v30  ;;  %v2887_v9 = vpack.c.bf16 %v2707_v27, %v2706_v44 }
 0x4c5   : > { %v4490_v49 = vmax.f32 %v4365_v35, 0.0  ;;  %12374 = vst [vmem:[#allocation32_spill] sm:$0xff] %v10858_v58 }
 0x4c6   : > { %v3893_v63 = vpop.f32.mrb[232].mxu1 }
 0x4c7   : > { %v4237_v3 = vmul.f32 %v10780_v43, %v3893_v63  ;;  %v8599_v26 = vpop.f32.mrb[233].mxu1  ;;  %v10856_v20 = vpack.c.bf16 %v4490_v49, %v4489_v14  ;;  %v8349_v49 = vld [vmem:[%s12245_s4 + $0xc] ss:$2 sm:$0x7] }
 0x4c8   : > { %v3896_v2 = vpop.f32.mrb[234].mxu1  ;;  %v10872_v26 = vrot.slane %v8349_v49, %v9627_v4  ;;  %v10875_v44 = vrot.slane %v8349_v49, %v9633_v6 }
 0x4c9   : > { %12373 = vst [vmem:[#allocation31_spill] sm:$0xff] %v10856_v20  ;;  %v4366_v23 = vadd.f32 %v10774_v54, %v4237_v3  ;;  %v4238_v35 = vmul.f32 %v10780_v43, %v3896_v2  ;;  %v8600_v53 = vpop.f32.mrb[235].mxu1  ;;  %5679 = vmatprep.mubr.bf16.mxu0 %v10856_v20  ;;  %v2709_v3 = vld [vmem:[#allocation3 + $0x37a] sm:$0xff] }
 0x4ca   : > { %5680 = vmatmul.mubr.bf16.gmra.mrb[232].mxu0 %v10858_v58  ;;  %v4801_v53 = vld [vmem:[#allocation2 + $0x370] sm:$0xff]  ;;  %v2890_v19 = vpack.c.bf16 %v2709_v3, %v2708_v42 }
 0x4cb   : > { %v4491_v63 = vmax.f32 %v4366_v23, 0.0  ;;  %v4367_v14 = vadd.f32 %v10774_v54, %v4238_v35  ;;  %8706 = vmatmul.mubr.bf16.gmra.mrb[84].mxu1 %v2887_v9  ;;  %v8350_v35 = vld [vmem:[%s12245_s4 + $0xd] ss:$2 sm:$0x7]  ;;  %v10883_v47 = vpack.c.bf16 %v4801_v53, %v4799_v55 }
 0x4cc   : > { %8709 = vmatprep.mubr.msk.bf16.mxu1 %vm9226_vm1, %v12363_v30 }
 0x4cd   : > { %v4492_v50 = vmax.f32 %v4367_v14, 0.0  ;;  %v5421_v7 = vpop.f32.mrb[128].mxu0  ;;  %12376 = vst [vmem:[#allocation34_spill] sm:$0xff] %v10883_v47 }
 0x4ce   : > { %v3901_v27 = vpop.f32.mrb[236].mxu1  ;;  %v5423_v2 = vpop.f32.mrb[129].mxu0 }
 0x4cf   : > { %v4239_v9 = vmul.f32 %v10780_v43, %v3901_v27  ;;  %v8603_v23 = vpop.f32.mrb[237].mxu1  ;;  %v5425_v14 = vpop.f32.mrb[130].mxu0  ;;  %v10881_v58 = vpack.c.bf16 %v4492_v50, %v4491_v63  ;;  %v6600_v27 = vmul.f32 %v10872_v26, %v5421_v7  ;;  %v6601_v63 = vmul.f32 %v10875_v44, %v5423_v2  ;;  %v4805_v7 = vld [vmem:[#allocation2 + $0x390] sm:$0xff] }
 0x4d0   : > { %v3904_v20 = vpop.f32.mrb[238].mxu1  ;;  %v5427_v22 = vpop.f32.mrb[131].mxu0  ;;  %v10890_v23 = vrot.slane %v8350_v35, %v9627_v4  ;;  %v10894_v50 = vrot.slane %v8350_v35, %v9633_v6  ;;  %v6603_v42 = vmul.f32 %v10872_v26, %v5425_v14  ;;  %v4803_v4 = vld [vmem:[#allocation2 + $0x380] sm:$0xff]  ;;  %v2710_v2 = vld [vmem:[#allocation3 + $0x382] sm:$0xff] }
 0x4d1   : > { %12375 = vst [vmem:[#allocation33_spill] sm:$0xff] %v10881_v58  ;;  %v4368_v34 = vadd.f32 %v10774_v54, %v4239_v9  ;;  %v4240_v49 = vmul.f32 %v10780_v43, %v3904_v20  ;;  %v8604_v52 = vpop.f32.mrb[239].mxu1  ;;  %5689 = vmatprep.mubr.bf16.mxu0 %v10881_v58  ;;  %v6604_v20 = vmul.f32 %v10875_v44, %v5427_v22 }
 0x4d2   : > { %5690 = vmatmul.mubr.bf16.gmra.mrb[236].mxu0 %v10883_v47  ;;  %v2711_v52 = vld [vmem:[#allocation3 + $0x38a] sm:$0xff]  ;;  %v6991_v9 = vadd.f32 %v10890_v23, %v6600_v27  ;;  %v6994_v29 = vadd.f32 %v10890_v23, %v6603_v42 }
 0x4d3   : > { %v4493_v55 = vmax.f32 %v4368_v34, 0.0  ;;  %v4369_v53 = vadd.f32 %v10774_v54, %v4240_v49  ;;  %8710 = vmatmul.mubr.bf16.gmra.mrb[88].mxu1 %v2890_v19  ;;  %v6992_v34 = vadd.f32 %v10894_v50, %v6601_v63  ;;  %v2893_v49 = vpack.c.bf16 %v2711_v52, %v2710_v2 }
 0x4d4   : > { %8713 = vmatprep.mubr.msk.bf16.mxu1 %vm9226_vm1, %v12363_v30  ;;  %v6995_v18 = vadd.f32 %v10894_v50, %v6604_v20  ;;  %v7366_v42 = vmax.f32 %v6991_v9, 0.0  ;;  %v2713_v9 = vld [vmem:[#allocation3 + $0x39a] sm:$0xff] }
 0x4d5   : > { %v4494_v3 = vmax.f32 %v4369_v53, 0.0  ;;  %v5431_v6 = vpop.f32.mrb[132].mxu0  ;;  %v10909_v53 = vpack.c.bf16 %v4805_v7, %v4803_v4  ;;  %v7367_v7 = vmax.f32 %v6992_v34, 0.0 }
 0x4d6   : > { %v3909_v35 = vpop.f32.mrb[240].mxu1  ;;  %v6606_v19 = vmul.f32 %v10872_v26, %v5431_v6  ;;  %v5433_v47 = vpop.f32.mrb[133].mxu0 }
 0x4d7   : > { %v4241_v14 = vmul.f32 %v10780_v43, %v3909_v35  ;;  %v8607_v22 = vpop.f32.mrb[241].mxu1  ;;  %v6607_v58 = vmul.f32 %v10875_v44, %v5433_v47  ;;  %v5435_v11 = vpop.f32.mrb[134].mxu0  ;;  %v10907_v33 = vpack.c.bf16 %v4494_v3, %v4493_v55  ;;  %12378 = vst [vmem:[#allocation36_spill] sm:$0xff] %v10909_v53 }
 0x4d8   : > { %v3912_v27 = vpop.f32.mrb[242].mxu1  ;;  %v6997_v63 = vadd.f32 %v10890_v23, %v6606_v19  ;;  %v6609_v52 = vmul.f32 %v10872_v26, %v5435_v11  ;;  %v5437_v2 = vpop.f32.mrb[135].mxu0 }
 0x4d9   : > { %12377 = vst [vmem:[#allocation35_spill] sm:$0xff] %v10907_v33  ;;  %v4370_v6 = vadd.f32 %v10774_v54, %v4241_v14  ;;  %v4242_v35 = vmul.f32 %v10780_v43, %v3912_v27  ;;  %v8608_v47 = vpop.f32.mrb[243].mxu1  ;;  %v6998_v55 = vadd.f32 %v10894_v50, %v6607_v58  ;;  %v6610_v4 = vmul.f32 %v10875_v44, %v5437_v2 }
 0x4da   : > { %5699 = vmatprep.mubr.bf16.mxu0 %v10907_v33  ;;  %v7372_v3 = vmax.f32 %v6997_v63, 0.0  ;;  %v7000_v20 = vadd.f32 %v10890_v23, %v6609_v52  ;;  %v7369_v27 = vmax.f32 %v6994_v29, 0.0  ;;  %v7370_v63 = vmax.f32 %v6995_v18, 0.0 }
 0x4db   : > { %5700 = vmatmul.mubr.bf16.gmra.mrb[240].mxu0 %v10909_v53  ;;  %v4495_v11 = vmax.f32 %v4370_v6, 0.0  ;;  %v4371_v19 = vadd.f32 %v10774_v54, %v4242_v35  ;;  %8714 = vmatmul.mubr.bf16.gmra.mrb[92].mxu1 %v2893_v49  ;;  %v7373_v14 = vmax.f32 %v6998_v55, 0.0  ;;  %v7001_v22 = vadd.f32 %v10894_v50, %v6610_v4  ;;  %v4807_v53 = vld [vmem:[#allocation2 + $0x3a0] sm:$0xff]  ;;  %v4809_v6 = vld [vmem:[#allocation2 + $0x3b0] sm:$0xff] }
 0x4dc   : > { %v7741_v58 = vmax.f32 %v7366_v42, %v7372_v3  ;;  %v7375_v47 = vmax.f32 %v7000_v20, 0.0  ;;  %8717 = vmatprep.mubr.msk.bf16.mxu1 %vm9226_vm1, %v12363_v30  ;;  %v2712_v3 = vld [vmem:[#allocation3 + $0x392] sm:$0xff] }
 0x4dd   : > { %v4496_v34 = vmax.f32 %v4371_v19, 0.0  ;;  %v7873_v2 = vmax.f32 %v7367_v7, %v7373_v14  ;;  %v7376_v52 = vmax.f32 %v7001_v22, 0.0  ;;  %v5441_v33 = vpop.f32.mrb[136].mxu0  ;;  %v2896_v7 = vpack.c.bf16 %v2713_v9, %v2712_v3  ;;  %v4811_v3 = vld [vmem:[#allocation2 + $0x3c0] sm:$0xff] }
 0x4de   : > { %v3917_v32 = vpop.f32.mrb[244].mxu1  ;;  %v7742_v35 = vmax.f32 %v7369_v27, %v7375_v47  ;;  %v6612_v49 = vmul.f32 %v10872_v26, %v5441_v33  ;;  %v5443_v55 = vpop.f32.mrb[137].mxu0  ;;  %v10933_v47 = vpack.c.bf16 %v4809_v6, %v4807_v53 }
 0x4df   : > { %v4243_v29 = vmul.f32 %v10780_v43, %v3917_v32  ;;  %v8611_v4 = vpop.f32.mrb[245].mxu1  ;;  %v7874_v42 = vmax.f32 %v7370_v63, %v7376_v52  ;;  %v6613_v20 = vmul.f32 %v10875_v44, %v5443_v55  ;;  %v5445_v21 = vpop.f32.mrb[138].mxu0  ;;  %v10929_v19 = vpack.c.bf16 %v4496_v34, %v4495_v11 }
 0x4e0   : > { %v3920_v18 = vpop.f32.mrb[246].mxu1  ;;  %v7003_v14 = vadd.f32 %v10890_v23, %v6612_v49  ;;  %v6615_v22 = vmul.f32 %v10872_v26, %v5445_v21  ;;  %v5447_v27 = vpop.f32.mrb[139].mxu0  ;;  %12380 = vst [vmem:[#allocation38_spill] sm:$0xff] %v10933_v47  ;;  %v2715_v4 = vld [vmem:[#allocation3 + $0x3aa] sm:$0xff] }
 0x4e1   : > { %12379 = vst [vmem:[#allocation37_spill] sm:$0xff] %v10929_v19  ;;  %v4372_v33 = vadd.f32 %v10774_v54, %v4243_v29  ;;  %v4244_v32 = vmul.f32 %v10780_v43, %v3920_v18  ;;  %v8612_v63 = vpop.f32.mrb[247].mxu1  ;;  %v7004_v52 = vadd.f32 %v10894_v50, %v6613_v20  ;;  %v6616_v55 = vmul.f32 %v10875_v44, %v5447_v27  ;;  %v4813_v27 = vld [vmem:[#allocation2 + $0x3d0] sm:$0xff] }
 0x4e2   : > { %5709 = vmatprep.mubr.bf16.mxu0 %v10929_v19  ;;  %v7378_v11 = vmax.f32 %v7003_v14, 0.0  ;;  %v7006_v9 = vadd.f32 %v10890_v23, %v6615_v22 }
 0x4e3   : > { %5710 = vmatmul.mubr.bf16.gmra.mrb[244].mxu0 %v10933_v47  ;;  %v4497_v21 = vmax.f32 %v4372_v33, 0.0  ;;  %v4373_v53 = vadd.f32 %v10774_v54, %v4244_v32  ;;  %8718 = vmatmul.mubr.bf16.gmra.mrb[96].mxu1 %v2896_v7  ;;  %v7379_v34 = vmax.f32 %v7004_v52, 0.0  ;;  %v7007_v6 = vadd.f32 %v10894_v50, %v6616_v55  ;;  %v9147_v33 = vld [vmem:[%s12244_s3 + $0x110] ss:$12 sps:$4 sm:$0xff]  }
 0x4e4   : > { %v7743_v49 = vmax.f32 %v7741_v58, %v7378_v11  ;;  %v7381_v29 = vmax.f32 %v7006_v9, 0.0  ;;  %8721 = vmatprep.mubr.msk.bf16.mxu1 %vm9226_vm1, %v12363_v30  ;;  %v2714_v9 = vld [vmem:[#allocation3 + $0x3a2] sm:$0xff]  ;;  %6071 = vmatpush1.bf16.msra.mxu0 %v9147_v33 }
 0x4e5   : > { %v4498_v20 = vmax.f32 %v4373_v53, 0.0  ;;  %v7875_v18 = vmax.f32 %v7873_v2, %v7379_v34  ;;  %v7382_v14 = vmax.f32 %v7007_v6, 0.0  ;;  %v5451_v22 = vpop.f32.mrb[140].mxu0  ;;  %v2899_v47 = vpack.c.bf16 %v2715_v4, %v2714_v9  ;;  %6072 = vmatprep.subr.bf16.mxu0 %v12366_v60 }
 0x4e6   : > { %v3925_v7 = vpop.f32.mrb[248].mxu1  ;;  %v7744_v32 = vmax.f32 %v7742_v35, %v7381_v29  ;;  %v6618_v63 = vmul.f32 %v10872_v26, %v5451_v22  ;;  %v5453_v58 = vpop.f32.mrb[141].mxu0  ;;  %v10956_v22 = vpack.c.bf16 %v4813_v27, %v4811_v3 }
 0x4e7   : > { %v4245_v52 = vmul.f32 %v10780_v43, %v3925_v7  ;;  %v8615_v55 = vpop.f32.mrb[249].mxu1  ;;  %v7876_v11 = vmax.f32 %v7874_v42, %v7382_v14  ;;  %v6619_v53 = vmul.f32 %v10875_v44, %v5453_v58  ;;  %v5455_v2 = vpop.f32.mrb[142].mxu0  ;;  %v10952_v34 = vpack.c.bf16 %v4498_v20, %v4497_v21 }
 0x4e8   : > { %v3928_v6 = vpop.f32.mrb[250].mxu1  ;;  %v7009_v19 = vadd.f32 %v10890_v23, %v6618_v63  ;;  %v6621_v35 = vmul.f32 %v10872_v26, %v5455_v2  ;;  %v5457_v29 = vpop.f32.mrb[143].mxu0  ;;  %12382 = vst [vmem:[#allocation40_spill] sm:$0xff] %v10956_v22 }
 0x4e9   : > { %12381 = vst [vmem:[#allocation39_spill] sm:$0xff] %v10952_v34  ;;  %v4374_v42 = vadd.f32 %v10774_v54, %v4245_v52  ;;  %v4246_v14 = vmul.f32 %v10780_v43, %v3928_v6  ;;  %v8616_v7 = vpop.f32.mrb[251].mxu1  ;;  %v7010_v21 = vadd.f32 %v10894_v50, %v6619_v53  ;;  %v6622_v20 = vmul.f32 %v10875_v44, %v5457_v29  ;;  %v4817_v29 = vld [vmem:[#allocation2 + $0x3f0] sm:$0xff] }
 0x4ea   : > { %5719 = vmatprep.mubr.bf16.mxu0 %v10952_v34  ;;  %v7384_v4 = vmax.f32 %v7009_v19, 0.0  ;;  %v7012_v33 = vadd.f32 %v10890_v23, %v6621_v35  ;;  %v2717_v19 = vld [vmem:[#allocation3 + $0x3ba] sm:$0xff]  ;;  %v4815_v35 = vld [vmem:[#allocation2 + $0x3e0] sm:$0xff] }
 0x4eb   : > { %5720 = vmatmul.mubr.bf16.gmra.mrb[248].mxu0 %v10956_v22  ;;  %v4499_v3 = vmax.f32 %v4374_v42, 0.0  ;;  %v4375_v27 = vadd.f32 %v10774_v54, %v4246_v14  ;;  %8722 = vmatmul.mubr.bf16.gmra.mrb[100].mxu1 %v2899_v47  ;;  %v7385_v63 = vmax.f32 %v7010_v21, 0.0  ;;  %v7013_v58 = vadd.f32 %v10894_v50, %v6622_v20 }
 0x4ec   : > { %v7745_v52 = vmax.f32 %v7743_v49, %v7384_v4  ;;  %v7387_v55 = vmax.f32 %v7012_v33, 0.0  ;;  %8725 = vmatprep.mubr.msk.bf16.mxu1 %vm9226_vm1, %v12363_v30  ;;  %v2716_v4 = vld [vmem:[#allocation3 + $0x3b2] sm:$0xff] }
 0x4ed   : > { %v4500_v9 = vmax.f32 %v4375_v27, 0.0  ;;  %v7877_v53 = vmax.f32 %v7875_v18, %v7385_v63  ;;  %v7388_v2 = vmax.f32 %v7013_v58, 0.0  ;;  %v5461_v6 = vpop.f32.mrb[144].mxu0  ;;  %v2902_v63 = vpack.c.bf16 %v2717_v19, %v2716_v4 }
 0x4ee   : > { %v3933_v7 = vpop.f32.mrb[252].mxu1  ;;  %v7746_v42 = vmax.f32 %v7744_v32, %v7387_v55  ;;  %v6624_v14 = vmul.f32 %v10872_v26, %v5461_v6  ;;  %v5463_v47 = vpop.f32.mrb[145].mxu0  ;;  %v10977_v55 = vpack.c.bf16 %v4817_v29, %v4815_v35 }
 0x4ef   : > { %v4247_v21 = vmul.f32 %v10780_v43, %v3933_v7  ;;  %v8619_v20 = vpop.f32.mrb[253].mxu1  ;;  %v7878_v49 = vmax.f32 %v7876_v11, %v7388_v2  ;;  %v6625_v33 = vmul.f32 %v10875_v44, %v5463_v47  ;;  %v5465_v22 = vpop.f32.mrb[146].mxu0  ;;  %v10973_v27 = vpack.c.bf16 %v4500_v9, %v4499_v3 }
 0x4f0   : > { %v3936_v18 = vpop.f32.mrb[254].mxu1  ;;  %v7015_v58 = vadd.f32 %v10890_v23, %v6624_v14  ;;  %v6627_v34 = vmul.f32 %v10872_v26, %v5465_v22  ;;  %v5467_v32 = vpop.f32.mrb[147].mxu0  ;;  %12383 = vst [vmem:[#allocation41_spill] sm:$0xff] %v10977_v55 }
 0x4f1   : > { %v4376_v6 = vadd.f32 %v10774_v54, %v4247_v21  ;;  %v4248_v7 = vmul.f32 %v10780_v43, %v3936_v18  ;;  %v8620_v11 = vpop.f32.mrb[255].mxu1  ;;  %v7016_v2 = vadd.f32 %v10894_v50, %v6625_v33  ;;  %v6628_v47 = vmul.f32 %v10875_v44, %v5467_v32  ;;  %5729 = vmatprep.mubr.bf16.mxu0 %v10973_v27  ;;  %v2719_v18 = vld [vmem:[#allocation3 + $0x3ca] sm:$0xff] }
 0x4f2   : > { %v7390_v3 = vmax.f32 %v7015_v58, 0.0  ;;  %v7018_v9 = vadd.f32 %v10890_v23, %v6627_v34  ;;  %v4821_v34 = vld [vmem:[#allocation2 + $0x410] sm:$0xff] }
 0x4f3   : > { %5730 = vmatmul.mubr.bf16.gmra.mrb[252].mxu0 %v10977_v55  ;;  %v4501_v22 = vmax.f32 %v4376_v6, 0.0  ;;  %v4377_v19 = vadd.f32 %v10774_v54, %v4248_v7  ;;  %8726 = vmatmul.mubr.bf16.gmra.mrb[104].mxu1 %v2902_v63  ;;  %v7391_v35 = vmax.f32 %v7016_v2, 0.0  ;;  %v7019_v29 = vadd.f32 %v10894_v50, %v6628_v47 }
 0x4f4   : > { %v7747_v14 = vmax.f32 %v7745_v52, %v7390_v3  ;;  %v7393_v21 = vmax.f32 %v7018_v9, 0.0  ;;  %8729 = vmatprep.mubr.msk.bf16.mxu1 %vm9226_vm1, %v12363_v30  ;;  %v2718_v52 = vld [vmem:[#allocation3 + $0x3c2] sm:$0xff] }
 0x4f5   : > { %v4502_v20 = vmax.f32 %v4377_v19, 0.0  ;;  %v7879_v4 = vmax.f32 %v7877_v53, %v7391_v35  ;;  %v7394_v33 = vmax.f32 %v7019_v29, 0.0  ;;  %v5471_v58 = vpop.f32.mrb[148].mxu0  ;;  %v4819_v53 = vld [vmem:[#allocation2 + $0x400] sm:$0xff]  ;;  %v2905_v35 = vpack.c.bf16 %v2719_v18, %v2718_v52 }
 0x4f6   : > { %v3941_v32 = vpop.f32.mrb[0].mxu1  ;;  %v7748_v11 = vmax.f32 %v7746_v42, %v7393_v21  ;;  %v6630_v6 = vmul.f32 %v10872_v26, %v5471_v58  ;;  %v5473_v7 = vpop.f32.mrb[149].mxu0  ;;  %v10997_v58 = vpack.c.bf16 %v4821_v34, %v4819_v53 }
 0x4f7   : > { %v4249_v63 = vmul.f32 %v10780_v43, %v3941_v32  ;;  %v8623_v2 = vpop.f32.mrb[1].mxu1  ;;  %v7880_v47 = vmax.f32 %v7878_v49, %v7394_v33  ;;  %v6631_v3 = vmul.f32 %v10875_v44, %v5473_v7  ;;  %v5475_v9 = vpop.f32.mrb[150].mxu0  ;;  %v10993_v55 = vpack.c.bf16 %v4502_v20, %v4501_v22 }
 0x4f8   : > { %v3944_v19 = vpop.f32.mrb[2].mxu1  ;;  %v7021_v29 = vadd.f32 %v10890_v23, %v6630_v6  ;;  %v6633_v42 = vmul.f32 %v10872_v26, %v5475_v9  ;;  %v5477_v21 = vpop.f32.mrb[151].mxu0  ;;  %12385 = vst [vmem:[#allocation43_spill] sm:$0xff] %v10997_v58 }
 0x4f9   : > { %12384 = vst [vmem:[#allocation42_spill] sm:$0xff] %v10993_v55  ;;  %v4378_v32 = vadd.f32 %v10774_v54, %v4249_v63  ;;  %v4250_v49 = vmul.f32 %v10780_v43, %v3944_v19  ;;  %v8624_v33 = vpop.f32.mrb[3].mxu1  ;;  %v7022_v7 = vadd.f32 %v10894_v50, %v6631_v3  ;;  %v6634_v22 = vmul.f32 %v10875_v44, %v5477_v21 }
 0x4fa   : > { %5739 = vmatprep.mubr.bf16.mxu0 %v10993_v55  ;;  %v7396_v20 = vmax.f32 %v7021_v29, 0.0  ;;  %v7024_v18 = vadd.f32 %v10890_v23, %v6633_v42  ;;  %v2721_v29 = vld [vmem:[#allocation3 + $0x3da] sm:$0xff] }
 0x4fb   : > { %5740 = vmatmul.mubr.bf16.gmra.mrb[0].mxu0 %v10997_v58  ;;  %v4503_v6 = vmax.f32 %v4378_v32, 0.0  ;;  %v4379_v34 = vadd.f32 %v10774_v54, %v4250_v49  ;;  %8730 = vmatmul.mubr.bf16.gmra.mrb[108].mxu1 %v2905_v35  ;;  %v7397_v2 = vmax.f32 %v7022_v7, 0.0  ;;  %v7025_v63 = vadd.f32 %v10894_v50, %v6634_v22  ;;  %v4825_v42 = vld [vmem:[#allocation2 + $0x430] sm:$0xff] }
 0x4fc   : > { %v7749_v52 = vmax.f32 %v7747_v14, %v7396_v20  ;;  %v7399_v9 = vmax.f32 %v7024_v18, 0.0  ;;  %8733 = vmatprep.mubr.msk.bf16.mxu1 %vm9226_vm1, %v12363_v30  ;;  %v2720_v14 = vld [vmem:[#allocation3 + $0x3d2] sm:$0xff] }
 0x4fd   : > { %v4504_v3 = vmax.f32 %v4379_v34, 0.0  ;;  %v7881_v53 = vmax.f32 %v7879_v4, %v7397_v2  ;;  %v7400_v19 = vmax.f32 %v7025_v63, 0.0  ;;  %v5481_v21 = vpop.f32.mrb[152].mxu0  ;;  %v4823_v4 = vld [vmem:[#allocation2 + $0x420] sm:$0xff]  ;;  %v9148_v34 = vld [vmem:[%s12244_s3 + $0x128] ss:$12 sps:$4 sm:$0xff]  }
 0x4fe   : > { %v3949_v33 = vpop.f32.mrb[4].mxu1  ;;  %v7750_v58 = vmax.f32 %v7748_v11, %v7399_v9  ;;  %v6636_v32 = vmul.f32 %v10872_v26, %v5481_v21  ;;  %v5483_v49 = vpop.f32.mrb[153].mxu0  ;;  %v2908_v11 = vpack.c.bf16 %v2721_v29, %v2720_v14  ;;  %6073 = vmatpush1.bf16.msra.mxu0 %v9148_v34 }
 0x4ff   : > { %v4251_v35 = vmul.f32 %v10780_v43, %v3949_v33  ;;  %v8627_v7 = vpop.f32.mrb[5].mxu1  ;;  %v7882_v22 = vmax.f32 %v7880_v47, %v7400_v19  ;;  %v6637_v20 = vmul.f32 %v10875_v44, %v5483_v49  ;;  %v5485_v18 = vpop.f32.mrb[154].mxu0  ;;  %v11013_v55 = vpack.c.bf16 %v4504_v3, %v4503_v6  ;;  %6074 = vmatprep.subr.bf16.mxu0 %v12366_v60 }
 0x500   : > { %v3952_v2 = vpop.f32.mrb[6].mxu1  ;;  %v7027_v63 = vadd.f32 %v10890_v23, %v6636_v32  ;;  %v6639_v9 = vmul.f32 %v10872_v26, %v5485_v18  ;;  %v5487_v21 = vpop.f32.mrb[155].mxu0  ;;  %v11020_v33 = vpack.c.bf16 %v4825_v42, %v4823_v4 }
 0x501   : > { %12386 = vst [vmem:[#allocation44_spill] sm:$0xff] %v11013_v55  ;;  %v4380_v47 = vadd.f32 %v10774_v54, %v4251_v35  ;;  %v4252_v19 = vmul.f32 %v10780_v43, %v3952_v2  ;;  %v8628_v6 = vpop.f32.mrb[7].mxu1  ;;  %v7028_v3 = vadd.f32 %v10894_v50, %v6637_v20  ;;  %v6640_v49 = vmul.f32 %v10875_v44, %v5487_v21 }
 0x502   : > { %12387 = vst [vmem:[#allocation45_spill] sm:$0xff] %v11020_v33  ;;  %5749 = vmatprep.mubr.bf16.mxu0 %v11013_v55  ;;  %v7402_v7 = vmax.f32 %v7027_v63, 0.0  ;;  %v7030_v29 = vadd.f32 %v10890_v23, %v6639_v9  ;;  %v2722_v9 = vld [vmem:[#allocation3 + $0x3e2] sm:$0x1f] }
 0x503   : > { %5750 = vmatmul.mubr.bf16.gmra.mrb[4].mxu0 %v11020_v33  ;;  %v4505_v32 = vmax.f32 %v4380_v47, 0.0  ;;  %v4381_v42 = vadd.f32 %v10774_v54, %v4252_v19  ;;  %8734 = vmatmul.mubr.bf16.gmra.mrb[112].mxu1 %v2908_v11  ;;  %v7403_v14 = vmax.f32 %v7028_v3, 0.0  ;;  %v7031_v35 = vadd.f32 %v10894_v50, %v6640_v49  ;;  %v4829_v47 = vld [vmem:[#allocation2 + $0x450] sm:$0xff] }
 0x504   : > { %v7751_v18 = vmax.f32 %v7749_v52, %v7402_v7  ;;  %v7405_v4 = vmax.f32 %v7030_v29, 0.0  ;;  %8737 = vmatprep.mubr.msk.bf16.mxu1 %vm9226_vm1, %v12363_v30 }
 0x505   : > { %v4506_v20 = vmax.f32 %v4381_v42, 0.0  ;;  %v7883_v2 = vmax.f32 %v7881_v53, %v7403_v14  ;;  %v7406_v63 = vmax.f32 %v7031_v35, 0.0  ;;  %v5491_v21 = vpop.f32.mrb[156].mxu0  ;;  %v4827_v42 = vld [vmem:[#allocation2 + $0x440] sm:$0xff]  ;;  %v2911_v14 = vpack.c.bf16 %v2722_v9, %v2722_v9 }
 0x506   : > { %v3957_v6 = vpop.f32.mrb[8].mxu1  ;;  %v7752_v19 = vmax.f32 %v7750_v58, %v7405_v4  ;;  %v6642_v11 = vmul.f32 %v10872_v26, %v5491_v21  ;;  %v5493_v3 = vpop.f32.mrb[157].mxu0  ;;  %v11041_v4 = vpack.c.bf16 %v4829_v47, %v4827_v42 }
 0x507   : > { %v4253_v34 = vmul.f32 %v10780_v43, %v3957_v6  ;;  %v8631_v52 = vpop.f32.mrb[9].mxu1  ;;  %v7884_v49 = vmax.f32 %v7882_v22, %v7406_v63  ;;  %v6643_v7 = vmul.f32 %v10875_v44, %v5493_v3  ;;  %v5495_v30 = vpop.f32.mrb[158].mxu0  ;;  %v11037_v29 = vpack.c.bf16 %v4506_v20, %v4505_v32 }
 0x508   : > { %v3960_v53 = vpop.f32.mrb[10].mxu1  ;;  %v7033_v35 = vadd.f32 %v10890_v23, %v6642_v11  ;;  %v6645_v33 = vmul.f32 %v10872_v26, %v5495_v30  ;;  %v5497_v58 = vpop.f32.mrb[159].mxu0  ;;  %12389 = vst [vmem:[#allocation47_spill] sm:$0xff] %v11041_v4 }
 0x509   : > { %12388 = vst [vmem:[#allocation46_spill] sm:$0xff] %v11037_v29  ;;  %v4382_v21 = vadd.f32 %v10774_v54, %v4253_v34  ;;  %v4254_v6 = vmul.f32 %v10780_v43, %v3960_v53  ;;  %v8632_v22 = vpop.f32.mrb[11].mxu1  ;;  %v7034_v63 = vadd.f32 %v10894_v50, %v6643_v7  ;;  %v6646_v32 = vmul.f32 %v10875_v44, %v5497_v58 }
 0x50a   : > { %5759 = vmatprep.mubr.bf16.mxu0 %v11037_v29  ;;  %v7408_v20 = vmax.f32 %v7033_v35, 0.0  ;;  %v7036_v9 = vadd.f32 %v10890_v23, %v6645_v33  ;;  %v4833_v22 = vld [vmem:[#allocation2 + $0x470] sm:$0xff] }
 0x50b   : > { %5760 = vmatmul.mubr.bf16.gmra.mrb[8].mxu0 %v11041_v4  ;;  %v4507_v11 = vmax.f32 %v4382_v21, 0.0  ;;  %v4383_v47 = vadd.f32 %v10774_v54, %v4254_v6  ;;  %8738 = vmatmul.mubr.bf16.gmra.mrb[116].mxu1 %v2911_v14  ;;  %v7409_v3 = vmax.f32 %v7034_v63, 0.0  ;;  %v7037_v34 = vadd.f32 %v10894_v50, %v6646_v32 }
 0x50c   : > { %v7753_v52 = vmax.f32 %v7751_v18, %v7408_v20  ;;  %v7411_v30 = vmax.f32 %v7036_v9, 0.0  ;;  %v4831_v18 = vld [vmem:[#allocation2 + $0x460] sm:$0xff] }
 0x50d   : > { %v4508_v42 = vmax.f32 %v4383_v47, 0.0  ;;  %v7885_v7 = vmax.f32 %v7883_v2, %v7409_v3  ;;  %v7412_v53 = vmax.f32 %v7037_v34, 0.0  ;;  %v5501_v58 = vpop.f32.mrb[160].mxu0 }
 0x50e   : > { %v3965_v29 = vpop.f32.mrb[12].mxu1  ;;  %v7754_v35 = vmax.f32 %v7752_v19, %v7411_v30  ;;  %v6648_v33 = vmul.f32 %v10872_v26, %v5501_v58  ;;  %v5503_v55 = vpop.f32.mrb[161].mxu0  ;;  %v11059_v19 = vpack.c.bf16 %v4833_v22, %v4831_v18 }
 0x50f   : > { %v4255_v21 = vmul.f32 %v10780_v43, %v3965_v29  ;;  %v8635_v4 = vpop.f32.mrb[13].mxu1  ;;  %v7886_v54 = vmax.f32 %v7884_v49, %v7412_v53  ;;  %v6649_v14 = vmul.f32 %v10875_v44, %v5503_v55  ;;  %v5505_v6 = vpop.f32.mrb[162].mxu0  ;;  %v11055_v63 = vpack.c.bf16 %v4508_v42, %v4507_v11  ;;  %v11064_v43 = vld [vmem:[%s12245_s4 + $0x7] ss:$0 sm:$0xff]  ;;  %v11070_v55 = vld [vmem:[%s12245_s4 + $0x6] ss:$0 sm:$0xff] }
 0x510   : > { %v3968_v32 = vpop.f32.mrb[14].mxu1  ;;  %v7039_v2 = vadd.f32 %v10890_v23, %v6648_v33  ;;  %v6651_v20 = vmul.f32 %v10872_v26, %v5505_v6  ;;  %v5507_v9 = vpop.f32.mrb[163].mxu0  ;;  %12391 = vst [vmem:[#allocation49_spill] sm:$0xff] %v11059_v19 }
 0x511   : > { %12390 = vst [vmem:[#allocation48_spill] sm:$0xff] %v11055_v63  ;;  %v4384_v49 = vadd.f32 %v11064_v43, %v4255_v21  ;;  %v4256_v29 = vmul.f32 %v11070_v55, %v3968_v32  ;;  %v8636_v4 = vpop.f32.mrb[15].mxu1  ;;  %v7040_v11 = vadd.f32 %v10894_v50, %v6649_v14  ;;  %v6652_v47 = vmul.f32 %v10875_v44, %v5507_v9  ;;  %v4837_v32 = vld [vmem:[#allocation2 + $0x490] sm:$0xff] }
 0x512   : > { %5769 = vmatprep.mubr.bf16.mxu0 %v11055_v63  ;;  %v7414_v3 = vmax.f32 %v7039_v2, 0.0  ;;  %v7042_v34 = vadd.f32 %v10890_v23, %v6651_v20 }
 0x513   : > { %5770 = vmatmul.mubr.bf16.gmra.mrb[12].mxu0 %v11059_v19  ;;  %v4509_v30 = vmax.f32 %v4384_v49, 0.0  ;;  %v4385_v42 = vadd.f32 %v11064_v43, %v4256_v29  ;;  %v7415_v53 = vmax.f32 %v7040_v11, 0.0  ;;  %v7043_v58 = vadd.f32 %v10894_v50, %v6652_v47 }
 0x514   : > { %v7755_v22 = vmax.f32 %v7753_v52, %v7414_v3  ;;  %v7417_v33 = vmax.f32 %v7042_v34, 0.0  ;;  %v4835_v52 = vld [vmem:[#allocation2 + $0x480] sm:$0xff] }
 0x515   : > { %v4510_v21 = vmax.f32 %v4385_v42, 0.0  ;;  %v7887_v6 = vmax.f32 %v7885_v7, %v7415_v53  ;;  %v7418_v14 = vmax.f32 %v7043_v58, 0.0  ;;  %v5511_v18 = vpop.f32.mrb[164].mxu0 }
 0x516   : > { %v3973_v9 = vpop.f32.mrb[16].mxu1  ;;  %v7756_v4 = vmax.f32 %v7754_v35, %v7417_v33  ;;  %v6654_v2 = vmul.f32 %v10872_v26, %v5511_v18  ;;  %v5513_v20 = vpop.f32.mrb[165].mxu0  ;;  %v11087_v35 = vpack.c.bf16 %v4837_v32, %v4835_v52 }
 0x517   : > { %v4257_v19 = vmul.f32 %v11070_v55, %v3973_v9  ;;  %v8639_v49 = vpop.f32.mrb[17].mxu1  ;;  %v7888_v63 = vmax.f32 %v7886_v54, %v7418_v14  ;;  %v6655_v29 = vmul.f32 %v10875_v44, %v5513_v20  ;;  %v5515_v11 = vpop.f32.mrb[166].mxu0  ;;  %v11083_v47 = vpack.c.bf16 %v4510_v21, %v4509_v30 }
 0x518   : > { %v3976_v3 = vpop.f32.mrb[18].mxu1  ;;  %v7045_v7 = vadd.f32 %v10890_v23, %v6654_v2  ;;  %v6657_v34 = vmul.f32 %v10872_v26, %v5515_v11  ;;  %v5517_v42 = vpop.f32.mrb[167].mxu0  ;;  %12393 = vst [vmem:[#allocation51_spill] sm:$0xff] %v11087_v35 }
 0x519   : > { %12392 = vst [vmem:[#allocation50_spill] sm:$0xff] %v11083_v47  ;;  %v4386_v53 = vadd.f32 %v11064_v43, %v4257_v19  ;;  %v4258_v58 = vmul.f32 %v11070_v55, %v3976_v3  ;;  %v8640_v33 = vpop.f32.mrb[19].mxu1  ;;  %v7046_v54 = vadd.f32 %v10894_v50, %v6655_v29  ;;  %v6658_v14 = vmul.f32 %v10875_v44, %v5517_v42  ;;  %v4841_v3 = vld [vmem:[#allocation2 + $0x4b0] sm:$0xff] }
 0x51a   : > { %5779 = vmatprep.mubr.bf16.mxu0 %v11083_v47  ;;  %v7420_v30 = vmax.f32 %v7045_v7, 0.0  ;;  %v7048_v21 = vadd.f32 %v10890_v23, %v6657_v34 }
 0x51b   : > { %5780 = vmatmul.mubr.bf16.gmra.mrb[16].mxu0 %v11087_v35  ;;  %v4511_v18 = vmax.f32 %v4386_v53, 0.0  ;;  %v4387_v32 = vadd.f32 %v11064_v43, %v4258_v58  ;;  %v7421_v9 = vmax.f32 %v7046_v54, 0.0  ;;  %v7049_v19 = vadd.f32 %v10894_v50, %v6658_v14 }
 0x51c   : > { %v7757_v2 = vmax.f32 %v7755_v22, %v7420_v30  ;;  %v7423_v20 = vmax.f32 %v7048_v21, 0.0  ;;  %v4839_v22 = vld [vmem:[#allocation2 + $0x4a0] sm:$0xff] }
 0x51d   : > { %v4512_v49 = vmax.f32 %v4387_v32, 0.0  ;;  %v7889_v11 = vmax.f32 %v7887_v6, %v7421_v9  ;;  %v7424_v29 = vmax.f32 %v7049_v19, 0.0  ;;  %v5521_v52 = vpop.f32.mrb[168].mxu0  ;;  %v9149_v6 = vld [vmem:[%s12244_s3 + $0x140] ss:$12 sps:$4 sm:$0xff]   ;;  %v11108_v9 = vpack.c.bf16 %v4841_v3, %v4839_v22 }
 0x51e   : > { %v3981_v42 = vpop.f32.mrb[20].mxu1  ;;  %v7758_v33 = vmax.f32 %v7756_v4, %v7423_v20  ;;  %v6660_v7 = vmul.f32 %v10872_v26, %v5521_v52  ;;  %v5523_v34 = vpop.f32.mrb[169].mxu0  ;;  %6075 = vmatpush1.bf16.msra.mxu0 %v9149_v6 }
 0x51f   : > { %v4259_v35 = vmul.f32 %v11070_v55, %v3981_v42  ;;  %v8643_v53 = vpop.f32.mrb[21].mxu1  ;;  %v7890_v47 = vmax.f32 %v7888_v63, %v7424_v29  ;;  %v6661_v58 = vmul.f32 %v10875_v44, %v5523_v34  ;;  %v5525_v54 = vpop.f32.mrb[170].mxu0  ;;  %v11101_v14 = vpack.c.bf16 %v4512_v49, %v4511_v18  ;;  %12395 = vst [vmem:[#allocation53_spill] sm:$0xff] %v11108_v9 }
 0x520   : > { %v3984_v30 = vpop.f32.mrb[22].mxu1  ;;  %v7051_v4 = vadd.f32 %v10890_v23, %v6660_v7  ;;  %v6663_v21 = vmul.f32 %v10872_v26, %v5525_v54  ;;  %v5527_v32 = vpop.f32.mrb[171].mxu0  ;;  %6076 = vmatprep.subr.bf16.mxu0 %v12366_v60 }
 0x521   : > { %12394 = vst [vmem:[#allocation52_spill] sm:$0xff] %v11101_v14  ;;  %v4388_v63 = vadd.f32 %v11064_v43, %v4259_v35  ;;  %v4260_v19 = vmul.f32 %v11070_v55, %v3984_v30  ;;  %v8644_v20 = vpop.f32.mrb[23].mxu1  ;;  %v7052_v18 = vadd.f32 %v10894_v50, %v6661_v58  ;;  %v6664_v49 = vmul.f32 %v10875_v44, %v5527_v32 }
 0x522   : > { %5789 = vmatprep.mubr.bf16.mxu0 %v11101_v14  ;;  %v7426_v29 = vmax.f32 %v7051_v4, 0.0  ;;  %v7054_v52 = vadd.f32 %v10890_v23, %v6663_v21  ;;  %v4845_v4 = vld [vmem:[#allocation2 + $0x4d0] sm:$0xff] }
 0x523   : > { %5790 = vmatmul.mubr.bf16.gmra.mrb[20].mxu0 %v11108_v9  ;;  %v4513_v42 = vmax.f32 %v4388_v63, 0.0  ;;  %v4389_v3 = vadd.f32 %v11064_v43, %v4260_v19  ;;  %v7427_v7 = vmax.f32 %v7052_v18, 0.0  ;;  %v7055_v35 = vadd.f32 %v10894_v50, %v6664_v49 }
 0x524   : > { %v7759_v34 = vmax.f32 %v7757_v2, %v7426_v29  ;;  %v7429_v53 = vmax.f32 %v7054_v52, 0.0  ;;  %v4843_v29 = vld [vmem:[#allocation2 + $0x4c0] sm:$0xff] }
 0x525   : > { %v4514_v58 = vmax.f32 %v4389_v3, 0.0  ;;  %v7891_v54 = vmax.f32 %v7889_v11, %v7427_v7  ;;  %v7430_v22 = vmax.f32 %v7055_v35, 0.0  ;;  %v5531_v30 = vpop.f32.mrb[172].mxu0 }
 0x526   : > { %v3989_v32 = vpop.f32.mrb[24].mxu1  ;;  %v7760_v21 = vmax.f32 %v7758_v33, %v7429_v53  ;;  %v6666_v20 = vmul.f32 %v10872_v26, %v5531_v30  ;;  %v5533_v63 = vpop.f32.mrb[173].mxu0  ;;  %v11127_v33 = vpack.c.bf16 %v4845_v4, %v4843_v29 }
 0x527   : > { %v4261_v19 = vmul.f32 %v11070_v55, %v3989_v32  ;;  %v8647_v18 = vpop.f32.mrb[25].mxu1  ;;  %v7892_v9 = vmax.f32 %v7890_v47, %v7430_v22  ;;  %v6667_v6 = vmul.f32 %v10875_v44, %v5533_v63  ;;  %v5535_v2 = vpop.f32.mrb[174].mxu0  ;;  %v11123_v49 = vpack.c.bf16 %v4514_v58, %v4513_v42 }
 0x528   : > { %v3992_v52 = vpop.f32.mrb[26].mxu1  ;;  %v7057_v11 = vadd.f32 %v10890_v23, %v6666_v20  ;;  %v6669_v3 = vmul.f32 %v10872_v26, %v5535_v2  ;;  %v5537_v7 = vpop.f32.mrb[175].mxu0  ;;  %12397 = vst [vmem:[#allocation55_spill] sm:$0xff] %v11127_v33 }
 0x529   : > { %12396 = vst [vmem:[#allocation54_spill] sm:$0xff] %v11123_v49  ;;  %v4390_v35 = vadd.f32 %v11064_v43, %v4261_v19  ;;  %v4262_v53 = vmul.f32 %v11070_v55, %v3992_v52  ;;  %v8648_v30 = vpop.f32.mrb[27].mxu1  ;;  %v7058_v47 = vadd.f32 %v10894_v50, %v6667_v6  ;;  %v6670_v22 = vmul.f32 %v10875_v44, %v5537_v7  ;;  %v4849_v7 = vld [vmem:[#allocation2 + $0x4f0] sm:$0xff] }
 0x52a   : > { %5799 = vmatprep.mubr.bf16.mxu0 %v11123_v49  ;;  %v7432_v42 = vmax.f32 %v7057_v11, 0.0  ;;  %v7060_v58 = vadd.f32 %v10890_v23, %v6669_v3 }
 0x52b   : > { %5800 = vmatmul.mubr.bf16.gmra.mrb[24].mxu0 %v11127_v33  ;;  %v4515_v32 = vmax.f32 %v4390_v35, 0.0  ;;  %v4391_v4 = vadd.f32 %v11064_v43, %v4262_v53  ;;  %v7433_v20 = vmax.f32 %v7058_v47, 0.0  ;;  %v7061_v63 = vadd.f32 %v10894_v50, %v6670_v22 }
 0x52c   : > { %v7761_v19 = vmax.f32 %v7759_v34, %v7432_v42  ;;  %v7435_v18 = vmax.f32 %v7060_v58, 0.0  ;;  %v4847_v34 = vld [vmem:[#allocation2 + $0x4e0] sm:$0xff] }
 0x52d   : > { %v4516_v2 = vmax.f32 %v4391_v4, 0.0  ;;  %v7893_v29 = vmax.f32 %v7891_v54, %v7433_v20  ;;  %v7436_v6 = vmax.f32 %v7061_v63, 0.0  ;;  %v5541_v52 = vpop.f32.mrb[176].mxu0 }
 0x52e   : > { %v3997_v30 = vpop.f32.mrb[28].mxu1  ;;  %v7762_v49 = vmax.f32 %v7760_v21, %v7435_v18  ;;  %v6672_v11 = vmul.f32 %v10872_v26, %v5541_v52  ;;  %v5543_v3 = vpop.f32.mrb[177].mxu0  ;;  %v11145_v21 = vpack.c.bf16 %v4849_v7, %v4847_v34 }
 0x52f   : > { %v4263_v33 = vmul.f32 %v11070_v55, %v3997_v30  ;;  %v8651_v35 = vpop.f32.mrb[29].mxu1  ;;  %v7894_v14 = vmax.f32 %v7892_v9, %v7436_v6  ;;  %v6673_v53 = vmul.f32 %v10875_v44, %v5543_v3  ;;  %v5545_v47 = vpop.f32.mrb[178].mxu0  ;;  %v11141_v22 = vpack.c.bf16 %v4516_v2, %v4515_v32 }
 0x530   : > { %v4000_v42 = vpop.f32.mrb[30].mxu1  ;;  %v7063_v54 = vadd.f32 %v10890_v23, %v6672_v11  ;;  %v6675_v58 = vmul.f32 %v10872_v26, %v5545_v47  ;;  %v5547_v4 = vpop.f32.mrb[179].mxu0  ;;  %12399 = vst [vmem:[#allocation57_spill] sm:$0xff] %v11145_v21 }
 0x531   : > { %12398 = vst [vmem:[#allocation56_spill] sm:$0xff] %v11141_v22  ;;  %v4392_v20 = vadd.f32 %v11064_v43, %v4263_v33  ;;  %v4264_v63 = vmul.f32 %v11070_v55, %v4000_v42  ;;  %v8652_v18 = vpop.f32.mrb[31].mxu1  ;;  %v7064_v9 = vadd.f32 %v10894_v50, %v6673_v53  ;;  %v6676_v6 = vmul.f32 %v10875_v44, %v5547_v4  ;;  %v4853_v42 = vld [vmem:[#allocation2 + $0x510] sm:$0xff] }
 0x532   : > { %5809 = vmatprep.mubr.bf16.mxu0 %v11141_v22  ;;  %v7438_v32 = vmax.f32 %v7063_v54, 0.0  ;;  %v7066_v2 = vadd.f32 %v10890_v23, %v6675_v58 }
 0x533   : > { %5810 = vmatmul.mubr.bf16.gmra.mrb[28].mxu0 %v11145_v21  ;;  %v4517_v52 = vmax.f32 %v4392_v20, 0.0  ;;  %v4393_v7 = vadd.f32 %v11064_v43, %v4264_v63  ;;  %v7439_v30 = vmax.f32 %v7064_v9, 0.0  ;;  %v7067_v33 = vadd.f32 %v10894_v50, %v6676_v6 }
 0x534   : > { %v7763_v11 = vmax.f32 %v7761_v19, %v7438_v32  ;;  %v7441_v3 = vmax.f32 %v7066_v2, 0.0  ;;  %v4851_v19 = vld [vmem:[#allocation2 + $0x500] sm:$0xff] }
 0x535   : > { %v4518_v35 = vmax.f32 %v4393_v7, 0.0  ;;  %v7895_v47 = vmax.f32 %v7893_v29, %v7439_v30  ;;  %v7442_v53 = vmax.f32 %v7067_v33, 0.0  ;;  %v5551_v34 = vpop.f32.mrb[180].mxu0 }
 0x536   : > { %v4005_v4 = vpop.f32.mrb[32].mxu1  ;;  %v7764_v18 = vmax.f32 %v7762_v49, %v7441_v3  ;;  %v6678_v54 = vmul.f32 %v10872_v26, %v5551_v34  ;;  %v5553_v58 = vpop.f32.mrb[181].mxu0  ;;  %v11163_v49 = vpack.c.bf16 %v4853_v42, %v4851_v19 }
 0x537   : > { %v4265_v21 = vmul.f32 %v11070_v55, %v4005_v4  ;;  %v8655_v20 = vpop.f32.mrb[33].mxu1  ;;  %v7896_v22 = vmax.f32 %v7894_v14, %v7442_v53  ;;  %v6679_v63 = vmul.f32 %v10875_v44, %v5553_v58  ;;  %v5555_v9 = vpop.f32.mrb[182].mxu0  ;;  %v11159_v6 = vpack.c.bf16 %v4518_v35, %v4517_v52 }
 0x538   : > { %v4008_v32 = vpop.f32.mrb[34].mxu1  ;;  %v7069_v29 = vadd.f32 %v10890_v23, %v6678_v54  ;;  %v6681_v2 = vmul.f32 %v10872_v26, %v5555_v9  ;;  %v5557_v7 = vpop.f32.mrb[183].mxu0  ;;  %12401 = vst [vmem:[#allocation59_spill] sm:$0xff] %v11163_v49 }
 0x539   : > { %12400 = vst [vmem:[#allocation58_spill] sm:$0xff] %v11159_v6  ;;  %v4394_v30 = vadd.f32 %v11064_v43, %v4265_v21  ;;  %v4266_v33 = vmul.f32 %v11070_v55, %v4008_v32  ;;  %v8656_v3 = vpop.f32.mrb[35].mxu1  ;;  %v7070_v14 = vadd.f32 %v10894_v50, %v6679_v63  ;;  %v6682_v53 = vmul.f32 %v10875_v44, %v5557_v7  ;;  %v4857_v32 = vld [vmem:[#allocation2 + $0x530] sm:$0xff] }
 0x53a   : > { %5819 = vmatprep.mubr.bf16.mxu0 %v11159_v6  ;;  %v7444_v52 = vmax.f32 %v7069_v29, 0.0  ;;  %v7072_v35 = vadd.f32 %v10890_v23, %v6681_v2 }
 0x53b   : > { %5820 = vmatmul.mubr.bf16.gmra.mrb[32].mxu0 %v11163_v49  ;;  %v4519_v34 = vmax.f32 %v4394_v30, 0.0  ;;  %v4395_v42 = vadd.f32 %v11064_v43, %v4266_v33  ;;  %v7445_v4 = vmax.f32 %v7070_v14, 0.0  ;;  %v7073_v21 = vadd.f32 %v10894_v50, %v6682_v53 }
 0x53c   : > { %v7765_v54 = vmax.f32 %v7763_v11, %v7444_v52  ;;  %v7447_v58 = vmax.f32 %v7072_v35, 0.0  ;;  %v4855_v11 = vld [vmem:[#allocation2 + $0x520] sm:$0xff] }
 0x53d   : > { %v4520_v20 = vmax.f32 %v4395_v42, 0.0  ;;  %v7897_v9 = vmax.f32 %v7895_v47, %v7445_v4  ;;  %v7448_v63 = vmax.f32 %v7073_v21, 0.0  ;;  %v5561_v19 = vpop.f32.mrb[184].mxu0  ;;  %v9150_v47 = vld [vmem:[%s12244_s3 + $0x158] ss:$12 sps:$4 sm:$0xff]   ;;  %v11184_v4 = vpack.c.bf16 %v4857_v32, %v4855_v11 }
 0x53e   : > { %v4013_v7 = vpop.f32.mrb[36].mxu1  ;;  %v7766_v3 = vmax.f32 %v7764_v18, %v7447_v58  ;;  %v6684_v29 = vmul.f32 %v10872_v26, %v5561_v19  ;;  %v5563_v2 = vpop.f32.mrb[185].mxu0  ;;  %6077 = vmatpush1.bf16.msra.mxu0 %v9150_v47 }
 0x53f   : > { %v4267_v49 = vmul.f32 %v11070_v55, %v4013_v7  ;;  %v8659_v30 = vpop.f32.mrb[37].mxu1  ;;  %v7898_v6 = vmax.f32 %v7896_v22, %v7448_v63  ;;  %v6685_v33 = vmul.f32 %v10875_v44, %v5563_v2  ;;  %v5565_v14 = vpop.f32.mrb[186].mxu0  ;;  %v11177_v53 = vpack.c.bf16 %v4520_v20, %v4519_v34  ;;  %12402 = vst [vmem:[#allocation60_spill] sm:$0xff] %v11184_v4 }
 0x540   : > { %v4016_v52 = vpop.f32.mrb[38].mxu1  ;;  %v7075_v18 = vadd.f32 %v10890_v23, %v6684_v29  ;;  %v6687_v35 = vmul.f32 %v10872_v26, %v5565_v14  ;;  %v5567_v42 = vpop.f32.mrb[187].mxu0  ;;  %6078 = vmatprep.subr.bf16.mxu0 %v12366_v60  ;;  %v4859_v60 = vld [vmem:[#allocation2 + $0x540] sm:$0xff] }
 0x541   : > { %v4396_v22 = vadd.f32 %v11064_v43, %v4267_v49  ;;  %v4268_v21 = vmul.f32 %v11070_v55, %v4016_v52  ;;  %v8660_v58 = vpop.f32.mrb[39].mxu1  ;;  %v7076_v34 = vadd.f32 %v10894_v50, %v6685_v33  ;;  %v6688_v20 = vmul.f32 %v10875_v44, %v5567_v42  ;;  %5829 = vmatprep.mubr.bf16.mxu0 %v11177_v53 }
 0x542   : > { %v7450_v63 = vmax.f32 %v7075_v18, 0.0  ;;  %v7078_v19 = vadd.f32 %v10890_v23, %v6687_v35  ;;  %v4861_v18 = vld [vmem:[#allocation2 + $0x550] sm:$0xff] }
 0x543   : > { %5830 = vmatmul.mubr.bf16.gmra.mrb[36].mxu0 %v11184_v4  ;;  %v4521_v7 = vmax.f32 %v4396_v22, 0.0  ;;  %v4397_v32 = vadd.f32 %v11064_v43, %v4268_v21  ;;  %v7451_v29 = vmax.f32 %v7076_v34, 0.0  ;;  %v7079_v49 = vadd.f32 %v10894_v50, %v6688_v20 }
 0x544   : > { %v7767_v2 = vmax.f32 %v7765_v54, %v7450_v63  ;;  %v7453_v30 = vmax.f32 %v7078_v19, 0.0 }
 0x545   : > { %v4522_v33 = vmax.f32 %v4397_v32, 0.0  ;;  %v7899_v14 = vmax.f32 %v7897_v9, %v7451_v29  ;;  %v7454_v11 = vmax.f32 %v7079_v49, 0.0  ;;  %v5571_v52 = vpop.f32.mrb[188].mxu0 }
 0x546   : > { %v4021_v42 = vpop.f32.mrb[40].mxu1  ;;  %v7768_v35 = vmax.f32 %v7766_v3, %v7453_v30  ;;  %v6690_v58 = vmul.f32 %v10872_v26, %v5571_v52  ;;  %v5573_v22 = vpop.f32.mrb[189].mxu0  ;;  %v11203_v3 = vpack.c.bf16 %v4861_v18, %v4859_v60 }
 0x547   : > { %v4269_v21 = vmul.f32 %v11070_v55, %v4021_v42  ;;  %v8663_v34 = vpop.f32.mrb[41].mxu1  ;;  %v7900_v4 = vmax.f32 %v7898_v6, %v7454_v11  ;;  %v6691_v47 = vmul.f32 %v10875_v44, %v5573_v22  ;;  %v5575_v54 = vpop.f32.mrb[190].mxu0  ;;  %v11199_v20 = vpack.c.bf16 %v4522_v33, %v4521_v7 }
 0x548   : > { %v4024_v63 = vpop.f32.mrb[42].mxu1  ;;  %v7081_v9 = vadd.f32 %v10890_v23, %v6690_v58  ;;  %v6693_v19 = vmul.f32 %v10872_v26, %v5575_v54  ;;  %v5577_v32 = vpop.f32.mrb[191].mxu0  ;;  %12404 = vst [vmem:[#allocation62_spill] sm:$0xff] %v11203_v3 }
 0x549   : > { %12403 = vst [vmem:[#allocation61_spill] sm:$0xff] %v11199_v20  ;;  %v4398_v29 = vadd.f32 %v11064_v43, %v4269_v21  ;;  %v4270_v49 = vmul.f32 %v11070_v55, %v4024_v63  ;;  %v8664_v30 = vpop.f32.mrb[43].mxu1  ;;  %v7082_v6 = vadd.f32 %v10894_v50, %v6691_v47  ;;  %v6694_v11 = vmul.f32 %v10875_v44, %v5577_v32  ;;  %v4865_v63 = vld [vmem:[#allocation2 + $0x570] sm:$0xff] }
 0x54a   : > { %5839 = vmatprep.mubr.bf16.mxu0 %v11199_v20  ;;  %v7456_v7 = vmax.f32 %v7081_v9, 0.0  ;;  %v7084_v33 = vadd.f32 %v10890_v23, %v6693_v19 }
 0x54b   : > { %5840 = vmatmul.mubr.bf16.gmra.mrb[40].mxu0 %v11203_v3  ;;  %v4523_v52 = vmax.f32 %v4398_v29, 0.0  ;;  %v4399_v18 = vadd.f32 %v11064_v43, %v4270_v49  ;;  %v7457_v42 = vmax.f32 %v7082_v6, 0.0  ;;  %v7085_v58 = vadd.f32 %v10894_v50, %v6694_v11 }
 0x54c   : > { %v7769_v22 = vmax.f32 %v7767_v2, %v7456_v7  ;;  %v7459_v21 = vmax.f32 %v7084_v33, 0.0  ;;  %v4863_v2 = vld [vmem:[#allocation2 + $0x560] sm:$0xff] }
 0x54d   : > { %v4524_v34 = vmax.f32 %v4399_v18, 0.0  ;;  %v7901_v54 = vmax.f32 %v7899_v14, %v7457_v42  ;;  %v7460_v47 = vmax.f32 %v7085_v58, 0.0  ;;  %v5581_v60 = vpop.f32.mrb[192].mxu0 }
 0x54e   : > { %v4029_v32 = vpop.f32.mrb[44].mxu1  ;;  %v7770_v30 = vmax.f32 %v7768_v35, %v7459_v21  ;;  %v6696_v9 = vmul.f32 %v10872_v26, %v5581_v60  ;;  %v5583_v19 = vpop.f32.mrb[193].mxu0  ;;  %v11221_v35 = vpack.c.bf16 %v4865_v63, %v4863_v2 }
 0x54f   : > { %v4271_v3 = vmul.f32 %v11070_v55, %v4029_v32  ;;  %v8667_v29 = vpop.f32.mrb[45].mxu1  ;;  %v7902_v20 = vmax.f32 %v7900_v4, %v7460_v47  ;;  %v6697_v49 = vmul.f32 %v10875_v44, %v5583_v19  ;;  %v5585_v6 = vpop.f32.mrb[194].mxu0  ;;  %v11217_v11 = vpack.c.bf16 %v4524_v34, %v4523_v52 }
 0x550   : > { %v4032_v7 = vpop.f32.mrb[46].mxu1  ;;  %v7087_v14 = vadd.f32 %v10890_v23, %v6696_v9  ;;  %v6699_v33 = vmul.f32 %v10872_v26, %v5585_v6  ;;  %v5587_v18 = vpop.f32.mrb[195].mxu0  ;;  %12406 = vst [vmem:[#allocation64_spill] sm:$0xff] %v11221_v35 }
 0x551   : > { %12405 = vst [vmem:[#allocation63_spill] sm:$0xff] %v11217_v11  ;;  %v4400_v42 = vadd.f32 %v11064_v43, %v4271_v3  ;;  %v4272_v58 = vmul.f32 %v11070_v55, %v4032_v7  ;;  %v8668_v21 = vpop.f32.mrb[47].mxu1  ;;  %v7088_v4 = vadd.f32 %v10894_v50, %v6697_v49  ;;  %v6700_v47 = vmul.f32 %v10875_v44, %v5587_v18  ;;  %v4869_v7 = vld [vmem:[#allocation2 + $0x590] sm:$0xff] }
 0x552   : > { %5849 = vmatprep.mubr.bf16.mxu0 %v11217_v11  ;;  %v7462_v52 = vmax.f32 %v7087_v14, 0.0  ;;  %v7090_v34 = vadd.f32 %v10890_v23, %v6699_v33 }
 0x553   : > { %5850 = vmatmul.mubr.bf16.gmra.mrb[44].mxu0 %v11221_v35  ;;  %v4525_v60 = vmax.f32 %v4400_v42, 0.0  ;;  %v4401_v63 = vadd.f32 %v11064_v43, %v4272_v58  ;;  %v7463_v32 = vmax.f32 %v7088_v4, 0.0  ;;  %v7091_v3 = vadd.f32 %v10894_v50, %v6700_v47 }
 0x554   : > { %v7771_v9 = vmax.f32 %v7769_v22, %v7462_v52  ;;  %v7465_v19 = vmax.f32 %v7090_v34, 0.0  ;;  %v4867_v22 = vld [vmem:[#allocation2 + $0x580] sm:$0xff] }
 0x555   : > { %v4526_v29 = vmax.f32 %v4401_v63, 0.0  ;;  %v7903_v6 = vmax.f32 %v7901_v54, %v7463_v32  ;;  %v7466_v49 = vmax.f32 %v7091_v3, 0.0  ;;  %v5591_v2 = vpop.f32.mrb[196].mxu0 }
 0x556   : > { %v4037_v18 = vpop.f32.mrb[48].mxu1  ;;  %v7772_v21 = vmax.f32 %v7770_v30, %v7465_v19  ;;  %v6702_v14 = vmul.f32 %v10872_v26, %v5591_v2  ;;  %v5593_v33 = vpop.f32.mrb[197].mxu0  ;;  %v11239_v30 = vpack.c.bf16 %v4869_v7, %v4867_v22 }
 0x557   : > { %v4273_v35 = vmul.f32 %v11070_v55, %v4037_v18  ;;  %v8671_v42 = vpop.f32.mrb[49].mxu1  ;;  %v7904_v11 = vmax.f32 %v7902_v20, %v7466_v49  ;;  %v6703_v58 = vmul.f32 %v10875_v44, %v5593_v33  ;;  %v5595_v4 = vpop.f32.mrb[198].mxu0  ;;  %v11235_v47 = vpack.c.bf16 %v4526_v29, %v4525_v60 }
 0x558   : > { %v4040_v52 = vpop.f32.mrb[50].mxu1  ;;  %v7093_v54 = vadd.f32 %v10890_v23, %v6702_v14  ;;  %v6705_v34 = vmul.f32 %v10872_v26, %v5595_v4  ;;  %v5597_v63 = vpop.f32.mrb[199].mxu0  ;;  %12408 = vst [vmem:[#allocation66_spill] sm:$0xff] %v11239_v30 }
 0x559   : > { %12407 = vst [vmem:[#allocation65_spill] sm:$0xff] %v11235_v47  ;;  %v4402_v32 = vadd.f32 %v11064_v43, %v4273_v35  ;;  %v4274_v3 = vmul.f32 %v11070_v55, %v4040_v52  ;;  %v8672_v19 = vpop.f32.mrb[51].mxu1  ;;  %v7094_v20 = vadd.f32 %v10894_v50, %v6703_v58  ;;  %v6706_v49 = vmul.f32 %v10875_v44, %v5597_v63  ;;  %v4873_v52 = vld [vmem:[#allocation2 + $0x5b0] sm:$0xff] }
 0x55a   : > { %5859 = vmatprep.mubr.bf16.mxu0 %v11235_v47  ;;  %v7468_v60 = vmax.f32 %v7093_v54, 0.0  ;;  %v7096_v29 = vadd.f32 %v10890_v23, %v6705_v34 }
 0x55b   : > { %5860 = vmatmul.mubr.bf16.gmra.mrb[48].mxu0 %v11239_v30  ;;  %v4527_v2 = vmax.f32 %v4402_v32, 0.0  ;;  %v4403_v7 = vadd.f32 %v11064_v43, %v4274_v3  ;;  %v7469_v18 = vmax.f32 %v7094_v20, 0.0  ;;  %v7097_v35 = vadd.f32 %v10894_v50, %v6706_v49 }
 0x55c   : > { %v7773_v14 = vmax.f32 %v7771_v9, %v7468_v60  ;;  %v7471_v33 = vmax.f32 %v7096_v29, 0.0  ;;  %v4871_v9 = vld [vmem:[#allocation2 + $0x5a0] sm:$0xff] }
 0x55d   : > { %v4528_v42 = vmax.f32 %v4403_v7, 0.0  ;;  %v7905_v4 = vmax.f32 %v7903_v6, %v7469_v18  ;;  %v7472_v58 = vmax.f32 %v7097_v35, 0.0  ;;  %v5601_v22 = vpop.f32.mrb[200].mxu0  ;;  %v9151_v6 = vld [vmem:[%s12244_s3 + $0x170] ss:$12 sps:$4 sm:$0xff]   ;;  %v11260_v18 = vpack.c.bf16 %v4873_v52, %v4871_v9 }
 0x55e   : > { %v4045_v63 = vpop.f32.mrb[52].mxu1  ;;  %v7774_v19 = vmax.f32 %v7772_v21, %v7471_v33  ;;  %v6708_v54 = vmul.f32 %v10872_v26, %v5601_v22  ;;  %v5603_v34 = vpop.f32.mrb[201].mxu0  ;;  %6079 = vmatpush1.bf16.msra.mxu0 %v9151_v6 }
 0x55f   : > { %v4275_v30 = vmul.f32 %v11070_v55, %v4045_v63  ;;  %v8675_v32 = vpop.f32.mrb[53].mxu1  ;;  %v7906_v47 = vmax.f32 %v7904_v11, %v7472_v58  ;;  %v6709_v3 = vmul.f32 %v10875_v44, %v5603_v34  ;;  %v5605_v20 = vpop.f32.mrb[202].mxu0  ;;  %v11253_v49 = vpack.c.bf16 %v4528_v42, %v4527_v2  ;;  %12410 = vst [vmem:[#allocation68_spill] sm:$0xff] %v11260_v18 }
 0x560   : > { %v4048_v60 = vpop.f32.mrb[54].mxu1  ;;  %v7099_v21 = vadd.f32 %v10890_v23, %v6708_v54  ;;  %v6711_v29 = vmul.f32 %v10872_v26, %v5605_v20  ;;  %v5607_v7 = vpop.f32.mrb[203].mxu0 }
 0x561   : > { %12409 = vst [vmem:[#allocation67_spill] sm:$0xff] %v11253_v49  ;;  %v4404_v11 = vadd.f32 %v11064_v43, %v4275_v30  ;;  %v4276_v35 = vmul.f32 %v11070_v55, %v4048_v60  ;;  %v8676_v33 = vpop.f32.mrb[55].mxu1  ;;  %v7100_v2 = vadd.f32 %v10894_v50, %v6709_v3  ;;  %v6712_v42 = vmul.f32 %v10875_v44, %v5607_v7  ;;  %v4877_v7 = vld [vmem:[#allocation2 + $0x5d0] sm:$0xff] }
 0x562   : > { %5869 = vmatprep.mubr.bf16.mxu0 %v11253_v49  ;;  %v7474_v58 = vmax.f32 %v7099_v21, 0.0  ;;  %v7102_v22 = vadd.f32 %v10890_v23, %v6711_v29 }
 0x563   : > { %5870 = vmatmul.mubr.bf16.gmra.mrb[52].mxu0 %v11260_v18  ;;  %v4529_v63 = vmax.f32 %v4404_v11, 0.0  ;;  %v4405_v52 = vadd.f32 %v11064_v43, %v4276_v35  ;;  %v7475_v54 = vmax.f32 %v7100_v2, 0.0  ;;  %v7103_v30 = vadd.f32 %v10894_v50, %v6712_v42 }
 0x564   : > { %v7775_v34 = vmax.f32 %v7773_v14, %v7474_v58  ;;  %v7477_v32 = vmax.f32 %v7102_v22, 0.0  ;;  %v4875_v14 = vld [vmem:[#allocation2 + $0x5c0] sm:$0xff] }
 0x565   : > { %v4530_v20 = vmax.f32 %v4405_v52, 0.0  ;;  %v7907_v3 = vmax.f32 %v7905_v4, %v7475_v54  ;;  %v7478_v9 = vmax.f32 %v7103_v30, 0.0  ;;  %v5611_v60 = vpop.f32.mrb[204].mxu0 }
 0x566   : > { %v4053_v33 = vpop.f32.mrb[56].mxu1  ;;  %v7776_v21 = vmax.f32 %v7774_v19, %v7477_v32  ;;  %v6714_v29 = vmul.f32 %v10872_v26, %v5611_v60  ;;  %v5613_v49 = vpop.f32.mrb[205].mxu0  ;;  %v11278_v19 = vpack.c.bf16 %v4877_v7, %v4875_v14 }
 0x567   : > { %v4277_v11 = vmul.f32 %v11070_v55, %v4053_v33  ;;  %v8679_v18 = vpop.f32.mrb[57].mxu1  ;;  %v7908_v35 = vmax.f32 %v7906_v47, %v7478_v9  ;;  %v6715_v2 = vmul.f32 %v10875_v44, %v5613_v49  ;;  %v5615_v42 = vpop.f32.mrb[206].mxu0  ;;  %v11274_v6 = vpack.c.bf16 %v4530_v20, %v4529_v63 }
 0x568   : > { %v4056_v58 = vpop.f32.mrb[58].mxu1  ;;  %v7105_v4 = vadd.f32 %v10890_v23, %v6714_v29  ;;  %v6717_v22 = vmul.f32 %v10872_v26, %v5615_v42  ;;  %v5617_v52 = vpop.f32.mrb[207].mxu0  ;;  %12412 = vst [vmem:[#allocation70_spill] sm:$0xff] %v11278_v19 }
 0x569   : > { %12411 = vst [vmem:[#allocation69_spill] sm:$0xff] %v11274_v6  ;;  %v4406_v54 = vadd.f32 %v11064_v43, %v4277_v11  ;;  %v4278_v30 = vmul.f32 %v11070_v55, %v4056_v58  ;;  %v8680_v18 = vpop.f32.mrb[59].mxu1  ;;  %v7106_v47 = vadd.f32 %v10894_v50, %v6715_v2  ;;  %v6718_v49 = vmul.f32 %v10875_v44, %v5617_v52  ;;  %v4881_v58 = vld [vmem:[#allocation2 + $0x5f0] sm:$0xff] }
 0x56a   : > { %5879 = vmatprep.mubr.bf16.mxu0 %v11274_v6  ;;  %v7480_v63 = vmax.f32 %v7105_v4, 0.0  ;;  %v7108_v32 = vadd.f32 %v10890_v23, %v6717_v22 }
 0x56b   : > { %5880 = vmatmul.mubr.bf16.gmra.mrb[56].mxu0 %v11278_v19  ;;  %v4531_v20 = vmax.f32 %v4406_v54, 0.0  ;;  %v4407_v9 = vadd.f32 %v11064_v43, %v4278_v30  ;;  %v7481_v60 = vmax.f32 %v7106_v47, 0.0  ;;  %v7109_v7 = vadd.f32 %v10894_v50, %v6718_v49 }
 0x56c   : > { %v7777_v33 = vmax.f32 %v7775_v34, %v7480_v63  ;;  %v7483_v29 = vmax.f32 %v7108_v32, 0.0  ;;  %v4879_v34 = vld [vmem:[#allocation2 + $0x5e0] sm:$0xff] }
 0x56d   : > { %v4532_v11 = vmax.f32 %v4407_v9, 0.0  ;;  %v7909_v42 = vmax.f32 %v7907_v3, %v7481_v60  ;;  %v7484_v2 = vmax.f32 %v7109_v7, 0.0  ;;  %v5621_v14 = vpop.f32.mrb[208].mxu0 }
 0x56e   : > { %v4061_v52 = vpop.f32.mrb[60].mxu1  ;;  %v7778_v18 = vmax.f32 %v7776_v21, %v7483_v29  ;;  %v6720_v4 = vmul.f32 %v10872_v26, %v5621_v14  ;;  %v5623_v22 = vpop.f32.mrb[209].mxu0  ;;  %v11296_v21 = vpack.c.bf16 %v4881_v58, %v4879_v34 }
 0x56f   : > { %v4279_v19 = vmul.f32 %v11070_v55, %v4061_v52  ;;  %v8683_v54 = vpop.f32.mrb[61].mxu1  ;;  %v7910_v6 = vmax.f32 %v7908_v35, %v7484_v2  ;;  %v6721_v30 = vmul.f32 %v10875_v44, %v5623_v22  ;;  %v5625_v47 = vpop.f32.mrb[210].mxu0  ;;  %v11292_v49 = vpack.c.bf16 %v4532_v11, %v4531_v20 }
 0x570   : > { %v4064_v63 = vpop.f32.mrb[62].mxu1  ;;  %v7111_v3 = vadd.f32 %v10890_v23, %v6720_v4  ;;  %v6723_v32 = vmul.f32 %v10872_v26, %v5625_v47  ;;  %v5627_v9 = vpop.f32.mrb[211].mxu0  ;;  %12414 = vst [vmem:[#allocation72_spill] sm:$0xff] %v11296_v21 }
 0x571   : > { %12413 = vst [vmem:[#allocation71_spill] sm:$0xff] %v11292_v49  ;;  %v4408_v60 = vadd.f32 %v11064_v43, %v4279_v19  ;;  %v4280_v7 = vmul.f32 %v11070_v55, %v4064_v63  ;;  %v8684_v29 = vpop.f32.mrb[63].mxu1  ;;  %v7112_v35 = vadd.f32 %v10894_v50, %v6721_v30  ;;  %v6724_v2 = vmul.f32 %v10875_v44, %v5627_v9  ;;  %v4885_v63 = vld [vmem:[#allocation2 + $0x610] sm:$0xff] }
 0x572   : > { %5889 = vmatprep.mubr.bf16.mxu0 %v11292_v49  ;;  %v7486_v20 = vmax.f32 %v7111_v3, 0.0  ;;  %v7114_v11 = vadd.f32 %v10890_v23, %v6723_v32 }
 0x573   : > { %5890 = vmatmul.mubr.bf16.gmra.mrb[60].mxu0 %v11296_v21  ;;  %v4533_v14 = vmax.f32 %v4408_v60, 0.0  ;;  %v4409_v58 = vadd.f32 %v11064_v43, %v4280_v7  ;;  %v7487_v52 = vmax.f32 %v7112_v35, 0.0  ;;  %v7115_v19 = vadd.f32 %v10894_v50, %v6724_v2 }
 0x574   : > { %v7779_v4 = vmax.f32 %v7777_v33, %v7486_v20  ;;  %v7489_v22 = vmax.f32 %v7114_v11, 0.0  ;;  %v4883_v33 = vld [vmem:[#allocation2 + $0x600] sm:$0xff] }
 0x575   : > { %v4534_v54 = vmax.f32 %v4409_v58, 0.0  ;;  %v7911_v47 = vmax.f32 %v7909_v42, %v7487_v52  ;;  %v7490_v30 = vmax.f32 %v7115_v19, 0.0  ;;  %v5631_v34 = vpop.f32.mrb[212].mxu0 }
 0x576   : > { %v4069_v9 = vpop.f32.mrb[64].mxu1  ;;  %v7780_v29 = vmax.f32 %v7778_v18, %v7489_v22  ;;  %v6726_v3 = vmul.f32 %v10872_v26, %v5631_v34  ;;  %v5633_v32 = vpop.f32.mrb[213].mxu0  ;;  %v11314_v18 = vpack.c.bf16 %v4885_v63, %v4883_v33  ;;  %v11326_v63 = vld [vmem:[%s12245_s4 + $0x7] ss:$0 sm:$0xff]  ;;  %v4889_v33 = vld [vmem:[#allocation2 + $0x630] sm:$0xff] }
 0x577   : > { %v4281_v21 = vmul.f32 %v11070_v55, %v4069_v9  ;;  %v8687_v60 = vpop.f32.mrb[65].mxu1  ;;  %v7912_v49 = vmax.f32 %v7910_v6, %v7490_v30  ;;  %v6727_v7 = vmul.f32 %v10875_v44, %v5633_v32  ;;  %v5635_v35 = vpop.f32.mrb[214].mxu0  ;;  %v11310_v2 = vpack.c.bf16 %v4534_v54, %v4533_v14 }
 0x578   : > { %v4072_v20 = vpop.f32.mrb[66].mxu1  ;;  %v7117_v42 = vadd.f32 %v10890_v23, %v6726_v3  ;;  %v6729_v11 = vmul.f32 %v10872_v26, %v5635_v35  ;;  %v5637_v58 = vpop.f32.mrb[215].mxu0  ;;  %12416 = vst [vmem:[#allocation74_spill] sm:$0xff] %v11314_v18 }
 0x579   : > { %12415 = vst [vmem:[#allocation73_spill] sm:$0xff] %v11310_v2  ;;  %v4410_v52 = vadd.f32 %v11064_v43, %v4281_v21  ;;  %v4282_v19 = vmul.f32 %v11070_v55, %v4072_v20  ;;  %v8688_v22 = vpop.f32.mrb[67].mxu1  ;;  %v7118_v6 = vadd.f32 %v10894_v50, %v6727_v7  ;;  %v6730_v30 = vmul.f32 %v10875_v44, %v5637_v58 }
 0x57a   : > { %5899 = vmatprep.mubr.bf16.mxu0 %v11310_v2  ;;  %v7492_v14 = vmax.f32 %v7117_v42, 0.0  ;;  %v7120_v54 = vadd.f32 %v10890_v23, %v6729_v11 }
 0x57b   : > { %5900 = vmatmul.mubr.bf16.gmra.mrb[64].mxu0 %v11314_v18  ;;  %v4535_v34 = vmax.f32 %v4410_v52, 0.0  ;;  %v4411_v43 = vadd.f32 %v11326_v63, %v4282_v19  ;;  %v7493_v55 = vmax.f32 %v7118_v6, 0.0  ;;  %v7121_v21 = vadd.f32 %v10894_v50, %v6730_v30  ;;  %v11334_v52 = vld [vmem:[%s12245_s4 + $0x6] ss:$0 sm:$0xff] }
 0x57c   : > { %v7781_v9 = vmax.f32 %v7779_v4, %v7492_v14  ;;  %v7495_v3 = vmax.f32 %v7120_v54, 0.0  ;;  %v4887_v14 = vld [vmem:[#allocation2 + $0x620] sm:$0xff] }
 0x57d   : > { %v4536_v32 = vmax.f32 %v4411_v43, 0.0  ;;  %v7913_v60 = vmax.f32 %v7911_v47, %v7493_v55  ;;  %v7496_v7 = vmax.f32 %v7121_v21, 0.0  ;;  %v5641_v35 = vpop.f32.mrb[216].mxu0  ;;  %v11342_v21 = vpack.c.bf16 %v4889_v33, %v4887_v14 }
 0x57e   : > { %v4077_v20 = vpop.f32.mrb[68].mxu1  ;;  %v7782_v42 = vmax.f32 %v7780_v29, %v7495_v3  ;;  %v6732_v11 = vmul.f32 %v10872_v26, %v5641_v35  ;;  %v5643_v58 = vpop.f32.mrb[217].mxu0 }
 0x57f   : > { %v4283_v19 = vmul.f32 %v11334_v52, %v4077_v20  ;;  %v8691_v22 = vpop.f32.mrb[69].mxu1  ;;  %v7914_v4 = vmax.f32 %v7912_v49, %v7496_v7  ;;  %v6733_v6 = vmul.f32 %v10875_v44, %v5643_v58  ;;  %v5645_v47 = vpop.f32.mrb[218].mxu0  ;;  %v11338_v30 = vpack.c.bf16 %v4536_v32, %v4535_v34  ;;  %12418 = vst [vmem:[#allocation76_spill] sm:$0xff] %v11342_v21 }
 0x580   : > { %v4080_v54 = vpop.f32.mrb[70].mxu1  ;;  %v7123_v29 = vadd.f32 %v10890_v23, %v6732_v11  ;;  %v6735_v43 = vmul.f32 %v10872_v26, %v5645_v47  ;;  %v5647_v55 = vpop.f32.mrb[219].mxu0 }
 0x581   : > { %12417 = vst [vmem:[#allocation75_spill] sm:$0xff] %v11338_v30  ;;  %v4412_v3 = vadd.f32 %v11326_v63, %v4283_v19  ;;  %v4284_v35 = vmul.f32 %v11334_v52, %v4080_v54  ;;  %v8692_v20 = vpop.f32.mrb[71].mxu1  ;;  %v7124_v49 = vadd.f32 %v10894_v50, %v6733_v6  ;;  %v6736_v7 = vmul.f32 %v10875_v44, %v5647_v55  ;;  %v4893_v55 = vld [vmem:[#allocation2 + $0x650] sm:$0xff] }
 0x582   : > { %5909 = vmatprep.mubr.bf16.mxu0 %v11338_v30  ;;  %v7498_v34 = vmax.f32 %v7123_v29, 0.0  ;;  %v7126_v32 = vadd.f32 %v10890_v23, %v6735_v43 }
 0x583   : > { %5910 = vmatmul.mubr.bf16.gmra.mrb[68].mxu0 %v11342_v21  ;;  %v4537_v11 = vmax.f32 %v4412_v3, 0.0  ;;  %v4413_v33 = vadd.f32 %v11326_v63, %v4284_v35  ;;  %v7499_v58 = vmax.f32 %v7124_v49, 0.0  ;;  %v7127_v19 = vadd.f32 %v10894_v50, %v6736_v7 }
 0x584   : > { %v7783_v22 = vmax.f32 %v7781_v9, %v7498_v34  ;;  %v7501_v47 = vmax.f32 %v7126_v32, 0.0  ;;  %v4891_v9 = vld [vmem:[#allocation2 + $0x640] sm:$0xff] }
 0x585   : > { %v4538_v14 = vmax.f32 %v4413_v33, 0.0  ;;  %v7915_v54 = vmax.f32 %v7913_v60, %v7499_v58  ;;  %v7502_v6 = vmax.f32 %v7127_v19, 0.0  ;;  %v5651_v20 = vpop.f32.mrb[220].mxu0 }
 0x586   : > { %v4085_v18 = vpop.f32.mrb[72].mxu1  ;;  %v7784_v30 = vmax.f32 %v7782_v42, %v7501_v47  ;;  %v6738_v29 = vmul.f32 %v10872_v26, %v5651_v20  ;;  %v5653_v43 = vpop.f32.mrb[221].mxu0  ;;  %v11360_v42 = vpack.c.bf16 %v4893_v55, %v4891_v9 }
 0x587   : > { %v4285_v21 = vmul.f32 %v11334_v52, %v4085_v18  ;;  %v8695_v3 = vpop.f32.mrb[73].mxu1  ;;  %v7916_v2 = vmax.f32 %v7914_v4, %v7502_v6  ;;  %v6739_v35 = vmul.f32 %v10875_v44, %v5653_v43  ;;  %v5655_v49 = vpop.f32.mrb[222].mxu0  ;;  %v11356_v7 = vpack.c.bf16 %v4538_v14, %v4537_v11 }
 0x588   : > { %v4088_v34 = vpop.f32.mrb[74].mxu1  ;;  %v7129_v60 = vadd.f32 %v10890_v23, %v6738_v29  ;;  %v6741_v32 = vmul.f32 %v10872_v26, %v5655_v49  ;;  %v5657_v33 = vpop.f32.mrb[223].mxu0  ;;  %12420 = vst [vmem:[#allocation78_spill] sm:$0xff] %v11360_v42 }
 0x589   : > { %12419 = vst [vmem:[#allocation77_spill] sm:$0xff] %v11356_v7  ;;  %v4414_v58 = vadd.f32 %v11326_v63, %v4285_v21  ;;  %v4286_v18 = vmul.f32 %v11334_v52, %v4088_v34  ;;  %v8696_v19 = vpop.f32.mrb[75].mxu1  ;;  %v7130_v4 = vadd.f32 %v10894_v50, %v6739_v35  ;;  %v6742_v47 = vmul.f32 %v10875_v44, %v5657_v33  ;;  %v4897_v34 = vld [vmem:[#allocation2 + $0x670] sm:$0xff] }
 0x58a   : > { %5919 = vmatprep.mubr.bf16.mxu0 %v11356_v7  ;;  %v7504_v11 = vmax.f32 %v7129_v60, 0.0  ;;  %v7132_v14 = vadd.f32 %v10890_v23, %v6741_v32 }
 0x58b   : > { %5920 = vmatmul.mubr.bf16.gmra.mrb[72].mxu0 %v11360_v42  ;;  %v4539_v6 = vmax.f32 %v4414_v58, 0.0  ;;  %v4415_v20 = vadd.f32 %v11326_v63, %v4286_v18  ;;  %v7505_v55 = vmax.f32 %v7130_v4, 0.0  ;;  %v7133_v21 = vadd.f32 %v10894_v50, %v6742_v47 }
 0x58c   : > { %v7785_v29 = vmax.f32 %v7783_v22, %v7504_v11  ;;  %v7507_v43 = vmax.f32 %v7132_v14, 0.0  ;;  %v4895_v22 = vld [vmem:[#allocation2 + $0x660] sm:$0xff] }
 0x58d   : > { %v4540_v3 = vmax.f32 %v4415_v20, 0.0  ;;  %v7917_v49 = vmax.f32 %v7915_v54, %v7505_v55  ;;  %v7508_v35 = vmax.f32 %v7133_v21, 0.0  ;;  %v5661_v9 = vpop.f32.mrb[224].mxu0 }
 0x58e   : > { %v4093_v33 = vpop.f32.mrb[76].mxu1  ;;  %v7786_v19 = vmax.f32 %v7784_v30, %v7507_v43  ;;  %v6744_v60 = vmul.f32 %v10872_v26, %v5661_v9  ;;  %v5663_v32 = vpop.f32.mrb[225].mxu0  ;;  %v11378_v30 = vpack.c.bf16 %v4897_v34, %v4895_v22 }
 0x58f   : > { %v4287_v42 = vmul.f32 %v11334_v52, %v4093_v33  ;;  %v8699_v58 = vpop.f32.mrb[77].mxu1  ;;  %v7918_v7 = vmax.f32 %v7916_v2, %v7508_v35  ;;  %v6745_v18 = vmul.f32 %v10875_v44, %v5663_v32  ;;  %v5665_v4 = vpop.f32.mrb[226].mxu0  ;;  %v11374_v47 = vpack.c.bf16 %v4540_v3, %v4539_v6 }
 0x590   : > { %v4096_v11 = vpop.f32.mrb[78].mxu1  ;;  %v7135_v54 = vadd.f32 %v10890_v23, %v6744_v60  ;;  %v6747_v14 = vmul.f32 %v10872_v26, %v5665_v4  ;;  %v5667_v20 = vpop.f32.mrb[227].mxu0  ;;  %12422 = vst [vmem:[#allocation80_spill] sm:$0xff] %v11378_v30 }
 0x591   : > { %12421 = vst [vmem:[#allocation79_spill] sm:$0xff] %v11374_v47  ;;  %v4416_v55 = vadd.f32 %v11326_v63, %v4287_v42  ;;  %v4288_v21 = vmul.f32 %v11334_v52, %v4096_v11  ;;  %v8700_v43 = vpop.f32.mrb[79].mxu1  ;;  %v7136_v2 = vadd.f32 %v10894_v50, %v6745_v18  ;;  %v6748_v35 = vmul.f32 %v10875_v44, %v5667_v20  ;;  %v4901_v11 = vld [vmem:[#allocation2 + $0x690] sm:$0xff] }
 0x592   : > { %5929 = vmatprep.mubr.bf16.mxu0 %v11374_v47  ;;  %v7510_v6 = vmax.f32 %v7135_v54, 0.0  ;;  %v7138_v3 = vadd.f32 %v10890_v23, %v6747_v14 }
 0x593   : > { %5930 = vmatmul.mubr.bf16.gmra.mrb[76].mxu0 %v11378_v30  ;;  %v4541_v9 = vmax.f32 %v4416_v55, 0.0  ;;  %v4417_v34 = vadd.f32 %v11326_v63, %v4288_v21  ;;  %v7511_v33 = vmax.f32 %v7136_v2, 0.0  ;;  %v7139_v42 = vadd.f32 %v10894_v50, %v6748_v35 }
 0x594   : > { %v7787_v60 = vmax.f32 %v7785_v29, %v7510_v6  ;;  %v7513_v32 = vmax.f32 %v7138_v3, 0.0  ;;  %v4899_v29 = vld [vmem:[#allocation2 + $0x680] sm:$0xff] }
 0x595   : > { %v4542_v58 = vmax.f32 %v4417_v34, 0.0  ;;  %v7919_v4 = vmax.f32 %v7917_v49, %v7511_v33  ;;  %v7514_v18 = vmax.f32 %v7139_v42, 0.0  ;;  %v5671_v22 = vpop.f32.mrb[228].mxu0 }
 0x596   : > { %v4101_v20 = vpop.f32.mrb[80].mxu1  ;;  %v7788_v43 = vmax.f32 %v7786_v19, %v7513_v32  ;;  %v6750_v54 = vmul.f32 %v10872_v26, %v5671_v22  ;;  %v5673_v14 = vpop.f32.mrb[229].mxu0  ;;  %v11396_v19 = vpack.c.bf16 %v4901_v11, %v4899_v29 }
 0x597   : > { %v4289_v30 = vmul.f32 %v11334_v52, %v4101_v20  ;;  %v8703_v55 = vpop.f32.mrb[81].mxu1  ;;  %v7920_v47 = vmax.f32 %v7918_v7, %v7514_v18  ;;  %v6751_v21 = vmul.f32 %v10875_v44, %v5673_v14  ;;  %v5675_v2 = vpop.f32.mrb[230].mxu0  ;;  %v11392_v35 = vpack.c.bf16 %v4542_v58, %v4541_v9 }
 0x598   : > { %v4104_v6 = vpop.f32.mrb[82].mxu1  ;;  %v7141_v49 = vadd.f32 %v10890_v23, %v6750_v54  ;;  %v6753_v3 = vmul.f32 %v10872_v26, %v5675_v2  ;;  %v5677_v34 = vpop.f32.mrb[231].mxu0  ;;  %12424 = vst [vmem:[#allocation82_spill] sm:$0xff] %v11396_v19 }
 0x599   : > { %12423 = vst [vmem:[#allocation81_spill] sm:$0xff] %v11392_v35  ;;  %v4418_v33 = vadd.f32 %v11326_v63, %v4289_v30  ;;  %v4290_v42 = vmul.f32 %v11334_v52, %v4104_v6  ;;  %v8704_v32 = vpop.f32.mrb[83].mxu1  ;;  %v7142_v7 = vadd.f32 %v10894_v50, %v6751_v21  ;;  %v6754_v18 = vmul.f32 %v10875_v44, %v5677_v34  ;;  %v4905_v6 = vld [vmem:[#allocation2 + $0x6b0] sm:$0xff] }
 0x59a   : > { %5939 = vmatprep.mubr.bf16.mxu0 %v11392_v35  ;;  %v7516_v9 = vmax.f32 %v7141_v49, 0.0  ;;  %v7144_v58 = vadd.f32 %v10890_v23, %v6753_v3 }
 0x59b   : > { %5940 = vmatmul.mubr.bf16.gmra.mrb[80].mxu0 %v11396_v19  ;;  %v4543_v22 = vmax.f32 %v4418_v33, 0.0  ;;  %v4419_v11 = vadd.f32 %v11326_v63, %v4290_v42  ;;  %v7517_v20 = vmax.f32 %v7142_v7, 0.0  ;;  %v7145_v30 = vadd.f32 %v10894_v50, %v6754_v18 }
 0x59c   : > { %v7789_v54 = vmax.f32 %v7787_v60, %v7516_v9  ;;  %v7519_v14 = vmax.f32 %v7144_v58, 0.0  ;;  %v4903_v60 = vld [vmem:[#allocation2 + $0x6a0] sm:$0xff] }
 0x59d   : > { %v4544_v55 = vmax.f32 %v4419_v11, 0.0  ;;  %v7921_v2 = vmax.f32 %v7919_v4, %v7517_v20  ;;  %v7520_v21 = vmax.f32 %v7145_v30, 0.0  ;;  %v5681_v29 = vpop.f32.mrb[232].mxu0 }
 0x59e   : > { %v4109_v34 = vpop.f32.mrb[84].mxu1  ;;  %v7790_v32 = vmax.f32 %v7788_v43, %v7519_v14  ;;  %v6756_v49 = vmul.f32 %v10872_v26, %v5681_v29  ;;  %v5683_v3 = vpop.f32.mrb[233].mxu0  ;;  %v11414_v43 = vpack.c.bf16 %v4905_v6, %v4903_v60 }
 0x59f   : > { %v4291_v19 = vmul.f32 %v11334_v52, %v4109_v34  ;;  %v8707_v33 = vpop.f32.mrb[85].mxu1  ;;  %v7922_v35 = vmax.f32 %v7920_v47, %v7520_v21  ;;  %v6757_v42 = vmul.f32 %v10875_v44, %v5683_v3  ;;  %v5685_v7 = vpop.f32.mrb[234].mxu0  ;;  %v11410_v18 = vpack.c.bf16 %v4544_v55, %v4543_v22 }
 0x5a0   : > { %v4112_v9 = vpop.f32.mrb[86].mxu1  ;;  %v7147_v4 = vadd.f32 %v10890_v23, %v6756_v49  ;;  %v6759_v58 = vmul.f32 %v10872_v26, %v5685_v7  ;;  %v5687_v11 = vpop.f32.mrb[235].mxu0  ;;  %12426 = vst [vmem:[#allocation84_spill] sm:$0xff] %v11414_v43 }
 0x5a1   : > { %12425 = vst [vmem:[#allocation83_spill] sm:$0xff] %v11410_v18  ;;  %v4420_v20 = vadd.f32 %v11326_v63, %v4291_v19  ;;  %v4292_v30 = vmul.f32 %v11334_v52, %v4112_v9  ;;  %v8708_v14 = vpop.f32.mrb[87].mxu1  ;;  %v7148_v47 = vadd.f32 %v10894_v50, %v6757_v42  ;;  %v6760_v21 = vmul.f32 %v10875_v44, %v5687_v11  ;;  %v4909_v9 = vld [vmem:[#allocation2 + $0x6d0] sm:$0xff] }
 0x5a2   : > { %5949 = vmatprep.mubr.bf16.mxu0 %v11410_v18  ;;  %v7522_v22 = vmax.f32 %v7147_v4, 0.0  ;;  %v7150_v55 = vadd.f32 %v10890_v23, %v6759_v58 }
 0x5a3   : > { %5950 = vmatmul.mubr.bf16.gmra.mrb[84].mxu0 %v11414_v43  ;;  %v4545_v29 = vmax.f32 %v4420_v20, 0.0  ;;  %v4421_v6 = vadd.f32 %v11326_v63, %v4292_v30  ;;  %v7523_v34 = vmax.f32 %v7148_v47, 0.0  ;;  %v7151_v19 = vadd.f32 %v10894_v50, %v6760_v21 }
 0x5a4   : > { %v7791_v49 = vmax.f32 %v7789_v54, %v7522_v22  ;;  %v7525_v3 = vmax.f32 %v7150_v55, 0.0  ;;  %v4907_v54 = vld [vmem:[#allocation2 + $0x6c0] sm:$0xff] }
 0x5a5   : > { %v4546_v33 = vmax.f32 %v4421_v6, 0.0  ;;  %v7923_v7 = vmax.f32 %v7921_v2, %v7523_v34  ;;  %v7526_v42 = vmax.f32 %v7151_v19, 0.0  ;;  %v5691_v60 = vpop.f32.mrb[236].mxu0 }
 0x5a6   : > { %v4117_v11 = vpop.f32.mrb[88].mxu1  ;;  %v7792_v14 = vmax.f32 %v7790_v32, %v7525_v3  ;;  %v6762_v4 = vmul.f32 %v10872_v26, %v5691_v60  ;;  %v5693_v58 = vpop.f32.mrb[237].mxu0  ;;  %v11432_v32 = vpack.c.bf16 %v4909_v9, %v4907_v54 }
 0x5a7   : > { %v4293_v43 = vmul.f32 %v11334_v52, %v4117_v11  ;;  %v8711_v20 = vpop.f32.mrb[89].mxu1  ;;  %v7924_v18 = vmax.f32 %v7922_v35, %v7526_v42  ;;  %v6763_v30 = vmul.f32 %v10875_v44, %v5693_v58  ;;  %v5695_v47 = vpop.f32.mrb[238].mxu0  ;;  %v11428_v21 = vpack.c.bf16 %v4546_v33, %v4545_v29 }
 0x5a8   : > { %v4120_v22 = vpop.f32.mrb[90].mxu1  ;;  %v7153_v2 = vadd.f32 %v10890_v23, %v6762_v4  ;;  %v6765_v55 = vmul.f32 %v10872_v26, %v5695_v47  ;;  %v5697_v6 = vpop.f32.mrb[239].mxu0  ;;  %12428 = vst [vmem:[#allocation86_spill] sm:$0xff] %v11432_v32 }
 0x5a9   : > { %12427 = vst [vmem:[#allocation85_spill] sm:$0xff] %v11428_v21  ;;  %v4422_v34 = vadd.f32 %v11326_v63, %v4293_v43  ;;  %v4294_v19 = vmul.f32 %v11334_v52, %v4120_v22  ;;  %v8712_v3 = vpop.f32.mrb[91].mxu1  ;;  %v7154_v35 = vadd.f32 %v10894_v50, %v6763_v30  ;;  %v6766_v42 = vmul.f32 %v10875_v44, %v5697_v6  ;;  %v4913_v22 = vld [vmem:[#allocation2 + $0x6f0] sm:$0xff] }
 0x5aa   : > { %5959 = vmatprep.mubr.bf16.mxu0 %v11428_v21  ;;  %v7528_v29 = vmax.f32 %v7153_v2, 0.0  ;;  %v7156_v33 = vadd.f32 %v10890_v23, %v6765_v55 }
 0x5ab   : > { %5960 = vmatmul.mubr.bf16.gmra.mrb[88].mxu0 %v11432_v32  ;;  %v4547_v60 = vmax.f32 %v4422_v34, 0.0  ;;  %v4423_v9 = vadd.f32 %v11326_v63, %v4294_v19  ;;  %v7529_v11 = vmax.f32 %v7154_v35, 0.0  ;;  %v7157_v43 = vadd.f32 %v10894_v50, %v6766_v42 }
 0x5ac   : > { %v7793_v4 = vmax.f32 %v7791_v49, %v7528_v29  ;;  %v7531_v58 = vmax.f32 %v7156_v33, 0.0  ;;  %v4911_v49 = vld [vmem:[#allocation2 + $0x6e0] sm:$0xff] }
 0x5ad   : > { %v4548_v20 = vmax.f32 %v4423_v9, 0.0  ;;  %v7925_v47 = vmax.f32 %v7923_v7, %v7529_v11  ;;  %v7532_v30 = vmax.f32 %v7157_v43, 0.0 }
 0x5ae   : > { %v5701_v54 = vpop.f32.mrb[240].mxu0  ;;  %v4125_v6 = vpop.f32.mrb[92].mxu1  ;;  %v7794_v3 = vmax.f32 %v7792_v14, %v7531_v58  ;;  %v11450_v14 = vpack.c.bf16 %v4913_v22, %v4911_v49 }
 0x5af   : > { %v6768_v2 = vmul.f32 %v10872_v26, %v5701_v54  ;;  %v5703_v55 = vpop.f32.mrb[241].mxu0  ;;  %v4295_v32 = vmul.f32 %v11334_v52, %v4125_v6  ;;  %v8715_v34 = vpop.f32.mrb[93].mxu1  ;;  %v7926_v21 = vmax.f32 %v7924_v18, %v7532_v30  ;;  %v11446_v42 = vpack.c.bf16 %v4548_v20, %v4547_v60 }
 0x5b0   : > { %v6769_v19 = vmul.f32 %v10875_v44, %v5703_v55  ;;  %v5705_v35 = vpop.f32.mrb[242].mxu0  ;;  %v4128_v29 = vpop.f32.mrb[94].mxu1  ;;  %12430 = vst [vmem:[#allocation88_spill] sm:$0xff] %v11450_v14 }
 0x5b1   : > { %12429 = vst [vmem:[#allocation87_spill] sm:$0xff] %v11446_v42  ;;  %v7159_v7 = vadd.f32 %v10890_v23, %v6768_v2  ;;  %v6771_v33 = vmul.f32 %v10872_v26, %v5705_v35  ;;  %v5707_v9 = vpop.f32.mrb[243].mxu0  ;;  %v4424_v11 = vadd.f32 %v11326_v63, %v4295_v32  ;;  %v4296_v43 = vmul.f32 %v11334_v52, %v4128_v29  ;;  %v8716_v58 = vpop.f32.mrb[95].mxu1  ;;  %v4917_v29 = vld [vmem:[#allocation2 + $0x710] sm:$0xff] }
 0x5b2   : > { %v7160_v18 = vadd.f32 %v10894_v50, %v6769_v19  ;;  %v6772_v30 = vmul.f32 %v10875_v44, %v5707_v9  ;;  %5969 = vmatprep.mubr.bf16.mxu0 %v11446_v42 }
 0x5b3   : > { %v7534_v60 = vmax.f32 %v7159_v7, 0.0  ;;  %v7162_v20 = vadd.f32 %v10890_v23, %v6771_v33  ;;  %5970 = vmatmul.mubr.bf16.gmra.mrb[92].mxu0 %v11450_v14  ;;  %v4549_v54 = vmax.f32 %v4424_v11, 0.0  ;;  %v4425_v22 = vadd.f32 %v11326_v63, %v4296_v43 }
 0x5b4   : > { %v7535_v6 = vmax.f32 %v7160_v18, 0.0  ;;  %v7163_v32 = vadd.f32 %v10894_v50, %v6772_v30 }
 0x5b5   : > { %v7795_v2 = vmax.f32 %v7793_v4, %v7534_v60  ;;  %v7537_v55 = vmax.f32 %v7162_v20, 0.0  ;;  %v4550_v34 = vmax.f32 %v4425_v22, 0.0  ;;  %v4915_v4 = vld [vmem:[#allocation2 + $0x700] sm:$0xff] }
 0x5b6   : > { %v7927_v35 = vmax.f32 %v7925_v47, %v7535_v6  ;;  %v7538_v19 = vmax.f32 %v7163_v32, 0.0  ;;  %v5711_v49 = vpop.f32.mrb[244].mxu0  ;;  %v4133_v9 = vpop.f32.mrb[96].mxu1 }
 0x5b7   : > { %v7796_v58 = vmax.f32 %v7794_v3, %v7537_v55  ;;  %v6774_v7 = vmul.f32 %v10872_v26, %v5711_v49  ;;  %v5713_v33 = vpop.f32.mrb[245].mxu0  ;;  %v4297_v14 = vmul.f32 %v11334_v52, %v4133_v9  ;;  %v8719_v11 = vpop.f32.mrb[97].mxu1  ;;  %v11464_v30 = vpack.c.bf16 %v4550_v34, %v4549_v54 }
 0x5b8   : > { %v7928_v42 = vmax.f32 %v7926_v21, %v7538_v19  ;;  %v6775_v43 = vmul.f32 %v10875_v44, %v5713_v33  ;;  %v5715_v18 = vpop.f32.mrb[246].mxu0  ;;  %v4136_v60 = vpop.f32.mrb[98].mxu1  ;;  %v11468_v3 = vpack.c.bf16 %v4917_v29, %v4915_v4 }
 0x5b9   : > { %12431 = vst [vmem:[#allocation89_spill] sm:$0xff] %v11464_v30  ;;  %v7165_v47 = vadd.f32 %v10890_v23, %v6774_v7  ;;  %v6777_v20 = vmul.f32 %v10872_v26, %v5715_v18  ;;  %v5717_v22 = vpop.f32.mrb[247].mxu0  ;;  %v4426_v6 = vadd.f32 %v11326_v63, %v4297_v14  ;;  %v4298_v32 = vmul.f32 %v11334_v52, %v4136_v60  ;;  %v8720_v55 = vpop.f32.mrb[99].mxu1  ;;  %v4921_v60 = vld [vmem:[#allocation2 + $0x730] sm:$0xff] }
 0x5ba   : > { %12432 = vst [vmem:[#allocation90_spill] sm:$0xff] %v11468_v3  ;;  %v7166_v21 = vadd.f32 %v10894_v50, %v6775_v43  ;;  %v6778_v19 = vmul.f32 %v10875_v44, %v5717_v22  ;;  %5979 = vmatprep.mubr.bf16.mxu0 %v11464_v30 }
 0x5bb   : > { %v7540_v54 = vmax.f32 %v7165_v47, 0.0  ;;  %v7168_v34 = vadd.f32 %v10890_v23, %v6777_v20  ;;  %5980 = vmatmul.mubr.bf16.gmra.mrb[96].mxu0 %v11468_v3  ;;  %v4551_v49 = vmax.f32 %v4426_v6, 0.0  ;;  %v4427_v29 = vadd.f32 %v11326_v63, %v4298_v32 }
 0x5bc   : > { %v7541_v9 = vmax.f32 %v7166_v21, 0.0  ;;  %v7169_v14 = vadd.f32 %v10894_v50, %v6778_v19 }
 0x5bd   : > { %v7797_v7 = vmax.f32 %v7795_v2, %v7540_v54  ;;  %v7543_v33 = vmax.f32 %v7168_v34, 0.0  ;;  %v4552_v11 = vmax.f32 %v4427_v29, 0.0  ;;  %v4919_v2 = vld [vmem:[#allocation2 + $0x720] sm:$0xff] }
 0x5be   : > { %v7929_v18 = vmax.f32 %v7927_v35, %v7541_v9  ;;  %v7544_v43 = vmax.f32 %v7169_v14, 0.0  ;;  %v5721_v4 = vpop.f32.mrb[248].mxu0  ;;  %v4141_v22 = vpop.f32.mrb[100].mxu1 }
 0x5bf   : > { %v7798_v55 = vmax.f32 %v7796_v58, %v7543_v33  ;;  %v6780_v47 = vmul.f32 %v10872_v26, %v5721_v4  ;;  %v5723_v20 = vpop.f32.mrb[249].mxu0  ;;  %v4299_v3 = vmul.f32 %v11334_v52, %v4141_v22  ;;  %v8723_v6 = vpop.f32.mrb[101].mxu1  ;;  %v11482_v19 = vpack.c.bf16 %v4552_v11, %v4551_v49 }
 0x5c0   : > { %v7930_v30 = vmax.f32 %v7928_v42, %v7544_v43  ;;  %v6781_v32 = vmul.f32 %v10875_v44, %v5723_v20  ;;  %v5725_v21 = vpop.f32.mrb[250].mxu0  ;;  %v4144_v54 = vpop.f32.mrb[102].mxu1  ;;  %v11486_v58 = vpack.c.bf16 %v4921_v60, %v4919_v2 }
 0x5c1   : > { %12433 = vst [vmem:[#allocation91_spill] sm:$0xff] %v11482_v19  ;;  %v7171_v35 = vadd.f32 %v10890_v23, %v6780_v47  ;;  %v6783_v34 = vmul.f32 %v10872_v26, %v5725_v21  ;;  %v5727_v29 = vpop.f32.mrb[251].mxu0  ;;  %v4428_v9 = vadd.f32 %v11326_v63, %v4299_v3  ;;  %v4300_v14 = vmul.f32 %v11334_v52, %v4144_v54  ;;  %v8724_v33 = vpop.f32.mrb[103].mxu1  ;;  %v4925_v54 = vld [vmem:[#allocation2 + $0x750] sm:$0xff] }
 0x5c2   : > { %12434 = vst [vmem:[#allocation92_spill] sm:$0xff] %v11486_v58  ;;  %v7172_v42 = vadd.f32 %v10894_v50, %v6781_v32  ;;  %v6784_v43 = vmul.f32 %v10875_v44, %v5727_v29  ;;  %5989 = vmatprep.mubr.bf16.mxu0 %v11482_v19 }
 0x5c3   : > { %v7546_v49 = vmax.f32 %v7171_v35, 0.0  ;;  %v7174_v11 = vadd.f32 %v10890_v23, %v6783_v34  ;;  %5990 = vmatmul.mubr.bf16.gmra.mrb[100].mxu0 %v11486_v58  ;;  %v4553_v4 = vmax.f32 %v4428_v9, 0.0  ;;  %v4429_v60 = vadd.f32 %v11326_v63, %v4300_v14 }
 0x5c4   : > { %v7547_v22 = vmax.f32 %v7172_v42, 0.0  ;;  %v7175_v3 = vadd.f32 %v10894_v50, %v6784_v43 }
 0x5c5   : > { %v7799_v47 = vmax.f32 %v7797_v7, %v7546_v49  ;;  %v7549_v20 = vmax.f32 %v7174_v11, 0.0  ;;  %v4554_v6 = vmax.f32 %v4429_v60, 0.0  ;;  %v4923_v7 = vld [vmem:[#allocation2 + $0x740] sm:$0xff] }
 0x5c6   : > { %v7931_v21 = vmax.f32 %v7929_v18, %v7547_v22  ;;  %v7550_v32 = vmax.f32 %v7175_v3, 0.0  ;;  %v5731_v2 = vpop.f32.mrb[252].mxu0  ;;  %v4149_v29 = vpop.f32.mrb[104].mxu1 }
 0x5c7   : > { %v7800_v33 = vmax.f32 %v7798_v55, %v7549_v20  ;;  %v6786_v35 = vmul.f32 %v10872_v26, %v5731_v2  ;;  %v5733_v34 = vpop.f32.mrb[253].mxu0  ;;  %v4301_v58 = vmul.f32 %v11334_v52, %v4149_v29  ;;  %v8727_v9 = vpop.f32.mrb[105].mxu1  ;;  %v11500_v43 = vpack.c.bf16 %v4554_v6, %v4553_v4 }
 0x5c8   : > { %v7932_v19 = vmax.f32 %v7930_v30, %v7550_v32  ;;  %v6787_v14 = vmul.f32 %v10875_v44, %v5733_v34  ;;  %v5735_v42 = vpop.f32.mrb[254].mxu0  ;;  %v4152_v49 = vpop.f32.mrb[106].mxu1  ;;  %v11504_v55 = vpack.c.bf16 %v4925_v54, %v4923_v7 }
 0x5c9   : > { %12435 = vst [vmem:[#allocation93_spill] sm:$0xff] %v11500_v43  ;;  %v7177_v18 = vadd.f32 %v10890_v23, %v6786_v35  ;;  %v6789_v11 = vmul.f32 %v10872_v26, %v5735_v42  ;;  %v5737_v60 = vpop.f32.mrb[255].mxu0  ;;  %v4430_v22 = vadd.f32 %v11326_v63, %v4301_v58  ;;  %v4302_v3 = vmul.f32 %v11334_v52, %v4152_v49  ;;  %v8728_v20 = vpop.f32.mrb[107].mxu1  ;;  %v4929_v49 = vld [vmem:[#allocation2 + $0x770] sm:$0xff] }
 0x5ca   : > { %12436 = vst [vmem:[#allocation94_spill] sm:$0xff] %v11504_v55  ;;  %v7178_v30 = vadd.f32 %v10894_v50, %v6787_v14  ;;  %v6790_v32 = vmul.f32 %v10875_v44, %v5737_v60  ;;  %5999 = vmatprep.mubr.bf16.mxu0 %v11500_v43 }
 0x5cb   : > { %v7552_v4 = vmax.f32 %v7177_v18, 0.0  ;;  %v7180_v6 = vadd.f32 %v10890_v23, %v6789_v11  ;;  %6000 = vmatmul.mubr.bf16.gmra.mrb[104].mxu0 %v11504_v55  ;;  %v4555_v2 = vmax.f32 %v4430_v22, 0.0  ;;  %v4431_v54 = vadd.f32 %v11326_v63, %v4302_v3 }
 0x5cc   : > { %v7553_v29 = vmax.f32 %v7178_v30, 0.0  ;;  %v7181_v58 = vadd.f32 %v10894_v50, %v6790_v32 }
 0x5cd   : > { %v7801_v35 = vmax.f32 %v7799_v47, %v7552_v4  ;;  %v7555_v34 = vmax.f32 %v7180_v6, 0.0  ;;  %v4556_v9 = vmax.f32 %v4431_v54, 0.0  ;;  %v4927_v47 = vld [vmem:[#allocation2 + $0x760] sm:$0xff] }
 0x5ce   : > { %v7933_v42 = vmax.f32 %v7931_v21, %v7553_v29  ;;  %v7556_v14 = vmax.f32 %v7181_v58, 0.0  ;;  %v5741_v7 = vpop.f32.mrb[0].mxu0  ;;  %v4157_v60 = vpop.f32.mrb[108].mxu1 }
 0x5cf   : > { %v7802_v20 = vmax.f32 %v7800_v33, %v7555_v34  ;;  %v6792_v18 = vmul.f32 %v10872_v26, %v5741_v7  ;;  %v5743_v11 = vpop.f32.mrb[1].mxu0  ;;  %v4303_v55 = vmul.f32 %v11334_v52, %v4157_v60  ;;  %v8731_v22 = vpop.f32.mrb[109].mxu1  ;;  %v11518_v32 = vpack.c.bf16 %v4556_v9, %v4555_v2 }
 0x5d0   : > { %v7934_v43 = vmax.f32 %v7932_v19, %v7556_v14  ;;  %v6793_v3 = vmul.f32 %v10875_v44, %v5743_v11  ;;  %v5745_v30 = vpop.f32.mrb[2].mxu0  ;;  %v4160_v4 = vpop.f32.mrb[110].mxu1  ;;  %v11522_v33 = vpack.c.bf16 %v4929_v49, %v4927_v47 }
 0x5d1   : > { %12437 = vst [vmem:[#allocation95_spill] sm:$0xff] %v11518_v32  ;;  %v7183_v21 = vadd.f32 %v10890_v23, %v6792_v18  ;;  %v6795_v6 = vmul.f32 %v10872_v26, %v5745_v30  ;;  %v5747_v54 = vpop.f32.mrb[3].mxu0  ;;  %v4432_v29 = vadd.f32 %v11326_v63, %v4303_v55  ;;  %v4304_v58 = vmul.f32 %v11334_v52, %v4160_v4  ;;  %v8732_v34 = vpop.f32.mrb[111].mxu1  ;;  %v4933_v4 = vld [vmem:[#allocation2 + $0x790] sm:$0xff] }
 0x5d2   : > { %12438 = vst [vmem:[#allocation96_spill] sm:$0xff] %v11522_v33  ;;  %v7184_v19 = vadd.f32 %v10894_v50, %v6793_v3  ;;  %v6796_v14 = vmul.f32 %v10875_v44, %v5747_v54  ;;  %6009 = vmatprep.mubr.bf16.mxu0 %v11518_v32 }
 0x5d3   : > { %v7558_v2 = vmax.f32 %v7183_v21, 0.0  ;;  %v7186_v9 = vadd.f32 %v10890_v23, %v6795_v6  ;;  %6010 = vmatmul.mubr.bf16.gmra.mrb[108].mxu0 %v11522_v33  ;;  %v4557_v7 = vmax.f32 %v4432_v29, 0.0  ;;  %v4433_v49 = vadd.f32 %v11326_v63, %v4304_v58 }
 0x5d4   : > { %v7559_v60 = vmax.f32 %v7184_v19, 0.0  ;;  %v7187_v55 = vadd.f32 %v10894_v50, %v6796_v14 }
 0x5d5   : > { %v7803_v18 = vmax.f32 %v7801_v35, %v7558_v2  ;;  %v7561_v11 = vmax.f32 %v7186_v9, 0.0  ;;  %v4558_v22 = vmax.f32 %v4433_v49, 0.0  ;;  %v4931_v35 = vld [vmem:[#allocation2 + $0x780] sm:$0xff] }
 0x5d6   : > { %v7935_v30 = vmax.f32 %v7933_v42, %v7559_v60  ;;  %v7562_v3 = vmax.f32 %v7187_v55, 0.0  ;;  %v5751_v47 = vpop.f32.mrb[4].mxu0  ;;  %v4165_v54 = vpop.f32.mrb[112].mxu1 }
 0x5d7   : > { %v7804_v34 = vmax.f32 %v7802_v20, %v7561_v11  ;;  %v6798_v21 = vmul.f32 %v10872_v26, %v5751_v47  ;;  %v5753_v6 = vpop.f32.mrb[5].mxu0  ;;  %v4305_v33 = vmul.f32 %v11334_v52, %v4165_v54  ;;  %v8735_v29 = vpop.f32.mrb[113].mxu1  ;;  %v11536_v14 = vpack.c.bf16 %v4558_v22, %v4557_v7 }
 0x5d8   : > { %v7936_v32 = vmax.f32 %v7934_v43, %v7562_v3  ;;  %v6799_v58 = vmul.f32 %v10875_v44, %v5753_v6  ;;  %v5755_v19 = vpop.f32.mrb[6].mxu0  ;;  %v4168_v2 = vpop.f32.mrb[114].mxu1  ;;  %v11540_v20 = vpack.c.bf16 %v4933_v4, %v4931_v35 }
 0x5d9   : > { %12439 = vst [vmem:[#allocation97_spill] sm:$0xff] %v11536_v14  ;;  %v7189_v42 = vadd.f32 %v10890_v23, %v6798_v21  ;;  %v6801_v9 = vmul.f32 %v10872_v26, %v5755_v19  ;;  %v5757_v49 = vpop.f32.mrb[7].mxu0  ;;  %v4434_v60 = vadd.f32 %v11326_v63, %v4305_v33  ;;  %v4306_v55 = vmul.f32 %v11334_v52, %v4168_v2  ;;  %v8736_v11 = vpop.f32.mrb[115].mxu1  ;;  %v4937_v2 = vld [vmem:[#allocation2 + $0x7b0] sm:$0xff] }
 0x5da   : > { %12440 = vst [vmem:[#allocation98_spill] sm:$0xff] %v11540_v20  ;;  %v7190_v43 = vadd.f32 %v10894_v50, %v6799_v58  ;;  %v6802_v3 = vmul.f32 %v10875_v44, %v5757_v49  ;;  %6019 = vmatprep.mubr.bf16.mxu0 %v11536_v14 }
 0x5db   : > { %v7564_v7 = vmax.f32 %v7189_v42, 0.0  ;;  %v7192_v22 = vadd.f32 %v10890_v23, %v6801_v9  ;;  %6020 = vmatmul.mubr.bf16.gmra.mrb[112].mxu0 %v11540_v20  ;;  %v4559_v47 = vmax.f32 %v4434_v60, 0.0  ;;  %v4435_v4 = vadd.f32 %v11326_v63, %v4306_v55 }
 0x5dc   : > { %v7565_v54 = vmax.f32 %v7190_v43, 0.0  ;;  %v7193_v33 = vadd.f32 %v10894_v50, %v6802_v3 }
 0x5dd   : > { %v7805_v21 = vmax.f32 %v7803_v18, %v7564_v7  ;;  %v7567_v6 = vmax.f32 %v7192_v22, 0.0  ;;  %v4560_v29 = vmax.f32 %v4435_v4, 0.0  ;;  %v4935_v18 = vld [vmem:[#allocation2 + $0x7a0] sm:$0xff] }
 0x5de   : > { %v7937_v19 = vmax.f32 %v7935_v30, %v7565_v54  ;;  %v7568_v58 = vmax.f32 %v7193_v33, 0.0  ;;  %v5761_v35 = vpop.f32.mrb[8].mxu0  ;;  %v4173_v49 = vpop.f32.mrb[116].mxu1 }
 0x5df   : > { %v7806_v11 = vmax.f32 %v7804_v34, %v7567_v6  ;;  %v6804_v42 = vmul.f32 %v10872_v26, %v5761_v35  ;;  %v5763_v9 = vpop.f32.mrb[9].mxu0  ;;  %v4307_v20 = vmul.f32 %v11334_v52, %v4173_v49  ;;  %v8739_v60 = vpop.f32.mrb[117].mxu1  ;;  %v11554_v3 = vpack.c.bf16 %v4560_v29, %v4559_v47 }
 0x5e0   : > { %v7938_v14 = vmax.f32 %v7936_v32, %v7568_v58  ;;  %v6805_v55 = vmul.f32 %v10875_v44, %v5763_v9  ;;  %v5765_v43 = vpop.f32.mrb[10].mxu0  ;;  %v4176_v7 = vpop.f32.mrb[118].mxu1  ;;  %v11558_v34 = vpack.c.bf16 %v4937_v2, %v4935_v18 }
 0x5e1   : > { %v7195_v30 = vadd.f32 %v10890_v23, %v6804_v42  ;;  %v6807_v22 = vmul.f32 %v10872_v26, %v5765_v43  ;;  %v5767_v4 = vpop.f32.mrb[11].mxu0  ;;  %v4436_v54 = vadd.f32 %v11326_v63, %v4307_v20  ;;  %v8740_v33 = vpop.f32.mrb[119].mxu1  ;;  %6029 = vmatprep.mubr.bf16.mxu0 %v11554_v3 }
 0x5e2   : > { %v7196_v52 = vadd.f32 %v10894_v50, %v6805_v55  ;;  %v6808_v32 = vmul.f32 %v10875_v44, %v5767_v4 }
 0x5e3   : > { %v7570_v47 = vmax.f32 %v7195_v30, 0.0  ;;  %v7198_v6 = vadd.f32 %v10890_v23, %v6807_v22  ;;  %6030 = vmatmul.mubr.bf16.gmra.mrb[116].mxu0 %v11558_v34  ;;  %v4561_v29 = vmax.f32 %v4436_v54, 0.0 }
 0x5e4   : > { %v7571_v58 = vmax.f32 %v7196_v52, 0.0  ;;  %v7199_v35 = vadd.f32 %v10894_v50, %v6808_v32  ;;  %v4939_v32 = vld [vmem:[#allocation2 + $0x7c0] sm:$0x1f] }
 0x5e5   : > { %v7807_v2 = vmax.f32 %v7805_v21, %v7570_v47  ;;  %v7573_v49 = vmax.f32 %v7198_v6, 0.0  ;;  %4686 = vst [vmem:[#allocation2 + $0x7c8] sm:$0x1f] %v4561_v29 }
 0x5e6   : > { %v7939_v63 = vmax.f32 %v7937_v19, %v7571_v58  ;;  %v7574_v20 = vmax.f32 %v7199_v35, 0.0  ;;  %v5771_v42 = vpop.f32.mrb[12].mxu0 }
 0x5e7   : > { %v7808_v9 = vmax.f32 %v7806_v11, %v7573_v49  ;;  %v6810_v60 = vmul.f32 %v10872_v26, %v5771_v42  ;;  %v5773_v55 = vpop.f32.mrb[13].mxu0  ;;  %v11577_v42 = vpack.c.bf16 %v4939_v32, %v4939_v32 }
 0x5e8   : > { %v7940_v43 = vmax.f32 %v7938_v14, %v7574_v20  ;;  %v6811_v18 = vmul.f32 %v10875_v44, %v5773_v55  ;;  %v5775_v7 = vpop.f32.mrb[14].mxu0 }
 0x5e9   : > { %v7201_v30 = vadd.f32 %v10890_v23, %v6810_v60  ;;  %v6813_v22 = vmul.f32 %v10872_v26, %v5775_v7  ;;  %v5777_v4 = vpop.f32.mrb[15].mxu0 }
 0x5ea   : > { %v7202_v21 = vadd.f32 %v10894_v50, %v6811_v18  ;;  %v6814_v54 = vmul.f32 %v10875_v44, %v5777_v4 }
 0x5eb   : > { %v7576_v19 = vmax.f32 %v7201_v30, 0.0  ;;  %v7204_v33 = vadd.f32 %v10890_v23, %v6813_v22 }
 0x5ec   : > { %v7577_v11 = vmax.f32 %v7202_v21, 0.0  ;;  %v7205_v52 = vadd.f32 %v10894_v50, %v6814_v54  ;;  %v4940_v6 = vld [vmem:[#allocation2 + $0x7c8] sm:$0x1f] }
 0x5ed   : > { %v7809_v14 = vmax.f32 %v7807_v2, %v7576_v19  ;;  %v7579_v47 = vmax.f32 %v7204_v33, 0.0  ;;  %v11575_v58 = vpack.c.bf16 %v4940_v6, %v4940_v6 }
 0x5ee   : > { %v7941_v29 = vmax.f32 %v7939_v63, %v7577_v11  ;;  %v7580_v35 = vmax.f32 %v7205_v52, 0.0  ;;  %v5781_v49 = vpop.f32.mrb[16].mxu0 }
 0x5ef   : > { %v7810_v20 = vmax.f32 %v7808_v9, %v7579_v47  ;;  %v6816_v60 = vmul.f32 %v10872_v26, %v5781_v49  ;;  %v5783_v55 = vpop.f32.mrb[17].mxu0  ;;  %6039 = vmatprep.mubr.bf16.mxu0 %v11575_v58 }
 0x5f0   : > { %v7942_v18 = vmax.f32 %v7940_v43, %v7580_v35  ;;  %v6817_v7 = vmul.f32 %v10875_v44, %v5783_v55  ;;  %v5785_v30 = vpop.f32.mrb[18].mxu0  ;;  %6040 = vmatmul.mubr.bf16.gmra.mrb[120].mxu0 %v11577_v42 }
 0x5f1   : > { %v7207_v2 = vadd.f32 %v10890_v23, %v6816_v60  ;;  %v6819_v63 = vmul.f32 %v10872_v26, %v5785_v30  ;;  %v5787_v22 = vpop.f32.mrb[19].mxu0  ;;  %6080 = vmatprep.mubr.bf16.mxu0 %v10491_v24 }
 0x5f2   : > { %v7208_v9 = vadd.f32 %v10894_v50, %v6817_v7  ;;  %v6820_v4 = vmul.f32 %v10875_v44, %v5787_v22 }
 0x5f3   : > { %v7582_v21 = vmax.f32 %v7207_v2, 0.0  ;;  %v7210_v54 = vadd.f32 %v10890_v23, %v6819_v63 }
 0x5f4   : > { %v7583_v43 = vmax.f32 %v7208_v9, 0.0  ;;  %v7211_v19 = vadd.f32 %v10894_v50, %v6820_v4 }
 0x5f5   : > { %v7811_v33 = vmax.f32 %v7809_v14, %v7582_v21  ;;  %v7585_v11 = vmax.f32 %v7210_v54, 0.0 }
 0x5f6   : > { %v7943_v52 = vmax.f32 %v7941_v29, %v7583_v43  ;;  %v7586_v32 = vmax.f32 %v7211_v19, 0.0  ;;  %v5791_v47 = vpop.f32.mrb[20].mxu0 }
 0x5f7   : > { %v7812_v6 = vmax.f32 %v7810_v20, %v7585_v11  ;;  %v6822_v35 = vmul.f32 %v10872_v26, %v5791_v47  ;;  %v5793_v49 = vpop.f32.mrb[21].mxu0 }
 0x5f8   : > { %v7944_v24 = vmax.f32 %v7942_v18, %v7586_v32  ;;  %v6823_v60 = vmul.f32 %v10875_v44, %v5793_v49  ;;  %v5795_v55 = vpop.f32.mrb[22].mxu0  ;;  %6081 = vmatmul.mubr.bf16.vlgmr.msra.gmra.mrb[124].mxu0 %v10496_v48 }
 0x5f9   : > { %v7213_v7 = vadd.f32 %v10890_v23, %v6822_v35  ;;  %v6825_v30 = vmul.f32 %v10872_v26, %v5795_v55  ;;  %v5797_v2 = vpop.f32.mrb[23].mxu0  ;;  %6088 = vmatprep.mubr.bf16.mxu0 %v10510_v16 }
 0x5fa   : > { %v7214_v14 = vadd.f32 %v10894_v50, %v6823_v60  ;;  %v6826_v29 = vmul.f32 %v10875_v44, %v5797_v2 }
 0x5fb   : > { %v7588_v20 = vmax.f32 %v7213_v7, 0.0  ;;  %v7216_v63 = vadd.f32 %v10890_v23, %v6825_v30 }
 0x5fc   : > { %v7589_v18 = vmax.f32 %v7214_v14, 0.0  ;;  %v7217_v22 = vadd.f32 %v10894_v50, %v6826_v29 }
 0x5fd   : > { %v7813_v9 = vmax.f32 %v7811_v33, %v7588_v20  ;;  %v7591_v4 = vmax.f32 %v7216_v63, 0.0 }
 0x5fe   : > { %v7945_v48 = vmax.f32 %v7943_v52, %v7589_v18  ;;  %v7592_v21 = vmax.f32 %v7217_v22, 0.0  ;;  %v5801_v54 = vpop.f32.mrb[24].mxu0 }
 0x5ff   : > { %v7814_v43 = vmax.f32 %v7812_v6, %v7591_v4  ;;  %v6828_v19 = vmul.f32 %v10872_v26, %v5801_v54  ;;  %v5803_v11 = vpop.f32.mrb[25].mxu0 }
 0x600   : > { %v7946_v16 = vmax.f32 %v7944_v24, %v7592_v21  ;;  %v6829_v32 = vmul.f32 %v10875_v44, %v5803_v11  ;;  %v5805_v47 = vpop.f32.mrb[26].mxu0  ;;  %6089 = vmatmul.mubr.bf16.gmra.mrb[128].mxu0 %v10515_v40 }
 0x601   : > { %v7219_v35 = vadd.f32 %v10890_v23, %v6828_v19  ;;  %v6831_v49 = vmul.f32 %v10872_v26, %v5805_v47  ;;  %v5807_v60 = vpop.f32.mrb[27].mxu0  ;;  %6096 = vmatprep.mubr.bf16.mxu0 %v10530_v28 }
 0x602   : > { %v7220_v33 = vadd.f32 %v10894_v50, %v6829_v32  ;;  %v6832_v52 = vmul.f32 %v10875_v44, %v5807_v60 }
 0x603   : > { %v7594_v6 = vmax.f32 %v7219_v35, 0.0  ;;  %v7222_v55 = vadd.f32 %v10890_v23, %v6831_v49 }
 0x604   : > { %v7595_v24 = vmax.f32 %v7220_v33, 0.0  ;;  %v7223_v7 = vadd.f32 %v10894_v50, %v6832_v52 }
 0x605   : > { %v7815_v30 = vmax.f32 %v7813_v9, %v7594_v6  ;;  %v7597_v2 = vmax.f32 %v7222_v55, 0.0 }
 0x606   : > { %v7947_v40 = vmax.f32 %v7945_v48, %v7595_v24  ;;  %v7598_v14 = vmax.f32 %v7223_v7, 0.0  ;;  %v5811_v29 = vpop.f32.mrb[28].mxu0 }
 0x607   : > { %v7816_v20 = vmax.f32 %v7814_v43, %v7597_v2  ;;  %v6834_v63 = vmul.f32 %v10872_v26, %v5811_v29  ;;  %v5813_v18 = vpop.f32.mrb[29].mxu0 }
 0x608   : > { %v7948_v28 = vmax.f32 %v7946_v16, %v7598_v14  ;;  %v6835_v22 = vmul.f32 %v10875_v44, %v5813_v18  ;;  %v5815_v4 = vpop.f32.mrb[30].mxu0  ;;  %6097 = vmatmul.mubr.bf16.gmra.mrb[132].mxu0 %v10535_v0 }
 0x609   : > { %v7225_v21 = vadd.f32 %v10890_v23, %v6834_v63  ;;  %v6837_v54 = vmul.f32 %v10872_v26, %v5815_v4  ;;  %v5817_v19 = vpop.f32.mrb[31].mxu0  ;;  %6104 = vmatprep.mubr.bf16.mxu0 %v10547_v57 }
 0x60a   : > { %v7226_v9 = vadd.f32 %v10894_v50, %v6835_v22  ;;  %v6838_v48 = vmul.f32 %v10875_v44, %v5817_v19 }
 0x60b   : > { %v7600_v43 = vmax.f32 %v7225_v21, 0.0  ;;  %v7228_v11 = vadd.f32 %v10890_v23, %v6837_v54 }
 0x60c   : > { %v7601_v16 = vmax.f32 %v7226_v9, 0.0  ;;  %v7229_v32 = vadd.f32 %v10894_v50, %v6838_v48 }
 0x60d   : > { %v7817_v47 = vmax.f32 %v7815_v30, %v7600_v43  ;;  %v7603_v35 = vmax.f32 %v7228_v11, 0.0 }
 0x60e   : > { %v7949_v0 = vmax.f32 %v7947_v40, %v7601_v16  ;;  %v7604_v49 = vmax.f32 %v7229_v32, 0.0  ;;  %v5821_v60 = vpop.f32.mrb[32].mxu0 }
 0x60f   : > { %v7818_v33 = vmax.f32 %v7816_v20, %v7603_v35  ;;  %v6840_v52 = vmul.f32 %v10872_v26, %v5821_v60  ;;  %v5823_v6 = vpop.f32.mrb[33].mxu0 }
 0x610   : > { %v7950_v57 = vmax.f32 %v7948_v28, %v7604_v49  ;;  %v6841_v55 = vmul.f32 %v10875_v44, %v5823_v6  ;;  %v5825_v24 = vpop.f32.mrb[34].mxu0  ;;  %6105 = vmatmul.mubr.bf16.gmra.mrb[136].mxu0 %v10549_v25 }
 0x611   : > { %v7231_v7 = vadd.f32 %v10890_v23, %v6840_v52  ;;  %v6843_v2 = vmul.f32 %v10872_v26, %v5825_v24  ;;  %v5827_v14 = vpop.f32.mrb[35].mxu0  ;;  %6112 = vmatprep.mubr.bf16.mxu0 %v10559_v17 }
 0x612   : > { %v7232_v30 = vadd.f32 %v10894_v50, %v6841_v55  ;;  %v6844_v40 = vmul.f32 %v10875_v44, %v5827_v14 }
 0x613   : > { %v7606_v29 = vmax.f32 %v7231_v7, 0.0  ;;  %v7234_v20 = vadd.f32 %v10890_v23, %v6843_v2 }
 0x614   : > { %v7607_v63 = vmax.f32 %v7232_v30, 0.0  ;;  %v7235_v18 = vadd.f32 %v10894_v50, %v6844_v40 }
 0x615   : > { %v7819_v28 = vmax.f32 %v7817_v47, %v7606_v29  ;;  %v7609_v22 = vmax.f32 %v7234_v20, 0.0 }
 0x616   : > { %v7951_v25 = vmax.f32 %v7949_v0, %v7607_v63  ;;  %v7610_v4 = vmax.f32 %v7235_v18, 0.0  ;;  %v5831_v21 = vpop.f32.mrb[36].mxu0 }
 0x617   : > { %v7820_v54 = vmax.f32 %v7818_v33, %v7609_v22  ;;  %v6846_v19 = vmul.f32 %v10872_v26, %v5831_v21  ;;  %v5833_v9 = vpop.f32.mrb[37].mxu0 }
 0x618   : > { %v7952_v17 = vmax.f32 %v7950_v57, %v7610_v4  ;;  %v6847_v48 = vmul.f32 %v10875_v44, %v5833_v9  ;;  %v5835_v43 = vpop.f32.mrb[38].mxu0  ;;  %6113 = vmatmul.mubr.bf16.gmra.mrb[140].mxu0 %v10561_v41 }
 0x619   : > { %v7237_v11 = vadd.f32 %v10890_v23, %v6846_v19  ;;  %v6849_v16 = vmul.f32 %v10872_v26, %v5835_v43  ;;  %v5837_v32 = vpop.f32.mrb[39].mxu0  ;;  %6120 = vmatprep.mubr.bf16.mxu0 %v10571_v59 }
 0x61a   : > { %v7238_v47 = vadd.f32 %v10894_v50, %v6847_v48  ;;  %v6850_v35 = vmul.f32 %v10875_v44, %v5837_v32 }
 0x61b   : > { %v7612_v0 = vmax.f32 %v7237_v11, 0.0  ;;  %v7240_v49 = vadd.f32 %v10890_v23, %v6849_v16 }
 0x61c   : > { %v7613_v60 = vmax.f32 %v7238_v47, 0.0  ;;  %v7241_v33 = vadd.f32 %v10894_v50, %v6850_v35 }
 0x61d   : > { %v7821_v52 = vmax.f32 %v7819_v28, %v7612_v0  ;;  %v7615_v6 = vmax.f32 %v7240_v49, 0.0 }
 0x61e   : > { %v7953_v41 = vmax.f32 %v7951_v25, %v7613_v60  ;;  %v7616_v57 = vmax.f32 %v7241_v33, 0.0  ;;  %v5841_v55 = vpop.f32.mrb[40].mxu0 }
 0x61f   : > { %v7822_v24 = vmax.f32 %v7820_v54, %v7615_v6  ;;  %v6852_v7 = vmul.f32 %v10872_v26, %v5841_v55  ;;  %v5843_v2 = vpop.f32.mrb[41].mxu0 }
 0x620   : > { %v7954_v59 = vmax.f32 %v7952_v17, %v7616_v57  ;;  %v6853_v14 = vmul.f32 %v10875_v44, %v5843_v2  ;;  %v5845_v30 = vpop.f32.mrb[42].mxu0  ;;  %6121 = vmatmul.mubr.bf16.gmra.mrb[144].mxu0 %v10573_v1 }
 0x621   : > { %v7243_v40 = vadd.f32 %v10890_v23, %v6852_v7  ;;  %v6855_v29 = vmul.f32 %v10872_v26, %v5845_v30  ;;  %v5847_v20 = vpop.f32.mrb[43].mxu0  ;;  %6128 = vmatprep.mubr.bf16.mxu0 %v10583_v45 }
 0x622   : > { %v7244_v63 = vadd.f32 %v10894_v50, %v6853_v14  ;;  %v6856_v18 = vmul.f32 %v10875_v44, %v5847_v20 }
 0x623   : > { %v7618_v28 = vmax.f32 %v7243_v40, 0.0  ;;  %v7246_v22 = vadd.f32 %v10890_v23, %v6855_v29 }
 0x624   : > { %v7619_v25 = vmax.f32 %v7244_v63, 0.0  ;;  %v7247_v4 = vadd.f32 %v10894_v50, %v6856_v18 }
 0x625   : > { %v7823_v21 = vmax.f32 %v7821_v52, %v7618_v28  ;;  %v7621_v54 = vmax.f32 %v7246_v22, 0.0 }
 0x626   : > { %v7955_v1 = vmax.f32 %v7953_v41, %v7619_v25  ;;  %v7622_v19 = vmax.f32 %v7247_v4, 0.0  ;;  %v5851_v9 = vpop.f32.mrb[44].mxu0 }
 0x627   : > { %v7824_v17 = vmax.f32 %v7822_v24, %v7621_v54  ;;  %v6858_v48 = vmul.f32 %v10872_v26, %v5851_v9  ;;  %v5853_v43 = vpop.f32.mrb[45].mxu0 }
 0x628   : > { %v7956_v45 = vmax.f32 %v7954_v59, %v7622_v19  ;;  %v6859_v11 = vmul.f32 %v10875_v44, %v5853_v43  ;;  %v5855_v16 = vpop.f32.mrb[46].mxu0  ;;  %6129 = vmatmul.mubr.bf16.gmra.mrb[148].mxu0 %v10588_v31 }
 0x629   : > { %v7249_v32 = vadd.f32 %v10890_v23, %v6858_v48  ;;  %v6861_v47 = vmul.f32 %v10872_v26, %v5855_v16  ;;  %v5857_v35 = vpop.f32.mrb[47].mxu0  ;;  %6136 = vmatprep.mubr.bf16.mxu0 %v10599_v5 }
 0x62a   : > { %v7250_v0 = vadd.f32 %v10894_v50, %v6859_v11  ;;  %v6862_v49 = vmul.f32 %v10875_v44, %v5857_v35 }
 0x62b   : > { %v7624_v60 = vmax.f32 %v7249_v32, 0.0  ;;  %v7252_v33 = vadd.f32 %v10890_v23, %v6861_v47 }
 0x62c   : > { %v7625_v52 = vmax.f32 %v7250_v0, 0.0  ;;  %v7253_v6 = vadd.f32 %v10894_v50, %v6862_v49 }
 0x62d   : > { %v7825_v41 = vmax.f32 %v7823_v21, %v7624_v60  ;;  %v7627_v57 = vmax.f32 %v7252_v33, 0.0 }
 0x62e   : > { %v7957_v31 = vmax.f32 %v7955_v1, %v7625_v52  ;;  %v7628_v55 = vmax.f32 %v7253_v6, 0.0  ;;  %v5861_v24 = vpop.f32.mrb[48].mxu0 }
 0x62f   : > { %v7826_v7 = vmax.f32 %v7824_v17, %v7627_v57  ;;  %v6864_v2 = vmul.f32 %v10872_v26, %v5861_v24  ;;  %v5863_v59 = vpop.f32.mrb[49].mxu0 }
 0x630   : > { %v7958_v5 = vmax.f32 %v7956_v45, %v7628_v55  ;;  %v6865_v14 = vmul.f32 %v10875_v44, %v5863_v59  ;;  %v5865_v30 = vpop.f32.mrb[50].mxu0  ;;  %6137 = vmatmul.mubr.bf16.gmra.mrb[152].mxu0 %v10601_v46 }
 0x631   : > { %v7255_v40 = vadd.f32 %v10890_v23, %v6864_v2  ;;  %v6867_v29 = vmul.f32 %v10872_v26, %v5865_v30  ;;  %v5867_v20 = vpop.f32.mrb[51].mxu0  ;;  %6144 = vmatprep.mubr.bf16.mxu0 %v10611_v39 }
 0x632   : > { %v7256_v63 = vadd.f32 %v10894_v50, %v6865_v14  ;;  %v6868_v18 = vmul.f32 %v10875_v44, %v5867_v20 }
 0x633   : > { %v7630_v28 = vmax.f32 %v7255_v40, 0.0  ;;  %v7258_v22 = vadd.f32 %v10890_v23, %v6867_v29 }
 0x634   : > { %v7631_v25 = vmax.f32 %v7256_v63, 0.0  ;;  %v7259_v4 = vadd.f32 %v10894_v50, %v6868_v18 }
 0x635   : > { %v7827_v21 = vmax.f32 %v7825_v41, %v7630_v28  ;;  %v7633_v54 = vmax.f32 %v7258_v22, 0.0 }
 0x636   : > { %v7959_v46 = vmax.f32 %v7957_v31, %v7631_v25  ;;  %v7634_v1 = vmax.f32 %v7259_v4, 0.0  ;;  %v5871_v19 = vpop.f32.mrb[52].mxu0 }
 0x637   : > { %v7828_v9 = vmax.f32 %v7826_v7, %v7633_v54  ;;  %v6870_v17 = vmul.f32 %v10872_v26, %v5871_v19  ;;  %v5873_v48 = vpop.f32.mrb[53].mxu0 }
 0x638   : > { %v7960_v39 = vmax.f32 %v7958_v5, %v7634_v1  ;;  %v6871_v43 = vmul.f32 %v10875_v44, %v5873_v48  ;;  %v5875_v45 = vpop.f32.mrb[54].mxu0  ;;  %6145 = vmatmul.mubr.bf16.gmra.mrb[156].mxu0 %v10613_v13 }
 0x639   : > { %v7261_v11 = vadd.f32 %v10890_v23, %v6870_v17  ;;  %v6873_v16 = vmul.f32 %v10872_v26, %v5875_v45  ;;  %v5877_v32 = vpop.f32.mrb[55].mxu0  ;;  %6152 = vmatprep.mubr.bf16.mxu0 %v10623_v36 }
 0x63a   : > { %v7262_v47 = vadd.f32 %v10894_v50, %v6871_v43  ;;  %v6874_v35 = vmul.f32 %v10875_v44, %v5877_v32 }
 0x63b   : > { %v7636_v0 = vmax.f32 %v7261_v11, 0.0  ;;  %v7264_v49 = vadd.f32 %v10890_v23, %v6873_v16 }
 0x63c   : > { %v7637_v60 = vmax.f32 %v7262_v47, 0.0  ;;  %v7265_v33 = vadd.f32 %v10894_v50, %v6874_v35 }
 0x63d   : > { %v7829_v52 = vmax.f32 %v7827_v21, %v7636_v0  ;;  %v7639_v6 = vmax.f32 %v7264_v49, 0.0 }
 0x63e   : > { %v7961_v13 = vmax.f32 %v7959_v46, %v7637_v60  ;;  %v7640_v41 = vmax.f32 %v7265_v33, 0.0  ;;  %v5881_v57 = vpop.f32.mrb[56].mxu0 }
 0x63f   : > { %v7830_v31 = vmax.f32 %v7828_v9, %v7639_v6  ;;  %v6876_v55 = vmul.f32 %v10872_v26, %v5881_v57  ;;  %v5883_v24 = vpop.f32.mrb[57].mxu0 }
 0x640   : > { %v7962_v36 = vmax.f32 %v7960_v39, %v7640_v41  ;;  %v6877_v7 = vmul.f32 %v10875_v44, %v5883_v24  ;;  %v5885_v2 = vpop.f32.mrb[58].mxu0  ;;  %6153 = vmatmul.mubr.bf16.gmra.mrb[160].mxu0 %v10625_v61 }
 0x641   : > { %v7267_v59 = vadd.f32 %v10890_v23, %v6876_v55  ;;  %v6879_v5 = vmul.f32 %v10872_v26, %v5885_v2  ;;  %v5887_v14 = vpop.f32.mrb[59].mxu0  ;;  %6160 = vmatprep.mubr.bf16.mxu0 %v10635_v62 }
 0x642   : > { %v7268_v30 = vadd.f32 %v10894_v50, %v6877_v7  ;;  %v6880_v40 = vmul.f32 %v10875_v44, %v5887_v14 }
 0x643   : > { %v7642_v29 = vmax.f32 %v7267_v59, 0.0  ;;  %v7270_v20 = vadd.f32 %v10890_v23, %v6879_v5 }
 0x644   : > { %v7643_v63 = vmax.f32 %v7268_v30, 0.0  ;;  %v7271_v18 = vadd.f32 %v10894_v50, %v6880_v40 }
 0x645   : > { %v7831_v28 = vmax.f32 %v7829_v52, %v7642_v29  ;;  %v7645_v22 = vmax.f32 %v7270_v20, 0.0 }
 0x646   : > { %v7963_v61 = vmax.f32 %v7961_v13, %v7643_v63  ;;  %v7646_v25 = vmax.f32 %v7271_v18, 0.0  ;;  %v5891_v4 = vpop.f32.mrb[60].mxu0 }
 0x647   : > { %v7832_v21 = vmax.f32 %v7830_v31, %v7645_v22  ;;  %v6882_v54 = vmul.f32 %v10872_v26, %v5891_v4  ;;  %v5893_v46 = vpop.f32.mrb[61].mxu0 }
 0x648   : > { %v7964_v62 = vmax.f32 %v7962_v36, %v7646_v25  ;;  %v6883_v1 = vmul.f32 %v10875_v44, %v5893_v46  ;;  %v5895_v19 = vpop.f32.mrb[62].mxu0  ;;  %6161 = vmatmul.mubr.bf16.gmra.mrb[164].mxu0 %v10640_v38 }
 0x649   : > { %v7273_v9 = vadd.f32 %v10890_v23, %v6882_v54  ;;  %v6885_v17 = vmul.f32 %v10872_v26, %v5895_v19  ;;  %v5897_v48 = vpop.f32.mrb[63].mxu0  ;;  %6168 = vmatprep.mubr.bf16.mxu0 %v10651_v15 }
 0x64a   : > { %v7274_v39 = vadd.f32 %v10894_v50, %v6883_v1  ;;  %v6886_v43 = vmul.f32 %v10875_v44, %v5897_v48 }
 0x64b   : > { %v7648_v45 = vmax.f32 %v7273_v9, 0.0  ;;  %v7276_v11 = vadd.f32 %v10890_v23, %v6885_v17 }
 0x64c   : > { %v7649_v16 = vmax.f32 %v7274_v39, 0.0  ;;  %v7277_v32 = vadd.f32 %v10894_v50, %v6886_v43 }
 0x64d   : > { %v7833_v47 = vmax.f32 %v7831_v28, %v7648_v45  ;;  %v7651_v35 = vmax.f32 %v7276_v11, 0.0 }
 0x64e   : > { %v7965_v38 = vmax.f32 %v7963_v61, %v7649_v16  ;;  %v7652_v0 = vmax.f32 %v7277_v32, 0.0  ;;  %v5901_v49 = vpop.f32.mrb[64].mxu0 }
 0x64f   : > { %v7834_v60 = vmax.f32 %v7832_v21, %v7651_v35  ;;  %v6888_v33 = vmul.f32 %v10872_v26, %v5901_v49  ;;  %v5903_v52 = vpop.f32.mrb[65].mxu0 }
 0x650   : > { %v7966_v15 = vmax.f32 %v7964_v62, %v7652_v0  ;;  %v6889_v6 = vmul.f32 %v10875_v44, %v5903_v52  ;;  %v5905_v13 = vpop.f32.mrb[66].mxu0  ;;  %6169 = vmatmul.mubr.bf16.gmra.mrb[168].mxu0 %v10653_v10 }
 0x651   : > { %v7279_v41 = vadd.f32 %v10890_v23, %v6888_v33  ;;  %v6891_v57 = vmul.f32 %v10872_v26, %v5905_v13  ;;  %v5907_v31 = vpop.f32.mrb[67].mxu0  ;;  %6176 = vmatprep.mubr.bf16.mxu0 %v10663_v56 }
 0x652   : > { %v7280_v55 = vadd.f32 %v10894_v50, %v6889_v6  ;;  %v6892_v24 = vmul.f32 %v10875_v44, %v5907_v31 }
 0x653   : > { %v7654_v36 = vmax.f32 %v7279_v41, 0.0  ;;  %v7282_v7 = vadd.f32 %v10890_v23, %v6891_v57 }
 0x654   : > { %v7655_v2 = vmax.f32 %v7280_v55, 0.0  ;;  %v7283_v59 = vadd.f32 %v10894_v50, %v6892_v24 }
 0x655   : > { %v7835_v5 = vmax.f32 %v7833_v47, %v7654_v36  ;;  %v7657_v14 = vmax.f32 %v7282_v7, 0.0  ;;  %v12441_v7 = vld [vmem:[#allocation8_spill] sm:$0xff] }
 0x656   : > { %v7967_v10 = vmax.f32 %v7965_v38, %v7655_v2  ;;  %v7658_v30 = vmax.f32 %v7283_v59, 0.0  ;;  %v5911_v40 = vpop.f32.mrb[68].mxu0 }
 0x657   : > { %v7836_v29 = vmax.f32 %v7834_v60, %v7657_v14  ;;  %v6894_v20 = vmul.f32 %v10872_v26, %v5911_v40  ;;  %v5913_v63 = vpop.f32.mrb[69].mxu0  ;;  %v12442_v14 = vld [vmem:[#allocation9_spill] sm:$0xff] }
 0x658   : > { %v7968_v56 = vmax.f32 %v7966_v15, %v7658_v30  ;;  %v6895_v18 = vmul.f32 %v10875_v44, %v5913_v63  ;;  %v5915_v28 = vpop.f32.mrb[70].mxu0  ;;  %6177 = vmatmul.mubr.bf16.gmra.mrb[172].mxu0 %v10665_v12 }
 0x659   : > { %v7285_v22 = vadd.f32 %v10890_v23, %v6894_v20  ;;  %v6897_v61 = vmul.f32 %v10872_v26, %v5915_v28  ;;  %v5917_v25 = vpop.f32.mrb[71].mxu0  ;;  %6184 = vmatprep.mubr.bf16.mxu0 %v10675_v8 }
 0x65a   : > { %v7286_v4 = vadd.f32 %v10894_v50, %v6895_v18  ;;  %v6898_v21 = vmul.f32 %v10875_v44, %v5917_v25 }
 0x65b   : > { %v7660_v54 = vmax.f32 %v7285_v22, 0.0  ;;  %v7288_v46 = vadd.f32 %v10890_v23, %v6897_v61 }
 0x65c   : > { %v7661_v62 = vmax.f32 %v7286_v4, 0.0  ;;  %v7289_v1 = vadd.f32 %v10894_v50, %v6898_v21 }
 0x65d   : > { %v7837_v19 = vmax.f32 %v7835_v5, %v7660_v54  ;;  %v7663_v9 = vmax.f32 %v7288_v46, 0.0 }
 0x65e   : > { %v7969_v12 = vmax.f32 %v7967_v10, %v7661_v62  ;;  %v7664_v17 = vmax.f32 %v7289_v1, 0.0  ;;  %v5921_v48 = vpop.f32.mrb[72].mxu0  ;;  %v12443_v1 = vld [vmem:[#allocation10_spill] sm:$0xff] }
 0x65f   : > { %v7838_v39 = vmax.f32 %v7836_v29, %v7663_v9  ;;  %v6900_v43 = vmul.f32 %v10872_v26, %v5921_v48  ;;  %v5923_v45 = vpop.f32.mrb[73].mxu0 }
 0x660   : > { %v7970_v8 = vmax.f32 %v7968_v56, %v7664_v17  ;;  %v6901_v11 = vmul.f32 %v10875_v44, %v5923_v45  ;;  %v5925_v16 = vpop.f32.mrb[74].mxu0  ;;  %6185 = vmatmul.mubr.bf16.gmra.mrb[176].mxu0 %v10677_v51  ;;  %v12444_v17 = vld [vmem:[#allocation11_spill] sm:$0xff] }
 0x661   : > { %v7291_v32 = vadd.f32 %v10890_v23, %v6900_v43  ;;  %v6903_v47 = vmul.f32 %v10872_v26, %v5925_v16  ;;  %v5927_v35 = vpop.f32.mrb[75].mxu0  ;;  %6192 = vmatprep.mubr.bf16.mxu0 %v10687_v37 }
 0x662   : > { %v7292_v38 = vadd.f32 %v10894_v50, %v6901_v11  ;;  %v6904_v0 = vmul.f32 %v10875_v44, %v5927_v35 }
 0x663   : > { %v7666_v49 = vmax.f32 %v7291_v32, 0.0  ;;  %v7294_v60 = vadd.f32 %v10890_v23, %v6903_v47 }
 0x664   : > { %v7667_v33 = vmax.f32 %v7292_v38, 0.0  ;;  %v7295_v52 = vadd.f32 %v10894_v50, %v6904_v0 }
 0x665   : > { %v7839_v15 = vmax.f32 %v7837_v19, %v7666_v49  ;;  %v7669_v6 = vmax.f32 %v7294_v60, 0.0 }
 0x666   : > { %v7971_v51 = vmax.f32 %v7969_v12, %v7667_v33  ;;  %v7670_v13 = vmax.f32 %v7295_v52, 0.0  ;;  %v5931_v41 = vpop.f32.mrb[76].mxu0 }
 0x667   : > { %v7840_v57 = vmax.f32 %v7838_v39, %v7669_v6  ;;  %v6906_v31 = vmul.f32 %v10872_v26, %v5931_v41  ;;  %v5933_v55 = vpop.f32.mrb[77].mxu0  ;;  %v12445_v6 = vld [vmem:[#allocation12_spill] sm:$0xff] }
 0x668   : > { %v7972_v37 = vmax.f32 %v7970_v8, %v7670_v13  ;;  %v6907_v24 = vmul.f32 %v10875_v44, %v5933_v55  ;;  %v5935_v36 = vpop.f32.mrb[78].mxu0  ;;  %6193 = vmatmul.mubr.bf16.gmra.mrb[180].mxu0 %v12441_v7 }
 0x669   : > { %v7297_v2 = vadd.f32 %v10890_v23, %v6906_v31  ;;  %v6909_v59 = vmul.f32 %v10872_v26, %v5935_v36  ;;  %v5937_v5 = vpop.f32.mrb[79].mxu0  ;;  %6200 = vmatprep.mubr.bf16.mxu0 %v12442_v14 }
 0x66a   : > { %v7298_v10 = vadd.f32 %v10894_v50, %v6907_v24  ;;  %v6910_v30 = vmul.f32 %v10875_v44, %v5937_v5 }
 0x66b   : > { %v7672_v40 = vmax.f32 %v7297_v2, 0.0  ;;  %v7300_v29 = vadd.f32 %v10890_v23, %v6909_v59 }
 0x66c   : > { %v7673_v20 = vmax.f32 %v7298_v10, 0.0  ;;  %v7301_v63 = vadd.f32 %v10894_v50, %v6910_v30 }
 0x66d   : > { %v7841_v56 = vmax.f32 %v7839_v15, %v7672_v40  ;;  %v7675_v18 = vmax.f32 %v7300_v29, 0.0 }
 0x66e   : > { %v7973_v28 = vmax.f32 %v7971_v51, %v7673_v20  ;;  %v7676_v22 = vmax.f32 %v7301_v63, 0.0  ;;  %v5941_v61 = vpop.f32.mrb[80].mxu0 }
 0x66f   : > { %v7842_v25 = vmax.f32 %v7840_v57, %v7675_v18  ;;  %v6912_v4 = vmul.f32 %v10872_v26, %v5941_v61  ;;  %v5943_v21 = vpop.f32.mrb[81].mxu0  ;;  %v12446_v57 = vld [vmem:[#allocation13_spill] sm:$0xff]  ;;  %v12447_v18 = vld [vmem:[#allocation14_spill] sm:$0xff] }
 0x670   : > { %v7974_v54 = vmax.f32 %v7972_v37, %v7676_v22  ;;  %v6913_v46 = vmul.f32 %v10875_v44, %v5943_v21  ;;  %v5945_v62 = vpop.f32.mrb[82].mxu0  ;;  %6201 = vmatmul.mubr.bf16.gmra.mrb[184].mxu0 %v12443_v1 }
 0x671   : > { %v7303_v19 = vadd.f32 %v10890_v23, %v6912_v4  ;;  %v6915_v9 = vmul.f32 %v10872_v26, %v5945_v62  ;;  %v5947_v12 = vpop.f32.mrb[83].mxu0  ;;  %6208 = vmatprep.mubr.bf16.mxu0 %v12444_v17 }
 0x672   : > { %v7304_v48 = vadd.f32 %v10894_v50, %v6913_v46  ;;  %v6916_v39 = vmul.f32 %v10875_v44, %v5947_v12 }
 0x673   : > { %v7678_v43 = vmax.f32 %v7303_v19, 0.0  ;;  %v7306_v45 = vadd.f32 %v10890_v23, %v6915_v9 }
 0x674   : > { %v7679_v8 = vmax.f32 %v7304_v48, 0.0  ;;  %v7307_v11 = vadd.f32 %v10894_v50, %v6916_v39 }
 0x675   : > { %v7843_v16 = vmax.f32 %v7841_v56, %v7678_v43  ;;  %v7681_v32 = vmax.f32 %v7306_v45, 0.0 }
 0x676   : > { %v7975_v47 = vmax.f32 %v7973_v28, %v7679_v8  ;;  %v7682_v35 = vmax.f32 %v7307_v11, 0.0  ;;  %v5951_v38 = vpop.f32.mrb[84].mxu0 }
 0x677   : > { %v7844_v0 = vmax.f32 %v7842_v25, %v7681_v32  ;;  %v6918_v49 = vmul.f32 %v10872_v26, %v5951_v38  ;;  %v5953_v60 = vpop.f32.mrb[85].mxu0  ;;  %v12448_v25 = vld [vmem:[#allocation15_spill] sm:$0xff]  ;;  %v12449_v32 = vld [vmem:[#allocation16_spill] sm:$0xff] }
 0x678   : > { %v7976_v33 = vmax.f32 %v7974_v54, %v7682_v35  ;;  %v6919_v52 = vmul.f32 %v10875_v44, %v5953_v60  ;;  %v5955_v15 = vpop.f32.mrb[86].mxu0  ;;  %6209 = vmatmul.mubr.bf16.gmra.mrb[188].mxu0 %v12445_v6 }
 0x679   : > { %v7309_v51 = vadd.f32 %v10890_v23, %v6918_v49  ;;  %v6921_v13 = vmul.f32 %v10872_v26, %v5955_v15  ;;  %v5957_v41 = vpop.f32.mrb[87].mxu0  ;;  %6216 = vmatprep.mubr.bf16.mxu0 %v12446_v57 }
 0x67a   : > { %v7310_v31 = vadd.f32 %v10894_v50, %v6919_v52  ;;  %v6922_v55 = vmul.f32 %v10875_v44, %v5957_v41 }
 0x67b   : > { %v7684_v37 = vmax.f32 %v7309_v51, 0.0  ;;  %v7312_v24 = vadd.f32 %v10890_v23, %v6921_v13 }
 0x67c   : > { %v7685_v36 = vmax.f32 %v7310_v31, 0.0  ;;  %v7313_v7 = vadd.f32 %v10894_v50, %v6922_v55 }
 0x67d   : > { %v7845_v2 = vmax.f32 %v7843_v16, %v7684_v37  ;;  %v7687_v59 = vmax.f32 %v7312_v24, 0.0 }
 0x67e   : > { %v7977_v5 = vmax.f32 %v7975_v47, %v7685_v36  ;;  %v7688_v14 = vmax.f32 %v7313_v7, 0.0  ;;  %v5961_v10 = vpop.f32.mrb[88].mxu0 }
 0x67f   : > { %v7846_v30 = vmax.f32 %v7844_v0, %v7687_v59  ;;  %v6924_v40 = vmul.f32 %v10872_v26, %v5961_v10  ;;  %v5963_v29 = vpop.f32.mrb[89].mxu0  ;;  %v12450_v0 = vld [vmem:[#allocation17_spill] sm:$0xff]  ;;  %v12451_v59 = vld [vmem:[#allocation18_spill] sm:$0xff] }
 0x680   : > { %v7978_v20 = vmax.f32 %v7976_v33, %v7688_v14  ;;  %v6925_v63 = vmul.f32 %v10875_v44, %v5963_v29  ;;  %v5965_v56 = vpop.f32.mrb[90].mxu0  ;;  %6217 = vmatmul.mubr.bf16.gmra.mrb[192].mxu0 %v12447_v18 }
 0x681   : > { %v7315_v28 = vadd.f32 %v10890_v23, %v6924_v40  ;;  %v6927_v22 = vmul.f32 %v10872_v26, %v5965_v56  ;;  %v5967_v61 = vpop.f32.mrb[91].mxu0  ;;  %6224 = vmatprep.mubr.bf16.mxu0 %v12448_v25 }
 0x682   : > { %v7316_v4 = vadd.f32 %v10894_v50, %v6925_v63  ;;  %v6928_v21 = vmul.f32 %v10875_v44, %v5967_v61 }
 0x683   : > { %v7690_v54 = vmax.f32 %v7315_v28, 0.0  ;;  %v7318_v46 = vadd.f32 %v10890_v23, %v6927_v22 }
 0x684   : > { %v7691_v62 = vmax.f32 %v7316_v4, 0.0  ;;  %v7319_v1 = vadd.f32 %v10894_v50, %v6928_v21 }
 0x685   : > { %v7847_v19 = vmax.f32 %v7845_v2, %v7690_v54  ;;  %v7693_v9 = vmax.f32 %v7318_v46, 0.0 }
 0x686   : > { %v7979_v12 = vmax.f32 %v7977_v5, %v7691_v62  ;;  %v7694_v17 = vmax.f32 %v7319_v1, 0.0  ;;  %v5971_v48 = vpop.f32.mrb[92].mxu0 }
 0x687   : > { %v7848_v39 = vmax.f32 %v7846_v30, %v7693_v9  ;;  %v6930_v43 = vmul.f32 %v10872_v26, %v5971_v48  ;;  %v5973_v45 = vpop.f32.mrb[93].mxu0  ;;  %v12452_v30 = vld [vmem:[#allocation19_spill] sm:$0xff]  ;;  %v12453_v9 = vld [vmem:[#allocation20_spill] sm:$0xff] }
 0x688   : > { %v7980_v8 = vmax.f32 %v7978_v20, %v7694_v17  ;;  %v6931_v11 = vmul.f32 %v10875_v44, %v5973_v45  ;;  %v5975_v16 = vpop.f32.mrb[94].mxu0  ;;  %6225 = vmatmul.mubr.bf16.gmra.mrb[196].mxu0 %v12449_v32 }
 0x689   : > { %v7321_v47 = vadd.f32 %v10890_v23, %v6930_v43  ;;  %v6933_v35 = vmul.f32 %v10872_v26, %v5975_v16  ;;  %v5977_v38 = vpop.f32.mrb[95].mxu0  ;;  %6232 = vmatprep.mubr.bf16.mxu0 %v12450_v0 }
 0x68a   : > { %v7322_v49 = vadd.f32 %v10894_v50, %v6931_v11  ;;  %v6934_v60 = vmul.f32 %v10875_v44, %v5977_v38 }
 0x68b   : > { %v7696_v33 = vmax.f32 %v7321_v47, 0.0  ;;  %v7324_v52 = vadd.f32 %v10890_v23, %v6933_v35 }
 0x68c   : > { %v7697_v15 = vmax.f32 %v7322_v49, 0.0  ;;  %v7325_v6 = vadd.f32 %v10894_v50, %v6934_v60 }
 0x68d   : > { %v7849_v51 = vmax.f32 %v7847_v19, %v7696_v33  ;;  %v7699_v13 = vmax.f32 %v7324_v52, 0.0 }
 0x68e   : > { %v7981_v41 = vmax.f32 %v7979_v12, %v7697_v15  ;;  %v7700_v57 = vmax.f32 %v7325_v6, 0.0  ;;  %v5981_v31 = vpop.f32.mrb[96].mxu0 }
 0x68f   : > { %v7850_v55 = vmax.f32 %v7848_v39, %v7699_v13  ;;  %v6936_v37 = vmul.f32 %v10872_v26, %v5981_v31  ;;  %v5983_v24 = vpop.f32.mrb[97].mxu0  ;;  %v12454_v39 = vld [vmem:[#allocation21_spill] sm:$0xff]  ;;  %v12455_v13 = vld [vmem:[#allocation22_spill] sm:$0xff] }
 0x690   : > { %v7982_v36 = vmax.f32 %v7980_v8, %v7700_v57  ;;  %v6937_v7 = vmul.f32 %v10875_v44, %v5983_v24  ;;  %v5985_v2 = vpop.f32.mrb[98].mxu0  ;;  %6233 = vmatmul.mubr.bf16.gmra.mrb[200].mxu0 %v12451_v59 }
 0x691   : > { %v7327_v5 = vadd.f32 %v10890_v23, %v6936_v37  ;;  %v6939_v14 = vmul.f32 %v10872_v26, %v5985_v2  ;;  %v5987_v10 = vpop.f32.mrb[99].mxu0  ;;  %6240 = vmatprep.mubr.bf16.mxu0 %v12452_v30 }
 0x692   : > { %v7328_v40 = vadd.f32 %v10894_v50, %v6937_v7  ;;  %v6940_v29 = vmul.f32 %v10875_v44, %v5987_v10 }
 0x693   : > { %v7702_v20 = vmax.f32 %v7327_v5, 0.0  ;;  %v7330_v63 = vadd.f32 %v10890_v23, %v6939_v14 }
 0x694   : > { %v7703_v56 = vmax.f32 %v7328_v40, 0.0  ;;  %v7331_v18 = vadd.f32 %v10894_v50, %v6940_v29 }
 0x695   : > { %v7851_v28 = vmax.f32 %v7849_v51, %v7702_v20  ;;  %v7705_v22 = vmax.f32 %v7330_v63, 0.0 }
 0x696   : > { %v7983_v61 = vmax.f32 %v7981_v41, %v7703_v56  ;;  %v7706_v25 = vmax.f32 %v7331_v18, 0.0  ;;  %v5991_v4 = vpop.f32.mrb[100].mxu0 }
 0x697   : > { %v7852_v21 = vmax.f32 %v7850_v55, %v7705_v22  ;;  %v6942_v54 = vmul.f32 %v10872_v26, %v5991_v4  ;;  %v5993_v46 = vpop.f32.mrb[101].mxu0  ;;  %v12456_v55 = vld [vmem:[#allocation23_spill] sm:$0xff]  ;;  %v12457_v22 = vld [vmem:[#allocation24_spill] sm:$0xff] }
 0x698   : > { %v7984_v62 = vmax.f32 %v7982_v36, %v7706_v25  ;;  %v6943_v1 = vmul.f32 %v10875_v44, %v5993_v46  ;;  %v5995_v19 = vpop.f32.mrb[102].mxu0  ;;  %6241 = vmatmul.mubr.bf16.gmra.mrb[204].mxu0 %v12453_v9 }
 0x699   : > { %v7333_v12 = vadd.f32 %v10890_v23, %v6942_v54  ;;  %v6945_v17 = vmul.f32 %v10872_v26, %v5995_v19  ;;  %v5997_v48 = vpop.f32.mrb[103].mxu0  ;;  %6248 = vmatprep.mubr.bf16.mxu0 %v12454_v39 }
 0x69a   : > { %v7334_v43 = vadd.f32 %v10894_v50, %v6943_v1  ;;  %v6946_v45 = vmul.f32 %v10875_v44, %v5997_v48 }
 0x69b   : > { %v7708_v8 = vmax.f32 %v7333_v12, 0.0  ;;  %v7336_v11 = vadd.f32 %v10890_v23, %v6945_v17 }
 0x69c   : > { %v7709_v16 = vmax.f32 %v7334_v43, 0.0  ;;  %v7337_v32 = vadd.f32 %v10894_v50, %v6946_v45 }
 0x69d   : > { %v7853_v47 = vmax.f32 %v7851_v28, %v7708_v8  ;;  %v7711_v35 = vmax.f32 %v7336_v11, 0.0 }
 0x69e   : > { %v7985_v38 = vmax.f32 %v7983_v61, %v7709_v16  ;;  %v7712_v0 = vmax.f32 %v7337_v32, 0.0  ;;  %v6001_v49 = vpop.f32.mrb[104].mxu0 }
 0x69f   : > { %v7854_v60 = vmax.f32 %v7852_v21, %v7711_v35  ;;  %v6948_v33 = vmul.f32 %v10872_v26, %v6001_v49  ;;  %v6003_v52 = vpop.f32.mrb[105].mxu0  ;;  %v12458_v21 = vld [vmem:[#allocation25_spill] sm:$0xff]  ;;  %v12459_v35 = vld [vmem:[#allocation26_spill] sm:$0xff] }
 0x6a0   : > { %v7986_v15 = vmax.f32 %v7984_v62, %v7712_v0  ;;  %v6949_v6 = vmul.f32 %v10875_v44, %v6003_v52  ;;  %v6005_v51 = vpop.f32.mrb[106].mxu0  ;;  %6249 = vmatmul.mubr.bf16.gmra.mrb[208].mxu0 %v12455_v13 }
 0x6a1   : > { %v7339_v41 = vadd.f32 %v10890_v23, %v6948_v33  ;;  %v6951_v57 = vmul.f32 %v10872_v26, %v6005_v51  ;;  %v6007_v31 = vpop.f32.mrb[107].mxu0  ;;  %6256 = vmatprep.mubr.bf16.mxu0 %v12456_v55 }
 0x6a2   : > { %v7340_v37 = vadd.f32 %v10894_v50, %v6949_v6  ;;  %v6952_v24 = vmul.f32 %v10875_v44, %v6007_v31 }
 0x6a3   : > { %v7714_v36 = vmax.f32 %v7339_v41, 0.0  ;;  %v7342_v7 = vadd.f32 %v10890_v23, %v6951_v57 }
 0x6a4   : > { %v7715_v2 = vmax.f32 %v7340_v37, 0.0  ;;  %v7343_v59 = vadd.f32 %v10894_v50, %v6952_v24 }
 0x6a5   : > { %v7855_v5 = vmax.f32 %v7853_v47, %v7714_v36  ;;  %v7717_v14 = vmax.f32 %v7342_v7, 0.0 }
 0x6a6   : > { %v7987_v10 = vmax.f32 %v7985_v38, %v7715_v2  ;;  %v7718_v30 = vmax.f32 %v7343_v59, 0.0  ;;  %v6011_v40 = vpop.f32.mrb[108].mxu0 }
 0x6a7   : > { %v7856_v29 = vmax.f32 %v7854_v60, %v7717_v14  ;;  %v6954_v20 = vmul.f32 %v10872_v26, %v6011_v40  ;;  %v6013_v63 = vpop.f32.mrb[109].mxu0  ;;  %v12460_v60 = vld [vmem:[#allocation27_spill] sm:$0xff]  ;;  %v12461_v14 = vld [vmem:[#allocation28_spill] sm:$0xff] }
 0x6a8   : > { %v7988_v56 = vmax.f32 %v7986_v15, %v7718_v30  ;;  %v6955_v18 = vmul.f32 %v10875_v44, %v6013_v63  ;;  %v6015_v28 = vpop.f32.mrb[110].mxu0  ;;  %6257 = vmatmul.mubr.bf16.gmra.mrb[212].mxu0 %v12457_v22 }
 0x6a9   : > { %v7345_v61 = vadd.f32 %v10890_v23, %v6954_v20  ;;  %v6957_v25 = vmul.f32 %v10872_v26, %v6015_v28  ;;  %v6017_v4 = vpop.f32.mrb[111].mxu0  ;;  %6264 = vmatprep.mubr.bf16.mxu0 %v12458_v21 }
 0x6aa   : > { %v7346_v54 = vadd.f32 %v10894_v50, %v6955_v18  ;;  %v6958_v46 = vmul.f32 %v10875_v44, %v6017_v4 }
 0x6ab   : > { %v7720_v62 = vmax.f32 %v7345_v61, 0.0  ;;  %v7348_v1 = vadd.f32 %v10890_v23, %v6957_v25 }
 0x6ac   : > { %v7721_v19 = vmax.f32 %v7346_v54, 0.0  ;;  %v7349_v9 = vadd.f32 %v10894_v50, %v6958_v46 }
 0x6ad   : > { %v7857_v12 = vmax.f32 %v7855_v5, %v7720_v62  ;;  %v7723_v17 = vmax.f32 %v7348_v1, 0.0  ;;  %v12463_v62 = vld [vmem:[#allocation30_spill] sm:$0xff]  ;;  %v12464_v1 = vld [vmem:[#allocation31_spill] sm:$0xff] }
 0x6ae   : > { %v7989_v48 = vmax.f32 %v7987_v10, %v7721_v19  ;;  %v7724_v39 = vmax.f32 %v7349_v9, 0.0  ;;  %v6021_v43 = vpop.f32.mrb[112].mxu0 }
 0x6af   : > { %v7858_v45 = vmax.f32 %v7856_v29, %v7723_v17  ;;  %v6960_v8 = vmul.f32 %v10872_v26, %v6021_v43  ;;  %v6023_v11 = vpop.f32.mrb[113].mxu0  ;;  %v12462_v29 = vld [vmem:[#allocation29_spill] sm:$0xff] }
 0x6b0   : > { %v7990_v16 = vmax.f32 %v7988_v56, %v7724_v39  ;;  %v6961_v32 = vmul.f32 %v10875_v44, %v6023_v11  ;;  %v6025_v47 = vpop.f32.mrb[114].mxu0  ;;  %6265 = vmatmul.mubr.bf16.gmra.mrb[216].mxu0 %v12459_v35  ;;  %v12465_v11 = vld [vmem:[#allocation32_spill] sm:$0xff]  ;;  %v12467_v35 = vld [vmem:[#allocation33_spill] sm:$0xff] }
 0x6b1   : > { %v7351_v38 = vadd.f32 %v10890_v23, %v6960_v8  ;;  %v6963_v0 = vmul.f32 %v10872_v26, %v6025_v47  ;;  %v6027_v49 = vpop.f32.mrb[115].mxu0  ;;  %6272 = vmatprep.mubr.bf16.mxu0 %v12460_v60 }
 0x6b2   : > { %v7352_v33 = vadd.f32 %v10894_v50, %v6961_v32  ;;  %v6964_v52 = vmul.f32 %v10875_v44, %v6027_v49 }
 0x6b3   : > { %v7726_v15 = vmax.f32 %v7351_v38, 0.0  ;;  %v7354_v6 = vadd.f32 %v10890_v23, %v6963_v0 }
 0x6b4   : > { %v7727_v51 = vmax.f32 %v7352_v33, 0.0  ;;  %v7355_v13 = vadd.f32 %v10894_v50, %v6964_v52 }
 0x6b5   : > { %v7859_v41 = vmax.f32 %v7857_v12, %v7726_v15  ;;  %v7729_v57 = vmax.f32 %v7354_v6, 0.0 }
 0x6b6   : > { %v7991_v31 = vmax.f32 %v7989_v48, %v7727_v51  ;;  %v7730_v55 = vmax.f32 %v7355_v13, 0.0  ;;  %v6031_v37 = vpop.f32.mrb[116].mxu0 }
 0x6b7   : > { %v7860_v24 = vmax.f32 %v7858_v45, %v7729_v57  ;;  %v6966_v36 = vmul.f32 %v10872_v26, %v6031_v37  ;;  %v6033_v7 = vpop.f32.mrb[117].mxu0  ;;  %v9159_v57 = vld [vmem:[%s12245_s4 + $0xd] ss:$2 sm:$0x7] }
 0x6b8   : > { %v7992_v2 = vmax.f32 %v7990_v16, %v7730_v55  ;;  %v6967_v59 = vmul.f32 %v10875_v44, %v6033_v7  ;;  %v6035_v5 = vpop.f32.mrb[118].mxu0  ;;  %6273 = vmatmul.mubr.bf16.gmra.mrb[220].mxu0 %v12461_v14  ;;  %v12466_v16 = vld [vmem:[#allocation7_spill] sm:$0xff]  ;;  %v12468_v55 = vld [vmem:[#allocation34_spill] sm:$0xff] }
 0x6b9   : > { %v7357_v10 = vadd.f32 %v10890_v23, %v6966_v36  ;;  %v6969_v30 = vmul.f32 %v10872_v26, %v6035_v5  ;;  %v6037_v40 = vpop.f32.mrb[119].mxu0  ;;  %6280 = vmatprep.mubr.bf16.mxu0 %v12462_v29  ;;  %v6595_v32 = vsub.s32 2, %v12466_v16 }
 0x6ba   : > { %v7358_v20 = vadd.f32 %v10894_v50, %v6967_v59  ;;  %v6970_v63 = vmul.f32 %v10875_v44, %v6037_v40 }
 0x6bb   : > { %v7732_v56 = vmax.f32 %v7357_v10, 0.0  ;;  %v7360_v18 = vadd.f32 %v10890_v23, %v6969_v30 }
 0x6bc   : > { %v7733_v28 = vmax.f32 %v7358_v20, 0.0  ;;  %v7361_v22 = vadd.f32 %v10894_v50, %v6970_v63 }
 0x6bd   : > { %v7735_v61 = vmax.f32 %v7360_v18, 0.0  ;;  %v7861_v25 = vmax.f32 %v7859_v41, %v7732_v56 }
 0x6be   : > { %v7736_v4 = vmax.f32 %v7361_v22, 0.0  ;;  %v7993_v21 = vmax.f32 %v7991_v31, %v7733_v28  ;;  %v11860_v31 = vrot.slane %v9159_v57, %v6595_v32 }
 0x6bf   : > { %v7862_v54 = vmax.f32 %v7860_v24, %v7735_v61  ;;  %v12469_v24 = vld [vmem:[#allocation35_spill] sm:$0xff] }
 0x6c0   : > { %v7994_v46 = vmax.f32 %v7992_v2, %v7736_v4  ;;  %6281 = vmatmul.mubr.bf16.gmra.mrb[224].mxu0 %v12463_v62  ;;  %v12471_v62 = vld [vmem:[#allocation37_spill] sm:$0xff] }
 0x6c1   : > { %6288 = vmatprep.mubr.bf16.mxu0 %v12464_v1 }
 0x6c3   : > { %v6041_v19 = vpop.f32.mrb[120].mxu0 }
 0x6c4   : > { %v6972_v9 = vmul.f32 %v10872_v26, %v6041_v19  ;;  %v6043_v12 = vpop.f32.mrb[121].mxu0 }
 0x6c5   : > { %v6973_v17 = vmul.f32 %v10875_v44, %v6043_v12  ;;  %v6045_v48 = vpop.f32.mrb[122].mxu0 }
 0x6c6   : > { %v7363_v39 = vadd.f32 %v10890_v23, %v6972_v9  ;;  %v6046_v43 = vpop.f32.mrb[123].mxu0  ;;  %v9158_v23 = vld [vmem:[%s12245_s4 + $0xc] ss:$2 sm:$0x7] }
 0x6c7   : > { %v7364_v45 = vadd.f32 %v10894_v50, %v6973_v17  ;;  %v11854_v50 = vrot.slane %v9158_v23, %v6595_v32 }
 0x6c8   : > { %v7738_v8 = vmax.f32 %v7363_v39, 0.0  ;;  %6289 = vmatmul.mubr.bf16.gmra.mrb[228].mxu0 %v12465_v11 }
 0x6c9   : > { %v7739_v47 = vmax.f32 %v7364_v45, 0.0  ;;  %6296 = vmatprep.mubr.bf16.mxu0 %v12467_v35 }
 0x6ca   : > { %v7864_v26 = vsel %vm7863_vm2, %v7738_v8, -inf }
 0x6cb   : > { %v7865_v38 = vmax.f32 %v7861_v25, %v7864_v26  ;;  %v7995_v44 = vsel %vm7863_vm2, %v7739_v47, -inf  ;;  %v6082_v0 = vpop.f32.mrb[124].mxu0 }
 0x6cc   : > { %v7996_v49 = vmax.f32 %v7993_v21, %v7995_v44  ;;  %v6084_v60 = vpop.f32.mrb[125].mxu0  ;;  %v6602_v41 = vmul.f32 %v11854_v50, %v6082_v0  ;;  %v12473_v44 = vld [vmem:[#allocation39_spill] sm:$0xff] }
 0x6cd   : > { %v7866_v33 = vmax.f32 %v7865_v38, %v7862_v54  ;;  %v6085_v52 = vpop.f32.mrb[126].mxu0  ;;  %v12470_v54 = vld [vmem:[#allocation36_spill] sm:$0xff]  ;;  %v12472_v38 = vld [vmem:[#allocation38_spill] sm:$0xff] }
 0x6ce   : > { %v7997_v15 = vmax.f32 %v7996_v49, %v7994_v46  ;;  %v6087_v6 = vpop.f32.mrb[127].mxu0  ;;  %v6605_v7 = vmul.f32 %v11854_v50, %v6085_v52  ;;  %v6993_v14 = vadd.f32 %v11860_v31, %v6602_v41 }
 0x6cf   : > { %v7867_v51 = vrot.slane %v7866_v33, 4 }
 0x6d0   : > { %v7998_v13 = vrot.slane %v7997_v15, 4  ;;  %6297 = vmatmul.mubr.bf16.gmra.mrb[232].mxu0 %v12468_v55  ;;  %v6996_v63 = vadd.f32 %v11860_v31, %v6605_v7  ;;  %v7368_v25 = vmax.f32 %v6993_v14, 0.0  ;;  %v12474_v55 = vld [vmem:[#allocation40_spill] sm:$0xff] }
 0x6d1   : > { %v7868_v37 = vmax.f32 %v7866_v33, %v7867_v51  ;;  %6304 = vmatprep.mubr.bf16.mxu0 %v12469_v24 }
 0x6d2   : > { %v7999_v36 = vmax.f32 %v7997_v15, %v7998_v13  ;;  %v7371_v19 = vmax.f32 %v6996_v63, 0.0  ;;  %v12476_v63 = vld [vmem:[#allocation42_spill] sm:$0xff] }
 0x6d3   : > { %v7869_v2 = vrot.slane %v7868_v37, 2  ;;  %v6090_v59 = vpop.f32.mrb[128].mxu0 }
 0x6d4   : > { %v8000_v5 = vrot.slane %v7999_v36, 2  ;;  %v6608_v10 = vmul.f32 %v11854_v50, %v6090_v59  ;;  %v6092_v30 = vpop.f32.mrb[129].mxu0 }
 0x6d5   : > { %v7870_v40 = vmax.f32 %v7868_v37, %v7869_v2  ;;  %v6093_v29 = vpop.f32.mrb[130].mxu0 }
 0x6d6   : > { %v8001_v20 = vmax.f32 %v7999_v36, %v8000_v5  ;;  %v6999_v56 = vadd.f32 %v11860_v31, %v6608_v10  ;;  %v6611_v18 = vmul.f32 %v11854_v50, %v6093_v29  ;;  %v6095_v28 = vpop.f32.mrb[131].mxu0 }
 0x6d7   : > { %v7871_v22 = vrot.slane %v7870_v40, 1 }
 0x6d8   : > { %v8002_v61 = vrot.slane %v8001_v20, 1  ;;  %v7374_v4 = vmax.f32 %v6999_v56, 0.0  ;;  %v7002_v21 = vadd.f32 %v11860_v31, %v6611_v18  ;;  %6305 = vmatmul.mubr.bf16.gmra.mrb[236].mxu0 %v12470_v54 }
 0x6d9   : > { %v11872_v46 = vmax.f32 %v7870_v40, %v7871_v22  ;;  %6312 = vmatprep.mubr.bf16.mxu0 %v12471_v62 }
 0x6da   : > { %v11875_v1 = vmax.f32 %v8001_v20, %v8002_v61  ;;  %v8004_v9 = vmax.f32 %v7368_v25, %v7374_v4  ;;  %v7377_v12 = vmax.f32 %v7002_v21, 0.0  ;;  %v12475_v20 = vld [vmem:[#allocation41_spill] sm:$0xff] }
 0x6db   : > { %v6098_v17 = vpop.f32.mrb[132].mxu0 }
 0x6dc   : > { %v8005_v48 = vmax.f32 %v7371_v19, %v7377_v12  ;;  %v6614_v39 = vmul.f32 %v11854_v50, %v6098_v17  ;;  %v6100_v43 = vpop.f32.mrb[133].mxu0  ;;  %v8138_v45 = vcombine.low %v11872_v46, %v11875_v1  ;;  %v12478_v12 = vld [vmem:[#allocation44_spill] sm:$0xff] }
 0x6dd   : > { %v6101_v8 = vpop.f32.mrb[134].mxu0 }
 0x6de   : > { %v7005_v11 = vadd.f32 %v11860_v31, %v6614_v39  ;;  %v6617_v32 = vmul.f32 %v11854_v50, %v6101_v8  ;;  %v6103_v47 = vpop.f32.mrb[135].mxu0 }
 0x6e0   : > { %v7380_v35 = vmax.f32 %v7005_v11, 0.0  ;;  %v7008_v26 = vadd.f32 %v11860_v31, %v6617_v32  ;;  %6313 = vmatmul.mubr.bf16.gmra.mrb[240].mxu0 %v12472_v38 }
 0x6e1   : > { %6320 = vmatprep.mubr.bf16.mxu0 %v12473_v44 }
 0x6e2   : > { %v8006_v0 = vmax.f32 %v8004_v9, %v7380_v35  ;;  %v7383_v49 = vmax.f32 %v7008_v26, 0.0  ;;  %v12477_v9 = vld [vmem:[#allocation43_spill] sm:$0xff] }
 0x6e3   : > { %v6106_v23 = vpop.f32.mrb[136].mxu0 }
 0x6e4   : > { %v8007_v60 = vmax.f32 %v8005_v48, %v7383_v49  ;;  %v6620_v33 = vmul.f32 %v11854_v50, %v6106_v23  ;;  %v6108_v52 = vpop.f32.mrb[137].mxu0  ;;  %v12480_v49 = vld [vmem:[#allocation46_spill] sm:$0xff] }
 0x6e5   : > { %v6109_v15 = vpop.f32.mrb[138].mxu0 }
 0x6e6   : > { %v7011_v6 = vadd.f32 %v11860_v31, %v6620_v33  ;;  %v6623_v51 = vmul.f32 %v11854_v50, %v6109_v15  ;;  %v6111_v13 = vpop.f32.mrb[139].mxu0 }
 0x6e8   : > { %v7386_v41 = vmax.f32 %v7011_v6, 0.0  ;;  %v7014_v57 = vadd.f32 %v11860_v31, %v6623_v51  ;;  %6321 = vmatmul.mubr.bf16.gmra.mrb[244].mxu0 %v12474_v55 }
 0x6e9   : > { %6328 = vmatprep.mubr.bf16.mxu0 %v10973_v27 }
 0x6ea   : > { %v8008_v37 = vmax.f32 %v8006_v0, %v7386_v41  ;;  %v7389_v24 = vmax.f32 %v7014_v57, 0.0  ;;  %v12479_v0 = vld [vmem:[#allocation45_spill] sm:$0xff] }
 0x6eb   : > { %v6114_v36 = vpop.f32.mrb[140].mxu0 }
 0x6ec   : > { %v8009_v7 = vmax.f32 %v8007_v60, %v7389_v24  ;;  %v6626_v2 = vmul.f32 %v11854_v50, %v6114_v36  ;;  %v6116_v59 = vpop.f32.mrb[141].mxu0  ;;  %v12481_v24 = vld [vmem:[#allocation47_spill] sm:$0xff]  ;;  %v12482_v36 = vld [vmem:[#allocation48_spill] sm:$0xff] }
 0x6ed   : > { %v6117_v5 = vpop.f32.mrb[142].mxu0 }
 0x6ee   : > { %v7017_v14 = vadd.f32 %v11860_v31, %v6626_v2  ;;  %v6629_v10 = vmul.f32 %v11854_v50, %v6117_v5  ;;  %v6119_v30 = vpop.f32.mrb[143].mxu0 }
 0x6f0   : > { %v7392_v40 = vmax.f32 %v7017_v14, 0.0  ;;  %v7020_v29 = vadd.f32 %v11860_v31, %v6629_v10  ;;  %6329 = vmatmul.mubr.bf16.gmra.mrb[248].mxu0 %v12475_v20 }
 0x6f1   : > { %6336 = vmatprep.mubr.bf16.mxu0 %v12476_v63 }
 0x6f2   : > { %v8010_v27 = vmax.f32 %v8008_v37, %v7392_v40  ;;  %v7395_v56 = vmax.f32 %v7020_v29, 0.0 }
 0x6f3   : > { %v6122_v18 = vpop.f32.mrb[144].mxu0 }
 0x6f4   : > { %v8011_v28 = vmax.f32 %v8009_v7, %v7395_v56  ;;  %v6632_v22 = vmul.f32 %v11854_v50, %v6122_v18  ;;  %v6124_v61 = vpop.f32.mrb[145].mxu0  ;;  %v12483_v56 = vld [vmem:[#allocation49_spill] sm:$0xff]  ;;  %v12484_v18 = vld [vmem:[#allocation50_spill] sm:$0xff] }
 0x6f5   : > { %v6125_v25 = vpop.f32.mrb[146].mxu0 }
 0x6f6   : > { %v7023_v4 = vadd.f32 %v11860_v31, %v6632_v22  ;;  %v6635_v21 = vmul.f32 %v11854_v50, %v6125_v25  ;;  %v6127_v54 = vpop.f32.mrb[147].mxu0 }
 0x6f8   : > { %v7398_v62 = vmax.f32 %v7023_v4, 0.0  ;;  %v7026_v19 = vadd.f32 %v11860_v31, %v6635_v21  ;;  %6337 = vmatmul.mubr.bf16.gmra.mrb[252].mxu0 %v12477_v9 }
 0x6f9   : > { %6344 = vmatprep.mubr.bf16.mxu0 %v12478_v12 }
 0x6fa   : > { %v8012_v17 = vmax.f32 %v8010_v27, %v7398_v62  ;;  %v7401_v48 = vmax.f32 %v7026_v19, 0.0 }
 0x6fb   : > { %v6130_v39 = vpop.f32.mrb[148].mxu0 }
 0x6fc   : > { %v8013_v43 = vmax.f32 %v8011_v28, %v7401_v48  ;;  %v6638_v8 = vmul.f32 %v11854_v50, %v6130_v39  ;;  %v6132_v11 = vpop.f32.mrb[149].mxu0  ;;  %v12485_v48 = vld [vmem:[#allocation51_spill] sm:$0xff]  ;;  %v12486_v39 = vld [vmem:[#allocation52_spill] sm:$0xff] }
 0x6fd   : > { %v6133_v32 = vpop.f32.mrb[150].mxu0 }
 0x6fe   : > { %v7029_v47 = vadd.f32 %v11860_v31, %v6638_v8  ;;  %v6641_v35 = vmul.f32 %v11854_v50, %v6133_v32  ;;  %v6135_v26 = vpop.f32.mrb[151].mxu0 }
 0x700   : > { %v7404_v38 = vmax.f32 %v7029_v47, 0.0  ;;  %v7032_v44 = vadd.f32 %v11860_v31, %v6641_v35  ;;  %6345 = vmatmul.mubr.bf16.gmra.mrb[0].mxu0 %v12479_v0 }
 0x701   : > { %6352 = vmatprep.mubr.bf16.mxu0 %v12480_v49 }
 0x702   : > { %v8014_v23 = vmax.f32 %v8012_v17, %v7404_v38  ;;  %v7407_v60 = vmax.f32 %v7032_v44, 0.0 }
 0x703   : > { %v6138_v33 = vpop.f32.mrb[152].mxu0 }
 0x704   : > { %v8015_v52 = vmax.f32 %v8013_v43, %v7407_v60  ;;  %v6644_v15 = vmul.f32 %v11854_v50, %v6138_v33  ;;  %v6140_v6 = vpop.f32.mrb[153].mxu0  ;;  %v12487_v60 = vld [vmem:[#allocation53_spill] sm:$0xff]  ;;  %v12488_v33 = vld [vmem:[#allocation54_spill] sm:$0xff] }
 0x705   : > { %v6141_v51 = vpop.f32.mrb[154].mxu0 }
 0x706   : > { %v7035_v13 = vadd.f32 %v11860_v31, %v6644_v15  ;;  %v6647_v41 = vmul.f32 %v11854_v50, %v6141_v51  ;;  %v6143_v57 = vpop.f32.mrb[155].mxu0 }
 0x708   : > { %v7410_v55 = vmax.f32 %v7035_v13, 0.0  ;;  %v7038_v37 = vadd.f32 %v11860_v31, %v6647_v41  ;;  %6353 = vmatmul.mubr.bf16.gmra.mrb[4].mxu0 %v12481_v24 }
 0x709   : > { %6360 = vmatprep.mubr.bf16.mxu0 %v12482_v36 }
 0x70a   : > { %v8016_v7 = vmax.f32 %v8014_v23, %v7410_v55  ;;  %v7413_v2 = vmax.f32 %v7038_v37, 0.0 }
 0x70b   : > { %v6146_v59 = vpop.f32.mrb[156].mxu0 }
 0x70c   : > { %v8017_v5 = vmax.f32 %v8015_v52, %v7413_v2  ;;  %v6650_v14 = vmul.f32 %v11854_v50, %v6146_v59  ;;  %v6148_v10 = vpop.f32.mrb[157].mxu0  ;;  %v12489_v2 = vld [vmem:[#allocation55_spill] sm:$0xff]  ;;  %v12490_v59 = vld [vmem:[#allocation56_spill] sm:$0xff] }
 0x70d   : > { %v6149_v30 = vpop.f32.mrb[158].mxu0 }
 0x70e   : > { %v7041_v40 = vadd.f32 %v11860_v31, %v6650_v14  ;;  %v6653_v29 = vmul.f32 %v11854_v50, %v6149_v30  ;;  %v6151_v20 = vpop.f32.mrb[159].mxu0 }
 0x710   : > { %v7416_v63 = vmax.f32 %v7041_v40, 0.0  ;;  %v7044_v27 = vadd.f32 %v11860_v31, %v6653_v29  ;;  %6361 = vmatmul.mubr.bf16.gmra.mrb[8].mxu0 %v12483_v56 }
 0x711   : > { %6368 = vmatprep.mubr.bf16.mxu0 %v12484_v18 }
 0x712   : > { %v8018_v28 = vmax.f32 %v8016_v7, %v7416_v63  ;;  %v7419_v22 = vmax.f32 %v7044_v27, 0.0 }
 0x713   : > { %v6154_v61 = vpop.f32.mrb[160].mxu0 }
 0x714   : > { %v8019_v25 = vmax.f32 %v8017_v5, %v7419_v22  ;;  %v6656_v4 = vmul.f32 %v11854_v50, %v6154_v61  ;;  %v6156_v21 = vpop.f32.mrb[161].mxu0  ;;  %v12491_v22 = vld [vmem:[#allocation57_spill] sm:$0xff]  ;;  %v12492_v61 = vld [vmem:[#allocation58_spill] sm:$0xff] }
 0x715   : > { %v6157_v54 = vpop.f32.mrb[162].mxu0 }
 0x716   : > { %v7047_v62 = vadd.f32 %v11860_v31, %v6656_v4  ;;  %v6659_v19 = vmul.f32 %v11854_v50, %v6157_v54  ;;  %v6159_v9 = vpop.f32.mrb[163].mxu0 }
 0x718   : > { %v7422_v12 = vmax.f32 %v7047_v62, 0.0  ;;  %v7050_v17 = vadd.f32 %v11860_v31, %v6659_v19  ;;  %6369 = vmatmul.mubr.bf16.gmra.mrb[12].mxu0 %v12485_v48 }
 0x719   : > { %6376 = vmatprep.mubr.bf16.mxu0 %v12486_v39 }
 0x71a   : > { %v8020_v43 = vmax.f32 %v8018_v28, %v7422_v12  ;;  %v7425_v8 = vmax.f32 %v7050_v17, 0.0 }
 0x71b   : > { %v6162_v11 = vpop.f32.mrb[164].mxu0 }
 0x71c   : > { %v8021_v32 = vmax.f32 %v8019_v25, %v7425_v8  ;;  %v6662_v47 = vmul.f32 %v11854_v50, %v6162_v11  ;;  %v6164_v35 = vpop.f32.mrb[165].mxu0  ;;  %v12493_v8 = vld [vmem:[#allocation59_spill] sm:$0xff] }
 0x71d   : > { %v6165_v26 = vpop.f32.mrb[166].mxu0 }
 0x71e   : > { %v7053_v38 = vadd.f32 %v11860_v31, %v6662_v47  ;;  %v6665_v44 = vmul.f32 %v11854_v50, %v6165_v26  ;;  %v6167_v0 = vpop.f32.mrb[167].mxu0 }
 0x720   : > { %v7428_v49 = vmax.f32 %v7053_v38, 0.0  ;;  %v7056_v23 = vadd.f32 %v11860_v31, %v6665_v44  ;;  %6377 = vmatmul.mubr.bf16.gmra.mrb[16].mxu0 %v12487_v60 }
 0x721   : > { %6384 = vmatprep.mubr.bf16.mxu0 %v12488_v33 }
 0x722   : > { %v8022_v52 = vmax.f32 %v8020_v43, %v7428_v49  ;;  %v7431_v15 = vmax.f32 %v7056_v23, 0.0 }
 0x723   : > { %v6170_v6 = vpop.f32.mrb[168].mxu0 }
 0x724   : > { %v8023_v51 = vmax.f32 %v8021_v32, %v7431_v15  ;;  %v6668_v13 = vmul.f32 %v11854_v50, %v6170_v6  ;;  %v6172_v41 = vpop.f32.mrb[169].mxu0  ;;  %v12495_v15 = vld [vmem:[#allocation61_spill] sm:$0xff] }
 0x725   : > { %v6173_v57 = vpop.f32.mrb[170].mxu0 }
 0x726   : > { %v7059_v55 = vadd.f32 %v11860_v31, %v6668_v13  ;;  %v6671_v37 = vmul.f32 %v11854_v50, %v6173_v57  ;;  %v6175_v24 = vpop.f32.mrb[171].mxu0 }
 0x728   : > { %v7434_v36 = vmax.f32 %v7059_v55, 0.0  ;;  %v7062_v7 = vadd.f32 %v11860_v31, %v6671_v37  ;;  %6385 = vmatmul.mubr.bf16.gmra.mrb[20].mxu0 %v12489_v2 }
 0x729   : > { %6392 = vmatprep.mubr.bf16.mxu0 %v12490_v59  ;;  %v12496_v59 = vld [vmem:[#allocation62_spill] sm:$0xff] }
 0x72a   : > { %v8024_v5 = vmax.f32 %v8022_v52, %v7434_v36  ;;  %v7437_v14 = vmax.f32 %v7062_v7, 0.0  ;;  %v12494_v52 = vld [vmem:[#allocation60_spill] sm:$0xff] }
 0x72b   : > { %v6178_v10 = vpop.f32.mrb[172].mxu0 }
 0x72c   : > { %v8025_v30 = vmax.f32 %v8023_v51, %v7437_v14  ;;  %v6674_v40 = vmul.f32 %v11854_v50, %v6178_v10  ;;  %v6180_v29 = vpop.f32.mrb[173].mxu0 }
 0x72d   : > { %v6181_v20 = vpop.f32.mrb[174].mxu0 }
 0x72e   : > { %v7065_v63 = vadd.f32 %v11860_v31, %v6674_v40  ;;  %v6677_v27 = vmul.f32 %v11854_v50, %v6181_v20  ;;  %v6183_v56 = vpop.f32.mrb[175].mxu0 }
 0x730   : > { %v7440_v18 = vmax.f32 %v7065_v63, 0.0  ;;  %v7068_v28 = vadd.f32 %v11860_v31, %v6677_v27  ;;  %6393 = vmatmul.mubr.bf16.gmra.mrb[24].mxu0 %v12491_v22 }
 0x731   : > { %6400 = vmatprep.mubr.bf16.mxu0 %v12492_v61  ;;  %v12498_v61 = vld [vmem:[#allocation64_spill] sm:$0xff] }
 0x732   : > { %v8026_v25 = vmax.f32 %v8024_v5, %v7440_v18  ;;  %v7443_v4 = vmax.f32 %v7068_v28, 0.0  ;;  %v12497_v5 = vld [vmem:[#allocation63_spill] sm:$0xff] }
 0x733   : > { %v6186_v21 = vpop.f32.mrb[176].mxu0 }
 0x734   : > { %v8027_v54 = vmax.f32 %v8025_v30, %v7443_v4  ;;  %v6680_v62 = vmul.f32 %v11854_v50, %v6186_v21  ;;  %v6188_v19 = vpop.f32.mrb[177].mxu0 }
 0x735   : > { %v6189_v9 = vpop.f32.mrb[178].mxu0 }
 0x736   : > { %v7071_v12 = vadd.f32 %v11860_v31, %v6680_v62  ;;  %v6683_v17 = vmul.f32 %v11854_v50, %v6189_v9  ;;  %v6191_v48 = vpop.f32.mrb[179].mxu0 }
 0x738   : > { %v7446_v39 = vmax.f32 %v7071_v12, 0.0  ;;  %v7074_v43 = vadd.f32 %v11860_v31, %v6683_v17  ;;  %6401 = vmatmul.mubr.bf16.gmra.mrb[28].mxu0 %v12493_v8 }
 0x739   : > { %6408 = vmatprep.mubr.bf16.mxu0 %v11177_v53 }
 0x73a   : > { %v8028_v11 = vmax.f32 %v8026_v25, %v7446_v39  ;;  %v7449_v32 = vmax.f32 %v7074_v43, 0.0  ;;  %v12499_v25 = vld [vmem:[#allocation65_spill] sm:$0xff] }
 0x73b   : > { %v6194_v47 = vpop.f32.mrb[180].mxu0 }
 0x73c   : > { %v8029_v35 = vmax.f32 %v8027_v54, %v7449_v32  ;;  %v6686_v26 = vmul.f32 %v11854_v50, %v6194_v47  ;;  %v6196_v38 = vpop.f32.mrb[181].mxu0  ;;  %v12501_v32 = vld [vmem:[#allocation67_spill] sm:$0xff] }
 0x73d   : > { %v6197_v44 = vpop.f32.mrb[182].mxu0 }
 0x73e   : > { %v7077_v0 = vadd.f32 %v11860_v31, %v6686_v26  ;;  %v6689_v49 = vmul.f32 %v11854_v50, %v6197_v44  ;;  %v6199_v23 = vpop.f32.mrb[183].mxu0 }
 0x740   : > { %v7452_v60 = vmax.f32 %v7077_v0, 0.0  ;;  %v7080_v33 = vadd.f32 %v11860_v31, %v6689_v49  ;;  %6409 = vmatmul.mubr.bf16.gmra.mrb[32].mxu0 %v12494_v52 }
 0x741   : > { %6416 = vmatprep.mubr.bf16.mxu0 %v12495_v15 }
 0x742   : > { %v8030_v53 = vmax.f32 %v8028_v11, %v7452_v60  ;;  %v7455_v6 = vmax.f32 %v7080_v33, 0.0  ;;  %v12500_v11 = vld [vmem:[#allocation66_spill] sm:$0xff] }
 0x743   : > { %v6202_v51 = vpop.f32.mrb[184].mxu0 }
 0x744   : > { %v8031_v13 = vmax.f32 %v8029_v35, %v7455_v6  ;;  %v6692_v41 = vmul.f32 %v11854_v50, %v6202_v51  ;;  %v6204_v57 = vpop.f32.mrb[185].mxu0  ;;  %v12503_v6 = vld [vmem:[#allocation69_spill] sm:$0xff] }
 0x745   : > { %v6205_v55 = vpop.f32.mrb[186].mxu0 }
 0x746   : > { %v7083_v37 = vadd.f32 %v11860_v31, %v6692_v41  ;;  %v6695_v24 = vmul.f32 %v11854_v50, %v6205_v55  ;;  %v6207_v36 = vpop.f32.mrb[187].mxu0 }
 0x748   : > { %v7458_v7 = vmax.f32 %v7083_v37, 0.0  ;;  %v7086_v2 = vadd.f32 %v11860_v31, %v6695_v24  ;;  %6417 = vmatmul.mubr.bf16.gmra.mrb[36].mxu0 %v12496_v59 }
 0x749   : > { %6424 = vmatprep.mubr.bf16.mxu0 %v12497_v5 }
 0x74a   : > { %v8032_v14 = vmax.f32 %v8030_v53, %v7458_v7  ;;  %v7461_v10 = vmax.f32 %v7086_v2, 0.0  ;;  %v12502_v53 = vld [vmem:[#allocation68_spill] sm:$0xff] }
 0x74b   : > { %v6210_v30 = vpop.f32.mrb[188].mxu0 }
 0x74c   : > { %v8033_v40 = vmax.f32 %v8031_v13, %v7461_v10  ;;  %v6698_v29 = vmul.f32 %v11854_v50, %v6210_v30  ;;  %v6212_v20 = vpop.f32.mrb[189].mxu0  ;;  %v12505_v10 = vld [vmem:[#allocation71_spill] sm:$0xff] }
 0x74d   : > { %v6213_v63 = vpop.f32.mrb[190].mxu0 }
 0x74e   : > { %v7089_v27 = vadd.f32 %v11860_v31, %v6698_v29  ;;  %v6701_v56 = vmul.f32 %v11854_v50, %v6213_v63  ;;  %v6215_v18 = vpop.f32.mrb[191].mxu0 }
 0x750   : > { %v7464_v28 = vmax.f32 %v7089_v27, 0.0  ;;  %v7092_v22 = vadd.f32 %v11860_v31, %v6701_v56  ;;  %6425 = vmatmul.mubr.bf16.gmra.mrb[40].mxu0 %v12498_v61 }
 0x751   : > { %6432 = vmatprep.mubr.bf16.mxu0 %v12499_v25 }
 0x752   : > { %v8034_v4 = vmax.f32 %v8032_v14, %v7464_v28  ;;  %v7467_v21 = vmax.f32 %v7092_v22, 0.0  ;;  %v12504_v14 = vld [vmem:[#allocation70_spill] sm:$0xff] }
 0x753   : > { %v6218_v54 = vpop.f32.mrb[192].mxu0 }
 0x754   : > { %v8035_v62 = vmax.f32 %v8033_v40, %v7467_v21  ;;  %v6704_v19 = vmul.f32 %v11854_v50, %v6218_v54  ;;  %v6220_v9 = vpop.f32.mrb[193].mxu0  ;;  %v12507_v21 = vld [vmem:[#allocation73_spill] sm:$0xff] }
 0x755   : > { %v6221_v12 = vpop.f32.mrb[194].mxu0 }
 0x756   : > { %v7095_v17 = vadd.f32 %v11860_v31, %v6704_v19  ;;  %v6707_v48 = vmul.f32 %v11854_v50, %v6221_v12  ;;  %v6223_v39 = vpop.f32.mrb[195].mxu0 }
 0x758   : > { %v7470_v43 = vmax.f32 %v7095_v17, 0.0  ;;  %v7098_v8 = vadd.f32 %v11860_v31, %v6707_v48  ;;  %6433 = vmatmul.mubr.bf16.gmra.mrb[44].mxu0 %v12500_v11 }
 0x759   : > { %6440 = vmatprep.mubr.bf16.mxu0 %v12501_v32 }
 0x75a   : > { %v8036_v47 = vmax.f32 %v8034_v4, %v7470_v43  ;;  %v7473_v35 = vmax.f32 %v7098_v8, 0.0  ;;  %v12506_v4 = vld [vmem:[#allocation72_spill] sm:$0xff] }
 0x75b   : > { %v6226_v26 = vpop.f32.mrb[196].mxu0 }
 0x75c   : > { %v8037_v38 = vmax.f32 %v8035_v62, %v7473_v35  ;;  %v6710_v44 = vmul.f32 %v11854_v50, %v6226_v26  ;;  %v6228_v0 = vpop.f32.mrb[197].mxu0  ;;  %v12509_v35 = vld [vmem:[#allocation75_spill] sm:$0xff] }
 0x75d   : > { %v6229_v49 = vpop.f32.mrb[198].mxu0 }
 0x75e   : > { %v7101_v23 = vadd.f32 %v11860_v31, %v6710_v44  ;;  %v6713_v60 = vmul.f32 %v11854_v50, %v6229_v49  ;;  %v6231_v33 = vpop.f32.mrb[199].mxu0 }
 0x760   : > { %v7476_v52 = vmax.f32 %v7101_v23, 0.0  ;;  %v7104_v15 = vadd.f32 %v11860_v31, %v6713_v60  ;;  %6441 = vmatmul.mubr.bf16.gmra.mrb[48].mxu0 %v12502_v53 }
 0x761   : > { %6448 = vmatprep.mubr.bf16.mxu0 %v12503_v6 }
 0x762   : > { %v8038_v51 = vmax.f32 %v8036_v47, %v7476_v52  ;;  %v7479_v13 = vmax.f32 %v7104_v15, 0.0  ;;  %v12508_v47 = vld [vmem:[#allocation74_spill] sm:$0xff] }
 0x763   : > { %v6234_v41 = vpop.f32.mrb[200].mxu0 }
 0x764   : > { %v8039_v57 = vmax.f32 %v8037_v38, %v7479_v13  ;;  %v6716_v55 = vmul.f32 %v11854_v50, %v6234_v41  ;;  %v6236_v37 = vpop.f32.mrb[201].mxu0  ;;  %v12511_v13 = vld [vmem:[#allocation77_spill] sm:$0xff] }
 0x765   : > { %v6237_v24 = vpop.f32.mrb[202].mxu0 }
 0x766   : > { %v7107_v36 = vadd.f32 %v11860_v31, %v6716_v55  ;;  %v6719_v7 = vmul.f32 %v11854_v50, %v6237_v24  ;;  %v6239_v2 = vpop.f32.mrb[203].mxu0 }
 0x768   : > { %v7482_v59 = vmax.f32 %v7107_v36, 0.0  ;;  %v7110_v5 = vadd.f32 %v11860_v31, %v6719_v7  ;;  %6449 = vmatmul.mubr.bf16.gmra.mrb[52].mxu0 %v12504_v14 }
 0x769   : > { %6456 = vmatprep.mubr.bf16.mxu0 %v12505_v10 }
 0x76a   : > { %v8040_v30 = vmax.f32 %v8038_v51, %v7482_v59  ;;  %v7485_v40 = vmax.f32 %v7110_v5, 0.0  ;;  %v12510_v51 = vld [vmem:[#allocation76_spill] sm:$0xff] }
 0x76b   : > { %v6242_v29 = vpop.f32.mrb[204].mxu0 }
 0x76c   : > { %v8041_v20 = vmax.f32 %v8039_v57, %v7485_v40  ;;  %v6722_v63 = vmul.f32 %v11854_v50, %v6242_v29  ;;  %v6244_v27 = vpop.f32.mrb[205].mxu0  ;;  %v12513_v40 = vld [vmem:[#allocation79_spill] sm:$0xff] }
 0x76d   : > { %v6245_v56 = vpop.f32.mrb[206].mxu0 }
 0x76e   : > { %v7113_v18 = vadd.f32 %v11860_v31, %v6722_v63  ;;  %v6725_v28 = vmul.f32 %v11854_v50, %v6245_v56  ;;  %v6247_v22 = vpop.f32.mrb[207].mxu0 }
 0x770   : > { %v7488_v61 = vmax.f32 %v7113_v18, 0.0  ;;  %v7116_v25 = vadd.f32 %v11860_v31, %v6725_v28  ;;  %6457 = vmatmul.mubr.bf16.gmra.mrb[56].mxu0 %v12506_v4 }
 0x771   : > { %6464 = vmatprep.mubr.bf16.mxu0 %v12507_v21 }
 0x772   : > { %v8042_v54 = vmax.f32 %v8040_v30, %v7488_v61  ;;  %v7491_v62 = vmax.f32 %v7116_v25, 0.0  ;;  %v12512_v30 = vld [vmem:[#allocation78_spill] sm:$0xff] }
 0x773   : > { %v6250_v19 = vpop.f32.mrb[208].mxu0 }
 0x774   : > { %v8043_v9 = vmax.f32 %v8041_v20, %v7491_v62  ;;  %v6728_v12 = vmul.f32 %v11854_v50, %v6250_v19  ;;  %v6252_v17 = vpop.f32.mrb[209].mxu0  ;;  %v12515_v62 = vld [vmem:[#allocation81_spill] sm:$0xff] }
 0x775   : > { %v6253_v48 = vpop.f32.mrb[210].mxu0 }
 0x776   : > { %v7119_v39 = vadd.f32 %v11860_v31, %v6728_v12  ;;  %v6731_v43 = vmul.f32 %v11854_v50, %v6253_v48  ;;  %v6255_v8 = vpop.f32.mrb[211].mxu0 }
 0x778   : > { %v7494_v11 = vmax.f32 %v7119_v39, 0.0  ;;  %v7122_v32 = vadd.f32 %v11860_v31, %v6731_v43  ;;  %6465 = vmatmul.mubr.bf16.gmra.mrb[60].mxu0 %v12508_v47 }
 0x779   : > { %6472 = vmatprep.mubr.bf16.mxu0 %v12509_v35 }
 0x77a   : > { %v8044_v26 = vmax.f32 %v8042_v54, %v7494_v11  ;;  %v7497_v38 = vmax.f32 %v7122_v32, 0.0  ;;  %v12514_v54 = vld [vmem:[#allocation80_spill] sm:$0xff] }
 0x77b   : > { %v6258_v44 = vpop.f32.mrb[212].mxu0 }
 0x77c   : > { %v8045_v0 = vmax.f32 %v8043_v9, %v7497_v38  ;;  %v6734_v49 = vmul.f32 %v11854_v50, %v6258_v44  ;;  %v6260_v23 = vpop.f32.mrb[213].mxu0  ;;  %v12517_v38 = vld [vmem:[#allocation83_spill] sm:$0xff] }
 0x77d   : > { %v6261_v60 = vpop.f32.mrb[214].mxu0 }
 0x77e   : > { %v7125_v33 = vadd.f32 %v11860_v31, %v6734_v49  ;;  %v6737_v52 = vmul.f32 %v11854_v50, %v6261_v60  ;;  %v6263_v15 = vpop.f32.mrb[215].mxu0 }
 0x780   : > { %v7500_v53 = vmax.f32 %v7125_v33, 0.0  ;;  %v7128_v6 = vadd.f32 %v11860_v31, %v6737_v52  ;;  %6473 = vmatmul.mubr.bf16.gmra.mrb[64].mxu0 %v12510_v51 }
 0x781   : > { %6480 = vmatprep.mubr.bf16.mxu0 %v12511_v13 }
 0x782   : > { %v8046_v41 = vmax.f32 %v8044_v26, %v7500_v53  ;;  %v7503_v57 = vmax.f32 %v7128_v6, 0.0  ;;  %v12516_v26 = vld [vmem:[#allocation82_spill] sm:$0xff] }
 0x783   : > { %v6266_v55 = vpop.f32.mrb[216].mxu0 }
 0x784   : > { %v8047_v37 = vmax.f32 %v8045_v0, %v7503_v57  ;;  %v6740_v24 = vmul.f32 %v11854_v50, %v6266_v55  ;;  %v6268_v36 = vpop.f32.mrb[217].mxu0  ;;  %v12519_v57 = vld [vmem:[#allocation85_spill] sm:$0xff] }
 0x785   : > { %v6269_v7 = vpop.f32.mrb[218].mxu0 }
 0x786   : > { %v7131_v2 = vadd.f32 %v11860_v31, %v6740_v24  ;;  %v6743_v59 = vmul.f32 %v11854_v50, %v6269_v7  ;;  %v6271_v5 = vpop.f32.mrb[219].mxu0 }
 0x788   : > { %v7506_v14 = vmax.f32 %v7131_v2, 0.0  ;;  %v7134_v10 = vadd.f32 %v11860_v31, %v6743_v59  ;;  %6481 = vmatmul.mubr.bf16.gmra.mrb[68].mxu0 %v12512_v30 }
 0x789   : > { %6488 = vmatprep.mubr.bf16.mxu0 %v12513_v40 }
 0x78a   : > { %v8048_v29 = vmax.f32 %v8046_v41, %v7506_v14  ;;  %v7509_v20 = vmax.f32 %v7134_v10, 0.0  ;;  %v12518_v41 = vld [vmem:[#allocation84_spill] sm:$0xff] }
 0x78b   : > { %v6274_v63 = vpop.f32.mrb[220].mxu0 }
 0x78c   : > { %v8049_v27 = vmax.f32 %v8047_v37, %v7509_v20  ;;  %v6746_v56 = vmul.f32 %v11854_v50, %v6274_v63  ;;  %v6276_v18 = vpop.f32.mrb[221].mxu0  ;;  %v12521_v20 = vld [vmem:[#allocation87_spill] sm:$0xff] }
 0x78d   : > { %v6277_v28 = vpop.f32.mrb[222].mxu0 }
 0x78e   : > { %v7137_v22 = vadd.f32 %v11860_v31, %v6746_v56  ;;  %v6749_v61 = vmul.f32 %v11854_v50, %v6277_v28  ;;  %v6279_v25 = vpop.f32.mrb[223].mxu0 }
 0x790   : > { %v7512_v4 = vmax.f32 %v7137_v22, 0.0  ;;  %v7140_v21 = vadd.f32 %v11860_v31, %v6749_v61  ;;  %6489 = vmatmul.mubr.bf16.gmra.mrb[72].mxu0 %v12514_v54 }
 0x791   : > { %6496 = vmatprep.mubr.bf16.mxu0 %v12515_v62 }
 0x792   : > { %v8050_v19 = vmax.f32 %v8048_v29, %v7512_v4  ;;  %v7515_v9 = vmax.f32 %v7140_v21, 0.0  ;;  %v12520_v29 = vld [vmem:[#allocation86_spill] sm:$0xff] }
 0x793   : > { %v6282_v12 = vpop.f32.mrb[224].mxu0 }
 0x794   : > { %v8051_v17 = vmax.f32 %v8049_v27, %v7515_v9  ;;  %v6752_v48 = vmul.f32 %v11854_v50, %v6282_v12  ;;  %v6284_v39 = vpop.f32.mrb[225].mxu0  ;;  %v12523_v9 = vld [vmem:[#allocation89_spill] sm:$0xff] }
 0x795   : > { %v6285_v43 = vpop.f32.mrb[226].mxu0 }
 0x796   : > { %v7143_v8 = vadd.f32 %v11860_v31, %v6752_v48  ;;  %v6755_v11 = vmul.f32 %v11854_v50, %v6285_v43  ;;  %v6287_v32 = vpop.f32.mrb[227].mxu0 }
 0x798   : > { %v7518_v47 = vmax.f32 %v7143_v8, 0.0  ;;  %v7146_v35 = vadd.f32 %v11860_v31, %v6755_v11  ;;  %6497 = vmatmul.mubr.bf16.gmra.mrb[76].mxu0 %v12516_v26 }
 0x799   : > { %6504 = vmatprep.mubr.bf16.mxu0 %v12517_v38 }
 0x79a   : > { %v8052_v44 = vmax.f32 %v8050_v19, %v7518_v47  ;;  %v7521_v0 = vmax.f32 %v7146_v35, 0.0  ;;  %v12522_v19 = vld [vmem:[#allocation88_spill] sm:$0xff] }
 0x79b   : > { %v6290_v49 = vpop.f32.mrb[228].mxu0 }
 0x79c   : > { %v8053_v23 = vmax.f32 %v8051_v17, %v7521_v0  ;;  %v6758_v60 = vmul.f32 %v11854_v50, %v6290_v49  ;;  %v6292_v33 = vpop.f32.mrb[229].mxu0  ;;  %v12525_v0 = vld [vmem:[#allocation91_spill] sm:$0xff] }
 0x79d   : > { %v6293_v52 = vpop.f32.mrb[230].mxu0 }
 0x79e   : > { %v7149_v15 = vadd.f32 %v11860_v31, %v6758_v60  ;;  %v6761_v53 = vmul.f32 %v11854_v50, %v6293_v52  ;;  %v6295_v6 = vpop.f32.mrb[231].mxu0 }
 0x7a0   : > { %v7524_v51 = vmax.f32 %v7149_v15, 0.0  ;;  %v7152_v13 = vadd.f32 %v11860_v31, %v6761_v53  ;;  %6505 = vmatmul.mubr.bf16.gmra.mrb[80].mxu0 %v12518_v41 }
 0x7a1   : > { %6512 = vmatprep.mubr.bf16.mxu0 %v12519_v57 }
 0x7a2   : > { %v8054_v55 = vmax.f32 %v8052_v44, %v7524_v51  ;;  %v7527_v37 = vmax.f32 %v7152_v13, 0.0  ;;  %v12524_v44 = vld [vmem:[#allocation90_spill] sm:$0xff] }
 0x7a3   : > { %v6298_v24 = vpop.f32.mrb[232].mxu0 }
 0x7a4   : > { %v8055_v36 = vmax.f32 %v8053_v23, %v7527_v37  ;;  %v6764_v7 = vmul.f32 %v11854_v50, %v6298_v24  ;;  %v6300_v2 = vpop.f32.mrb[233].mxu0  ;;  %v12527_v37 = vld [vmem:[#allocation93_spill] sm:$0xff] }
 0x7a5   : > { %v6301_v59 = vpop.f32.mrb[234].mxu0 }
 0x7a6   : > { %v7155_v5 = vadd.f32 %v11860_v31, %v6764_v7  ;;  %v6767_v14 = vmul.f32 %v11854_v50, %v6301_v59  ;;  %v6303_v10 = vpop.f32.mrb[235].mxu0 }
 0x7a8   : > { %v7530_v30 = vmax.f32 %v7155_v5, 0.0  ;;  %v7158_v40 = vadd.f32 %v11860_v31, %v6767_v14  ;;  %6513 = vmatmul.mubr.bf16.gmra.mrb[84].mxu0 %v12520_v29 }
 0x7a9   : > { %6520 = vmatprep.mubr.bf16.mxu0 %v12521_v20 }
 0x7aa   : > { %v8056_v63 = vmax.f32 %v8054_v55, %v7530_v30  ;;  %v7533_v27 = vmax.f32 %v7158_v40, 0.0  ;;  %v12526_v55 = vld [vmem:[#allocation92_spill] sm:$0xff] }
 0x7ab   : > { %v6306_v56 = vpop.f32.mrb[236].mxu0 }
 0x7ac   : > { %v8057_v18 = vmax.f32 %v8055_v36, %v7533_v27  ;;  %v6770_v28 = vmul.f32 %v11854_v50, %v6306_v56  ;;  %v6308_v22 = vpop.f32.mrb[237].mxu0  ;;  %v12529_v27 = vld [vmem:[#allocation95_spill] sm:$0xff] }
 0x7ad   : > { %v6309_v61 = vpop.f32.mrb[238].mxu0 }
 0x7ae   : > { %v7161_v25 = vadd.f32 %v11860_v31, %v6770_v28  ;;  %v6773_v4 = vmul.f32 %v11854_v50, %v6309_v61  ;;  %v6311_v21 = vpop.f32.mrb[239].mxu0 }
 0x7b0   : > { %v7536_v54 = vmax.f32 %v7161_v25, 0.0  ;;  %v7164_v62 = vadd.f32 %v11860_v31, %v6773_v4  ;;  %6521 = vmatmul.mubr.bf16.gmra.mrb[88].mxu0 %v12522_v19 }
 0x7b1   : > { %6528 = vmatprep.mubr.bf16.mxu0 %v12523_v9 }
 0x7b2   : > { %v8058_v12 = vmax.f32 %v8056_v63, %v7536_v54  ;;  %v7539_v17 = vmax.f32 %v7164_v62, 0.0  ;;  %v12528_v63 = vld [vmem:[#allocation94_spill] sm:$0xff] }
 0x7b3   : > { %v6314_v48 = vpop.f32.mrb[240].mxu0 }
 0x7b4   : > { %v8059_v39 = vmax.f32 %v8057_v18, %v7539_v17  ;;  %v6776_v43 = vmul.f32 %v11854_v50, %v6314_v48  ;;  %v6316_v8 = vpop.f32.mrb[241].mxu0  ;;  %v12531_v17 = vld [vmem:[#allocation97_spill] sm:$0xff] }
 0x7b5   : > { %v6317_v11 = vpop.f32.mrb[242].mxu0 }
 0x7b6   : > { %v7167_v32 = vadd.f32 %v11860_v31, %v6776_v43  ;;  %v6779_v47 = vmul.f32 %v11854_v50, %v6317_v11  ;;  %v6319_v35 = vpop.f32.mrb[243].mxu0 }
 0x7b8   : > { %v7542_v26 = vmax.f32 %v7167_v32, 0.0  ;;  %v7170_v38 = vadd.f32 %v11860_v31, %v6779_v47  ;;  %6529 = vmatmul.mubr.bf16.gmra.mrb[92].mxu0 %v12524_v44 }
 0x7b9   : > { %6536 = vmatprep.mubr.bf16.mxu0 %v12525_v0 }
 0x7ba   : > { %v8060_v49 = vmax.f32 %v8058_v12, %v7542_v26  ;;  %v7545_v23 = vmax.f32 %v7170_v38, 0.0  ;;  %v12530_v12 = vld [vmem:[#allocation96_spill] sm:$0xff] }
 0x7bb   : > { %v6322_v60 = vpop.f32.mrb[244].mxu0 }
 0x7bc   : > { %v8061_v33 = vmax.f32 %v8059_v39, %v7545_v23  ;;  %v6782_v52 = vmul.f32 %v11854_v50, %v6322_v60  ;;  %v6324_v15 = vpop.f32.mrb[245].mxu0 }
 0x7bd   : > { %v6325_v53 = vpop.f32.mrb[246].mxu0 }
 0x7be   : > { %v7173_v6 = vadd.f32 %v11860_v31, %v6782_v52  ;;  %v6785_v51 = vmul.f32 %v11854_v50, %v6325_v53  ;;  %v6327_v13 = vpop.f32.mrb[247].mxu0 }
 0x7c0   : > { %v7548_v41 = vmax.f32 %v7173_v6, 0.0  ;;  %v7176_v57 = vadd.f32 %v11860_v31, %v6785_v51  ;;  %6537 = vmatmul.mubr.bf16.gmra.mrb[96].mxu0 %v12526_v55 }
 0x7c1   : > { %6544 = vmatprep.mubr.bf16.mxu0 %v12527_v37 }
 0x7c2   : > { %v8062_v24 = vmax.f32 %v8060_v49, %v7548_v41  ;;  %v7551_v36 = vmax.f32 %v7176_v57, 0.0  ;;  %v12532_v49 = vld [vmem:[#allocation98_spill] sm:$0xff] }
 0x7c3   : > { %v6330_v7 = vpop.f32.mrb[248].mxu0 }
 0x7c4   : > { %v8063_v2 = vmax.f32 %v8061_v33, %v7551_v36  ;;  %v6788_v59 = vmul.f32 %v11854_v50, %v6330_v7  ;;  %v6332_v5 = vpop.f32.mrb[249].mxu0 }
 0x7c5   : > { %v6333_v14 = vpop.f32.mrb[250].mxu0 }
 0x7c6   : > { %v7179_v10 = vadd.f32 %v11860_v31, %v6788_v59  ;;  %v6791_v30 = vmul.f32 %v11854_v50, %v6333_v14  ;;  %v6335_v40 = vpop.f32.mrb[251].mxu0 }
 0x7c8   : > { %v7554_v29 = vmax.f32 %v7179_v10, 0.0  ;;  %v7182_v20 = vadd.f32 %v11860_v31, %v6791_v30  ;;  %6545 = vmatmul.mubr.bf16.gmra.mrb[100].mxu0 %v12528_v63 }
 0x7c9   : > { %6552 = vmatprep.mubr.bf16.mxu0 %v12529_v27 }
 0x7ca   : > { %v8064_v56 = vmax.f32 %v8062_v24, %v7554_v29  ;;  %v7557_v18 = vmax.f32 %v7182_v20, 0.0 }
 0x7cb   : > { %v6338_v28 = vpop.f32.mrb[252].mxu0 }
 0x7cc   : > { %v8065_v22 = vmax.f32 %v8063_v2, %v7557_v18  ;;  %v6794_v61 = vmul.f32 %v11854_v50, %v6338_v28  ;;  %v6340_v25 = vpop.f32.mrb[253].mxu0 }
 0x7cd   : > { %v6341_v4 = vpop.f32.mrb[254].mxu0 }
 0x7ce   : > { %v7185_v21 = vadd.f32 %v11860_v31, %v6794_v61  ;;  %v6797_v54 = vmul.f32 %v11854_v50, %v6341_v4  ;;  %v6343_v62 = vpop.f32.mrb[255].mxu0 }
 0x7d0   : > { %v7560_v19 = vmax.f32 %v7185_v21, 0.0  ;;  %v7188_v9 = vadd.f32 %v11860_v31, %v6797_v54  ;;  %6553 = vmatmul.mubr.bf16.gmra.mrb[104].mxu0 %v12530_v12 }
 0x7d1   : > { %6560 = vmatprep.mubr.bf16.mxu0 %v12531_v17 }
 0x7d2   : > { %v8066_v48 = vmax.f32 %v8064_v56, %v7560_v19  ;;  %v7563_v39 = vmax.f32 %v7188_v9, 0.0 }
 0x7d3   : > { %v6346_v43 = vpop.f32.mrb[0].mxu0 }
 0x7d4   : > { %v8067_v8 = vmax.f32 %v8065_v22, %v7563_v39  ;;  %v6800_v11 = vmul.f32 %v11854_v50, %v6346_v43  ;;  %v6348_v32 = vpop.f32.mrb[1].mxu0 }
 0x7d5   : > { %v6349_v47 = vpop.f32.mrb[2].mxu0 }
 0x7d6   : > { %v7191_v35 = vadd.f32 %v11860_v31, %v6800_v11  ;;  %v6803_v26 = vmul.f32 %v11854_v50, %v6349_v47  ;;  %v6351_v38 = vpop.f32.mrb[3].mxu0 }
 0x7d8   : > { %v7566_v44 = vmax.f32 %v7191_v35, 0.0  ;;  %v7194_v0 = vadd.f32 %v11860_v31, %v6803_v26  ;;  %6561 = vmatmul.mubr.bf16.gmra.mrb[108].mxu0 %v12532_v49 }
 0x7d9   : > { %6568 = vmatprep.mubr.bf16.mxu0 %v11554_v3 }
 0x7da   : > { %v8068_v23 = vmax.f32 %v8066_v48, %v7566_v44  ;;  %v7569_v60 = vmax.f32 %v7194_v0, 0.0 }
 0x7db   : > { %v6354_v33 = vpop.f32.mrb[4].mxu0 }
 0x7dc   : > { %v8069_v52 = vmax.f32 %v8067_v8, %v7569_v60  ;;  %v6806_v15 = vmul.f32 %v11854_v50, %v6354_v33  ;;  %v6356_v53 = vpop.f32.mrb[5].mxu0 }
 0x7dd   : > { %v6357_v6 = vpop.f32.mrb[6].mxu0 }
 0x7de   : > { %v7197_v51 = vadd.f32 %v11860_v31, %v6806_v15  ;;  %v6809_v13 = vmul.f32 %v11854_v50, %v6357_v6  ;;  %v6359_v41 = vpop.f32.mrb[7].mxu0 }
 0x7e0   : > { %v7572_v57 = vmax.f32 %v7197_v51, 0.0  ;;  %v7200_v55 = vadd.f32 %v11860_v31, %v6809_v13  ;;  %6569 = vmatmul.mubr.bf16.gmra.mrb[112].mxu0 %v11558_v34 }
 0x7e1   : > { %6576 = vmatprep.mubr.bf16.mxu0 %v11575_v58 }
 0x7e2   : > { %v8070_v3 = vmax.f32 %v8068_v23, %v7572_v57  ;;  %v7575_v37 = vmax.f32 %v7200_v55, 0.0 }
 0x7e3   : > { %v6362_v24 = vpop.f32.mrb[8].mxu0 }
 0x7e4   : > { %v8071_v36 = vmax.f32 %v8069_v52, %v7575_v37  ;;  %v6812_v7 = vmul.f32 %v11854_v50, %v6362_v24  ;;  %v6364_v2 = vpop.f32.mrb[9].mxu0 }
 0x7e5   : > { %v6365_v59 = vpop.f32.mrb[10].mxu0 }
 0x7e6   : > { %v7203_v5 = vadd.f32 %v11860_v31, %v6812_v7  ;;  %v6815_v14 = vmul.f32 %v11854_v50, %v6365_v59  ;;  %v6367_v10 = vpop.f32.mrb[11].mxu0 }
 0x7e8   : > { %v7578_v30 = vmax.f32 %v7203_v5, 0.0  ;;  %v7206_v40 = vadd.f32 %v11860_v31, %v6815_v14  ;;  %6577 = vmatmul.mubr.bf16.gmra.mrb[116].mxu0 %v11577_v42 }
 0x7ea   : > { %v8072_v34 = vmax.f32 %v8070_v3, %v7578_v30  ;;  %v7581_v58 = vmax.f32 %v7206_v40, 0.0 }
 0x7eb   : > { %v6370_v29 = vpop.f32.mrb[12].mxu0 }
 0x7ec   : > { %v8073_v20 = vmax.f32 %v8071_v36, %v7581_v58  ;;  %v6818_v63 = vmul.f32 %v11854_v50, %v6370_v29  ;;  %v6372_v27 = vpop.f32.mrb[13].mxu0 }
 0x7ed   : > { %v6373_v56 = vpop.f32.mrb[14].mxu0 }
 0x7ee   : > { %v7209_v18 = vadd.f32 %v11860_v31, %v6818_v63  ;;  %v6821_v28 = vmul.f32 %v11854_v50, %v6373_v56  ;;  %v6375_v22 = vpop.f32.mrb[15].mxu0 }
 0x7f0   : > { %v7584_v61 = vmax.f32 %v7209_v18, 0.0  ;;  %v7212_v25 = vadd.f32 %v11860_v31, %v6821_v28 }
 0x7f2   : > { %v8074_v4 = vmax.f32 %v8072_v34, %v7584_v61  ;;  %v7587_v21 = vmax.f32 %v7212_v25, 0.0 }
 0x7f3   : > { %v6378_v54 = vpop.f32.mrb[16].mxu0 }
 0x7f4   : > { %v8075_v42 = vmax.f32 %v8073_v20, %v7587_v21  ;;  %v6824_v62 = vmul.f32 %v11854_v50, %v6378_v54  ;;  %v6380_v19 = vpop.f32.mrb[17].mxu0 }
 0x7f5   : > { %v6381_v9 = vpop.f32.mrb[18].mxu0 }
 0x7f6   : > { %v7215_v12 = vadd.f32 %v11860_v31, %v6824_v62  ;;  %v6827_v17 = vmul.f32 %v11854_v50, %v6381_v9  ;;  %v6383_v48 = vpop.f32.mrb[19].mxu0 }
 0x7f8   : > { %v7590_v39 = vmax.f32 %v7215_v12, 0.0  ;;  %v7218_v43 = vadd.f32 %v11860_v31, %v6827_v17 }
 0x7fa   : > { %v8076_v8 = vmax.f32 %v8074_v4, %v7590_v39  ;;  %v7593_v11 = vmax.f32 %v7218_v43, 0.0 }
 0x7fb   : > { %v6386_v32 = vpop.f32.mrb[20].mxu0 }
 0x7fc   : > { %v8077_v47 = vmax.f32 %v8075_v42, %v7593_v11  ;;  %v6830_v35 = vmul.f32 %v11854_v50, %v6386_v32  ;;  %v6388_v26 = vpop.f32.mrb[21].mxu0 }
 0x7fd   : > { %v6389_v38 = vpop.f32.mrb[22].mxu0 }
 0x7fe   : > { %v7221_v44 = vadd.f32 %v11860_v31, %v6830_v35  ;;  %v6833_v0 = vmul.f32 %v11854_v50, %v6389_v38  ;;  %v6391_v49 = vpop.f32.mrb[23].mxu0 }
 0x800   : > { %v7596_v23 = vmax.f32 %v7221_v44, 0.0  ;;  %v7224_v60 = vadd.f32 %v11860_v31, %v6833_v0 }
 0x802   : > { %v8078_v33 = vmax.f32 %v8076_v8, %v7596_v23  ;;  %v7599_v52 = vmax.f32 %v7224_v60, 0.0 }
 0x803   : > { %v6394_v15 = vpop.f32.mrb[24].mxu0 }
 0x804   : > { %v8079_v53 = vmax.f32 %v8077_v47, %v7599_v52  ;;  %v6836_v6 = vmul.f32 %v11854_v50, %v6394_v15  ;;  %v6396_v51 = vpop.f32.mrb[25].mxu0 }
 0x805   : > { %v6397_v13 = vpop.f32.mrb[26].mxu0 }
 0x806   : > { %v7227_v41 = vadd.f32 %v11860_v31, %v6836_v6  ;;  %v6839_v57 = vmul.f32 %v11854_v50, %v6397_v13  ;;  %v6399_v55 = vpop.f32.mrb[27].mxu0 }
 0x808   : > { %v7602_v3 = vmax.f32 %v7227_v41, 0.0  ;;  %v7230_v37 = vadd.f32 %v11860_v31, %v6839_v57 }
 0x80a   : > { %v8080_v24 = vmax.f32 %v8078_v33, %v7602_v3  ;;  %v7605_v36 = vmax.f32 %v7230_v37, 0.0 }
 0x80b   : > { %v6402_v7 = vpop.f32.mrb[28].mxu0 }
 0x80c   : > { %v8081_v2 = vmax.f32 %v8079_v53, %v7605_v36  ;;  %v6842_v59 = vmul.f32 %v11854_v50, %v6402_v7  ;;  %v6404_v5 = vpop.f32.mrb[29].mxu0 }
 0x80d   : > { %v6405_v14 = vpop.f32.mrb[30].mxu0 }
 0x80e   : > { %v7233_v10 = vadd.f32 %v11860_v31, %v6842_v59  ;;  %v6845_v30 = vmul.f32 %v11854_v50, %v6405_v14  ;;  %v6407_v40 = vpop.f32.mrb[31].mxu0 }
 0x810   : > { %v7608_v34 = vmax.f32 %v7233_v10, 0.0  ;;  %v7236_v58 = vadd.f32 %v11860_v31, %v6845_v30 }
 0x812   : > { %v8082_v29 = vmax.f32 %v8080_v24, %v7608_v34  ;;  %v7611_v20 = vmax.f32 %v7236_v58, 0.0 }
 0x813   : > { %v6410_v63 = vpop.f32.mrb[32].mxu0 }
 0x814   : > { %v8083_v27 = vmax.f32 %v8081_v2, %v7611_v20  ;;  %v6848_v56 = vmul.f32 %v11854_v50, %v6410_v63  ;;  %v6412_v18 = vpop.f32.mrb[33].mxu0 }
 0x815   : > { %v6413_v28 = vpop.f32.mrb[34].mxu0 }
 0x816   : > { %v7239_v22 = vadd.f32 %v11860_v31, %v6848_v56  ;;  %v6851_v61 = vmul.f32 %v11854_v50, %v6413_v28  ;;  %v6415_v25 = vpop.f32.mrb[35].mxu0 }
 0x818   : > { %v7614_v4 = vmax.f32 %v7239_v22, 0.0  ;;  %v7242_v21 = vadd.f32 %v11860_v31, %v6851_v61 }
 0x81a   : > { %v8084_v54 = vmax.f32 %v8082_v29, %v7614_v4  ;;  %v7617_v42 = vmax.f32 %v7242_v21, 0.0 }
 0x81b   : > { %v6418_v62 = vpop.f32.mrb[36].mxu0 }
 0x81c   : > { %v8085_v19 = vmax.f32 %v8083_v27, %v7617_v42  ;;  %v6854_v9 = vmul.f32 %v11854_v50, %v6418_v62  ;;  %v6420_v12 = vpop.f32.mrb[37].mxu0 }
 0x81d   : > { %v6421_v17 = vpop.f32.mrb[38].mxu0 }
 0x81e   : > { %v7245_v48 = vadd.f32 %v11860_v31, %v6854_v9  ;;  %v6857_v39 = vmul.f32 %v11854_v50, %v6421_v17  ;;  %v6423_v43 = vpop.f32.mrb[39].mxu0 }
 0x820   : > { %v7620_v8 = vmax.f32 %v7245_v48, 0.0  ;;  %v7248_v11 = vadd.f32 %v11860_v31, %v6857_v39 }
 0x822   : > { %v8086_v32 = vmax.f32 %v8084_v54, %v7620_v8  ;;  %v7623_v47 = vmax.f32 %v7248_v11, 0.0 }
 0x823   : > { %v6426_v35 = vpop.f32.mrb[40].mxu0 }
 0x824   : > { %v8087_v26 = vmax.f32 %v8085_v19, %v7623_v47  ;;  %v6860_v38 = vmul.f32 %v11854_v50, %v6426_v35  ;;  %v6428_v44 = vpop.f32.mrb[41].mxu0 }
 0x825   : > { %v6429_v0 = vpop.f32.mrb[42].mxu0 }
 0x826   : > { %v7251_v49 = vadd.f32 %v11860_v31, %v6860_v38  ;;  %v6863_v23 = vmul.f32 %v11854_v50, %v6429_v0  ;;  %v6431_v60 = vpop.f32.mrb[43].mxu0 }
 0x828   : > { %v7626_v33 = vmax.f32 %v7251_v49, 0.0  ;;  %v7254_v52 = vadd.f32 %v11860_v31, %v6863_v23 }
 0x82a   : > { %v8088_v15 = vmax.f32 %v8086_v32, %v7626_v33  ;;  %v7629_v53 = vmax.f32 %v7254_v52, 0.0 }
 0x82b   : > { %v6434_v6 = vpop.f32.mrb[44].mxu0 }
 0x82c   : > { %v8089_v51 = vmax.f32 %v8087_v26, %v7629_v53  ;;  %v6866_v13 = vmul.f32 %v11854_v50, %v6434_v6  ;;  %v6436_v41 = vpop.f32.mrb[45].mxu0 }
 0x82d   : > { %v6437_v57 = vpop.f32.mrb[46].mxu0 }
 0x82e   : > { %v7257_v55 = vadd.f32 %v11860_v31, %v6866_v13  ;;  %v6869_v3 = vmul.f32 %v11854_v50, %v6437_v57  ;;  %v6439_v37 = vpop.f32.mrb[47].mxu0 }
 0x830   : > { %v7632_v24 = vmax.f32 %v7257_v55, 0.0  ;;  %v7260_v36 = vadd.f32 %v11860_v31, %v6869_v3 }
 0x832   : > { %v8090_v7 = vmax.f32 %v8088_v15, %v7632_v24  ;;  %v7635_v2 = vmax.f32 %v7260_v36, 0.0 }
 0x833   : > { %v6442_v59 = vpop.f32.mrb[48].mxu0 }
 0x834   : > { %v8091_v5 = vmax.f32 %v8089_v51, %v7635_v2  ;;  %v6872_v14 = vmul.f32 %v11854_v50, %v6442_v59  ;;  %v6444_v10 = vpop.f32.mrb[49].mxu0 }
 0x835   : > { %v6445_v30 = vpop.f32.mrb[50].mxu0 }
 0x836   : > { %v7263_v40 = vadd.f32 %v11860_v31, %v6872_v14  ;;  %v6875_v34 = vmul.f32 %v11854_v50, %v6445_v30  ;;  %v6447_v58 = vpop.f32.mrb[51].mxu0 }
 0x838   : > { %v7638_v29 = vmax.f32 %v7263_v40, 0.0  ;;  %v7266_v20 = vadd.f32 %v11860_v31, %v6875_v34 }
 0x83a   : > { %v8092_v63 = vmax.f32 %v8090_v7, %v7638_v29  ;;  %v7641_v27 = vmax.f32 %v7266_v20, 0.0 }
 0x83b   : > { %v6450_v56 = vpop.f32.mrb[52].mxu0 }
 0x83c   : > { %v8093_v18 = vmax.f32 %v8091_v5, %v7641_v27  ;;  %v6878_v28 = vmul.f32 %v11854_v50, %v6450_v56  ;;  %v6452_v22 = vpop.f32.mrb[53].mxu0 }
 0x83d   : > { %v6453_v61 = vpop.f32.mrb[54].mxu0 }
 0x83e   : > { %v7269_v25 = vadd.f32 %v11860_v31, %v6878_v28  ;;  %v6881_v4 = vmul.f32 %v11854_v50, %v6453_v61  ;;  %v6455_v21 = vpop.f32.mrb[55].mxu0 }
 0x840   : > { %v7644_v54 = vmax.f32 %v7269_v25, 0.0  ;;  %v7272_v42 = vadd.f32 %v11860_v31, %v6881_v4 }
 0x842   : > { %v8094_v62 = vmax.f32 %v8092_v63, %v7644_v54  ;;  %v7647_v19 = vmax.f32 %v7272_v42, 0.0 }
 0x843   : > { %v6458_v9 = vpop.f32.mrb[56].mxu0 }
 0x844   : > { %v8095_v12 = vmax.f32 %v8093_v18, %v7647_v19  ;;  %v6884_v17 = vmul.f32 %v11854_v50, %v6458_v9  ;;  %v6460_v48 = vpop.f32.mrb[57].mxu0 }
 0x845   : > { %v6461_v39 = vpop.f32.mrb[58].mxu0 }
 0x846   : > { %v7275_v43 = vadd.f32 %v11860_v31, %v6884_v17  ;;  %v6887_v8 = vmul.f32 %v11854_v50, %v6461_v39  ;;  %v6463_v11 = vpop.f32.mrb[59].mxu0 }
 0x848   : > { %v7650_v32 = vmax.f32 %v7275_v43, 0.0  ;;  %v7278_v47 = vadd.f32 %v11860_v31, %v6887_v8 }
 0x84a   : > { %v8096_v35 = vmax.f32 %v8094_v62, %v7650_v32  ;;  %v7653_v26 = vmax.f32 %v7278_v47, 0.0 }
 0x84b   : > { %v6466_v38 = vpop.f32.mrb[60].mxu0 }
 0x84c   : > { %v8097_v44 = vmax.f32 %v8095_v12, %v7653_v26  ;;  %v6890_v0 = vmul.f32 %v11854_v50, %v6466_v38  ;;  %v6468_v49 = vpop.f32.mrb[61].mxu0 }
 0x84d   : > { %v6469_v23 = vpop.f32.mrb[62].mxu0 }
 0x84e   : > { %v7281_v60 = vadd.f32 %v11860_v31, %v6890_v0  ;;  %v6893_v33 = vmul.f32 %v11854_v50, %v6469_v23  ;;  %v6471_v52 = vpop.f32.mrb[63].mxu0 }
 0x850   : > { %v7656_v15 = vmax.f32 %v7281_v60, 0.0  ;;  %v7284_v53 = vadd.f32 %v11860_v31, %v6893_v33 }
 0x852   : > { %v8098_v6 = vmax.f32 %v8096_v35, %v7656_v15  ;;  %v7659_v51 = vmax.f32 %v7284_v53, 0.0 }
 0x853   : > { %v6474_v13 = vpop.f32.mrb[64].mxu0 }
 0x854   : > { %v8099_v41 = vmax.f32 %v8097_v44, %v7659_v51  ;;  %v6896_v57 = vmul.f32 %v11854_v50, %v6474_v13  ;;  %v6476_v55 = vpop.f32.mrb[65].mxu0 }
 0x855   : > { %v6477_v3 = vpop.f32.mrb[66].mxu0 }
 0x856   : > { %v7287_v37 = vadd.f32 %v11860_v31, %v6896_v57  ;;  %v6899_v24 = vmul.f32 %v11854_v50, %v6477_v3  ;;  %v6479_v36 = vpop.f32.mrb[67].mxu0 }
 0x858   : > { %v7662_v7 = vmax.f32 %v7287_v37, 0.0  ;;  %v7290_v2 = vadd.f32 %v11860_v31, %v6899_v24 }
 0x85a   : > { %v8100_v59 = vmax.f32 %v8098_v6, %v7662_v7  ;;  %v7665_v5 = vmax.f32 %v7290_v2, 0.0 }
 0x85b   : > { %v6482_v14 = vpop.f32.mrb[68].mxu0 }
 0x85c   : > { %v8101_v10 = vmax.f32 %v8099_v41, %v7665_v5  ;;  %v6902_v30 = vmul.f32 %v11854_v50, %v6482_v14  ;;  %v6484_v40 = vpop.f32.mrb[69].mxu0 }
 0x85d   : > { %v6485_v34 = vpop.f32.mrb[70].mxu0 }
 0x85e   : > { %v7293_v58 = vadd.f32 %v11860_v31, %v6902_v30  ;;  %v6905_v29 = vmul.f32 %v11854_v50, %v6485_v34  ;;  %v6487_v20 = vpop.f32.mrb[71].mxu0 }
 0x860   : > { %v7668_v63 = vmax.f32 %v7293_v58, 0.0  ;;  %v7296_v27 = vadd.f32 %v11860_v31, %v6905_v29 }
 0x862   : > { %v8102_v56 = vmax.f32 %v8100_v59, %v7668_v63  ;;  %v7671_v18 = vmax.f32 %v7296_v27, 0.0 }
 0x863   : > { %v6490_v28 = vpop.f32.mrb[72].mxu0 }
 0x864   : > { %v8103_v22 = vmax.f32 %v8101_v10, %v7671_v18  ;;  %v6908_v61 = vmul.f32 %v11854_v50, %v6490_v28  ;;  %v6492_v25 = vpop.f32.mrb[73].mxu0 }
 0x865   : > { %v6493_v4 = vpop.f32.mrb[74].mxu0 }
 0x866   : > { %v7299_v21 = vadd.f32 %v11860_v31, %v6908_v61  ;;  %v6911_v54 = vmul.f32 %v11854_v50, %v6493_v4  ;;  %v6495_v42 = vpop.f32.mrb[75].mxu0 }
 0x868   : > { %v7674_v62 = vmax.f32 %v7299_v21, 0.0  ;;  %v7302_v19 = vadd.f32 %v11860_v31, %v6911_v54 }
 0x86a   : > { %v8104_v9 = vmax.f32 %v8102_v56, %v7674_v62  ;;  %v7677_v12 = vmax.f32 %v7302_v19, 0.0 }
 0x86b   : > { %v6498_v17 = vpop.f32.mrb[76].mxu0 }
 0x86c   : > { %v8105_v48 = vmax.f32 %v8103_v22, %v7677_v12  ;;  %v6914_v39 = vmul.f32 %v11854_v50, %v6498_v17  ;;  %v6500_v43 = vpop.f32.mrb[77].mxu0 }
 0x86d   : > { %v6501_v8 = vpop.f32.mrb[78].mxu0 }
 0x86e   : > { %v7305_v11 = vadd.f32 %v11860_v31, %v6914_v39  ;;  %v6917_v32 = vmul.f32 %v11854_v50, %v6501_v8  ;;  %v6503_v47 = vpop.f32.mrb[79].mxu0 }
 0x870   : > { %v7680_v35 = vmax.f32 %v7305_v11, 0.0  ;;  %v7308_v26 = vadd.f32 %v11860_v31, %v6917_v32 }
 0x872   : > { %v8106_v38 = vmax.f32 %v8104_v9, %v7680_v35  ;;  %v7683_v44 = vmax.f32 %v7308_v26, 0.0 }
 0x873   : > { %v6506_v0 = vpop.f32.mrb[80].mxu0 }
 0x874   : > { %v8107_v49 = vmax.f32 %v8105_v48, %v7683_v44  ;;  %v6920_v23 = vmul.f32 %v11854_v50, %v6506_v0  ;;  %v6508_v60 = vpop.f32.mrb[81].mxu0 }
 0x875   : > { %v6509_v33 = vpop.f32.mrb[82].mxu0 }
 0x876   : > { %v7311_v52 = vadd.f32 %v11860_v31, %v6920_v23  ;;  %v6923_v15 = vmul.f32 %v11854_v50, %v6509_v33  ;;  %v6511_v53 = vpop.f32.mrb[83].mxu0 }
 0x878   : > { %v7686_v6 = vmax.f32 %v7311_v52, 0.0  ;;  %v7314_v51 = vadd.f32 %v11860_v31, %v6923_v15 }
 0x87a   : > { %v8108_v13 = vmax.f32 %v8106_v38, %v7686_v6  ;;  %v7689_v41 = vmax.f32 %v7314_v51, 0.0 }
 0x87b   : > { %v6514_v57 = vpop.f32.mrb[84].mxu0 }
 0x87c   : > { %v8109_v55 = vmax.f32 %v8107_v49, %v7689_v41  ;;  %v6926_v3 = vmul.f32 %v11854_v50, %v6514_v57  ;;  %v6516_v37 = vpop.f32.mrb[85].mxu0 }
 0x87d   : > { %v6517_v24 = vpop.f32.mrb[86].mxu0 }
 0x87e   : > { %v7317_v36 = vadd.f32 %v11860_v31, %v6926_v3  ;;  %v6929_v7 = vmul.f32 %v11854_v50, %v6517_v24  ;;  %v6519_v2 = vpop.f32.mrb[87].mxu0 }
 0x880   : > { %v7692_v59 = vmax.f32 %v7317_v36, 0.0  ;;  %v7320_v5 = vadd.f32 %v11860_v31, %v6929_v7 }
 0x882   : > { %v8110_v14 = vmax.f32 %v8108_v13, %v7692_v59  ;;  %v7695_v10 = vmax.f32 %v7320_v5, 0.0 }
 0x883   : > { %v6522_v30 = vpop.f32.mrb[88].mxu0 }
 0x884   : > { %v8111_v40 = vmax.f32 %v8109_v55, %v7695_v10  ;;  %v6932_v34 = vmul.f32 %v11854_v50, %v6522_v30  ;;  %v6524_v58 = vpop.f32.mrb[89].mxu0 }
 0x885   : > { %v6525_v29 = vpop.f32.mrb[90].mxu0 }
 0x886   : > { %v7323_v20 = vadd.f32 %v11860_v31, %v6932_v34  ;;  %v6935_v63 = vmul.f32 %v11854_v50, %v6525_v29  ;;  %v6527_v27 = vpop.f32.mrb[91].mxu0 }
 0x888   : > { %v7698_v56 = vmax.f32 %v7323_v20, 0.0  ;;  %v7326_v18 = vadd.f32 %v11860_v31, %v6935_v63 }
 0x88a   : > { %v8112_v28 = vmax.f32 %v8110_v14, %v7698_v56  ;;  %v7701_v22 = vmax.f32 %v7326_v18, 0.0 }
 0x88b   : > { %v6530_v61 = vpop.f32.mrb[92].mxu0 }
 0x88c   : > { %v8113_v25 = vmax.f32 %v8111_v40, %v7701_v22  ;;  %v6938_v4 = vmul.f32 %v11854_v50, %v6530_v61  ;;  %v6532_v21 = vpop.f32.mrb[93].mxu0 }
 0x88d   : > { %v6533_v54 = vpop.f32.mrb[94].mxu0 }
 0x88e   : > { %v7329_v42 = vadd.f32 %v11860_v31, %v6938_v4  ;;  %v6941_v62 = vmul.f32 %v11854_v50, %v6533_v54  ;;  %v6535_v19 = vpop.f32.mrb[95].mxu0 }
 0x890   : > { %v7704_v9 = vmax.f32 %v7329_v42, 0.0  ;;  %v7332_v12 = vadd.f32 %v11860_v31, %v6941_v62 }
 0x892   : > { %v8114_v17 = vmax.f32 %v8112_v28, %v7704_v9  ;;  %v7707_v48 = vmax.f32 %v7332_v12, 0.0 }
 0x893   : > { %v6538_v39 = vpop.f32.mrb[96].mxu0 }
 0x894   : > { %v8115_v43 = vmax.f32 %v8113_v25, %v7707_v48  ;;  %v6944_v8 = vmul.f32 %v11854_v50, %v6538_v39  ;;  %v6540_v11 = vpop.f32.mrb[97].mxu0 }
 0x895   : > { %v6541_v32 = vpop.f32.mrb[98].mxu0 }
 0x896   : > { %v7335_v47 = vadd.f32 %v11860_v31, %v6944_v8  ;;  %v6947_v35 = vmul.f32 %v11854_v50, %v6541_v32  ;;  %v6543_v26 = vpop.f32.mrb[99].mxu0 }
 0x898   : > { %v7710_v38 = vmax.f32 %v7335_v47, 0.0  ;;  %v7338_v44 = vadd.f32 %v11860_v31, %v6947_v35 }
 0x89a   : > { %v8116_v0 = vmax.f32 %v8114_v17, %v7710_v38  ;;  %v7713_v49 = vmax.f32 %v7338_v44, 0.0 }
 0x89b   : > { %v6546_v23 = vpop.f32.mrb[100].mxu0 }
 0x89c   : > { %v8117_v60 = vmax.f32 %v8115_v43, %v7713_v49  ;;  %v6950_v33 = vmul.f32 %v11854_v50, %v6546_v23  ;;  %v6548_v52 = vpop.f32.mrb[101].mxu0 }
 0x89d   : > { %v6549_v15 = vpop.f32.mrb[102].mxu0 }
 0x89e   : > { %v7341_v53 = vadd.f32 %v11860_v31, %v6950_v33  ;;  %v6953_v6 = vmul.f32 %v11854_v50, %v6549_v15  ;;  %v6551_v51 = vpop.f32.mrb[103].mxu0  ;;  %v9227_v33 = vmov 1966171168  }
 0x89f   : > { %v8140_v52 = vunpack.c.l.s4 %v9227_v33 }
 0x8a0   : > { %v7716_v13 = vmax.f32 %v7341_v53, 0.0  ;;  %v7344_v41 = vadd.f32 %v11860_v31, %v6953_v6 }
 0x8a1   : > { %v8141_v6 = vunpack.c.0.s8 %v8140_v52 }
 0x8a2   : > { %v8118_v57 = vmax.f32 %v8116_v0, %v7716_v13  ;;  %v7719_v55 = vmax.f32 %v7344_v41, 0.0 }
 0x8a3   : > { %v6554_v3 = vpop.f32.mrb[104].mxu0  ;;  %v8144_v13 = vsub.s32 %v8141_v6, %v12466_v16 }
 0x8a4   : > { %v8119_v37 = vmax.f32 %v8117_v60, %v7719_v55  ;;  %v6956_v24 = vmul.f32 %v11854_v50, %v6554_v3  ;;  %v6556_v36 = vpop.f32.mrb[105].mxu0  ;;  %v12533_v3 = vlaneseq }
 0x8a5   : > { %v6557_v7 = vpop.f32.mrb[106].mxu0  ;;  %v8145_v41 = vrot.slane %v8138_v45, %v8144_v13 }
 0x8a6   : > { %v7347_v2 = vadd.f32 %v11860_v31, %v6956_v24  ;;  %v6959_v59 = vmul.f32 %v11854_v50, %v6557_v7  ;;  %v6559_v5 = vpop.f32.mrb[107].mxu0  ;;  %vm8164_vm3 = vcmp.lt.s32.totalorder %v12533_v3, 384 }
 0x8a8   : > { %v7722_v14 = vmax.f32 %v7347_v2, 0.0  ;;  %v7350_v10 = vadd.f32 %v11860_v31, %v6959_v59 }
 0x8aa   : > { %v8120_v30 = vmax.f32 %v8118_v57, %v7722_v14  ;;  %v7725_v40 = vmax.f32 %v7350_v10, 0.0 }
 0x8ab   : > { %v6562_v34 = vpop.f32.mrb[108].mxu0 }
 0x8ac   : > { %v8121_v58 = vmax.f32 %v8119_v37, %v7725_v40  ;;  %v6962_v29 = vmul.f32 %v11854_v50, %v6562_v34  ;;  %v6564_v20 = vpop.f32.mrb[109].mxu0 }
 0x8ad   : > { %v6565_v63 = vpop.f32.mrb[110].mxu0 }
 0x8ae   : > { %v7353_v27 = vadd.f32 %v11860_v31, %v6962_v29  ;;  %v6965_v56 = vmul.f32 %v11854_v50, %v6565_v63  ;;  %v6567_v18 = vpop.f32.mrb[111].mxu0 }
 0x8b0   : > { %v7728_v28 = vmax.f32 %v7353_v27, 0.0  ;;  %v7356_v22 = vadd.f32 %v11860_v31, %v6965_v56 }
 0x8b2   : > { %v8122_v61 = vmax.f32 %v8120_v30, %v7728_v28  ;;  %v7731_v25 = vmax.f32 %v7356_v22, 0.0 }
 0x8b3   : > { %v6570_v4 = vpop.f32.mrb[112].mxu0 }
 0x8b4   : > { %v8123_v21 = vmax.f32 %v8121_v58, %v7731_v25  ;;  %v6968_v54 = vmul.f32 %v11854_v50, %v6570_v4  ;;  %v6572_v42 = vpop.f32.mrb[113].mxu0 }
 0x8b5   : > { %v6573_v62 = vpop.f32.mrb[114].mxu0 }
 0x8b6   : > { %v7359_v19 = vadd.f32 %v11860_v31, %v6968_v54  ;;  %v6971_v9 = vmul.f32 %v11854_v50, %v6573_v62  ;;  %v6575_v12 = vpop.f32.mrb[115].mxu0 }
 0x8b8   : > { %v7734_v17 = vmax.f32 %v7359_v19, 0.0  ;;  %v7362_v48 = vadd.f32 %v11860_v31, %v6971_v9 }
 0x8ba   : > { %v8124_v39 = vmax.f32 %v8122_v61, %v7734_v17  ;;  %v7737_v43 = vmax.f32 %v7362_v48, 0.0 }
 0x8bb   : > { %v6578_v8 = vpop.f32.mrb[116].mxu0 }
 0x8bc   : > { %v8125_v11 = vmax.f32 %v8123_v21, %v7737_v43  ;;  %v6974_v32 = vmul.f32 %v11854_v50, %v6578_v8  ;;  %v6580_v47 = vpop.f32.mrb[117].mxu0 }
 0x8bd   : > { %v6581_v35 = vpop.f32.mrb[118].mxu0 }
 0x8be   : > { %v7365_v26 = vadd.f32 %v11860_v31, %v6974_v32  ;;  %v6582_v38 = vpop.f32.mrb[119].mxu0 }
 0x8c0   : > { %v7740_v44 = vmax.f32 %v7365_v26, 0.0 }
 0x8c2   : > { %v8126_v0 = vsel %vm7863_vm2, %v7740_v44, -inf }
 0x8c3   : > { %v8127_v49 = vmax.f32 %v8124_v39, %v8126_v0 }
 0x8c5   : > { %v8128_v23 = vmax.f32 %v8127_v49, %v8125_v11 }
 0x8c7   : > { %v8129_v60 = vrot.slane %v8128_v23, 4 }
 0x8c9   : > { %v8130_v15 = vmax.f32 %v8128_v23, %v8129_v60 }
 0x8cb   : > { %v8131_v53 = vrot.slane %v8130_v15, 2 }
 0x8cd   : > { %v8132_v51 = vmax.f32 %v8130_v15, %v8131_v53 }
 0x8cf   : > { %v8133_v50 = vrot.slane %v8132_v51, 1 }
 0x8d1   : > { %v8134_v31 = vmax.f32 %v8132_v51, %v8133_v50 }
 0x8d3   : > { %v8152_v57 = vrot.slane %v8134_v31, %v8144_v13 }
 0x8d5   : > { %v8153_v55 = vcombine.low %v8145_v41, %v8152_v57 }
 0x8d7   : > { %v8160_v37 = vrot.slane %v8153_v55, %v8144_v13 }
 0x8d9   : > { %8166 = vst.msk [vmem:[%s217_s15] sm:$0x7] %vm8164_vm3, %v8160_v37 }
 0x8da   : > { %9173 = shalt.err (!%p9170_p3)
}
 0x8db   : > { %s9174_s7 = scalar_lea.hbm %s12199_s25, 48  ;;  %s9178_s11 = scalar_lea.hbm %s12246_s5, 96 }
 0x8dc   : > { %p9175_p4 = scmp.ne.s32.totalorder %s12199_s25, %s9174_s7  ;;  %p9179_p9 = scmp.lt.u32.totalorder %s12199_s25, %s12246_s5 }
 0x8dd   : > { %p9180_p10 = scmp.lt.u32.totalorder %s9178_s11, %s9174_s7  ;;  %p9182_p12 = scmp.lt.u32.totalorder %s9174_s7, %s12199_s25 }
 0x8de   : > { %p9176_p7 = pnand %p9175_p4, %p9297_p5 }
 0x8df   : > { %p9181_p11 = por %p9180_p10, %p9179_p9 }
 0x8e0   : > { %p9177_p8 = pneg %p9176_p7 }
 0x8e1   : > { %p9183_p13 = por %p9182_p12, %p9181_p11 }
 0x8e3   : > { %p9184_p0 = pnand %p9183_p13, %p9177_p8 }
 0x8e5   : > { %9187 = shalt.err (!%p9184_p0)
}
 0x8e6   : > { %9006 = dma.vmem_to_hbm [thread:$0]  (%p9297_p5), %s12201_s16, 48, %s12199_s25, %s8168_s9  }
 0x8e7 PF: > { %p9012_p1 = scmp.ge.s32.totalorder %s9222_s21, 2  ;;  %s8194_s14 = sand.u32 1, %s9210_s18  }
 0x8e8   : > { %s8195_s15 = scalar_lea.sflag [#allocation5], %s8194_s14 }
 0x8e9   : > { %p9009_p2 = pnand %p9012_p1, %p9301_p6 }
 0x8eb   : > { %9205 = dma.done.wait (!%p9009_p2), %s8195_s15, 48  }
 0x8ec   : > { %9207 = vsyncadd (!%p9009_p2), %s8195_s15, 4294967248  ;;  %p15_p3 = scmp.ge.s32.totalorder %s9284_s24, 4   ;;  %s12534_s18 = smov %s9214_s19 }
 0x8ed   : > { %s12535_s19 = smov %s9218_s20  ;;  %s12536_s20 = smov %s9295_s27 }
 0x8ee   : > { %s12537_s21 = smov %s9284_s24  ;;  %17 = sbr.rel (!%p15_p3) target bundleno = 3 (0x3), region = 79 }
 0x8f5   :  { %8200 = vsyncpa [#allocation5], 1 }
 0x8f6   :  { %8202 = vsyncpa [#allocation5 + $0x1], 1 }

</bundles_post_ra>
